<compile_context>
chip_gen: v5e
topology: v5e:2x2
jax: 0.10.0
libtpu: 0.0.40
codegen_flags: <defaults>
</compile_context>

<pallas_src>
import functools

import jax
import jax.numpy as jnp
from jax.experimental import pallas as pl
from jax.experimental.pallas import tpu as pltpu


_LANE = 128  # conv output channels are zero-padded to a full lane width


# ---------------------------------------------------------------------------
# Conv layer: implicit-GEMM kernel (relu(conv(x, w, stride, VALID) + b))
# ---------------------------------------------------------------------------
def _conv_kernel(x_ref, w_ref, b_ref, o_ref, *, s, kh, kw, oh, ow, cin, cp):
    # x_ref : (s*s, Hp, Wp, Cin)  bf16   stride-phase decomposed input image
    # w_ref : (kh*kw, Cin, Cp)    bf16   per-tap weights (Cout padded to Cp)
    # b_ref : (1, Cp)             f32
    # o_ref : (1, oh*ow, Cp)      bf16
    m = kh // s
    acc = jnp.zeros((oh * ow, cp), jnp.float32)
    for ri in range(s):
        for rj in range(s):
            xp = x_ref[ri * s + rj]                    # (Hp, Wp, Cin) in VMEM
            for qi in range(m):
                for qj in range(m):
                    patch = xp[qi:qi + oh, qj:qj + ow, :]   # contiguous slice
                    patch = patch.reshape(oh * ow, cin)
                    tap = (s * qi + ri) * kw + (s * qj + rj)
                    acc = acc + jnp.dot(patch, w_ref[tap],
                                        preferred_element_type=jnp.float32)
    acc = acc + b_ref[...]
    o_ref[0] = jnp.maximum(acc, 0.0).astype(o_ref.dtype)


def _conv_layer(x_nhwc, w_hwio, b, stride):
    """relu(conv2d_valid(x, w, stride) + b).  Returns NHWC bf16 activations."""
    bsz, h, w, cin = x_nhwc.shape
    kh, kw, cin2, cout = w_hwio.shape
    assert cin == cin2 and kh == kw
    assert kh % stride == 0 and h % stride == 0 and w % stride == 0
    s = stride
    hp, wp = h // s, w // s
    oh, ow = (h - kh) // s + 1, (w - kw) // s + 1
    cp = _LANE * pl.cdiv(cout, _LANE)          # lane-dense padded out channels

    # Stride-phase decomposition (pure layout change, same number of bytes):
    #   xph[b*s*s + ri*s + rj, p, q, c] == x[b, s*p + ri, s*q + rj, c]
    xph = x_nhwc.astype(jnp.bfloat16)
    xph = xph.reshape(bsz, hp, s, wp, s, cin)
    xph = xph.transpose(0, 2, 4, 1, 3, 5).reshape(bsz * s * s, hp, wp, cin)

    # bf16 per-tap weights, zero-padded to a lane-dense Cout; zero bias pad.
    wt = jnp.pad(w_hwio.astype(jnp.bfloat16).reshape(kh * kw, cin, cout),
                 ((0, 0), (0, 0), (0, cp - cout)))
    bt = jnp.pad(b.astype(jnp.float32), (0, cp - cout)).reshape(1, cp)

    kernel = functools.partial(_conv_kernel, s=s, kh=kh, kw=kw,
                               oh=oh, ow=ow, cin=cin, cp=cp)
    cost = pl.CostEstimate(
        flops=2 * bsz * oh * ow * kh * kw * cin * cp,
        transcendentals=0,
        bytes_accessed=2 * (xph.size + wt.size + bsz * oh * ow * cp) + 4 * cp)

    out = pl.pallas_call(
        kernel,
        out_shape=jax.ShapeDtypeStruct((bsz, oh * ow, cp), jnp.bfloat16),
        grid=(bsz,),
        in_specs=[
            pl.BlockSpec((s * s, hp, wp, cin), lambda bi: (bi, 0, 0, 0)),
            pl.BlockSpec((kh * kw, cin, cp), lambda bi: (0, 0, 0)),  # resident
            pl.BlockSpec((1, cp), lambda bi: (0, 0)),                # resident
        ],
        out_specs=pl.BlockSpec((1, oh * ow, cp), lambda bi: (bi, 0, 0)),
        compiler_params=pltpu.CompilerParams(
            dimension_semantics=("parallel",)),   # batch shards across TCs (v7x)
        cost_estimate=cost,
    )(xph, wt, bt)

    # Drop the lane padding (padded channels are exactly zero) -> real Cout.
    # This slice fuses into the next layer's layout transform in XLA.
    return out.reshape(bsz, oh, ow, cp)[..., :cout]


# ---------------------------------------------------------------------------
# FC layer: relu(x @ w + b), activation block resident, weight streamed over N
# ---------------------------------------------------------------------------
def _fc_kernel(x_ref, w_ref, b_ref, o_ref):
    acc = jnp.dot(x_ref[...], w_ref[...], preferred_element_type=jnp.float32)
    o_ref[...] = jnp.maximum(acc + b_ref[...], 0.0).astype(o_ref.dtype)


def _fc_relu(x, w, b):
    m, k = x.shape
    k2, n = w.shape
    assert k == k2 and b.shape == (n,)
    # >=2 parallel grid steps over N (v7x megacore); x (tiny) stays resident,
    # the larger bf16 weight streams one (K, tn) tile per step.
    tn = 256 if (n % 256 == 0 and n >= 512) else n
    grid = (n // tn,)
    xb = x.astype(jnp.bfloat16)
    wb = w.astype(jnp.bfloat16)
    b2 = b.astype(jnp.float32).reshape(1, n)
    cost = pl.CostEstimate(flops=2 * m * k * n, transcendentals=0,
                           bytes_accessed=2 * (m * k + k * n) + 4 * (m * n + n))
    return pl.pallas_call(
        _fc_kernel,
        out_shape=jax.ShapeDtypeStruct((m, n), jnp.float32),
        grid=grid,
        in_specs=[
            pl.BlockSpec((m, k), lambda j: (0, 0)),    # activations resident
            pl.BlockSpec((k, tn), lambda j: (0, j)),   # weight streams over N
            pl.BlockSpec((1, tn), lambda j: (0, j)),
        ],
        out_specs=pl.BlockSpec((m, tn), lambda j: (0, j)),
        compiler_params=pltpu.CompilerParams(dimension_semantics=("parallel",)),
        cost_estimate=cost,
    )(xb, wb, b2)


# ---------------------------------------------------------------------------
# Forward passes
# ---------------------------------------------------------------------------
def nature_conv_forward(params, x):
    """Pallas forward.  x: (B, C, H, W) (NCHW, like the PyTorch module)."""
    x = jnp.transpose(x, (0, 2, 3, 1))                 # NHWC: channels on lanes
    x = _conv_layer(x, params["w1"], params["b1"], 4)
    x = _conv_layer(x, params["w2"], params["b2"], 2)
    x = _conv_layer(x, params["w3"], params["b3"], 1)
    flat = x.reshape(x.shape[0], -1)                   # NHWC (H, W, C) flatten
    return _fc_relu(flat, params["w4"], params["b4"])


def nature_conv_reference(params, x):
    """Pure-JAX f32 reference (lax conv, HIGHEST precision)."""
    x = jnp.transpose(x, (0, 2, 3, 1)).astype(jnp.float32)

    def conv(x, w, b, s):
        y = jax.lax.conv_general_dilated(
            x, w, window_strides=(s, s), padding="VALID",
            dimension_numbers=("NHWC", "HWIO", "NHWC"),
            precision=jax.lax.Precision.HIGHEST)
        return jnp.maximum(y + b, 0.0)

    x = conv(x, params["w1"], params["b1"], 4)
    x = conv(x, params["w2"], params["b2"], 2)
    x = conv(x, params["w3"], params["b3"], 1)
    flat = x.reshape(x.shape[0], -1)
    y = jnp.dot(flat, params["w4"],
                precision=jax.lax.Precision.HIGHEST) + params["b4"]
    return jnp.maximum(y, 0.0)


def _conv_out_dim(n, k, s):
    return (n - k) // s + 1


class NatureConvPallas:
    """Mirrors torch NatureConv (feature_dim=512); see layout notes above."""

    def __init__(self, CHW_shape, key, dtype=jnp.float32):
        c, h, w = CHW_shape
        self.feature_dim = 512
        h1, w1 = _conv_out_dim(h, 8, 4), _conv_out_dim(w, 8, 4)
        h2, w2 = _conv_out_dim(h1, 4, 2), _conv_out_dim(w1, 4, 2)
        h3, w3 = _conv_out_dim(h2, 3, 1), _conv_out_dim(w2, 3, 1)
        conv_out = h3 * w3 * 64                        # same as _get_conv_out

        ks = jax.random.split(key, 8)

        def _w(k, shape, fan_in):
            # layer_init uses orthogonal(sqrt(2)) / zero bias originally; the
            # init choice does not affect the forward semantics being tested.
            return ((2.0 / fan_in) ** 0.5) * jax.random.normal(k, shape, dtype)

        def _b(k, n):
            return 0.01 * jax.random.normal(k, (n,), dtype)

        self.params = {
            "w1": _w(ks[0], (8, 8, c, 32), 8 * 8 * c),   "b1": _b(ks[1], 32),
            "w2": _w(ks[2], (4, 4, 32, 64), 4 * 4 * 32), "b2": _b(ks[3], 64),
            "w3": _w(ks[4], (3, 3, 64, 64), 3 * 3 * 64), "b3": _b(ks[5], 64),
            "w4": _w(ks[6], (conv_out, 512), conv_out),  "b4": _b(ks[7], 512),
        }
        self._fwd = jax.jit(nature_conv_forward)

    def __call__(self, x):
        return self._fwd(self.params, x)

    def reference(self, x):
        return nature_conv_reference(self.params, x)


if __name__ == "__main__":
    key = jax.random.PRNGKey(0)
    k_params, k_x = jax.random.split(key)

    # Smallest square input supported by the 8/4 -> 4/2 -> 3/1 conv stack.
    B, C, H, W = 2, 4, 36, 36
    x = jax.random.normal(k_x, (B, C, H, W), dtype=jnp.float32)

    model = NatureConvPallas((C, H, W), k_params)
    y = jax.block_until_ready(model(x))
    y_ref = jax.block_until_ready(model.reference(x))

    assert y.shape == (B, model.feature_dim), y.shape
    assert y.dtype == jnp.float32
    rel_err = float(jnp.max(jnp.abs(y - y_ref))) / (float(jnp.max(jnp.abs(y_ref))) + 1e-6)
    assert rel_err < 5e-2, f"Pallas vs reference mismatch: rel_err={rel_err}"
    print("KERNEL_OK")
</pallas_src>

<mosaic_0001>
module attributes {stable_mosaic.version = 11 : i64} {
  func.func @_conv_kernel(%arg0: i32, %arg1: memref<16x9x9x4xbf16, #tpu.memory_space<vmem>>, %arg2: memref<64x4x128xbf16, #tpu.memory_space<vmem>>, %arg3: memref<1x128xf32, #tpu.memory_space<vmem>>, %arg4: memref<1x64x128xbf16, #tpu.memory_space<vmem>>) attributes {dimension_semantics = [#tpu.dimension_semantics<parallel>], iteration_bounds = array<i64: 2>, scalar_prefetch = 0 : i64, scratch_operands = 0 : i64, tpu.core_type = #tpu.core_type<tc>, window_params = [{transform_indices = @transform_0, window_bounds = array<i64: 16, 9, 9, 4>}, {pipeline_mode = #tpu.pipeline_mode<synchronous>, transform_indices = @transform_1, window_bounds = array<i64: 64, 4, 128>}, {pipeline_mode = #tpu.pipeline_mode<synchronous>, transform_indices = @transform_2, window_bounds = array<i64: 1, 128>}, {transform_indices = @transform_3, window_bounds = array<i64: 1, 64, 128>}]} {
    %cst = arith.constant 0.000000e+00 : f32
    %0 = vector.broadcast %cst : f32 to vector<64x128xf32>
    %c0 = arith.constant 0 : index
    %c0_0 = arith.constant 0 : index
    %c0_1 = arith.constant 0 : index
    %c0_2 = arith.constant 0 : index
    %1 = vector.load %arg1[%c0, %c0_0, %c0_1, %c0_2] : memref<16x9x9x4xbf16, #tpu.memory_space<vmem>>, vector<1x9x9x4xbf16>
    %2 = vector.shape_cast %1 : vector<1x9x9x4xbf16> to vector<9x9x4xbf16>
    %3 = vector.extract_strided_slice %2 {offsets = [0, 0, 0], sizes = [8, 8, 4], strides = [1, 1, 1]} : vector<9x9x4xbf16> to vector<8x8x4xbf16>
    %4 = vector.shape_cast %3 : vector<8x8x4xbf16> to vector<64x4xbf16>
    %c0_3 = arith.constant 0 : index
    %c0_4 = arith.constant 0 : index
    %c0_5 = arith.constant 0 : index
    %5 = vector.load %arg2[%c0_3, %c0_4, %c0_5] : memref<64x4x128xbf16, #tpu.memory_space<vmem>>, vector<1x4x128xbf16>
    %6 = vector.shape_cast %5 : vector<1x4x128xbf16> to vector<4x128xbf16>
    %cst_6 = arith.constant dense<0.000000e+00> : vector<64x128xf32>
    %7 = tpu.matmul %4, %6, %cst_6 {dimension_numbers = #tpu.dot_dimension_numbers<[1], [0], [0], [1], [0, 0, 1, 1], [], []>} : vector<64x4xbf16>, vector<4x128xbf16>, vector<64x128xf32> -> vector<64x128xf32>
    %8 = arith.addf %0, %7 : vector<64x128xf32>
    %9 = vector.extract_strided_slice %2 {offsets = [0, 1, 0], sizes = [8, 8, 4], strides = [1, 1, 1]} : vector<9x9x4xbf16> to vector<8x8x4xbf16>
    %10 = vector.shape_cast %9 : vector<8x8x4xbf16> to vector<64x4xbf16>
    %c4 = arith.constant 4 : index
    %c0_7 = arith.constant 0 : index
    %c0_8 = arith.constant 0 : index
    %11 = vector.load %arg2[%c4, %c0_7, %c0_8] : memref<64x4x128xbf16, #tpu.memory_space<vmem>>, vector<1x4x128xbf16>
    %12 = vector.shape_cast %11 : vector<1x4x128xbf16> to vector<4x128xbf16>
    %cst_9 = arith.constant dense<0.000000e+00> : vector<64x128xf32>
    %13 = tpu.matmul %10, %12, %cst_9 {dimension_numbers = #tpu.dot_dimension_numbers<[1], [0], [0], [1], [0, 0, 1, 1], [], []>} : vector<64x4xbf16>, vector<4x128xbf16>, vector<64x128xf32> -> vector<64x128xf32>
    %14 = arith.addf %8, %13 : vector<64x128xf32>
    %15 = vector.extract_strided_slice %2 {offsets = [1, 0, 0], sizes = [8, 8, 4], strides = [1, 1, 1]} : vector<9x9x4xbf16> to vector<8x8x4xbf16>
    %16 = vector.shape_cast %15 : vector<8x8x4xbf16> to vector<64x4xbf16>
    %c32 = arith.constant 32 : index
    %c0_10 = arith.constant 0 : index
    %c0_11 = arith.constant 0 : index
    %17 = vector.load %arg2[%c32, %c0_10, %c0_11] : memref<64x4x128xbf16, #tpu.memory_space<vmem>>, vector<1x4x128xbf16>
    %18 = vector.shape_cast %17 : vector<1x4x128xbf16> to vector<4x128xbf16>
    %cst_12 = arith.constant dense<0.000000e+00> : vector<64x128xf32>
    %19 = tpu.matmul %16, %18, %cst_12 {dimension_numbers = #tpu.dot_dimension_numbers<[1], [0], [0], [1], [0, 0, 1, 1], [], []>} : vector<64x4xbf16>, vector<4x128xbf16>, vector<64x128xf32> -> vector<64x128xf32>
    %20 = arith.addf %14, %19 : vector<64x128xf32>
    %21 = vector.extract_strided_slice %2 {offsets = [1, 1, 0], sizes = [8, 8, 4], strides = [1, 1, 1]} : vector<9x9x4xbf16> to vector<8x8x4xbf16>
    %22 = vector.shape_cast %21 : vector<8x8x4xbf16> to vector<64x4xbf16>
    %c36 = arith.constant 36 : index
    %c0_13 = arith.constant 0 : index
    %c0_14 = arith.constant 0 : index
    %23 = vector.load %arg2[%c36, %c0_13, %c0_14] : memref<64x4x128xbf16, #tpu.memory_space<vmem>>, vector<1x4x128xbf16>
    %24 = vector.shape_cast %23 : vector<1x4x128xbf16> to vector<4x128xbf16>
    %cst_15 = arith.constant dense<0.000000e+00> : vector<64x128xf32>
    %25 = tpu.matmul %22, %24, %cst_15 {dimension_numbers = #tpu.dot_dimension_numbers<[1], [0], [0], [1], [0, 0, 1, 1], [], []>} : vector<64x4xbf16>, vector<4x128xbf16>, vector<64x128xf32> -> vector<64x128xf32>
    %26 = arith.addf %20, %25 : vector<64x128xf32>
    %c1 = arith.constant 1 : index
    %c0_16 = arith.constant 0 : index
    %c0_17 = arith.constant 0 : index
    %c0_18 = arith.constant 0 : index
    %27 = vector.load %arg1[%c1, %c0_16, %c0_17, %c0_18] : memref<16x9x9x4xbf16, #tpu.memory_space<vmem>>, vector<1x9x9x4xbf16>
    %28 = vector.shape_cast %27 : vector<1x9x9x4xbf16> to vector<9x9x4xbf16>
    %29 = vector.extract_strided_slice %28 {offsets = [0, 0, 0], sizes = [8, 8, 4], strides = [1, 1, 1]} : vector<9x9x4xbf16> to vector<8x8x4xbf16>
    %30 = vector.shape_cast %29 : vector<8x8x4xbf16> to vector<64x4xbf16>
    %c1_19 = arith.constant 1 : index
    %c0_20 = arith.constant 0 : index
    %c0_21 = arith.constant 0 : index
    %31 = vector.load %arg2[%c1_19, %c0_20, %c0_21] : memref<64x4x128xbf16, #tpu.memory_space<vmem>>, vector<1x4x128xbf16>
    %32 = vector.shape_cast %31 : vector<1x4x128xbf16> to vector<4x128xbf16>
    %cst_22 = arith.constant dense<0.000000e+00> : vector<64x128xf32>
    %33 = tpu.matmul %30, %32, %cst_22 {dimension_numbers = #tpu.dot_dimension_numbers<[1], [0], [0], [1], [0, 0, 1, 1], [], []>} : vector<64x4xbf16>, vector<4x128xbf16>, vector<64x128xf32> -> vector<64x128xf32>
    %34 = arith.addf %26, %33 : vector<64x128xf32>
    %35 = vector.extract_strided_slice %28 {offsets = [0, 1, 0], sizes = [8, 8, 4], strides = [1, 1, 1]} : vector<9x9x4xbf16> to vector<8x8x4xbf16>
    %36 = vector.shape_cast %35 : vector<8x8x4xbf16> to vector<64x4xbf16>
    %c5 = arith.constant 5 : index
    %c0_23 = arith.constant 0 : index
    %c0_24 = arith.constant 0 : index
    %37 = vector.load %arg2[%c5, %c0_23, %c0_24] : memref<64x4x128xbf16, #tpu.memory_space<vmem>>, vector<1x4x128xbf16>
    %38 = vector.shape_cast %37 : vector<1x4x128xbf16> to vector<4x128xbf16>
    %cst_25 = arith.constant dense<0.000000e+00> : vector<64x128xf32>
    %39 = tpu.matmul %36, %38, %cst_25 {dimension_numbers = #tpu.dot_dimension_numbers<[1], [0], [0], [1], [0, 0, 1, 1], [], []>} : vector<64x4xbf16>, vector<4x128xbf16>, vector<64x128xf32> -> vector<64x128xf32>
    %40 = arith.addf %34, %39 : vector<64x128xf32>
    %41 = vector.extract_strided_slice %28 {offsets = [1, 0, 0], sizes = [8, 8, 4], strides = [1, 1, 1]} : vector<9x9x4xbf16> to vector<8x8x4xbf16>
    %42 = vector.shape_cast %41 : vector<8x8x4xbf16> to vector<64x4xbf16>
    %c33 = arith.constant 33 : index
    %c0_26 = arith.constant 0 : index
    %c0_27 = arith.constant 0 : index
    %43 = vector.load %arg2[%c33, %c0_26, %c0_27] : memref<64x4x128xbf16, #tpu.memory_space<vmem>>, vector<1x4x128xbf16>
    %44 = vector.shape_cast %43 : vector<1x4x128xbf16> to vector<4x128xbf16>
    %cst_28 = arith.constant dense<0.000000e+00> : vector<64x128xf32>
    %45 = tpu.matmul %42, %44, %cst_28 {dimension_numbers = #tpu.dot_dimension_numbers<[1], [0], [0], [1], [0, 0, 1, 1], [], []>} : vector<64x4xbf16>, vector<4x128xbf16>, vector<64x128xf32> -> vector<64x128xf32>
    %46 = arith.addf %40, %45 : vector<64x128xf32>
    %47 = vector.extract_strided_slice %28 {offsets = [1, 1, 0], sizes = [8, 8, 4], strides = [1, 1, 1]} : vector<9x9x4xbf16> to vector<8x8x4xbf16>
    %48 = vector.shape_cast %47 : vector<8x8x4xbf16> to vector<64x4xbf16>
    %c37 = arith.constant 37 : index
    %c0_29 = arith.constant 0 : index
    %c0_30 = arith.constant 0 : index
    %49 = vector.load %arg2[%c37, %c0_29, %c0_30] : memref<64x4x128xbf16, #tpu.memory_space<vmem>>, vector<1x4x128xbf16>
    %50 = vector.shape_cast %49 : vector<1x4x128xbf16> to vector<4x128xbf16>
    %cst_31 = arith.constant dense<0.000000e+00> : vector<64x128xf32>
    %51 = tpu.matmul %48, %50, %cst_31 {dimension_numbers = #tpu.dot_dimension_numbers<[1], [0], [0], [1], [0, 0, 1, 1], [], []>} : vector<64x4xbf16>, vector<4x128xbf16>, vector<64x128xf32> -> vector<64x128xf32>
    %52 = arith.addf %46, %51 : vector<64x128xf32>
    %c2 = arith.constant 2 : index
    %c0_32 = arith.constant 0 : index
    %c0_33 = arith.constant 0 : index
    %c0_34 = arith.constant 0 : index
    %53 = vector.load %arg1[%c2, %c0_32, %c0_33, %c0_34] : memref<16x9x9x4xbf16, #tpu.memory_space<vmem>>, vector<1x9x9x4xbf16>
    %54 = vector.shape_cast %53 : vector<1x9x9x4xbf16> to vector<9x9x4xbf16>
    %55 = vector.extract_strided_slice %54 {offsets = [0, 0, 0], sizes = [8, 8, 4], strides = [1, 1, 1]} : vector<9x9x4xbf16> to vector<8x8x4xbf16>
    %56 = vector.shape_cast %55 : vector<8x8x4xbf16> to vector<64x4xbf16>
    %c2_35 = arith.constant 2 : index
    %c0_36 = arith.constant 0 : index
    %c0_37 = arith.constant 0 : index
    %57 = vector.load %arg2[%c2_35, %c0_36, %c0_37] : memref<64x4x128xbf16, #tpu.memory_space<vmem>>, vector<1x4x128xbf16>
    %58 = vector.shape_cast %57 : vector<1x4x128xbf16> to vector<4x128xbf16>
    %cst_38 = arith.constant dense<0.000000e+00> : vector<64x128xf32>
    %59 = tpu.matmul %56, %58, %cst_38 {dimension_numbers = #tpu.dot_dimension_numbers<[1], [0], [0], [1], [0, 0, 1, 1], [], []>} : vector<64x4xbf16>, vector<4x128xbf16>, vector<64x128xf32> -> vector<64x128xf32>
    %60 = arith.addf %52, %59 : vector<64x128xf32>
    %61 = vector.extract_strided_slice %54 {offsets = [0, 1, 0], sizes = [8, 8, 4], strides = [1, 1, 1]} : vector<9x9x4xbf16> to vector<8x8x4xbf16>
    %62 = vector.shape_cast %61 : vector<8x8x4xbf16> to vector<64x4xbf16>
    %c6 = arith.constant 6 : index
    %c0_39 = arith.constant 0 : index
    %c0_40 = arith.constant 0 : index
    %63 = vector.load %arg2[%c6, %c0_39, %c0_40] : memref<64x4x128xbf16, #tpu.memory_space<vmem>>, vector<1x4x128xbf16>
    %64 = vector.shape_cast %63 : vector<1x4x128xbf16> to vector<4x128xbf16>
    %cst_41 = arith.constant dense<0.000000e+00> : vector<64x128xf32>
    %65 = tpu.matmul %62, %64, %cst_41 {dimension_numbers = #tpu.dot_dimension_numbers<[1], [0], [0], [1], [0, 0, 1, 1], [], []>} : vector<64x4xbf16>, vector<4x128xbf16>, vector<64x128xf32> -> vector<64x128xf32>
    %66 = arith.addf %60, %65 : vector<64x128xf32>
    %67 = vector.extract_strided_slice %54 {offsets = [1, 0, 0], sizes = [8, 8, 4], strides = [1, 1, 1]} : vector<9x9x4xbf16> to vector<8x8x4xbf16>
    %68 = vector.shape_cast %67 : vector<8x8x4xbf16> to vector<64x4xbf16>
    %c34 = arith.constant 34 : index
    %c0_42 = arith.constant 0 : index
    %c0_43 = arith.constant 0 : index
    %69 = vector.load %arg2[%c34, %c0_42, %c0_43] : memref<64x4x128xbf16, #tpu.memory_space<vmem>>, vector<1x4x128xbf16>
    %70 = vector.shape_cast %69 : vector<1x4x128xbf16> to vector<4x128xbf16>
    %cst_44 = arith.constant dense<0.000000e+00> : vector<64x128xf32>
    %71 = tpu.matmul %68, %70, %cst_44 {dimension_numbers = #tpu.dot_dimension_numbers<[1], [0], [0], [1], [0, 0, 1, 1], [], []>} : vector<64x4xbf16>, vector<4x128xbf16>, vector<64x128xf32> -> vector<64x128xf32>
    %72 = arith.addf %66, %71 : vector<64x128xf32>
    %73 = vector.extract_strided_slice %54 {offsets = [1, 1, 0], sizes = [8, 8, 4], strides = [1, 1, 1]} : vector<9x9x4xbf16> to vector<8x8x4xbf16>
    %74 = vector.shape_cast %73 : vector<8x8x4xbf16> to vector<64x4xbf16>
    %c38 = arith.constant 38 : index
    %c0_45 = arith.constant 0 : index
    %c0_46 = arith.constant 0 : index
    %75 = vector.load %arg2[%c38, %c0_45, %c0_46] : memref<64x4x128xbf16, #tpu.memory_space<vmem>>, vector<1x4x128xbf16>
    %76 = vector.shape_cast %75 : vector<1x4x128xbf16> to vector<4x128xbf16>
    %cst_47 = arith.constant dense<0.000000e+00> : vector<64x128xf32>
    %77 = tpu.matmul %74, %76, %cst_47 {dimension_numbers = #tpu.dot_dimension_numbers<[1], [0], [0], [1], [0, 0, 1, 1], [], []>} : vector<64x4xbf16>, vector<4x128xbf16>, vector<64x128xf32> -> vector<64x128xf32>
    %78 = arith.addf %72, %77 : vector<64x128xf32>
    %c3 = arith.constant 3 : index
    %c0_48 = arith.constant 0 : index
    %c0_49 = arith.constant 0 : index
    %c0_50 = arith.constant 0 : index
    %79 = vector.load %arg1[%c3, %c0_48, %c0_49, %c0_50] : memref<16x9x9x4xbf16, #tpu.memory_space<vmem>>, vector<1x9x9x4xbf16>
    %80 = vector.shape_cast %79 : vector<1x9x9x4xbf16> to vector<9x9x4xbf16>
    %81 = vector.extract_strided_slice %80 {offsets = [0, 0, 0], sizes = [8, 8, 4], strides = [1, 1, 1]} : vector<9x9x4xbf16> to vector<8x8x4xbf16>
    %82 = vector.shape_cast %81 : vector<8x8x4xbf16> to vector<64x4xbf16>
    %c3_51 = arith.constant 3 : index
    %c0_52 = arith.constant 0 : index
    %c0_53 = arith.constant 0 : index
    %83 = vector.load %arg2[%c3_51, %c0_52, %c0_53] : memref<64x4x128xbf16, #tpu.memory_space<vmem>>, vector<1x4x128xbf16>
    %84 = vector.shape_cast %83 : vector<1x4x128xbf16> to vector<4x128xbf16>
    %cst_54 = arith.constant dense<0.000000e+00> : vector<64x128xf32>
    %85 = tpu.matmul %82, %84, %cst_54 {dimension_numbers = #tpu.dot_dimension_numbers<[1], [0], [0], [1], [0, 0, 1, 1], [], []>} : vector<64x4xbf16>, vector<4x128xbf16>, vector<64x128xf32> -> vector<64x128xf32>
    %86 = arith.addf %78, %85 : vector<64x128xf32>
    %87 = vector.extract_strided_slice %80 {offsets = [0, 1, 0], sizes = [8, 8, 4], strides = [1, 1, 1]} : vector<9x9x4xbf16> to vector<8x8x4xbf16>
    %88 = vector.shape_cast %87 : vector<8x8x4xbf16> to vector<64x4xbf16>
    %c7 = arith.constant 7 : index
    %c0_55 = arith.constant 0 : index
    %c0_56 = arith.constant 0 : index
    %89 = vector.load %arg2[%c7, %c0_55, %c0_56] : memref<64x4x128xbf16, #tpu.memory_space<vmem>>, vector<1x4x128xbf16>
    %90 = vector.shape_cast %89 : vector<1x4x128xbf16> to vector<4x128xbf16>
    %cst_57 = arith.constant dense<0.000000e+00> : vector<64x128xf32>
    %91 = tpu.matmul %88, %90, %cst_57 {dimension_numbers = #tpu.dot_dimension_numbers<[1], [0], [0], [1], [0, 0, 1, 1], [], []>} : vector<64x4xbf16>, vector<4x128xbf16>, vector<64x128xf32> -> vector<64x128xf32>
    %92 = arith.addf %86, %91 : vector<64x128xf32>
    %93 = vector.extract_strided_slice %80 {offsets = [1, 0, 0], sizes = [8, 8, 4], strides = [1, 1, 1]} : vector<9x9x4xbf16> to vector<8x8x4xbf16>
    %94 = vector.shape_cast %93 : vector<8x8x4xbf16> to vector<64x4xbf16>
    %c35 = arith.constant 35 : index
    %c0_58 = arith.constant 0 : index
    %c0_59 = arith.constant 0 : index
    %95 = vector.load %arg2[%c35, %c0_58, %c0_59] : memref<64x4x128xbf16, #tpu.memory_space<vmem>>, vector<1x4x128xbf16>
    %96 = vector.shape_cast %95 : vector<1x4x128xbf16> to vector<4x128xbf16>
    %cst_60 = arith.constant dense<0.000000e+00> : vector<64x128xf32>
    %97 = tpu.matmul %94, %96, %cst_60 {dimension_numbers = #tpu.dot_dimension_numbers<[1], [0], [0], [1], [0, 0, 1, 1], [], []>} : vector<64x4xbf16>, vector<4x128xbf16>, vector<64x128xf32> -> vector<64x128xf32>
    %98 = arith.addf %92, %97 : vector<64x128xf32>
    %99 = vector.extract_strided_slice %80 {offsets = [1, 1, 0], sizes = [8, 8, 4], strides = [1, 1, 1]} : vector<9x9x4xbf16> to vector<8x8x4xbf16>
    %100 = vector.shape_cast %99 : vector<8x8x4xbf16> to vector<64x4xbf16>
    %c39 = arith.constant 39 : index
    %c0_61 = arith.constant 0 : index
    %c0_62 = arith.constant 0 : index
    %101 = vector.load %arg2[%c39, %c0_61, %c0_62] : memref<64x4x128xbf16, #tpu.memory_space<vmem>>, vector<1x4x128xbf16>
    %102 = vector.shape_cast %101 : vector<1x4x128xbf16> to vector<4x128xbf16>
    %cst_63 = arith.constant dense<0.000000e+00> : vector<64x128xf32>
    %103 = tpu.matmul %100, %102, %cst_63 {dimension_numbers = #tpu.dot_dimension_numbers<[1], [0], [0], [1], [0, 0, 1, 1], [], []>} : vector<64x4xbf16>, vector<4x128xbf16>, vector<64x128xf32> -> vector<64x128xf32>
    %104 = arith.addf %98, %103 : vector<64x128xf32>
    %c4_64 = arith.constant 4 : index
    %c0_65 = arith.constant 0 : index
    %c0_66 = arith.constant 0 : index
    %c0_67 = arith.constant 0 : index
    %105 = vector.load %arg1[%c4_64, %c0_65, %c0_66, %c0_67] : memref<16x9x9x4xbf16, #tpu.memory_space<vmem>>, vector<1x9x9x4xbf16>
    %106 = vector.shape_cast %105 : vector<1x9x9x4xbf16> to vector<9x9x4xbf16>
    %107 = vector.extract_strided_slice %106 {offsets = [0, 0, 0], sizes = [8, 8, 4], strides = [1, 1, 1]} : vector<9x9x4xbf16> to vector<8x8x4xbf16>
    %108 = vector.shape_cast %107 : vector<8x8x4xbf16> to vector<64x4xbf16>
    %c8 = arith.constant 8 : index
    %c0_68 = arith.constant 0 : index
    %c0_69 = arith.constant 0 : index
    %109 = vector.load %arg2[%c8, %c0_68, %c0_69] : memref<64x4x128xbf16, #tpu.memory_space<vmem>>, vector<1x4x128xbf16>
    %110 = vector.shape_cast %109 : vector<1x4x128xbf16> to vector<4x128xbf16>
    %cst_70 = arith.constant dense<0.000000e+00> : vector<64x128xf32>
    %111 = tpu.matmul %108, %110, %cst_70 {dimension_numbers = #tpu.dot_dimension_numbers<[1], [0], [0], [1], [0, 0, 1, 1], [], []>} : vector<64x4xbf16>, vector<4x128xbf16>, vector<64x128xf32> -> vector<64x128xf32>
    %112 = arith.addf %104, %111 : vector<64x128xf32>
    %113 = vector.extract_strided_slice %106 {offsets = [0, 1, 0], sizes = [8, 8, 4], strides = [1, 1, 1]} : vector<9x9x4xbf16> to vector<8x8x4xbf16>
    %114 = vector.shape_cast %113 : vector<8x8x4xbf16> to vector<64x4xbf16>
    %c12 = arith.constant 12 : index
    %c0_71 = arith.constant 0 : index
    %c0_72 = arith.constant 0 : index
    %115 = vector.load %arg2[%c12, %c0_71, %c0_72] : memref<64x4x128xbf16, #tpu.memory_space<vmem>>, vector<1x4x128xbf16>
    %116 = vector.shape_cast %115 : vector<1x4x128xbf16> to vector<4x128xbf16>
    %cst_73 = arith.constant dense<0.000000e+00> : vector<64x128xf32>
    %117 = tpu.matmul %114, %116, %cst_73 {dimension_numbers = #tpu.dot_dimension_numbers<[1], [0], [0], [1], [0, 0, 1, 1], [], []>} : vector<64x4xbf16>, vector<4x128xbf16>, vector<64x128xf32> -> vector<64x128xf32>
    %118 = arith.addf %112, %117 : vector<64x128xf32>
    %119 = vector.extract_strided_slice %106 {offsets = [1, 0, 0], sizes = [8, 8, 4], strides = [1, 1, 1]} : vector<9x9x4xbf16> to vector<8x8x4xbf16>
    %120 = vector.shape_cast %119 : vector<8x8x4xbf16> to vector<64x4xbf16>
    %c40 = arith.constant 40 : index
    %c0_74 = arith.constant 0 : index
    %c0_75 = arith.constant 0 : index
    %121 = vector.load %arg2[%c40, %c0_74, %c0_75] : memref<64x4x128xbf16, #tpu.memory_space<vmem>>, vector<1x4x128xbf16>
    %122 = vector.shape_cast %121 : vector<1x4x128xbf16> to vector<4x128xbf16>
    %cst_76 = arith.constant dense<0.000000e+00> : vector<64x128xf32>
    %123 = tpu.matmul %120, %122, %cst_76 {dimension_numbers = #tpu.dot_dimension_numbers<[1], [0], [0], [1], [0, 0, 1, 1], [], []>} : vector<64x4xbf16>, vector<4x128xbf16>, vector<64x128xf32> -> vector<64x128xf32>
    %124 = arith.addf %118, %123 : vector<64x128xf32>
    %125 = vector.extract_strided_slice %106 {offsets = [1, 1, 0], sizes = [8, 8, 4], strides = [1, 1, 1]} : vector<9x9x4xbf16> to vector<8x8x4xbf16>
    %126 = vector.shape_cast %125 : vector<8x8x4xbf16> to vector<64x4xbf16>
    %c44 = arith.constant 44 : index
    %c0_77 = arith.constant 0 : index
    %c0_78 = arith.constant 0 : index
    %127 = vector.load %arg2[%c44, %c0_77, %c0_78] : memref<64x4x128xbf16, #tpu.memory_space<vmem>>, vector<1x4x128xbf16>
    %128 = vector.shape_cast %127 : vector<1x4x128xbf16> to vector<4x128xbf16>
    %cst_79 = arith.constant dense<0.000000e+00> : vector<64x128xf32>
    %129 = tpu.matmul %126, %128, %cst_79 {dimension_numbers = #tpu.dot_dimension_numbers<[1], [0], [0], [1], [0, 0, 1, 1], [], []>} : vector<64x4xbf16>, vector<4x128xbf16>, vector<64x128xf32> -> vector<64x128xf32>
    %130 = arith.addf %124, %129 : vector<64x128xf32>
    %c5_80 = arith.constant 5 : index
    %c0_81 = arith.constant 0 : index
    %c0_82 = arith.constant 0 : index
    %c0_83 = arith.constant 0 : index
    %131 = vector.load %arg1[%c5_80, %c0_81, %c0_82, %c0_83] : memref<16x9x9x4xbf16, #tpu.memory_space<vmem>>, vector<1x9x9x4xbf16>
    %132 = vector.shape_cast %131 : vector<1x9x9x4xbf16> to vector<9x9x4xbf16>
    %133 = vector.extract_strided_slice %132 {offsets = [0, 0, 0], sizes = [8, 8, 4], strides = [1, 1, 1]} : vector<9x9x4xbf16> to vector<8x8x4xbf16>
    %134 = vector.shape_cast %133 : vector<8x8x4xbf16> to vector<64x4xbf16>
    %c9 = arith.constant 9 : index
    %c0_84 = arith.constant 0 : index
    %c0_85 = arith.constant 0 : index
    %135 = vector.load %arg2[%c9, %c0_84, %c0_85] : memref<64x4x128xbf16, #tpu.memory_space<vmem>>, vector<1x4x128xbf16>
    %136 = vector.shape_cast %135 : vector<1x4x128xbf16> to vector<4x128xbf16>
    %cst_86 = arith.constant dense<0.000000e+00> : vector<64x128xf32>
    %137 = tpu.matmul %134, %136, %cst_86 {dimension_numbers = #tpu.dot_dimension_numbers<[1], [0], [0], [1], [0, 0, 1, 1], [], []>} : vector<64x4xbf16>, vector<4x128xbf16>, vector<64x128xf32> -> vector<64x128xf32>
    %138 = arith.addf %130, %137 : vector<64x128xf32>
    %139 = vector.extract_strided_slice %132 {offsets = [0, 1, 0], sizes = [8, 8, 4], strides = [1, 1, 1]} : vector<9x9x4xbf16> to vector<8x8x4xbf16>
    %140 = vector.shape_cast %139 : vector<8x8x4xbf16> to vector<64x4xbf16>
    %c13 = arith.constant 13 : index
    %c0_87 = arith.constant 0 : index
    %c0_88 = arith.constant 0 : index
    %141 = vector.load %arg2[%c13, %c0_87, %c0_88] : memref<64x4x128xbf16, #tpu.memory_space<vmem>>, vector<1x4x128xbf16>
    %142 = vector.shape_cast %141 : vector<1x4x128xbf16> to vector<4x128xbf16>
    %cst_89 = arith.constant dense<0.000000e+00> : vector<64x128xf32>
    %143 = tpu.matmul %140, %142, %cst_89 {dimension_numbers = #tpu.dot_dimension_numbers<[1], [0], [0], [1], [0, 0, 1, 1], [], []>} : vector<64x4xbf16>, vector<4x128xbf16>, vector<64x128xf32> -> vector<64x128xf32>
    %144 = arith.addf %138, %143 : vector<64x128xf32>
    %145 = vector.extract_strided_slice %132 {offsets = [1, 0, 0], sizes = [8, 8, 4], strides = [1, 1, 1]} : vector<9x9x4xbf16> to vector<8x8x4xbf16>
    %146 = vector.shape_cast %145 : vector<8x8x4xbf16> to vector<64x4xbf16>
    %c41 = arith.constant 41 : index
    %c0_90 = arith.constant 0 : index
    %c0_91 = arith.constant 0 : index
    %147 = vector.load %arg2[%c41, %c0_90, %c0_91] : memref<64x4x128xbf16, #tpu.memory_space<vmem>>, vector<1x4x128xbf16>
    %148 = vector.shape_cast %147 : vector<1x4x128xbf16> to vector<4x128xbf16>
    %cst_92 = arith.constant dense<0.000000e+00> : vector<64x128xf32>
    %149 = tpu.matmul %146, %148, %cst_92 {dimension_numbers = #tpu.dot_dimension_numbers<[1], [0], [0], [1], [0, 0, 1, 1], [], []>} : vector<64x4xbf16>, vector<4x128xbf16>, vector<64x128xf32> -> vector<64x128xf32>
    %150 = arith.addf %144, %149 : vector<64x128xf32>
    %151 = vector.extract_strided_slice %132 {offsets = [1, 1, 0], sizes = [8, 8, 4], strides = [1, 1, 1]} : vector<9x9x4xbf16> to vector<8x8x4xbf16>
    %152 = vector.shape_cast %151 : vector<8x8x4xbf16> to vector<64x4xbf16>
    %c45 = arith.constant 45 : index
    %c0_93 = arith.constant 0 : index
    %c0_94 = arith.constant 0 : index
    %153 = vector.load %arg2[%c45, %c0_93, %c0_94] : memref<64x4x128xbf16, #tpu.memory_space<vmem>>, vector<1x4x128xbf16>
    %154 = vector.shape_cast %153 : vector<1x4x128xbf16> to vector<4x128xbf16>
    %cst_95 = arith.constant dense<0.000000e+00> : vector<64x128xf32>
    %155 = tpu.matmul %152, %154, %cst_95 {dimension_numbers = #tpu.dot_dimension_numbers<[1], [0], [0], [1], [0, 0, 1, 1], [], []>} : vector<64x4xbf16>, vector<4x128xbf16>, vector<64x128xf32> -> vector<64x128xf32>
    %156 = arith.addf %150, %155 : vector<64x128xf32>
    %c6_96 = arith.constant 6 : index
    %c0_97 = arith.constant 0 : index
    %c0_98 = arith.constant 0 : index
    %c0_99 = arith.constant 0 : index
    %157 = vector.load %arg1[%c6_96, %c0_97, %c0_98, %c0_99] : memref<16x9x9x4xbf16, #tpu.memory_space<vmem>>, vector<1x9x9x4xbf16>
    %158 = vector.shape_cast %157 : vector<1x9x9x4xbf16> to vector<9x9x4xbf16>
    %159 = vector.extract_strided_slice %158 {offsets = [0, 0, 0], sizes = [8, 8, 4], strides = [1, 1, 1]} : vector<9x9x4xbf16> to vector<8x8x4xbf16>
    %160 = vector.shape_cast %159 : vector<8x8x4xbf16> to vector<64x4xbf16>
    %c10 = arith.constant 10 : index
    %c0_100 = arith.constant 0 : index
    %c0_101 = arith.constant 0 : index
    %161 = vector.load %arg2[%c10, %c0_100, %c0_101] : memref<64x4x128xbf16, #tpu.memory_space<vmem>>, vector<1x4x128xbf16>
    %162 = vector.shape_cast %161 : vector<1x4x128xbf16> to vector<4x128xbf16>
    %cst_102 = arith.constant dense<0.000000e+00> : vector<64x128xf32>
    %163 = tpu.matmul %160, %162, %cst_102 {dimension_numbers = #tpu.dot_dimension_numbers<[1], [0], [0], [1], [0, 0, 1, 1], [], []>} : vector<64x4xbf16>, vector<4x128xbf16>, vector<64x128xf32> -> vector<64x128xf32>
    %164 = arith.addf %156, %163 : vector<64x128xf32>
    %165 = vector.extract_strided_slice %158 {offsets = [0, 1, 0], sizes = [8, 8, 4], strides = [1, 1, 1]} : vector<9x9x4xbf16> to vector<8x8x4xbf16>
    %166 = vector.shape_cast %165 : vector<8x8x4xbf16> to vector<64x4xbf16>
    %c14 = arith.constant 14 : index
    %c0_103 = arith.constant 0 : index
    %c0_104 = arith.constant 0 : index
    %167 = vector.load %arg2[%c14, %c0_103, %c0_104] : memref<64x4x128xbf16, #tpu.memory_space<vmem>>, vector<1x4x128xbf16>
    %168 = vector.shape_cast %167 : vector<1x4x128xbf16> to vector<4x128xbf16>
    %cst_105 = arith.constant dense<0.000000e+00> : vector<64x128xf32>
    %169 = tpu.matmul %166, %168, %cst_105 {dimension_numbers = #tpu.dot_dimension_numbers<[1], [0], [0], [1], [0, 0, 1, 1], [], []>} : vector<64x4xbf16>, vector<4x128xbf16>, vector<64x128xf32> -> vector<64x128xf32>
    %170 = arith.addf %164, %169 : vector<64x128xf32>
    %171 = vector.extract_strided_slice %158 {offsets = [1, 0, 0], sizes = [8, 8, 4], strides = [1, 1, 1]} : vector<9x9x4xbf16> to vector<8x8x4xbf16>
    %172 = vector.shape_cast %171 : vector<8x8x4xbf16> to vector<64x4xbf16>
    %c42 = arith.constant 42 : index
    %c0_106 = arith.constant 0 : index
    %c0_107 = arith.constant 0 : index
    %173 = vector.load %arg2[%c42, %c0_106, %c0_107] : memref<64x4x128xbf16, #tpu.memory_space<vmem>>, vector<1x4x128xbf16>
    %174 = vector.shape_cast %173 : vector<1x4x128xbf16> to vector<4x128xbf16>
    %cst_108 = arith.constant dense<0.000000e+00> : vector<64x128xf32>
    %175 = tpu.matmul %172, %174, %cst_108 {dimension_numbers = #tpu.dot_dimension_numbers<[1], [0], [0], [1], [0, 0, 1, 1], [], []>} : vector<64x4xbf16>, vector<4x128xbf16>, vector<64x128xf32> -> vector<64x128xf32>
    %176 = arith.addf %170, %175 : vector<64x128xf32>
    %177 = vector.extract_strided_slice %158 {offsets = [1, 1, 0], sizes = [8, 8, 4], strides = [1, 1, 1]} : vector<9x9x4xbf16> to vector<8x8x4xbf16>
    %178 = vector.shape_cast %177 : vector<8x8x4xbf16> to vector<64x4xbf16>
    %c46 = arith.constant 46 : index
    %c0_109 = arith.constant 0 : index
    %c0_110 = arith.constant 0 : index
    %179 = vector.load %arg2[%c46, %c0_109, %c0_110] : memref<64x4x128xbf16, #tpu.memory_space<vmem>>, vector<1x4x128xbf16>
    %180 = vector.shape_cast %179 : vector<1x4x128xbf16> to vector<4x128xbf16>
    %cst_111 = arith.constant dense<0.000000e+00> : vector<64x128xf32>
    %181 = tpu.matmul %178, %180, %cst_111 {dimension_numbers = #tpu.dot_dimension_numbers<[1], [0], [0], [1], [0, 0, 1, 1], [], []>} : vector<64x4xbf16>, vector<4x128xbf16>, vector<64x128xf32> -> vector<64x128xf32>
    %182 = arith.addf %176, %181 : vector<64x128xf32>
    %c7_112 = arith.constant 7 : index
    %c0_113 = arith.constant 0 : index
    %c0_114 = arith.constant 0 : index
    %c0_115 = arith.constant 0 : index
    %183 = vector.load %arg1[%c7_112, %c0_113, %c0_114, %c0_115] : memref<16x9x9x4xbf16, #tpu.memory_space<vmem>>, vector<1x9x9x4xbf16>
    %184 = vector.shape_cast %183 : vector<1x9x9x4xbf16> to vector<9x9x4xbf16>
    %185 = vector.extract_strided_slice %184 {offsets = [0, 0, 0], sizes = [8, 8, 4], strides = [1, 1, 1]} : vector<9x9x4xbf16> to vector<8x8x4xbf16>
    %186 = vector.shape_cast %185 : vector<8x8x4xbf16> to vector<64x4xbf16>
    %c11 = arith.constant 11 : index
    %c0_116 = arith.constant 0 : index
    %c0_117 = arith.constant 0 : index
    %187 = vector.load %arg2[%c11, %c0_116, %c0_117] : memref<64x4x128xbf16, #tpu.memory_space<vmem>>, vector<1x4x128xbf16>
    %188 = vector.shape_cast %187 : vector<1x4x128xbf16> to vector<4x128xbf16>
    %cst_118 = arith.constant dense<0.000000e+00> : vector<64x128xf32>
    %189 = tpu.matmul %186, %188, %cst_118 {dimension_numbers = #tpu.dot_dimension_numbers<[1], [0], [0], [1], [0, 0, 1, 1], [], []>} : vector<64x4xbf16>, vector<4x128xbf16>, vector<64x128xf32> -> vector<64x128xf32>
    %190 = arith.addf %182, %189 : vector<64x128xf32>
    %191 = vector.extract_strided_slice %184 {offsets = [0, 1, 0], sizes = [8, 8, 4], strides = [1, 1, 1]} : vector<9x9x4xbf16> to vector<8x8x4xbf16>
    %192 = vector.shape_cast %191 : vector<8x8x4xbf16> to vector<64x4xbf16>
    %c15 = arith.constant 15 : index
    %c0_119 = arith.constant 0 : index
    %c0_120 = arith.constant 0 : index
    %193 = vector.load %arg2[%c15, %c0_119, %c0_120] : memref<64x4x128xbf16, #tpu.memory_space<vmem>>, vector<1x4x128xbf16>
    %194 = vector.shape_cast %193 : vector<1x4x128xbf16> to vector<4x128xbf16>
    %cst_121 = arith.constant dense<0.000000e+00> : vector<64x128xf32>
    %195 = tpu.matmul %192, %194, %cst_121 {dimension_numbers = #tpu.dot_dimension_numbers<[1], [0], [0], [1], [0, 0, 1, 1], [], []>} : vector<64x4xbf16>, vector<4x128xbf16>, vector<64x128xf32> -> vector<64x128xf32>
    %196 = arith.addf %190, %195 : vector<64x128xf32>
    %197 = vector.extract_strided_slice %184 {offsets = [1, 0, 0], sizes = [8, 8, 4], strides = [1, 1, 1]} : vector<9x9x4xbf16> to vector<8x8x4xbf16>
    %198 = vector.shape_cast %197 : vector<8x8x4xbf16> to vector<64x4xbf16>
    %c43 = arith.constant 43 : index
    %c0_122 = arith.constant 0 : index
    %c0_123 = arith.constant 0 : index
    %199 = vector.load %arg2[%c43, %c0_122, %c0_123] : memref<64x4x128xbf16, #tpu.memory_space<vmem>>, vector<1x4x128xbf16>
    %200 = vector.shape_cast %199 : vector<1x4x128xbf16> to vector<4x128xbf16>
    %cst_124 = arith.constant dense<0.000000e+00> : vector<64x128xf32>
    %201 = tpu.matmul %198, %200, %cst_124 {dimension_numbers = #tpu.dot_dimension_numbers<[1], [0], [0], [1], [0, 0, 1, 1], [], []>} : vector<64x4xbf16>, vector<4x128xbf16>, vector<64x128xf32> -> vector<64x128xf32>
    %202 = arith.addf %196, %201 : vector<64x128xf32>
    %203 = vector.extract_strided_slice %184 {offsets = [1, 1, 0], sizes = [8, 8, 4], strides = [1, 1, 1]} : vector<9x9x4xbf16> to vector<8x8x4xbf16>
    %204 = vector.shape_cast %203 : vector<8x8x4xbf16> to vector<64x4xbf16>
    %c47 = arith.constant 47 : index
    %c0_125 = arith.constant 0 : index
    %c0_126 = arith.constant 0 : index
    %205 = vector.load %arg2[%c47, %c0_125, %c0_126] : memref<64x4x128xbf16, #tpu.memory_space<vmem>>, vector<1x4x128xbf16>
    %206 = vector.shape_cast %205 : vector<1x4x128xbf16> to vector<4x128xbf16>
    %cst_127 = arith.constant dense<0.000000e+00> : vector<64x128xf32>
    %207 = tpu.matmul %204, %206, %cst_127 {dimension_numbers = #tpu.dot_dimension_numbers<[1], [0], [0], [1], [0, 0, 1, 1], [], []>} : vector<64x4xbf16>, vector<4x128xbf16>, vector<64x128xf32> -> vector<64x128xf32>
    %208 = arith.addf %202, %207 : vector<64x128xf32>
    %c8_128 = arith.constant 8 : index
    %c0_129 = arith.constant 0 : index
    %c0_130 = arith.constant 0 : index
    %c0_131 = arith.constant 0 : index
    %209 = vector.load %arg1[%c8_128, %c0_129, %c0_130, %c0_131] : memref<16x9x9x4xbf16, #tpu.memory_space<vmem>>, vector<1x9x9x4xbf16>
    %210 = vector.shape_cast %209 : vector<1x9x9x4xbf16> to vector<9x9x4xbf16>
    %211 = vector.extract_strided_slice %210 {offsets = [0, 0, 0], sizes = [8, 8, 4], strides = [1, 1, 1]} : vector<9x9x4xbf16> to vector<8x8x4xbf16>
    %212 = vector.shape_cast %211 : vector<8x8x4xbf16> to vector<64x4xbf16>
    %c16 = arith.constant 16 : index
    %c0_132 = arith.constant 0 : index
    %c0_133 = arith.constant 0 : index
    %213 = vector.load %arg2[%c16, %c0_132, %c0_133] : memref<64x4x128xbf16, #tpu.memory_space<vmem>>, vector<1x4x128xbf16>
    %214 = vector.shape_cast %213 : vector<1x4x128xbf16> to vector<4x128xbf16>
    %cst_134 = arith.constant dense<0.000000e+00> : vector<64x128xf32>
    %215 = tpu.matmul %212, %214, %cst_134 {dimension_numbers = #tpu.dot_dimension_numbers<[1], [0], [0], [1], [0, 0, 1, 1], [], []>} : vector<64x4xbf16>, vector<4x128xbf16>, vector<64x128xf32> -> vector<64x128xf32>
    %216 = arith.addf %208, %215 : vector<64x128xf32>
    %217 = vector.extract_strided_slice %210 {offsets = [0, 1, 0], sizes = [8, 8, 4], strides = [1, 1, 1]} : vector<9x9x4xbf16> to vector<8x8x4xbf16>
    %218 = vector.shape_cast %217 : vector<8x8x4xbf16> to vector<64x4xbf16>
    %c20 = arith.constant 20 : index
    %c0_135 = arith.constant 0 : index
    %c0_136 = arith.constant 0 : index
    %219 = vector.load %arg2[%c20, %c0_135, %c0_136] : memref<64x4x128xbf16, #tpu.memory_space<vmem>>, vector<1x4x128xbf16>
    %220 = vector.shape_cast %219 : vector<1x4x128xbf16> to vector<4x128xbf16>
    %cst_137 = arith.constant dense<0.000000e+00> : vector<64x128xf32>
    %221 = tpu.matmul %218, %220, %cst_137 {dimension_numbers = #tpu.dot_dimension_numbers<[1], [0], [0], [1], [0, 0, 1, 1], [], []>} : vector<64x4xbf16>, vector<4x128xbf16>, vector<64x128xf32> -> vector<64x128xf32>
    %222 = arith.addf %216, %221 : vector<64x128xf32>
    %223 = vector.extract_strided_slice %210 {offsets = [1, 0, 0], sizes = [8, 8, 4], strides = [1, 1, 1]} : vector<9x9x4xbf16> to vector<8x8x4xbf16>
    %224 = vector.shape_cast %223 : vector<8x8x4xbf16> to vector<64x4xbf16>
    %c48 = arith.constant 48 : index
    %c0_138 = arith.constant 0 : index
    %c0_139 = arith.constant 0 : index
    %225 = vector.load %arg2[%c48, %c0_138, %c0_139] : memref<64x4x128xbf16, #tpu.memory_space<vmem>>, vector<1x4x128xbf16>
    %226 = vector.shape_cast %225 : vector<1x4x128xbf16> to vector<4x128xbf16>
    %cst_140 = arith.constant dense<0.000000e+00> : vector<64x128xf32>
    %227 = tpu.matmul %224, %226, %cst_140 {dimension_numbers = #tpu.dot_dimension_numbers<[1], [0], [0], [1], [0, 0, 1, 1], [], []>} : vector<64x4xbf16>, vector<4x128xbf16>, vector<64x128xf32> -> vector<64x128xf32>
    %228 = arith.addf %222, %227 : vector<64x128xf32>
    %229 = vector.extract_strided_slice %210 {offsets = [1, 1, 0], sizes = [8, 8, 4], strides = [1, 1, 1]} : vector<9x9x4xbf16> to vector<8x8x4xbf16>
    %230 = vector.shape_cast %229 : vector<8x8x4xbf16> to vector<64x4xbf16>
    %c52 = arith.constant 52 : index
    %c0_141 = arith.constant 0 : index
    %c0_142 = arith.constant 0 : index
    %231 = vector.load %arg2[%c52, %c0_141, %c0_142] : memref<64x4x128xbf16, #tpu.memory_space<vmem>>, vector<1x4x128xbf16>
    %232 = vector.shape_cast %231 : vector<1x4x128xbf16> to vector<4x128xbf16>
    %cst_143 = arith.constant dense<0.000000e+00> : vector<64x128xf32>
    %233 = tpu.matmul %230, %232, %cst_143 {dimension_numbers = #tpu.dot_dimension_numbers<[1], [0], [0], [1], [0, 0, 1, 1], [], []>} : vector<64x4xbf16>, vector<4x128xbf16>, vector<64x128xf32> -> vector<64x128xf32>
    %234 = arith.addf %228, %233 : vector<64x128xf32>
    %c9_144 = arith.constant 9 : index
    %c0_145 = arith.constant 0 : index
    %c0_146 = arith.constant 0 : index
    %c0_147 = arith.constant 0 : index
    %235 = vector.load %arg1[%c9_144, %c0_145, %c0_146, %c0_147] : memref<16x9x9x4xbf16, #tpu.memory_space<vmem>>, vector<1x9x9x4xbf16>
    %236 = vector.shape_cast %235 : vector<1x9x9x4xbf16> to vector<9x9x4xbf16>
    %237 = vector.extract_strided_slice %236 {offsets = [0, 0, 0], sizes = [8, 8, 4], strides = [1, 1, 1]} : vector<9x9x4xbf16> to vector<8x8x4xbf16>
    %238 = vector.shape_cast %237 : vector<8x8x4xbf16> to vector<64x4xbf16>
    %c17 = arith.constant 17 : index
    %c0_148 = arith.constant 0 : index
    %c0_149 = arith.constant 0 : index
    %239 = vector.load %arg2[%c17, %c0_148, %c0_149] : memref<64x4x128xbf16, #tpu.memory_space<vmem>>, vector<1x4x128xbf16>
    %240 = vector.shape_cast %239 : vector<1x4x128xbf16> to vector<4x128xbf16>
    %cst_150 = arith.constant dense<0.000000e+00> : vector<64x128xf32>
    %241 = tpu.matmul %238, %240, %cst_150 {dimension_numbers = #tpu.dot_dimension_numbers<[1], [0], [0], [1], [0, 0, 1, 1], [], []>} : vector<64x4xbf16>, vector<4x128xbf16>, vector<64x128xf32> -> vector<64x128xf32>
    %242 = arith.addf %234, %241 : vector<64x128xf32>
    %243 = vector.extract_strided_slice %236 {offsets = [0, 1, 0], sizes = [8, 8, 4], strides = [1, 1, 1]} : vector<9x9x4xbf16> to vector<8x8x4xbf16>
    %244 = vector.shape_cast %243 : vector<8x8x4xbf16> to vector<64x4xbf16>
    %c21 = arith.constant 21 : index
    %c0_151 = arith.constant 0 : index
    %c0_152 = arith.constant 0 : index
    %245 = vector.load %arg2[%c21, %c0_151, %c0_152] : memref<64x4x128xbf16, #tpu.memory_space<vmem>>, vector<1x4x128xbf16>
    %246 = vector.shape_cast %245 : vector<1x4x128xbf16> to vector<4x128xbf16>
    %cst_153 = arith.constant dense<0.000000e+00> : vector<64x128xf32>
    %247 = tpu.matmul %244, %246, %cst_153 {dimension_numbers = #tpu.dot_dimension_numbers<[1], [0], [0], [1], [0, 0, 1, 1], [], []>} : vector<64x4xbf16>, vector<4x128xbf16>, vector<64x128xf32> -> vector<64x128xf32>
    %248 = arith.addf %242, %247 : vector<64x128xf32>
    %249 = vector.extract_strided_slice %236 {offsets = [1, 0, 0], sizes = [8, 8, 4], strides = [1, 1, 1]} : vector<9x9x4xbf16> to vector<8x8x4xbf16>
    %250 = vector.shape_cast %249 : vector<8x8x4xbf16> to vector<64x4xbf16>
    %c49 = arith.constant 49 : index
    %c0_154 = arith.constant 0 : index
    %c0_155 = arith.constant 0 : index
    %251 = vector.load %arg2[%c49, %c0_154, %c0_155] : memref<64x4x128xbf16, #tpu.memory_space<vmem>>, vector<1x4x128xbf16>
    %252 = vector.shape_cast %251 : vector<1x4x128xbf16> to vector<4x128xbf16>
    %cst_156 = arith.constant dense<0.000000e+00> : vector<64x128xf32>
    %253 = tpu.matmul %250, %252, %cst_156 {dimension_numbers = #tpu.dot_dimension_numbers<[1], [0], [0], [1], [0, 0, 1, 1], [], []>} : vector<64x4xbf16>, vector<4x128xbf16>, vector<64x128xf32> -> vector<64x128xf32>
    %254 = arith.addf %248, %253 : vector<64x128xf32>
    %255 = vector.extract_strided_slice %236 {offsets = [1, 1, 0], sizes = [8, 8, 4], strides = [1, 1, 1]} : vector<9x9x4xbf16> to vector<8x8x4xbf16>
    %256 = vector.shape_cast %255 : vector<8x8x4xbf16> to vector<64x4xbf16>
    %c53 = arith.constant 53 : index
    %c0_157 = arith.constant 0 : index
    %c0_158 = arith.constant 0 : index
    %257 = vector.load %arg2[%c53, %c0_157, %c0_158] : memref<64x4x128xbf16, #tpu.memory_space<vmem>>, vector<1x4x128xbf16>
    %258 = vector.shape_cast %257 : vector<1x4x128xbf16> to vector<4x128xbf16>
    %cst_159 = arith.constant dense<0.000000e+00> : vector<64x128xf32>
    %259 = tpu.matmul %256, %258, %cst_159 {dimension_numbers = #tpu.dot_dimension_numbers<[1], [0], [0], [1], [0, 0, 1, 1], [], []>} : vector<64x4xbf16>, vector<4x128xbf16>, vector<64x128xf32> -> vector<64x128xf32>
    %260 = arith.addf %254, %259 : vector<64x128xf32>
    %c10_160 = arith.constant 10 : index
    %c0_161 = arith.constant 0 : index
    %c0_162 = arith.constant 0 : index
    %c0_163 = arith.constant 0 : index
    %261 = vector.load %arg1[%c10_160, %c0_161, %c0_162, %c0_163] : memref<16x9x9x4xbf16, #tpu.memory_space<vmem>>, vector<1x9x9x4xbf16>
    %262 = vector.shape_cast %261 : vector<1x9x9x4xbf16> to vector<9x9x4xbf16>
    %263 = vector.extract_strided_slice %262 {offsets = [0, 0, 0], sizes = [8, 8, 4], strides = [1, 1, 1]} : vector<9x9x4xbf16> to vector<8x8x4xbf16>
    %264 = vector.shape_cast %263 : vector<8x8x4xbf16> to vector<64x4xbf16>
    %c18 = arith.constant 18 : index
    %c0_164 = arith.constant 0 : index
    %c0_165 = arith.constant 0 : index
    %265 = vector.load %arg2[%c18, %c0_164, %c0_165] : memref<64x4x128xbf16, #tpu.memory_space<vmem>>, vector<1x4x128xbf16>
    %266 = vector.shape_cast %265 : vector<1x4x128xbf16> to vector<4x128xbf16>
    %cst_166 = arith.constant dense<0.000000e+00> : vector<64x128xf32>
    %267 = tpu.matmul %264, %266, %cst_166 {dimension_numbers = #tpu.dot_dimension_numbers<[1], [0], [0], [1], [0, 0, 1, 1], [], []>} : vector<64x4xbf16>, vector<4x128xbf16>, vector<64x128xf32> -> vector<64x128xf32>
    %268 = arith.addf %260, %267 : vector<64x128xf32>
    %269 = vector.extract_strided_slice %262 {offsets = [0, 1, 0], sizes = [8, 8, 4], strides = [1, 1, 1]} : vector<9x9x4xbf16> to vector<8x8x4xbf16>
    %270 = vector.shape_cast %269 : vector<8x8x4xbf16> to vector<64x4xbf16>
    %c22 = arith.constant 22 : index
    %c0_167 = arith.constant 0 : index
    %c0_168 = arith.constant 0 : index
    %271 = vector.load %arg2[%c22, %c0_167, %c0_168] : memref<64x4x128xbf16, #tpu.memory_space<vmem>>, vector<1x4x128xbf16>
    %272 = vector.shape_cast %271 : vector<1x4x128xbf16> to vector<4x128xbf16>
    %cst_169 = arith.constant dense<0.000000e+00> : vector<64x128xf32>
    %273 = tpu.matmul %270, %272, %cst_169 {dimension_numbers = #tpu.dot_dimension_numbers<[1], [0], [0], [1], [0, 0, 1, 1], [], []>} : vector<64x4xbf16>, vector<4x128xbf16>, vector<64x128xf32> -> vector<64x128xf32>
    %274 = arith.addf %268, %273 : vector<64x128xf32>
    %275 = vector.extract_strided_slice %262 {offsets = [1, 0, 0], sizes = [8, 8, 4], strides = [1, 1, 1]} : vector<9x9x4xbf16> to vector<8x8x4xbf16>
    %276 = vector.shape_cast %275 : vector<8x8x4xbf16> to vector<64x4xbf16>
    %c50 = arith.constant 50 : index
    %c0_170 = arith.constant 0 : index
    %c0_171 = arith.constant 0 : index
    %277 = vector.load %arg2[%c50, %c0_170, %c0_171] : memref<64x4x128xbf16, #tpu.memory_space<vmem>>, vector<1x4x128xbf16>
    %278 = vector.shape_cast %277 : vector<1x4x128xbf16> to vector<4x128xbf16>
    %cst_172 = arith.constant dense<0.000000e+00> : vector<64x128xf32>
    %279 = tpu.matmul %276, %278, %cst_172 {dimension_numbers = #tpu.dot_dimension_numbers<[1], [0], [0], [1], [0, 0, 1, 1], [], []>} : vector<64x4xbf16>, vector<4x128xbf16>, vector<64x128xf32> -> vector<64x128xf32>
    %280 = arith.addf %274, %279 : vector<64x128xf32>
    %281 = vector.extract_strided_slice %262 {offsets = [1, 1, 0], sizes = [8, 8, 4], strides = [1, 1, 1]} : vector<9x9x4xbf16> to vector<8x8x4xbf16>
    %282 = vector.shape_cast %281 : vector<8x8x4xbf16> to vector<64x4xbf16>
    %c54 = arith.constant 54 : index
    %c0_173 = arith.constant 0 : index
    %c0_174 = arith.constant 0 : index
    %283 = vector.load %arg2[%c54, %c0_173, %c0_174] : memref<64x4x128xbf16, #tpu.memory_space<vmem>>, vector<1x4x128xbf16>
    %284 = vector.shape_cast %283 : vector<1x4x128xbf16> to vector<4x128xbf16>
    %cst_175 = arith.constant dense<0.000000e+00> : vector<64x128xf32>
    %285 = tpu.matmul %282, %284, %cst_175 {dimension_numbers = #tpu.dot_dimension_numbers<[1], [0], [0], [1], [0, 0, 1, 1], [], []>} : vector<64x4xbf16>, vector<4x128xbf16>, vector<64x128xf32> -> vector<64x128xf32>
    %286 = arith.addf %280, %285 : vector<64x128xf32>
    %c11_176 = arith.constant 11 : index
    %c0_177 = arith.constant 0 : index
    %c0_178 = arith.constant 0 : index
    %c0_179 = arith.constant 0 : index
    %287 = vector.load %arg1[%c11_176, %c0_177, %c0_178, %c0_179] : memref<16x9x9x4xbf16, #tpu.memory_space<vmem>>, vector<1x9x9x4xbf16>
    %288 = vector.shape_cast %287 : vector<1x9x9x4xbf16> to vector<9x9x4xbf16>
    %289 = vector.extract_strided_slice %288 {offsets = [0, 0, 0], sizes = [8, 8, 4], strides = [1, 1, 1]} : vector<9x9x4xbf16> to vector<8x8x4xbf16>
    %290 = vector.shape_cast %289 : vector<8x8x4xbf16> to vector<64x4xbf16>
    %c19 = arith.constant 19 : index
    %c0_180 = arith.constant 0 : index
    %c0_181 = arith.constant 0 : index
    %291 = vector.load %arg2[%c19, %c0_180, %c0_181] : memref<64x4x128xbf16, #tpu.memory_space<vmem>>, vector<1x4x128xbf16>
    %292 = vector.shape_cast %291 : vector<1x4x128xbf16> to vector<4x128xbf16>
    %cst_182 = arith.constant dense<0.000000e+00> : vector<64x128xf32>
    %293 = tpu.matmul %290, %292, %cst_182 {dimension_numbers = #tpu.dot_dimension_numbers<[1], [0], [0], [1], [0, 0, 1, 1], [], []>} : vector<64x4xbf16>, vector<4x128xbf16>, vector<64x128xf32> -> vector<64x128xf32>
    %294 = arith.addf %286, %293 : vector<64x128xf32>
    %295 = vector.extract_strided_slice %288 {offsets = [0, 1, 0], sizes = [8, 8, 4], strides = [1, 1, 1]} : vector<9x9x4xbf16> to vector<8x8x4xbf16>
    %296 = vector.shape_cast %295 : vector<8x8x4xbf16> to vector<64x4xbf16>
    %c23 = arith.constant 23 : index
    %c0_183 = arith.constant 0 : index
    %c0_184 = arith.constant 0 : index
    %297 = vector.load %arg2[%c23, %c0_183, %c0_184] : memref<64x4x128xbf16, #tpu.memory_space<vmem>>, vector<1x4x128xbf16>
    %298 = vector.shape_cast %297 : vector<1x4x128xbf16> to vector<4x128xbf16>
    %cst_185 = arith.constant dense<0.000000e+00> : vector<64x128xf32>
    %299 = tpu.matmul %296, %298, %cst_185 {dimension_numbers = #tpu.dot_dimension_numbers<[1], [0], [0], [1], [0, 0, 1, 1], [], []>} : vector<64x4xbf16>, vector<4x128xbf16>, vector<64x128xf32> -> vector<64x128xf32>
    %300 = arith.addf %294, %299 : vector<64x128xf32>
    %301 = vector.extract_strided_slice %288 {offsets = [1, 0, 0], sizes = [8, 8, 4], strides = [1, 1, 1]} : vector<9x9x4xbf16> to vector<8x8x4xbf16>
    %302 = vector.shape_cast %301 : vector<8x8x4xbf16> to vector<64x4xbf16>
    %c51 = arith.constant 51 : index
    %c0_186 = arith.constant 0 : index
    %c0_187 = arith.constant 0 : index
    %303 = vector.load %arg2[%c51, %c0_186, %c0_187] : memref<64x4x128xbf16, #tpu.memory_space<vmem>>, vector<1x4x128xbf16>
    %304 = vector.shape_cast %303 : vector<1x4x128xbf16> to vector<4x128xbf16>
    %cst_188 = arith.constant dense<0.000000e+00> : vector<64x128xf32>
    %305 = tpu.matmul %302, %304, %cst_188 {dimension_numbers = #tpu.dot_dimension_numbers<[1], [0], [0], [1], [0, 0, 1, 1], [], []>} : vector<64x4xbf16>, vector<4x128xbf16>, vector<64x128xf32> -> vector<64x128xf32>
    %306 = arith.addf %300, %305 : vector<64x128xf32>
    %307 = vector.extract_strided_slice %288 {offsets = [1, 1, 0], sizes = [8, 8, 4], strides = [1, 1, 1]} : vector<9x9x4xbf16> to vector<8x8x4xbf16>
    %308 = vector.shape_cast %307 : vector<8x8x4xbf16> to vector<64x4xbf16>
    %c55 = arith.constant 55 : index
    %c0_189 = arith.constant 0 : index
    %c0_190 = arith.constant 0 : index
    %309 = vector.load %arg2[%c55, %c0_189, %c0_190] : memref<64x4x128xbf16, #tpu.memory_space<vmem>>, vector<1x4x128xbf16>
    %310 = vector.shape_cast %309 : vector<1x4x128xbf16> to vector<4x128xbf16>
    %cst_191 = arith.constant dense<0.000000e+00> : vector<64x128xf32>
    %311 = tpu.matmul %308, %310, %cst_191 {dimension_numbers = #tpu.dot_dimension_numbers<[1], [0], [0], [1], [0, 0, 1, 1], [], []>} : vector<64x4xbf16>, vector<4x128xbf16>, vector<64x128xf32> -> vector<64x128xf32>
    %312 = arith.addf %306, %311 : vector<64x128xf32>
    %c12_192 = arith.constant 12 : index
    %c0_193 = arith.constant 0 : index
    %c0_194 = arith.constant 0 : index
    %c0_195 = arith.constant 0 : index
    %313 = vector.load %arg1[%c12_192, %c0_193, %c0_194, %c0_195] : memref<16x9x9x4xbf16, #tpu.memory_space<vmem>>, vector<1x9x9x4xbf16>
    %314 = vector.shape_cast %313 : vector<1x9x9x4xbf16> to vector<9x9x4xbf16>
    %315 = vector.extract_strided_slice %314 {offsets = [0, 0, 0], sizes = [8, 8, 4], strides = [1, 1, 1]} : vector<9x9x4xbf16> to vector<8x8x4xbf16>
    %316 = vector.shape_cast %315 : vector<8x8x4xbf16> to vector<64x4xbf16>
    %c24 = arith.constant 24 : index
    %c0_196 = arith.constant 0 : index
    %c0_197 = arith.constant 0 : index
    %317 = vector.load %arg2[%c24, %c0_196, %c0_197] : memref<64x4x128xbf16, #tpu.memory_space<vmem>>, vector<1x4x128xbf16>
    %318 = vector.shape_cast %317 : vector<1x4x128xbf16> to vector<4x128xbf16>
    %cst_198 = arith.constant dense<0.000000e+00> : vector<64x128xf32>
    %319 = tpu.matmul %316, %318, %cst_198 {dimension_numbers = #tpu.dot_dimension_numbers<[1], [0], [0], [1], [0, 0, 1, 1], [], []>} : vector<64x4xbf16>, vector<4x128xbf16>, vector<64x128xf32> -> vector<64x128xf32>
    %320 = arith.addf %312, %319 : vector<64x128xf32>
    %321 = vector.extract_strided_slice %314 {offsets = [0, 1, 0], sizes = [8, 8, 4], strides = [1, 1, 1]} : vector<9x9x4xbf16> to vector<8x8x4xbf16>
    %322 = vector.shape_cast %321 : vector<8x8x4xbf16> to vector<64x4xbf16>
    %c28 = arith.constant 28 : index
    %c0_199 = arith.constant 0 : index
    %c0_200 = arith.constant 0 : index
    %323 = vector.load %arg2[%c28, %c0_199, %c0_200] : memref<64x4x128xbf16, #tpu.memory_space<vmem>>, vector<1x4x128xbf16>
    %324 = vector.shape_cast %323 : vector<1x4x128xbf16> to vector<4x128xbf16>
    %cst_201 = arith.constant dense<0.000000e+00> : vector<64x128xf32>
    %325 = tpu.matmul %322, %324, %cst_201 {dimension_numbers = #tpu.dot_dimension_numbers<[1], [0], [0], [1], [0, 0, 1, 1], [], []>} : vector<64x4xbf16>, vector<4x128xbf16>, vector<64x128xf32> -> vector<64x128xf32>
    %326 = arith.addf %320, %325 : vector<64x128xf32>
    %327 = vector.extract_strided_slice %314 {offsets = [1, 0, 0], sizes = [8, 8, 4], strides = [1, 1, 1]} : vector<9x9x4xbf16> to vector<8x8x4xbf16>
    %328 = vector.shape_cast %327 : vector<8x8x4xbf16> to vector<64x4xbf16>
    %c56 = arith.constant 56 : index
    %c0_202 = arith.constant 0 : index
    %c0_203 = arith.constant 0 : index
    %329 = vector.load %arg2[%c56, %c0_202, %c0_203] : memref<64x4x128xbf16, #tpu.memory_space<vmem>>, vector<1x4x128xbf16>
    %330 = vector.shape_cast %329 : vector<1x4x128xbf16> to vector<4x128xbf16>
    %cst_204 = arith.constant dense<0.000000e+00> : vector<64x128xf32>
    %331 = tpu.matmul %328, %330, %cst_204 {dimension_numbers = #tpu.dot_dimension_numbers<[1], [0], [0], [1], [0, 0, 1, 1], [], []>} : vector<64x4xbf16>, vector<4x128xbf16>, vector<64x128xf32> -> vector<64x128xf32>
    %332 = arith.addf %326, %331 : vector<64x128xf32>
    %333 = vector.extract_strided_slice %314 {offsets = [1, 1, 0], sizes = [8, 8, 4], strides = [1, 1, 1]} : vector<9x9x4xbf16> to vector<8x8x4xbf16>
    %334 = vector.shape_cast %333 : vector<8x8x4xbf16> to vector<64x4xbf16>
    %c60 = arith.constant 60 : index
    %c0_205 = arith.constant 0 : index
    %c0_206 = arith.constant 0 : index
    %335 = vector.load %arg2[%c60, %c0_205, %c0_206] : memref<64x4x128xbf16, #tpu.memory_space<vmem>>, vector<1x4x128xbf16>
    %336 = vector.shape_cast %335 : vector<1x4x128xbf16> to vector<4x128xbf16>
    %cst_207 = arith.constant dense<0.000000e+00> : vector<64x128xf32>
    %337 = tpu.matmul %334, %336, %cst_207 {dimension_numbers = #tpu.dot_dimension_numbers<[1], [0], [0], [1], [0, 0, 1, 1], [], []>} : vector<64x4xbf16>, vector<4x128xbf16>, vector<64x128xf32> -> vector<64x128xf32>
    %338 = arith.addf %332, %337 : vector<64x128xf32>
    %c13_208 = arith.constant 13 : index
    %c0_209 = arith.constant 0 : index
    %c0_210 = arith.constant 0 : index
    %c0_211 = arith.constant 0 : index
    %339 = vector.load %arg1[%c13_208, %c0_209, %c0_210, %c0_211] : memref<16x9x9x4xbf16, #tpu.memory_space<vmem>>, vector<1x9x9x4xbf16>
    %340 = vector.shape_cast %339 : vector<1x9x9x4xbf16> to vector<9x9x4xbf16>
    %341 = vector.extract_strided_slice %340 {offsets = [0, 0, 0], sizes = [8, 8, 4], strides = [1, 1, 1]} : vector<9x9x4xbf16> to vector<8x8x4xbf16>
    %342 = vector.shape_cast %341 : vector<8x8x4xbf16> to vector<64x4xbf16>
    %c25 = arith.constant 25 : index
    %c0_212 = arith.constant 0 : index
    %c0_213 = arith.constant 0 : index
    %343 = vector.load %arg2[%c25, %c0_212, %c0_213] : memref<64x4x128xbf16, #tpu.memory_space<vmem>>, vector<1x4x128xbf16>
    %344 = vector.shape_cast %343 : vector<1x4x128xbf16> to vector<4x128xbf16>
    %cst_214 = arith.constant dense<0.000000e+00> : vector<64x128xf32>
    %345 = tpu.matmul %342, %344, %cst_214 {dimension_numbers = #tpu.dot_dimension_numbers<[1], [0], [0], [1], [0, 0, 1, 1], [], []>} : vector<64x4xbf16>, vector<4x128xbf16>, vector<64x128xf32> -> vector<64x128xf32>
    %346 = arith.addf %338, %345 : vector<64x128xf32>
    %347 = vector.extract_strided_slice %340 {offsets = [0, 1, 0], sizes = [8, 8, 4], strides = [1, 1, 1]} : vector<9x9x4xbf16> to vector<8x8x4xbf16>
    %348 = vector.shape_cast %347 : vector<8x8x4xbf16> to vector<64x4xbf16>
    %c29 = arith.constant 29 : index
    %c0_215 = arith.constant 0 : index
    %c0_216 = arith.constant 0 : index
    %349 = vector.load %arg2[%c29, %c0_215, %c0_216] : memref<64x4x128xbf16, #tpu.memory_space<vmem>>, vector<1x4x128xbf16>
    %350 = vector.shape_cast %349 : vector<1x4x128xbf16> to vector<4x128xbf16>
    %cst_217 = arith.constant dense<0.000000e+00> : vector<64x128xf32>
    %351 = tpu.matmul %348, %350, %cst_217 {dimension_numbers = #tpu.dot_dimension_numbers<[1], [0], [0], [1], [0, 0, 1, 1], [], []>} : vector<64x4xbf16>, vector<4x128xbf16>, vector<64x128xf32> -> vector<64x128xf32>
    %352 = arith.addf %346, %351 : vector<64x128xf32>
    %353 = vector.extract_strided_slice %340 {offsets = [1, 0, 0], sizes = [8, 8, 4], strides = [1, 1, 1]} : vector<9x9x4xbf16> to vector<8x8x4xbf16>
    %354 = vector.shape_cast %353 : vector<8x8x4xbf16> to vector<64x4xbf16>
    %c57 = arith.constant 57 : index
    %c0_218 = arith.constant 0 : index
    %c0_219 = arith.constant 0 : index
    %355 = vector.load %arg2[%c57, %c0_218, %c0_219] : memref<64x4x128xbf16, #tpu.memory_space<vmem>>, vector<1x4x128xbf16>
    %356 = vector.shape_cast %355 : vector<1x4x128xbf16> to vector<4x128xbf16>
    %cst_220 = arith.constant dense<0.000000e+00> : vector<64x128xf32>
    %357 = tpu.matmul %354, %356, %cst_220 {dimension_numbers = #tpu.dot_dimension_numbers<[1], [0], [0], [1], [0, 0, 1, 1], [], []>} : vector<64x4xbf16>, vector<4x128xbf16>, vector<64x128xf32> -> vector<64x128xf32>
    %358 = arith.addf %352, %357 : vector<64x128xf32>
    %359 = vector.extract_strided_slice %340 {offsets = [1, 1, 0], sizes = [8, 8, 4], strides = [1, 1, 1]} : vector<9x9x4xbf16> to vector<8x8x4xbf16>
    %360 = vector.shape_cast %359 : vector<8x8x4xbf16> to vector<64x4xbf16>
    %c61 = arith.constant 61 : index
    %c0_221 = arith.constant 0 : index
    %c0_222 = arith.constant 0 : index
    %361 = vector.load %arg2[%c61, %c0_221, %c0_222] : memref<64x4x128xbf16, #tpu.memory_space<vmem>>, vector<1x4x128xbf16>
    %362 = vector.shape_cast %361 : vector<1x4x128xbf16> to vector<4x128xbf16>
    %cst_223 = arith.constant dense<0.000000e+00> : vector<64x128xf32>
    %363 = tpu.matmul %360, %362, %cst_223 {dimension_numbers = #tpu.dot_dimension_numbers<[1], [0], [0], [1], [0, 0, 1, 1], [], []>} : vector<64x4xbf16>, vector<4x128xbf16>, vector<64x128xf32> -> vector<64x128xf32>
    %364 = arith.addf %358, %363 : vector<64x128xf32>
    %c14_224 = arith.constant 14 : index
    %c0_225 = arith.constant 0 : index
    %c0_226 = arith.constant 0 : index
    %c0_227 = arith.constant 0 : index
    %365 = vector.load %arg1[%c14_224, %c0_225, %c0_226, %c0_227] : memref<16x9x9x4xbf16, #tpu.memory_space<vmem>>, vector<1x9x9x4xbf16>
    %366 = vector.shape_cast %365 : vector<1x9x9x4xbf16> to vector<9x9x4xbf16>
    %367 = vector.extract_strided_slice %366 {offsets = [0, 0, 0], sizes = [8, 8, 4], strides = [1, 1, 1]} : vector<9x9x4xbf16> to vector<8x8x4xbf16>
    %368 = vector.shape_cast %367 : vector<8x8x4xbf16> to vector<64x4xbf16>
    %c26 = arith.constant 26 : index
    %c0_228 = arith.constant 0 : index
    %c0_229 = arith.constant 0 : index
    %369 = vector.load %arg2[%c26, %c0_228, %c0_229] : memref<64x4x128xbf16, #tpu.memory_space<vmem>>, vector<1x4x128xbf16>
    %370 = vector.shape_cast %369 : vector<1x4x128xbf16> to vector<4x128xbf16>
    %cst_230 = arith.constant dense<0.000000e+00> : vector<64x128xf32>
    %371 = tpu.matmul %368, %370, %cst_230 {dimension_numbers = #tpu.dot_dimension_numbers<[1], [0], [0], [1], [0, 0, 1, 1], [], []>} : vector<64x4xbf16>, vector<4x128xbf16>, vector<64x128xf32> -> vector<64x128xf32>
    %372 = arith.addf %364, %371 : vector<64x128xf32>
    %373 = vector.extract_strided_slice %366 {offsets = [0, 1, 0], sizes = [8, 8, 4], strides = [1, 1, 1]} : vector<9x9x4xbf16> to vector<8x8x4xbf16>
    %374 = vector.shape_cast %373 : vector<8x8x4xbf16> to vector<64x4xbf16>
    %c30 = arith.constant 30 : index
    %c0_231 = arith.constant 0 : index
    %c0_232 = arith.constant 0 : index
    %375 = vector.load %arg2[%c30, %c0_231, %c0_232] : memref<64x4x128xbf16, #tpu.memory_space<vmem>>, vector<1x4x128xbf16>
    %376 = vector.shape_cast %375 : vector<1x4x128xbf16> to vector<4x128xbf16>
    %cst_233 = arith.constant dense<0.000000e+00> : vector<64x128xf32>
    %377 = tpu.matmul %374, %376, %cst_233 {dimension_numbers = #tpu.dot_dimension_numbers<[1], [0], [0], [1], [0, 0, 1, 1], [], []>} : vector<64x4xbf16>, vector<4x128xbf16>, vector<64x128xf32> -> vector<64x128xf32>
    %378 = arith.addf %372, %377 : vector<64x128xf32>
    %379 = vector.extract_strided_slice %366 {offsets = [1, 0, 0], sizes = [8, 8, 4], strides = [1, 1, 1]} : vector<9x9x4xbf16> to vector<8x8x4xbf16>
    %380 = vector.shape_cast %379 : vector<8x8x4xbf16> to vector<64x4xbf16>
    %c58 = arith.constant 58 : index
    %c0_234 = arith.constant 0 : index
    %c0_235 = arith.constant 0 : index
    %381 = vector.load %arg2[%c58, %c0_234, %c0_235] : memref<64x4x128xbf16, #tpu.memory_space<vmem>>, vector<1x4x128xbf16>
    %382 = vector.shape_cast %381 : vector<1x4x128xbf16> to vector<4x128xbf16>
    %cst_236 = arith.constant dense<0.000000e+00> : vector<64x128xf32>
    %383 = tpu.matmul %380, %382, %cst_236 {dimension_numbers = #tpu.dot_dimension_numbers<[1], [0], [0], [1], [0, 0, 1, 1], [], []>} : vector<64x4xbf16>, vector<4x128xbf16>, vector<64x128xf32> -> vector<64x128xf32>
    %384 = arith.addf %378, %383 : vector<64x128xf32>
    %385 = vector.extract_strided_slice %366 {offsets = [1, 1, 0], sizes = [8, 8, 4], strides = [1, 1, 1]} : vector<9x9x4xbf16> to vector<8x8x4xbf16>
    %386 = vector.shape_cast %385 : vector<8x8x4xbf16> to vector<64x4xbf16>
    %c62 = arith.constant 62 : index
    %c0_237 = arith.constant 0 : index
    %c0_238 = arith.constant 0 : index
    %387 = vector.load %arg2[%c62, %c0_237, %c0_238] : memref<64x4x128xbf16, #tpu.memory_space<vmem>>, vector<1x4x128xbf16>
    %388 = vector.shape_cast %387 : vector<1x4x128xbf16> to vector<4x128xbf16>
    %cst_239 = arith.constant dense<0.000000e+00> : vector<64x128xf32>
    %389 = tpu.matmul %386, %388, %cst_239 {dimension_numbers = #tpu.dot_dimension_numbers<[1], [0], [0], [1], [0, 0, 1, 1], [], []>} : vector<64x4xbf16>, vector<4x128xbf16>, vector<64x128xf32> -> vector<64x128xf32>
    %390 = arith.addf %384, %389 : vector<64x128xf32>
    %c15_240 = arith.constant 15 : index
    %c0_241 = arith.constant 0 : index
    %c0_242 = arith.constant 0 : index
    %c0_243 = arith.constant 0 : index
    %391 = vector.load %arg1[%c15_240, %c0_241, %c0_242, %c0_243] : memref<16x9x9x4xbf16, #tpu.memory_space<vmem>>, vector<1x9x9x4xbf16>
    %392 = vector.shape_cast %391 : vector<1x9x9x4xbf16> to vector<9x9x4xbf16>
    %393 = vector.extract_strided_slice %392 {offsets = [0, 0, 0], sizes = [8, 8, 4], strides = [1, 1, 1]} : vector<9x9x4xbf16> to vector<8x8x4xbf16>
    %394 = vector.shape_cast %393 : vector<8x8x4xbf16> to vector<64x4xbf16>
    %c27 = arith.constant 27 : index
    %c0_244 = arith.constant 0 : index
    %c0_245 = arith.constant 0 : index
    %395 = vector.load %arg2[%c27, %c0_244, %c0_245] : memref<64x4x128xbf16, #tpu.memory_space<vmem>>, vector<1x4x128xbf16>
    %396 = vector.shape_cast %395 : vector<1x4x128xbf16> to vector<4x128xbf16>
    %cst_246 = arith.constant dense<0.000000e+00> : vector<64x128xf32>
    %397 = tpu.matmul %394, %396, %cst_246 {dimension_numbers = #tpu.dot_dimension_numbers<[1], [0], [0], [1], [0, 0, 1, 1], [], []>} : vector<64x4xbf16>, vector<4x128xbf16>, vector<64x128xf32> -> vector<64x128xf32>
    %398 = arith.addf %390, %397 : vector<64x128xf32>
    %399 = vector.extract_strided_slice %392 {offsets = [0, 1, 0], sizes = [8, 8, 4], strides = [1, 1, 1]} : vector<9x9x4xbf16> to vector<8x8x4xbf16>
    %400 = vector.shape_cast %399 : vector<8x8x4xbf16> to vector<64x4xbf16>
    %c31 = arith.constant 31 : index
    %c0_247 = arith.constant 0 : index
    %c0_248 = arith.constant 0 : index
    %401 = vector.load %arg2[%c31, %c0_247, %c0_248] : memref<64x4x128xbf16, #tpu.memory_space<vmem>>, vector<1x4x128xbf16>
    %402 = vector.shape_cast %401 : vector<1x4x128xbf16> to vector<4x128xbf16>
    %cst_249 = arith.constant dense<0.000000e+00> : vector<64x128xf32>
    %403 = tpu.matmul %400, %402, %cst_249 {dimension_numbers = #tpu.dot_dimension_numbers<[1], [0], [0], [1], [0, 0, 1, 1], [], []>} : vector<64x4xbf16>, vector<4x128xbf16>, vector<64x128xf32> -> vector<64x128xf32>
    %404 = arith.addf %398, %403 : vector<64x128xf32>
    %405 = vector.extract_strided_slice %392 {offsets = [1, 0, 0], sizes = [8, 8, 4], strides = [1, 1, 1]} : vector<9x9x4xbf16> to vector<8x8x4xbf16>
    %406 = vector.shape_cast %405 : vector<8x8x4xbf16> to vector<64x4xbf16>
    %c59 = arith.constant 59 : index
    %c0_250 = arith.constant 0 : index
    %c0_251 = arith.constant 0 : index
    %407 = vector.load %arg2[%c59, %c0_250, %c0_251] : memref<64x4x128xbf16, #tpu.memory_space<vmem>>, vector<1x4x128xbf16>
    %408 = vector.shape_cast %407 : vector<1x4x128xbf16> to vector<4x128xbf16>
    %cst_252 = arith.constant dense<0.000000e+00> : vector<64x128xf32>
    %409 = tpu.matmul %406, %408, %cst_252 {dimension_numbers = #tpu.dot_dimension_numbers<[1], [0], [0], [1], [0, 0, 1, 1], [], []>} : vector<64x4xbf16>, vector<4x128xbf16>, vector<64x128xf32> -> vector<64x128xf32>
    %410 = arith.addf %404, %409 : vector<64x128xf32>
    %411 = vector.extract_strided_slice %392 {offsets = [1, 1, 0], sizes = [8, 8, 4], strides = [1, 1, 1]} : vector<9x9x4xbf16> to vector<8x8x4xbf16>
    %412 = vector.shape_cast %411 : vector<8x8x4xbf16> to vector<64x4xbf16>
    %c63 = arith.constant 63 : index
    %c0_253 = arith.constant 0 : index
    %c0_254 = arith.constant 0 : index
    %413 = vector.load %arg2[%c63, %c0_253, %c0_254] : memref<64x4x128xbf16, #tpu.memory_space<vmem>>, vector<1x4x128xbf16>
    %414 = vector.shape_cast %413 : vector<1x4x128xbf16> to vector<4x128xbf16>
    %cst_255 = arith.constant dense<0.000000e+00> : vector<64x128xf32>
    %415 = tpu.matmul %412, %414, %cst_255 {dimension_numbers = #tpu.dot_dimension_numbers<[1], [0], [0], [1], [0, 0, 1, 1], [], []>} : vector<64x4xbf16>, vector<4x128xbf16>, vector<64x128xf32> -> vector<64x128xf32>
    %416 = arith.addf %410, %415 : vector<64x128xf32>
    %c0_256 = arith.constant 0 : index
    %c0_257 = arith.constant 0 : index
    %417 = vector.load %arg3[%c0_256, %c0_257] : memref<1x128xf32, #tpu.memory_space<vmem>>, vector<1x128xf32>
    %418 = vector.broadcast %417 : vector<1x128xf32> to vector<64x128xf32>
    %419 = arith.addf %416, %418 : vector<64x128xf32>
    %cst_258 = arith.constant 0.000000e+00 : f32
    %420 = vector.broadcast %cst_258 : f32 to vector<64x128xf32>
    %421 = arith.maximumf %419, %420 : vector<64x128xf32>
    %422 = arith.truncf %421 : vector<64x128xf32> to vector<64x128xbf16>
    %c0_259 = arith.constant 0 : index
    %c0_260 = arith.constant 0 : index
    %c0_261 = arith.constant 0 : index
    %423 = vector.load %arg4[%c0_259, %c0_260, %c0_261] : memref<1x64x128xbf16, #tpu.memory_space<vmem>>, vector<1x64x128xbf16>
    %424 = vector.shape_cast %423 : vector<1x64x128xbf16> to vector<64x128xbf16>
    %425 = vector.shape_cast %422 : vector<64x128xbf16> to vector<1x64x128xbf16>
    tpu.vector_store %arg4[%c0_259, %c0_260, %c0_261], %425 {strides = array<i32>} : memref<1x64x128xbf16, #tpu.memory_space<vmem>>, vector<1x64x128xbf16>,
    return
  }
  func.func @transform_0(%arg0: i32) -> (i32, i32, i32, i32) {
    %c0_i32 = arith.constant 0 : i32
    %c0_i32_0 = arith.constant 0 : i32
    %c0_i32_1 = arith.constant 0 : i32
    %c0_i32_2 = arith.constant 0 : i32
    return %arg0, %c0_i32, %c0_i32_0, %c0_i32_1 : i32, i32, i32, i32
  }
  func.func @transform_1(%arg0: i32) -> (i32, i32, i32) {
    %c0_i32 = arith.constant 0 : i32
    %c0_i32_0 = arith.constant 0 : i32
    %c0_i32_1 = arith.constant 0 : i32
    %c0_i32_2 = arith.constant 0 : i32
    return %c0_i32, %c0_i32_0, %c0_i32_1 : i32, i32, i32
  }
  func.func @transform_2(%arg0: i32) -> (i32, i32) {
    %c0_i32 = arith.constant 0 : i32
    %c0_i32_0 = arith.constant 0 : i32
    %c0_i32_1 = arith.constant 0 : i32
    return %c0_i32, %c0_i32_0 : i32, i32
  }
  func.func @transform_3(%arg0: i32) -> (i32, i32, i32) {
    %c0_i32 = arith.constant 0 : i32
    %c0_i32_0 = arith.constant 0 : i32
    %c0_i32_1 = arith.constant 0 : i32
    return %arg0, %c0_i32, %c0_i32_0 : i32, i32, i32
  }
}

module attributes {stable_mosaic.version = 11 : i64} {
  func.func @_conv_kernel(%arg0: i32, %arg1: memref<4x4x4x32xbf16, #tpu.memory_space<vmem>>, %arg2: memref<16x32x128xbf16, #tpu.memory_space<vmem>>, %arg3: memref<1x128xf32, #tpu.memory_space<vmem>>, %arg4: memref<1x9x128xbf16, #tpu.memory_space<vmem>>) attributes {dimension_semantics = [#tpu.dimension_semantics<parallel>], iteration_bounds = array<i64: 2>, scalar_prefetch = 0 : i64, scratch_operands = 0 : i64, tpu.core_type = #tpu.core_type<tc>, window_params = [{transform_indices = @transform_0, window_bounds = array<i64: 4, 4, 4, 32>}, {pipeline_mode = #tpu.pipeline_mode<synchronous>, transform_indices = @transform_1, window_bounds = array<i64: 16, 32, 128>}, {pipeline_mode = #tpu.pipeline_mode<synchronous>, transform_indices = @transform_2, window_bounds = array<i64: 1, 128>}, {transform_indices = @transform_3, window_bounds = array<i64: 1, 9, 128>}]} {
    %cst = arith.constant 0.000000e+00 : f32
    %0 = vector.broadcast %cst : f32 to vector<9x128xf32>
    %c0 = arith.constant 0 : index
    %c0_0 = arith.constant 0 : index
    %c0_1 = arith.constant 0 : index
    %c0_2 = arith.constant 0 : index
    %1 = vector.load %arg1[%c0, %c0_0, %c0_1, %c0_2] : memref<4x4x4x32xbf16, #tpu.memory_space<vmem>>, vector<1x4x4x32xbf16>
    %2 = vector.shape_cast %1 : vector<1x4x4x32xbf16> to vector<4x4x32xbf16>
    %3 = vector.extract_strided_slice %2 {offsets = [0, 0, 0], sizes = [3, 3, 32], strides = [1, 1, 1]} : vector<4x4x32xbf16> to vector<3x3x32xbf16>
    %4 = vector.shape_cast %3 : vector<3x3x32xbf16> to vector<9x32xbf16>
    %c0_3 = arith.constant 0 : index
    %c0_4 = arith.constant 0 : index
    %c0_5 = arith.constant 0 : index
    %5 = vector.load %arg2[%c0_3, %c0_4, %c0_5] : memref<16x32x128xbf16, #tpu.memory_space<vmem>>, vector<1x32x128xbf16>
    %6 = vector.shape_cast %5 : vector<1x32x128xbf16> to vector<32x128xbf16>
    %cst_6 = arith.constant dense<0.000000e+00> : vector<9x128xf32>
    %7 = tpu.matmul %4, %6, %cst_6 {dimension_numbers = #tpu.dot_dimension_numbers<[1], [0], [0], [1], [0, 0, 1, 1], [], []>} : vector<9x32xbf16>, vector<32x128xbf16>, vector<9x128xf32> -> vector<9x128xf32>
    %8 = arith.addf %0, %7 : vector<9x128xf32>
    %9 = vector.extract_strided_slice %2 {offsets = [0, 1, 0], sizes = [3, 3, 32], strides = [1, 1, 1]} : vector<4x4x32xbf16> to vector<3x3x32xbf16>
    %10 = vector.shape_cast %9 : vector<3x3x32xbf16> to vector<9x32xbf16>
    %c2 = arith.constant 2 : index
    %c0_7 = arith.constant 0 : index
    %c0_8 = arith.constant 0 : index
    %11 = vector.load %arg2[%c2, %c0_7, %c0_8] : memref<16x32x128xbf16, #tpu.memory_space<vmem>>, vector<1x32x128xbf16>
    %12 = vector.shape_cast %11 : vector<1x32x128xbf16> to vector<32x128xbf16>
    %cst_9 = arith.constant dense<0.000000e+00> : vector<9x128xf32>
    %13 = tpu.matmul %10, %12, %cst_9 {dimension_numbers = #tpu.dot_dimension_numbers<[1], [0], [0], [1], [0, 0, 1, 1], [], []>} : vector<9x32xbf16>, vector<32x128xbf16>, vector<9x128xf32> -> vector<9x128xf32>
    %14 = arith.addf %8, %13 : vector<9x128xf32>
    %15 = vector.extract_strided_slice %2 {offsets = [1, 0, 0], sizes = [3, 3, 32], strides = [1, 1, 1]} : vector<4x4x32xbf16> to vector<3x3x32xbf16>
    %16 = vector.shape_cast %15 : vector<3x3x32xbf16> to vector<9x32xbf16>
    %c8 = arith.constant 8 : index
    %c0_10 = arith.constant 0 : index
    %c0_11 = arith.constant 0 : index
    %17 = vector.load %arg2[%c8, %c0_10, %c0_11] : memref<16x32x128xbf16, #tpu.memory_space<vmem>>, vector<1x32x128xbf16>
    %18 = vector.shape_cast %17 : vector<1x32x128xbf16> to vector<32x128xbf16>
    %cst_12 = arith.constant dense<0.000000e+00> : vector<9x128xf32>
    %19 = tpu.matmul %16, %18, %cst_12 {dimension_numbers = #tpu.dot_dimension_numbers<[1], [0], [0], [1], [0, 0, 1, 1], [], []>} : vector<9x32xbf16>, vector<32x128xbf16>, vector<9x128xf32> -> vector<9x128xf32>
    %20 = arith.addf %14, %19 : vector<9x128xf32>
    %21 = vector.extract_strided_slice %2 {offsets = [1, 1, 0], sizes = [3, 3, 32], strides = [1, 1, 1]} : vector<4x4x32xbf16> to vector<3x3x32xbf16>
    %22 = vector.shape_cast %21 : vector<3x3x32xbf16> to vector<9x32xbf16>
    %c10 = arith.constant 10 : index
    %c0_13 = arith.constant 0 : index
    %c0_14 = arith.constant 0 : index
    %23 = vector.load %arg2[%c10, %c0_13, %c0_14] : memref<16x32x128xbf16, #tpu.memory_space<vmem>>, vector<1x32x128xbf16>
    %24 = vector.shape_cast %23 : vector<1x32x128xbf16> to vector<32x128xbf16>
    %cst_15 = arith.constant dense<0.000000e+00> : vector<9x128xf32>
    %25 = tpu.matmul %22, %24, %cst_15 {dimension_numbers = #tpu.dot_dimension_numbers<[1], [0], [0], [1], [0, 0, 1, 1], [], []>} : vector<9x32xbf16>, vector<32x128xbf16>, vector<9x128xf32> -> vector<9x128xf32>
    %26 = arith.addf %20, %25 : vector<9x128xf32>
    %c1 = arith.constant 1 : index
    %c0_16 = arith.constant 0 : index
    %c0_17 = arith.constant 0 : index
    %c0_18 = arith.constant 0 : index
    %27 = vector.load %arg1[%c1, %c0_16, %c0_17, %c0_18] : memref<4x4x4x32xbf16, #tpu.memory_space<vmem>>, vector<1x4x4x32xbf16>
    %28 = vector.shape_cast %27 : vector<1x4x4x32xbf16> to vector<4x4x32xbf16>
    %29 = vector.extract_strided_slice %28 {offsets = [0, 0, 0], sizes = [3, 3, 32], strides = [1, 1, 1]} : vector<4x4x32xbf16> to vector<3x3x32xbf16>
    %30 = vector.shape_cast %29 : vector<3x3x32xbf16> to vector<9x32xbf16>
    %c1_19 = arith.constant 1 : index
    %c0_20 = arith.constant 0 : index
    %c0_21 = arith.constant 0 : index
    %31 = vector.load %arg2[%c1_19, %c0_20, %c0_21] : memref<16x32x128xbf16, #tpu.memory_space<vmem>>, vector<1x32x128xbf16>
    %32 = vector.shape_cast %31 : vector<1x32x128xbf16> to vector<32x128xbf16>
    %cst_22 = arith.constant dense<0.000000e+00> : vector<9x128xf32>
    %33 = tpu.matmul %30, %32, %cst_22 {dimension_numbers = #tpu.dot_dimension_numbers<[1], [0], [0], [1], [0, 0, 1, 1], [], []>} : vector<9x32xbf16>, vector<32x128xbf16>, vector<9x128xf32> -> vector<9x128xf32>
    %34 = arith.addf %26, %33 : vector<9x128xf32>
    %35 = vector.extract_strided_slice %28 {offsets = [0, 1, 0], sizes = [3, 3, 32], strides = [1, 1, 1]} : vector<4x4x32xbf16> to vector<3x3x32xbf16>
    %36 = vector.shape_cast %35 : vector<3x3x32xbf16> to vector<9x32xbf16>
    %c3 = arith.constant 3 : index
    %c0_23 = arith.constant 0 : index
    %c0_24 = arith.constant 0 : index
    %37 = vector.load %arg2[%c3, %c0_23, %c0_24] : memref<16x32x128xbf16, #tpu.memory_space<vmem>>, vector<1x32x128xbf16>
    %38 = vector.shape_cast %37 : vector<1x32x128xbf16> to vector<32x128xbf16>
    %cst_25 = arith.constant dense<0.000000e+00> : vector<9x128xf32>
    %39 = tpu.matmul %36, %38, %cst_25 {dimension_numbers = #tpu.dot_dimension_numbers<[1], [0], [0], [1], [0, 0, 1, 1], [], []>} : vector<9x32xbf16>, vector<32x128xbf16>, vector<9x128xf32> -> vector<9x128xf32>
    %40 = arith.addf %34, %39 : vector<9x128xf32>
    %41 = vector.extract_strided_slice %28 {offsets = [1, 0, 0], sizes = [3, 3, 32], strides = [1, 1, 1]} : vector<4x4x32xbf16> to vector<3x3x32xbf16>
    %42 = vector.shape_cast %41 : vector<3x3x32xbf16> to vector<9x32xbf16>
    %c9 = arith.constant 9 : index
    %c0_26 = arith.constant 0 : index
    %c0_27 = arith.constant 0 : index
    %43 = vector.load %arg2[%c9, %c0_26, %c0_27] : memref<16x32x128xbf16, #tpu.memory_space<vmem>>, vector<1x32x128xbf16>
    %44 = vector.shape_cast %43 : vector<1x32x128xbf16> to vector<32x128xbf16>
    %cst_28 = arith.constant dense<0.000000e+00> : vector<9x128xf32>
    %45 = tpu.matmul %42, %44, %cst_28 {dimension_numbers = #tpu.dot_dimension_numbers<[1], [0], [0], [1], [0, 0, 1, 1], [], []>} : vector<9x32xbf16>, vector<32x128xbf16>, vector<9x128xf32> -> vector<9x128xf32>
    %46 = arith.addf %40, %45 : vector<9x128xf32>
    %47 = vector.extract_strided_slice %28 {offsets = [1, 1, 0], sizes = [3, 3, 32], strides = [1, 1, 1]} : vector<4x4x32xbf16> to vector<3x3x32xbf16>
    %48 = vector.shape_cast %47 : vector<3x3x32xbf16> to vector<9x32xbf16>
    %c11 = arith.constant 11 : index
    %c0_29 = arith.constant 0 : index
    %c0_30 = arith.constant 0 : index
    %49 = vector.load %arg2[%c11, %c0_29, %c0_30] : memref<16x32x128xbf16, #tpu.memory_space<vmem>>, vector<1x32x128xbf16>
    %50 = vector.shape_cast %49 : vector<1x32x128xbf16> to vector<32x128xbf16>
    %cst_31 = arith.constant dense<0.000000e+00> : vector<9x128xf32>
    %51 = tpu.matmul %48, %50, %cst_31 {dimension_numbers = #tpu.dot_dimension_numbers<[1], [0], [0], [1], [0, 0, 1, 1], [], []>} : vector<9x32xbf16>, vector<32x128xbf16>, vector<9x128xf32> -> vector<9x128xf32>
    %52 = arith.addf %46, %51 : vector<9x128xf32>
    %c2_32 = arith.constant 2 : index
    %c0_33 = arith.constant 0 : index
    %c0_34 = arith.constant 0 : index
    %c0_35 = arith.constant 0 : index
    %53 = vector.load %arg1[%c2_32, %c0_33, %c0_34, %c0_35] : memref<4x4x4x32xbf16, #tpu.memory_space<vmem>>, vector<1x4x4x32xbf16>
    %54 = vector.shape_cast %53 : vector<1x4x4x32xbf16> to vector<4x4x32xbf16>
    %55 = vector.extract_strided_slice %54 {offsets = [0, 0, 0], sizes = [3, 3, 32], strides = [1, 1, 1]} : vector<4x4x32xbf16> to vector<3x3x32xbf16>
    %56 = vector.shape_cast %55 : vector<3x3x32xbf16> to vector<9x32xbf16>
    %c4 = arith.constant 4 : index
    %c0_36 = arith.constant 0 : index
    %c0_37 = arith.constant 0 : index
    %57 = vector.load %arg2[%c4, %c0_36, %c0_37] : memref<16x32x128xbf16, #tpu.memory_space<vmem>>, vector<1x32x128xbf16>
    %58 = vector.shape_cast %57 : vector<1x32x128xbf16> to vector<32x128xbf16>
    %cst_38 = arith.constant dense<0.000000e+00> : vector<9x128xf32>
    %59 = tpu.matmul %56, %58, %cst_38 {dimension_numbers = #tpu.dot_dimension_numbers<[1], [0], [0], [1], [0, 0, 1, 1], [], []>} : vector<9x32xbf16>, vector<32x128xbf16>, vector<9x128xf32> -> vector<9x128xf32>
    %60 = arith.addf %52, %59 : vector<9x128xf32>
    %61 = vector.extract_strided_slice %54 {offsets = [0, 1, 0], sizes = [3, 3, 32], strides = [1, 1, 1]} : vector<4x4x32xbf16> to vector<3x3x32xbf16>
    %62 = vector.shape_cast %61 : vector<3x3x32xbf16> to vector<9x32xbf16>
    %c6 = arith.constant 6 : index
    %c0_39 = arith.constant 0 : index
    %c0_40 = arith.constant 0 : index
    %63 = vector.load %arg2[%c6, %c0_39, %c0_40] : memref<16x32x128xbf16, #tpu.memory_space<vmem>>, vector<1x32x128xbf16>
    %64 = vector.shape_cast %63 : vector<1x32x128xbf16> to vector<32x128xbf16>
    %cst_41 = arith.constant dense<0.000000e+00> : vector<9x128xf32>
    %65 = tpu.matmul %62, %64, %cst_41 {dimension_numbers = #tpu.dot_dimension_numbers<[1], [0], [0], [1], [0, 0, 1, 1], [], []>} : vector<9x32xbf16>, vector<32x128xbf16>, vector<9x128xf32> -> vector<9x128xf32>
    %66 = arith.addf %60, %65 : vector<9x128xf32>
    %67 = vector.extract_strided_slice %54 {offsets = [1, 0, 0], sizes = [3, 3, 32], strides = [1, 1, 1]} : vector<4x4x32xbf16> to vector<3x3x32xbf16>
    %68 = vector.shape_cast %67 : vector<3x3x32xbf16> to vector<9x32xbf16>
    %c12 = arith.constant 12 : index
    %c0_42 = arith.constant 0 : index
    %c0_43 = arith.constant 0 : index
    %69 = vector.load %arg2[%c12, %c0_42, %c0_43] : memref<16x32x128xbf16, #tpu.memory_space<vmem>>, vector<1x32x128xbf16>
    %70 = vector.shape_cast %69 : vector<1x32x128xbf16> to vector<32x128xbf16>
    %cst_44 = arith.constant dense<0.000000e+00> : vector<9x128xf32>
    %71 = tpu.matmul %68, %70, %cst_44 {dimension_numbers = #tpu.dot_dimension_numbers<[1], [0], [0], [1], [0, 0, 1, 1], [], []>} : vector<9x32xbf16>, vector<32x128xbf16>, vector<9x128xf32> -> vector<9x128xf32>
    %72 = arith.addf %66, %71 : vector<9x128xf32>
    %73 = vector.extract_strided_slice %54 {offsets = [1, 1, 0], sizes = [3, 3, 32], strides = [1, 1, 1]} : vector<4x4x32xbf16> to vector<3x3x32xbf16>
    %74 = vector.shape_cast %73 : vector<3x3x32xbf16> to vector<9x32xbf16>
    %c14 = arith.constant 14 : index
    %c0_45 = arith.constant 0 : index
    %c0_46 = arith.constant 0 : index
    %75 = vector.load %arg2[%c14, %c0_45, %c0_46] : memref<16x32x128xbf16, #tpu.memory_space<vmem>>, vector<1x32x128xbf16>
    %76 = vector.shape_cast %75 : vector<1x32x128xbf16> to vector<32x128xbf16>
    %cst_47 = arith.constant dense<0.000000e+00> : vector<9x128xf32>
    %77 = tpu.matmul %74, %76, %cst_47 {dimension_numbers = #tpu.dot_dimension_numbers<[1], [0], [0], [1], [0, 0, 1, 1], [], []>} : vector<9x32xbf16>, vector<32x128xbf16>, vector<9x128xf32> -> vector<9x128xf32>
    %78 = arith.addf %72, %77 : vector<9x128xf32>
    %c3_48 = arith.constant 3 : index
    %c0_49 = arith.constant 0 : index
    %c0_50 = arith.constant 0 : index
    %c0_51 = arith.constant 0 : index
    %79 = vector.load %arg1[%c3_48, %c0_49, %c0_50, %c0_51] : memref<4x4x4x32xbf16, #tpu.memory_space<vmem>>, vector<1x4x4x32xbf16>
    %80 = vector.shape_cast %79 : vector<1x4x4x32xbf16> to vector<4x4x32xbf16>
    %81 = vector.extract_strided_slice %80 {offsets = [0, 0, 0], sizes = [3, 3, 32], strides = [1, 1, 1]} : vector<4x4x32xbf16> to vector<3x3x32xbf16>
    %82 = vector.shape_cast %81 : vector<3x3x32xbf16> to vector<9x32xbf16>
    %c5 = arith.constant 5 : index
    %c0_52 = arith.constant 0 : index
    %c0_53 = arith.constant 0 : index
    %83 = vector.load %arg2[%c5, %c0_52, %c0_53] : memref<16x32x128xbf16, #tpu.memory_space<vmem>>, vector<1x32x128xbf16>
    %84 = vector.shape_cast %83 : vector<1x32x128xbf16> to vector<32x128xbf16>
    %cst_54 = arith.constant dense<0.000000e+00> : vector<9x128xf32>
    %85 = tpu.matmul %82, %84, %cst_54 {dimension_numbers = #tpu.dot_dimension_numbers<[1], [0], [0], [1], [0, 0, 1, 1], [], []>} : vector<9x32xbf16>, vector<32x128xbf16>, vector<9x128xf32> -> vector<9x128xf32>
    %86 = arith.addf %78, %85 : vector<9x128xf32>
    %87 = vector.extract_strided_slice %80 {offsets = [0, 1, 0], sizes = [3, 3, 32], strides = [1, 1, 1]} : vector<4x4x32xbf16> to vector<3x3x32xbf16>
    %88 = vector.shape_cast %87 : vector<3x3x32xbf16> to vector<9x32xbf16>
    %c7 = arith.constant 7 : index
    %c0_55 = arith.constant 0 : index
    %c0_56 = arith.constant 0 : index
    %89 = vector.load %arg2[%c7, %c0_55, %c0_56] : memref<16x32x128xbf16, #tpu.memory_space<vmem>>, vector<1x32x128xbf16>
    %90 = vector.shape_cast %89 : vector<1x32x128xbf16> to vector<32x128xbf16>
    %cst_57 = arith.constant dense<0.000000e+00> : vector<9x128xf32>
    %91 = tpu.matmul %88, %90, %cst_57 {dimension_numbers = #tpu.dot_dimension_numbers<[1], [0], [0], [1], [0, 0, 1, 1], [], []>} : vector<9x32xbf16>, vector<32x128xbf16>, vector<9x128xf32> -> vector<9x128xf32>
    %92 = arith.addf %86, %91 : vector<9x128xf32>
    %93 = vector.extract_strided_slice %80 {offsets = [1, 0, 0], sizes = [3, 3, 32], strides = [1, 1, 1]} : vector<4x4x32xbf16> to vector<3x3x32xbf16>
    %94 = vector.shape_cast %93 : vector<3x3x32xbf16> to vector<9x32xbf16>
    %c13 = arith.constant 13 : index
    %c0_58 = arith.constant 0 : index
    %c0_59 = arith.constant 0 : index
    %95 = vector.load %arg2[%c13, %c0_58, %c0_59] : memref<16x32x128xbf16, #tpu.memory_space<vmem>>, vector<1x32x128xbf16>
    %96 = vector.shape_cast %95 : vector<1x32x128xbf16> to vector<32x128xbf16>
    %cst_60 = arith.constant dense<0.000000e+00> : vector<9x128xf32>
    %97 = tpu.matmul %94, %96, %cst_60 {dimension_numbers = #tpu.dot_dimension_numbers<[1], [0], [0], [1], [0, 0, 1, 1], [], []>} : vector<9x32xbf16>, vector<32x128xbf16>, vector<9x128xf32> -> vector<9x128xf32>
    %98 = arith.addf %92, %97 : vector<9x128xf32>
    %99 = vector.extract_strided_slice %80 {offsets = [1, 1, 0], sizes = [3, 3, 32], strides = [1, 1, 1]} : vector<4x4x32xbf16> to vector<3x3x32xbf16>
    %100 = vector.shape_cast %99 : vector<3x3x32xbf16> to vector<9x32xbf16>
    %c15 = arith.constant 15 : index
    %c0_61 = arith.constant 0 : index
    %c0_62 = arith.constant 0 : index
    %101 = vector.load %arg2[%c15, %c0_61, %c0_62] : memref<16x32x128xbf16, #tpu.memory_space<vmem>>, vector<1x32x128xbf16>
    %102 = vector.shape_cast %101 : vector<1x32x128xbf16> to vector<32x128xbf16>
    %cst_63 = arith.constant dense<0.000000e+00> : vector<9x128xf32>
    %103 = tpu.matmul %100, %102, %cst_63 {dimension_numbers = #tpu.dot_dimension_numbers<[1], [0], [0], [1], [0, 0, 1, 1], [], []>} : vector<9x32xbf16>, vector<32x128xbf16>, vector<9x128xf32> -> vector<9x128xf32>
    %104 = arith.addf %98, %103 : vector<9x128xf32>
    %c0_64 = arith.constant 0 : index
    %c0_65 = arith.constant 0 : index
    %105 = vector.load %arg3[%c0_64, %c0_65] : memref<1x128xf32, #tpu.memory_space<vmem>>, vector<1x128xf32>
    %106 = vector.broadcast %105 : vector<1x128xf32> to vector<9x128xf32>
    %107 = arith.addf %104, %106 : vector<9x128xf32>
    %cst_66 = arith.constant 0.000000e+00 : f32
    %108 = vector.broadcast %cst_66 : f32 to vector<9x128xf32>
    %109 = arith.maximumf %107, %108 : vector<9x128xf32>
    %110 = arith.truncf %109 : vector<9x128xf32> to vector<9x128xbf16>
    %c0_67 = arith.constant 0 : index
    %c0_68 = arith.constant 0 : index
    %c0_69 = arith.constant 0 : index
    %111 = vector.load %arg4[%c0_67, %c0_68, %c0_69] : memref<1x9x128xbf16, #tpu.memory_space<vmem>>, vector<1x9x128xbf16>
    %112 = vector.shape_cast %111 : vector<1x9x128xbf16> to vector<9x128xbf16>
    %113 = vector.shape_cast %110 : vector<9x128xbf16> to vector<1x9x128xbf16>
    tpu.vector_store %arg4[%c0_67, %c0_68, %c0_69], %113 {strides = array<i32>} : memref<1x9x128xbf16, #tpu.memory_space<vmem>>, vector<1x9x128xbf16>,
    return
  }
  func.func @transform_0(%arg0: i32) -> (i32, i32, i32, i32) {
    %c0_i32 = arith.constant 0 : i32
    %c0_i32_0 = arith.constant 0 : i32
    %c0_i32_1 = arith.constant 0 : i32
    %c0_i32_2 = arith.constant 0 : i32
    return %arg0, %c0_i32, %c0_i32_0, %c0_i32_1 : i32, i32, i32, i32
  }
  func.func @transform_1(%arg0: i32) -> (i32, i32, i32) {
    %c0_i32 = arith.constant 0 : i32
    %c0_i32_0 = arith.constant 0 : i32
    %c0_i32_1 = arith.constant 0 : i32
    %c0_i32_2 = arith.constant 0 : i32
    return %c0_i32, %c0_i32_0, %c0_i32_1 : i32, i32, i32
  }
  func.func @transform_2(%arg0: i32) -> (i32, i32) {
    %c0_i32 = arith.constant 0 : i32
    %c0_i32_0 = arith.constant 0 : i32
    %c0_i32_1 = arith.constant 0 : i32
    return %c0_i32, %c0_i32_0 : i32, i32
  }
  func.func @transform_3(%arg0: i32) -> (i32, i32, i32) {
    %c0_i32 = arith.constant 0 : i32
    %c0_i32_0 = arith.constant 0 : i32
    %c0_i32_1 = arith.constant 0 : i32
    return %arg0, %c0_i32, %c0_i32_0 : i32, i32, i32
  }
}

module attributes {stable_mosaic.version = 11 : i64} {
  func.func @_conv_kernel(%arg0: i32, %arg1: memref<1x3x3x64xbf16, #tpu.memory_space<vmem>>, %arg2: memref<9x64x128xbf16, #tpu.memory_space<vmem>>, %arg3: memref<1x128xf32, #tpu.memory_space<vmem>>, %arg4: memref<1x1x128xbf16, #tpu.memory_space<vmem>>) attributes {dimension_semantics = [#tpu.dimension_semantics<parallel>], iteration_bounds = array<i64: 2>, scalar_prefetch = 0 : i64, scratch_operands = 0 : i64, tpu.core_type = #tpu.core_type<tc>, window_params = [{transform_indices = @transform_0, window_bounds = array<i64: 1, 3, 3, 64>}, {pipeline_mode = #tpu.pipeline_mode<synchronous>, transform_indices = @transform_1, window_bounds = array<i64: 9, 64, 128>}, {pipeline_mode = #tpu.pipeline_mode<synchronous>, transform_indices = @transform_2, window_bounds = array<i64: 1, 128>}, {transform_indices = @transform_3, window_bounds = array<i64: 1, 1, 128>}]} {
    %cst = arith.constant 0.000000e+00 : f32
    %0 = vector.broadcast %cst : f32 to vector<1x128xf32>
    %c0 = arith.constant 0 : index
    %c0_0 = arith.constant 0 : index
    %c0_1 = arith.constant 0 : index
    %c0_2 = arith.constant 0 : index
    %1 = vector.load %arg1[%c0, %c0_0, %c0_1, %c0_2] : memref<1x3x3x64xbf16, #tpu.memory_space<vmem>>, vector<1x3x3x64xbf16>
    %2 = vector.shape_cast %1 : vector<1x3x3x64xbf16> to vector<3x3x64xbf16>
    %3 = vector.extract_strided_slice %2 {offsets = [0, 0, 0], sizes = [1, 1, 64], strides = [1, 1, 1]} : vector<3x3x64xbf16> to vector<1x1x64xbf16>
    %4 = vector.shape_cast %3 : vector<1x1x64xbf16> to vector<1x64xbf16>
    %c0_3 = arith.constant 0 : index
    %c0_4 = arith.constant 0 : index
    %c0_5 = arith.constant 0 : index
    %5 = vector.load %arg2[%c0_3, %c0_4, %c0_5] : memref<9x64x128xbf16, #tpu.memory_space<vmem>>, vector<1x64x128xbf16>
    %6 = vector.shape_cast %5 : vector<1x64x128xbf16> to vector<64x128xbf16>
    %cst_6 = arith.constant dense<0.000000e+00> : vector<1x128xf32>
    %7 = tpu.matmul %4, %6, %cst_6 {dimension_numbers = #tpu.dot_dimension_numbers<[1], [0], [0], [1], [0, 0, 1, 1], [], []>} : vector<1x64xbf16>, vector<64x128xbf16>, vector<1x128xf32> -> vector<1x128xf32>
    %8 = arith.addf %0, %7 : vector<1x128xf32>
    %9 = vector.extract_strided_slice %2 {offsets = [0, 1, 0], sizes = [1, 1, 64], strides = [1, 1, 1]} : vector<3x3x64xbf16> to vector<1x1x64xbf16>
    %10 = vector.shape_cast %9 : vector<1x1x64xbf16> to vector<1x64xbf16>
    %c1 = arith.constant 1 : index
    %c0_7 = arith.constant 0 : index
    %c0_8 = arith.constant 0 : index
    %11 = vector.load %arg2[%c1, %c0_7, %c0_8] : memref<9x64x128xbf16, #tpu.memory_space<vmem>>, vector<1x64x128xbf16>
    %12 = vector.shape_cast %11 : vector<1x64x128xbf16> to vector<64x128xbf16>
    %cst_9 = arith.constant dense<0.000000e+00> : vector<1x128xf32>
    %13 = tpu.matmul %10, %12, %cst_9 {dimension_numbers = #tpu.dot_dimension_numbers<[1], [0], [0], [1], [0, 0, 1, 1], [], []>} : vector<1x64xbf16>, vector<64x128xbf16>, vector<1x128xf32> -> vector<1x128xf32>
    %14 = arith.addf %8, %13 : vector<1x128xf32>
    %15 = vector.extract_strided_slice %2 {offsets = [0, 2, 0], sizes = [1, 1, 64], strides = [1, 1, 1]} : vector<3x3x64xbf16> to vector<1x1x64xbf16>
    %16 = vector.shape_cast %15 : vector<1x1x64xbf16> to vector<1x64xbf16>
    %c2 = arith.constant 2 : index
    %c0_10 = arith.constant 0 : index
    %c0_11 = arith.constant 0 : index
    %17 = vector.load %arg2[%c2, %c0_10, %c0_11] : memref<9x64x128xbf16, #tpu.memory_space<vmem>>, vector<1x64x128xbf16>
    %18 = vector.shape_cast %17 : vector<1x64x128xbf16> to vector<64x128xbf16>
    %cst_12 = arith.constant dense<0.000000e+00> : vector<1x128xf32>
    %19 = tpu.matmul %16, %18, %cst_12 {dimension_numbers = #tpu.dot_dimension_numbers<[1], [0], [0], [1], [0, 0, 1, 1], [], []>} : vector<1x64xbf16>, vector<64x128xbf16>, vector<1x128xf32> -> vector<1x128xf32>
    %20 = arith.addf %14, %19 : vector<1x128xf32>
    %21 = vector.extract_strided_slice %2 {offsets = [1, 0, 0], sizes = [1, 1, 64], strides = [1, 1, 1]} : vector<3x3x64xbf16> to vector<1x1x64xbf16>
    %22 = vector.shape_cast %21 : vector<1x1x64xbf16> to vector<1x64xbf16>
    %c3 = arith.constant 3 : index
    %c0_13 = arith.constant 0 : index
    %c0_14 = arith.constant 0 : index
    %23 = vector.load %arg2[%c3, %c0_13, %c0_14] : memref<9x64x128xbf16, #tpu.memory_space<vmem>>, vector<1x64x128xbf16>
    %24 = vector.shape_cast %23 : vector<1x64x128xbf16> to vector<64x128xbf16>
    %cst_15 = arith.constant dense<0.000000e+00> : vector<1x128xf32>
    %25 = tpu.matmul %22, %24, %cst_15 {dimension_numbers = #tpu.dot_dimension_numbers<[1], [0], [0], [1], [0, 0, 1, 1], [], []>} : vector<1x64xbf16>, vector<64x128xbf16>, vector<1x128xf32> -> vector<1x128xf32>
    %26 = arith.addf %20, %25 : vector<1x128xf32>
    %27 = vector.extract_strided_slice %2 {offsets = [1, 1, 0], sizes = [1, 1, 64], strides = [1, 1, 1]} : vector<3x3x64xbf16> to vector<1x1x64xbf16>
    %28 = vector.shape_cast %27 : vector<1x1x64xbf16> to vector<1x64xbf16>
    %c4 = arith.constant 4 : index
    %c0_16 = arith.constant 0 : index
    %c0_17 = arith.constant 0 : index
    %29 = vector.load %arg2[%c4, %c0_16, %c0_17] : memref<9x64x128xbf16, #tpu.memory_space<vmem>>, vector<1x64x128xbf16>
    %30 = vector.shape_cast %29 : vector<1x64x128xbf16> to vector<64x128xbf16>
    %cst_18 = arith.constant dense<0.000000e+00> : vector<1x128xf32>
    %31 = tpu.matmul %28, %30, %cst_18 {dimension_numbers = #tpu.dot_dimension_numbers<[1], [0], [0], [1], [0, 0, 1, 1], [], []>} : vector<1x64xbf16>, vector<64x128xbf16>, vector<1x128xf32> -> vector<1x128xf32>
    %32 = arith.addf %26, %31 : vector<1x128xf32>
    %33 = vector.extract_strided_slice %2 {offsets = [1, 2, 0], sizes = [1, 1, 64], strides = [1, 1, 1]} : vector<3x3x64xbf16> to vector<1x1x64xbf16>
    %34 = vector.shape_cast %33 : vector<1x1x64xbf16> to vector<1x64xbf16>
    %c5 = arith.constant 5 : index
    %c0_19 = arith.constant 0 : index
    %c0_20 = arith.constant 0 : index
    %35 = vector.load %arg2[%c5, %c0_19, %c0_20] : memref<9x64x128xbf16, #tpu.memory_space<vmem>>, vector<1x64x128xbf16>
    %36 = vector.shape_cast %35 : vector<1x64x128xbf16> to vector<64x128xbf16>
    %cst_21 = arith.constant dense<0.000000e+00> : vector<1x128xf32>
    %37 = tpu.matmul %34, %36, %cst_21 {dimension_numbers = #tpu.dot_dimension_numbers<[1], [0], [0], [1], [0, 0, 1, 1], [], []>} : vector<1x64xbf16>, vector<64x128xbf16>, vector<1x128xf32> -> vector<1x128xf32>
    %38 = arith.addf %32, %37 : vector<1x128xf32>
    %39 = vector.extract_strided_slice %2 {offsets = [2, 0, 0], sizes = [1, 1, 64], strides = [1, 1, 1]} : vector<3x3x64xbf16> to vector<1x1x64xbf16>
    %40 = vector.shape_cast %39 : vector<1x1x64xbf16> to vector<1x64xbf16>
    %c6 = arith.constant 6 : index
    %c0_22 = arith.constant 0 : index
    %c0_23 = arith.constant 0 : index
    %41 = vector.load %arg2[%c6, %c0_22, %c0_23] : memref<9x64x128xbf16, #tpu.memory_space<vmem>>, vector<1x64x128xbf16>
    %42 = vector.shape_cast %41 : vector<1x64x128xbf16> to vector<64x128xbf16>
    %cst_24 = arith.constant dense<0.000000e+00> : vector<1x128xf32>
    %43 = tpu.matmul %40, %42, %cst_24 {dimension_numbers = #tpu.dot_dimension_numbers<[1], [0], [0], [1], [0, 0, 1, 1], [], []>} : vector<1x64xbf16>, vector<64x128xbf16>, vector<1x128xf32> -> vector<1x128xf32>
    %44 = arith.addf %38, %43 : vector<1x128xf32>
    %45 = vector.extract_strided_slice %2 {offsets = [2, 1, 0], sizes = [1, 1, 64], strides = [1, 1, 1]} : vector<3x3x64xbf16> to vector<1x1x64xbf16>
    %46 = vector.shape_cast %45 : vector<1x1x64xbf16> to vector<1x64xbf16>
    %c7 = arith.constant 7 : index
    %c0_25 = arith.constant 0 : index
    %c0_26 = arith.constant 0 : index
    %47 = vector.load %arg2[%c7, %c0_25, %c0_26] : memref<9x64x128xbf16, #tpu.memory_space<vmem>>, vector<1x64x128xbf16>
    %48 = vector.shape_cast %47 : vector<1x64x128xbf16> to vector<64x128xbf16>
    %cst_27 = arith.constant dense<0.000000e+00> : vector<1x128xf32>
    %49 = tpu.matmul %46, %48, %cst_27 {dimension_numbers = #tpu.dot_dimension_numbers<[1], [0], [0], [1], [0, 0, 1, 1], [], []>} : vector<1x64xbf16>, vector<64x128xbf16>, vector<1x128xf32> -> vector<1x128xf32>
    %50 = arith.addf %44, %49 : vector<1x128xf32>
    %51 = vector.extract_strided_slice %2 {offsets = [2, 2, 0], sizes = [1, 1, 64], strides = [1, 1, 1]} : vector<3x3x64xbf16> to vector<1x1x64xbf16>
    %52 = vector.shape_cast %51 : vector<1x1x64xbf16> to vector<1x64xbf16>
    %c8 = arith.constant 8 : index
    %c0_28 = arith.constant 0 : index
    %c0_29 = arith.constant 0 : index
    %53 = vector.load %arg2[%c8, %c0_28, %c0_29] : memref<9x64x128xbf16, #tpu.memory_space<vmem>>, vector<1x64x128xbf16>
    %54 = vector.shape_cast %53 : vector<1x64x128xbf16> to vector<64x128xbf16>
    %cst_30 = arith.constant dense<0.000000e+00> : vector<1x128xf32>
    %55 = tpu.matmul %52, %54, %cst_30 {dimension_numbers = #tpu.dot_dimension_numbers<[1], [0], [0], [1], [0, 0, 1, 1], [], []>} : vector<1x64xbf16>, vector<64x128xbf16>, vector<1x128xf32> -> vector<1x128xf32>
    %56 = arith.addf %50, %55 : vector<1x128xf32>
    %c0_31 = arith.constant 0 : index
    %c0_32 = arith.constant 0 : index
    %57 = vector.load %arg3[%c0_31, %c0_32] : memref<1x128xf32, #tpu.memory_space<vmem>>, vector<1x128xf32>
    %58 = arith.addf %56, %57 : vector<1x128xf32>
    %cst_33 = arith.constant 0.000000e+00 : f32
    %59 = vector.broadcast %cst_33 : f32 to vector<1x128xf32>
    %60 = arith.maximumf %58, %59 : vector<1x128xf32>
    %61 = arith.truncf %60 : vector<1x128xf32> to vector<1x128xbf16>
    %c0_34 = arith.constant 0 : index
    %c0_35 = arith.constant 0 : index
    %c0_36 = arith.constant 0 : index
    %62 = vector.load %arg4[%c0_34, %c0_35, %c0_36] : memref<1x1x128xbf16, #tpu.memory_space<vmem>>, vector<1x1x128xbf16>
    %63 = vector.shape_cast %62 : vector<1x1x128xbf16> to vector<1x128xbf16>
    %64 = vector.shape_cast %61 : vector<1x128xbf16> to vector<1x1x128xbf16>
    tpu.vector_store %arg4[%c0_34, %c0_35, %c0_36], %64 {strides = array<i32>} : memref<1x1x128xbf16, #tpu.memory_space<vmem>>, vector<1x1x128xbf16>,
    return
  }
  func.func @transform_0(%arg0: i32) -> (i32, i32, i32, i32) {
    %c0_i32 = arith.constant 0 : i32
    %c0_i32_0 = arith.constant 0 : i32
    %c0_i32_1 = arith.constant 0 : i32
    %c0_i32_2 = arith.constant 0 : i32
    return %arg0, %c0_i32, %c0_i32_0, %c0_i32_1 : i32, i32, i32, i32
  }
  func.func @transform_1(%arg0: i32) -> (i32, i32, i32) {
    %c0_i32 = arith.constant 0 : i32
    %c0_i32_0 = arith.constant 0 : i32
    %c0_i32_1 = arith.constant 0 : i32
    %c0_i32_2 = arith.constant 0 : i32
    return %c0_i32, %c0_i32_0, %c0_i32_1 : i32, i32, i32
  }
  func.func @transform_2(%arg0: i32) -> (i32, i32) {
    %c0_i32 = arith.constant 0 : i32
    %c0_i32_0 = arith.constant 0 : i32
    %c0_i32_1 = arith.constant 0 : i32
    return %c0_i32, %c0_i32_0 : i32, i32
  }
  func.func @transform_3(%arg0: i32) -> (i32, i32, i32) {
    %c0_i32 = arith.constant 0 : i32
    %c0_i32_0 = arith.constant 0 : i32
    %c0_i32_1 = arith.constant 0 : i32
    return %arg0, %c0_i32, %c0_i32_0 : i32, i32, i32
  }
}

module attributes {stable_mosaic.version = 11 : i64} {
  func.func @_fc_kernel(%arg0: i32, %arg1: memref<2x64xbf16, #tpu.memory_space<vmem>>, %arg2: memref<64x256xbf16, #tpu.memory_space<vmem>>, %arg3: memref<1x256xf32, #tpu.memory_space<vmem>>, %arg4: memref<2x256xf32, #tpu.memory_space<vmem>>) attributes {dimension_semantics = [#tpu.dimension_semantics<parallel>], iteration_bounds = array<i64: 2>, scalar_prefetch = 0 : i64, scratch_operands = 0 : i64, tpu.core_type = #tpu.core_type<tc>, window_params = [{pipeline_mode = #tpu.pipeline_mode<synchronous>, transform_indices = @transform_0, window_bounds = array<i64: 2, 64>}, {transform_indices = @transform_1, window_bounds = array<i64: 64, 256>}, {transform_indices = @transform_2, window_bounds = array<i64: 1, 256>}, {transform_indices = @transform_3, window_bounds = array<i64: 2, 256>}]} {
    %c0 = arith.constant 0 : index
    %c0_0 = arith.constant 0 : index
    %0 = vector.load %arg1[%c0, %c0_0] : memref<2x64xbf16, #tpu.memory_space<vmem>>, vector<2x64xbf16>
    %c0_1 = arith.constant 0 : index
    %c0_2 = arith.constant 0 : index
    %1 = vector.load %arg2[%c0_1, %c0_2] : memref<64x256xbf16, #tpu.memory_space<vmem>>, vector<64x256xbf16>
    %cst = arith.constant dense<0.000000e+00> : vector<2x256xf32>
    %2 = tpu.matmul %0, %1, %cst {dimension_numbers = #tpu.dot_dimension_numbers<[1], [0], [0], [1], [0, 0, 1, 1], [], []>} : vector<2x64xbf16>, vector<64x256xbf16>, vector<2x256xf32> -> vector<2x256xf32>
    %c0_3 = arith.constant 0 : index
    %c0_4 = arith.constant 0 : index
    %3 = vector.load %arg3[%c0_3, %c0_4] : memref<1x256xf32, #tpu.memory_space<vmem>>, vector<1x256xf32>
    %4 = vector.broadcast %3 : vector<1x256xf32> to vector<2x256xf32>
    %5 = arith.addf %2, %4 : vector<2x256xf32>
    %cst_5 = arith.constant 0.000000e+00 : f32
    %6 = vector.broadcast %cst_5 : f32 to vector<2x256xf32>
    %7 = arith.maximumf %5, %6 : vector<2x256xf32>
    %c0_6 = arith.constant 0 : index
    %c0_7 = arith.constant 0 : index
    %8 = vector.load %arg4[%c0_6, %c0_7] : memref<2x256xf32, #tpu.memory_space<vmem>>, vector<2x256xf32>
    tpu.vector_store %arg4[%c0_6, %c0_7], %7 {strides = array<i32>} : memref<2x256xf32, #tpu.memory_space<vmem>>, vector<2x256xf32>,
    return
  }
  func.func @transform_0(%arg0: i32) -> (i32, i32) {
    %c0_i32 = arith.constant 0 : i32
    %c0_i32_0 = arith.constant 0 : i32
    %c0_i32_1 = arith.constant 0 : i32
    return %c0_i32, %c0_i32_0 : i32, i32
  }
  func.func @transform_1(%arg0: i32) -> (i32, i32) {
    %c0_i32 = arith.constant 0 : i32
    %c0_i32_0 = arith.constant 0 : i32
    return %c0_i32, %arg0 : i32, i32
  }
  func.func @transform_2(%arg0: i32) -> (i32, i32) {
    %c0_i32 = arith.constant 0 : i32
    %c0_i32_0 = arith.constant 0 : i32
    return %c0_i32, %arg0 : i32, i32
  }
  func.func @transform_3(%arg0: i32) -> (i32, i32) {
    %c0_i32 = arith.constant 0 : i32
    %c0_i32_0 = arith.constant 0 : i32
    return %c0_i32, %arg0 : i32, i32
  }
}

</mosaic_0001>

<bundles_post_ra>
// kernel: nature_conv_forward.5
= control target key start
LH: loop header
LB: loop body
LE: loop exit
PB: predicated region body
PF: predicated region fallthrough
CT: control target
= control target key end

     0   :  { %s1793_s12 = smov 0   ;;  %s2118_s0 = inlined_call_operand.vmem [shape: bf16[8,4,4,32], index: 0, kind: input, shape index: {}]   ;;  %s2119_s1 = inlined_call_operand.vmem [shape: bf16[16,32,128], index: 1, kind: input, shape index: {}]   ;;  %s2120_s2 = inlined_call_operand.vmem [shape: f32[1,128], index: 2, kind: input, shape index: {}]   ;;  %s2121_s3 = inlined_call_operand.vmem [shape: bf16[2,9,128], index: 3, kind: output, shape index: {}]  }
   0x1 LB: > { %s1799_s13 = sadd.s32 4294967295, %s1771_s12   ;;  %p1474_p0 = scmp.ge.s32.totalorder %s1771_s12, 1  ;;  %s1771_s12 = sphi %s1793_s12, %s13_s12  }
   0x2   : > { %p139_p1 = scmp.lt.s32.totalorder %s1771_s12, 3 }
   0x4   : > { %p140_p2 = pnand %p1474_p0, %p139_p1 }
   0x5   : > { %s1475_s20 = sshll.u32 (!%p140_p2), %s1799_s13, 2  ;;  %p171_p4 = scmp.lt.s32.totalorder (!%p140_p2), %s1799_s13, 1 }
   0x6   : > { %143 = sbr.rel (%p140_p2) target bundleno = 367 (0x16f), region = 32  ;;  %p165_p3 = scmp.lt.s32.totalorder (!%p140_p2), %s1475_s20, 7 }
   0xb   : > { %v1727_v0 = vld [vmem:[%s2119_s1 + $0x28] sm:$0xff]  ;;  %v1726_v3 = vld [vmem:[%s2119_s1 + $0x20] sm:$0xff]  ;;  %s2123_s20 = smov (!%p165_p3, %s1475_s20), 7  ;;  %vm193_vm0 = vcmask 1040384   ;;  %vm197_vm1 = vcmask 1042434   ;;  %vm201_vm2 = vcmask 1041408  }
   0xc   : > { %v1725_v1 = vld [vmem:[%s2119_s1 + $0x8] sm:$0xff]  ;;  %300 = vmatpush.bf16.msra.mxu0 %v1727_v0  ;;  %v1724_v4 = vld [vmem:[%s2119_s1] sm:$0xff]  ;;  %s1722_s29 = sshll.u32 %s2123_s20, 3  ;;  %vm204_vm3 = vcmask 1041409   ;;  %vm206_vm4 = vcmask 1043459   ;;  %vm208_vm5 = vcmask 1042433  }
   0xd   : > { %v1729_v2 = vld [vmem:[%s2119_s1 + $0x88] sm:$0xff]  ;;  %348 = vmatpush.bf16.msra.mxu1 %v1725_v1  ;;  %v1728_v6 = vld [vmem:[%s2119_s1 + $0x80] sm:$0xff]  ;;  %s1828_s5 = scalar_lea.vmem %s2118_s0, %s1722_s29  ;;  %vm291_vm6 = vcmask 261120   ;;  %v1733_v59 = vld [vmem:[%s2119_s1 + $0x18] sm:$0xff]  ;;  %s2125_s13 = smov (!%p171_p4, %s1799_s13), 1 }
   0xe   : > { %v1731_v5 = vld [vmem:[%s2119_s1 + $0xa8] sm:$0xff]  ;;  %419 = vmatpush.bf16.msra.mxu2 %v1729_v2  ;;  %v177_v7 = vld [vmem:[%s1828_s5] sm:$0x3]  ;;  %v178_v8 = vld [vmem:[%s1828_s5 + $0x2] sm:$0x3]  ;;  %s1723_s9 = sshll.u32 %s2125_s13, 3 }
   0xf   : > { %473 = vmatpush.bf16.msra.mxu3 %v1731_v5  ;;  %v179_v9 = vld [vmem:[%s1828_s5 + $0x4] sm:$0x3]  ;;  %v184_v10 = vrot.slane %v177_v7, 1  ;;  %v185_v11 = vrot.slane %v177_v7, 2  ;;  %v186_v12 = vrot.slane %v177_v7, 3  ;;  %v187_v13 = vrot.slane %v178_v8, 1  ;;  %s175_s14 = scalar_lea.vmem %s2121_s3, %s1723_s9 }
  0x10   : > { %301 = vmatpush.bf16.msra.mxu0 %v1726_v3  ;;  %v188_v14 = vrot.slane %v178_v8, 2  ;;  %v189_v15 = vrot.slane %v178_v8, 3  ;;  %v190_v16 = vrot.slane %v179_v9, 1  ;;  %v191_v17 = vrot.slane %v179_v9, 2  ;;  %v1730_v48 = vld [vmem:[%s2119_s1 + $0xa0] sm:$0xff]  ;;  %v1735_v60 = vld [vmem:[%s2119_s1 + $0x38] sm:$0xff] }
  0x11   : > { %349 = vmatpush.bf16.msra.mxu1 %v1724_v4  ;;  %v192_v18 = vrot.slane %v179_v9, 3  ;;  %v196_v19 = vsel %vm193_vm0, %v177_v7, %v184_v10  ;;  %v200_v20 = vsel %vm197_vm1, %v185_v11, %v186_v12  ;;  %v205_v21 = vsel %vm204_vm3, %v177_v7, %v184_v10  ;;  %v180_v49 = vld [vmem:[%s1828_s5 + $0x6] sm:$0x3]  ;;  %v1737_v61 = vld [vmem:[%s2119_s1 + $0x98] sm:$0xff]  ;;  %v1732_v63 = vld [vmem:[%s2119_s1 + $0x10] sm:$0xff] }
  0x12   : > { %420 = vmatpush.bf16.msra.mxu2 %v1728_v6  ;;  %v202_v22 = vsel %vm201_vm2, %v196_v19, %v200_v20  ;;  %v207_v23 = vsel %vm206_vm4, %v185_v11, %v186_v12  ;;  %v214_v24 = vsel %vm193_vm0, %v178_v8, %v187_v13  ;;  %v217_v25 = vsel %vm197_vm1, %v188_v14, %v189_v15  ;;  %v1734_v0 = vld [vmem:[%s2119_s1 + $0x30] sm:$0xff]  ;;  %v1535_v10 = vld [vmem:[%s1828_s5 + $0xa] sm:$0x3]  ;;  %v1739_v11 = vld [vmem:[%s2119_s1 + $0xb8] sm:$0xff] }
  0x13   : > { %v209_v26 = vsel %vm208_vm5, %v205_v21, %v207_v23  ;;  %v1842_v27 = vsel %vm201_vm2, %v214_v24, %v217_v25  ;;  %v220_v28 = vsel %vm204_vm3, %v178_v8, %v187_v13  ;;  %v221_v29 = vsel %vm206_vm4, %v188_v14, %v189_v15  ;;  %474 = vmatpush.bf16.msra.mxu3 %v1730_v48  ;;  %v1736_v1 = vld [vmem:[%s2119_s1 + $0x90] sm:$0xff]  ;;  %v1536_v14 = vld [vmem:[%s1828_s5 + $0xc] sm:$0x3] }
  0x14   : > { %v211_v30 = vrot.slane %v209_v26, 1  ;;  %v222_v31 = vsel %vm208_vm5, %v220_v28, %v221_v29  ;;  %v227_v32 = vsel %vm193_vm0, %v179_v9, %v190_v16  ;;  %v230_v33 = vsel %vm197_vm1, %v191_v17, %v192_v18  ;;  %593 = vmatpush.bf16.msrb.mxu0 %v1733_v59 }
  0x15   : > { %v1849_v34 = vrot.slane %v222_v31, 1  ;;  %v1852_v35 = vsel %vm201_vm2, %v227_v32, %v230_v33  ;;  %v233_v36 = vsel %vm204_vm3, %v179_v9, %v190_v16  ;;  %v234_v37 = vsel %vm206_vm4, %v191_v17, %v192_v18  ;;  %651 = vmatpush.bf16.msrb.mxu1 %v1735_v60  ;;  %v1534_v9 = vld [vmem:[%s1828_s5 + $0x8] sm:$0x3] }
  0x16   : > { %v235_v38 = vsel %vm208_vm5, %v233_v36, %v234_v37  ;;  %v239_v39 = vunpack.i.h.s16 %v202_v22  ;;  %v242_v40 = vunpack.i.h.s16 %v1842_v27  ;;  %v245_v41 = vunpack.i.h.s16 %v1852_v35  ;;  %724 = vmatpush.bf16.msrb.mxu2 %v1737_v61 }
  0x17   : > { %v1859_v42 = vrot.slane %v235_v38, 1  ;;  %v251_v43 = vunpack.i.h.s16 %v211_v30  ;;  %271 = vst [vmem:[#allocation1 + $0x2] ss:$9 sm:$0xff] %v1849_v34  ;;  %v1495_v50 = vpack.i.b16 %v1842_v27, %v211_v30  ;;  %v357_v51 = vrot.slane %v180_v49, 1  ;;  %778 = vmatpush.bf16.msrb.mxu3 %v1739_v11  ;;  %v1744_v11 = vld [vmem:[%s2119_s1 + $0xc0] sm:$0xff] }
  0x18   : > { %v1484_v44 = vpack.i.b16 %v211_v30, %v239_v39  ;;  %v358_v52 = vrot.slane %v180_v49, 2  ;;  %v359_v53 = vrot.slane %v180_v49, 3  ;;  %v1496_v55 = vpack.i.b16 %v1849_v34, %v242_v40  ;;  %594 = vmatpush.bf16.msrb.mxu0 %v1732_v63 }
  0x19   : > { %v253_v45 = vunpack.i.h.s16 %v1859_v42  ;;  %v260_v46 = vpack.i.b16 %v242_v40, %v251_v43  ;;  %v1485_v47 = vpack.i.b16 %v1859_v42, %v245_v41  ;;  %v246_v56 = vunpack.i.l.s16 %v1859_v42  ;;  %652 = vmatpush.bf16.msrb.mxu1 %v1734_v0 }
  0x1a   : > { %265 = vst [vmem:[#allocation1] ss:$9 sm:$0xff] %v1484_v44  ;;  %v368_v57 = vsel %vm204_vm3, %v180_v49, %v357_v51  ;;  %v369_v58 = vsel %vm206_vm4, %v358_v52, %v359_v53  ;;  %v362_v3 = vsel %vm193_vm0, %v180_v49, %v357_v51  ;;  %v365_v4 = vsel %vm197_vm1, %v358_v52, %v359_v53 }
  0x1b   : > { %268 = vst [vmem:[#allocation1 + $0x1] ss:$9 sm:$0xff] %v260_v46  ;;  %v370_v62 = vsel %vm208_vm5, %v368_v57, %v369_v58  ;;  %v1510_v5 = vpack.i.b16 %v1852_v35, %v1849_v34  ;;  %725 = vmatpush.bf16.msrb.mxu2 %v1736_v1  ;;  %v366_v7 = vsel %vm201_vm2, %v362_v3, %v365_v4  ;;  %v252_v12 = vunpack.i.h.s16 %v1849_v34  ;;  %v1537_v58 = vld [vmem:[%s1828_s5 + $0xe] sm:$0x3] }
  0x1c   : > { %274 = vst [vmem:[#allocation1 + $0x3] ss:$9 sm:$0xff] %v1485_v47  ;;  %v372_v2 = vrot.slane %v370_v62, 1  ;;  %v374_v13 = vunpack.i.h.s16 %v366_v7  ;;  %v491_v15 = vrot.slane %v1534_v9, 1  ;;  %v492_v16 = vrot.slane %v1534_v9, 2 }
  0x1d   : > { %277 = vst [vmem:[#allocation1 + $0x4] ss:$9 sm:$0xff] %v253_v45  ;;  %v493_v17 = vrot.slane %v1534_v9, 3  ;;  %v494_v18 = vrot.slane %v1535_v10, 1  ;;  %v495_v19 = vrot.slane %v1535_v10, 2  ;;  %v496_v20 = vrot.slane %v1535_v10, 3 }
  0x1e   : > { %v375_v8 = vunpack.i.l.s16 %v372_v2  ;;  %v435_v21 = vpack.i.b16 %v245_v41, %v252_v12  ;;  %v498_v23 = vrot.slane %v1536_v14, 2  ;;  %v499_v24 = vrot.slane %v1536_v14, 3 }
  0x1f   : > { %v1524_v26 = vpack.i.b16 %v372_v2, %v374_v13  ;;  %v509_v28 = vsel %vm206_vm4, %v492_v16, %v493_v17  ;;  %v515_v29 = vsel %vm193_vm0, %v1535_v10, %v494_v18  ;;  %v429_v30 = vunpack.i.h.s16 %v372_v2 }
  0x20   : > { %v518_v31 = vsel %vm197_vm1, %v495_v19, %v496_v20  ;;  %v521_v32 = vsel %vm204_vm3, %v1535_v10, %v494_v18  ;;  %v522_v33 = vsel %vm206_vm4, %v495_v19, %v496_v20  ;;  %v535_v36 = vsel %vm206_vm4, %v498_v23, %v499_v24  ;;  %v1742_v10 = vld [vmem:[%s2119_s1 + $0x60] sm:$0xff]  ;;  %v1596_v19 = vld [vmem:[%s1828_s5 + $0x10] sm:$0x3]  ;;  %v1597_v20 = vld [vmem:[%s1828_s5 + $0x12] sm:$0x3] }
  0x21   : > { %v1924_v37 = vsel %vm201_vm2, %v515_v29, %v518_v31  ;;  %v523_v38 = vsel %vm208_vm5, %v521_v32, %v522_v33  ;;  %v502_v41 = vsel %vm193_vm0, %v1534_v9, %v491_v15  ;;  %v531_v48 = vsel %vm197_vm1, %v498_v23, %v499_v24  ;;  %v1598_v23 = vld [vmem:[%s1828_s5 + $0x14] sm:$0x3] }
  0x22   : > { %v1930_v43 = vrot.slane %v523_v38, 1  ;;  %v543_v44 = vunpack.i.h.s16 %v1924_v37  ;;  %v662_v61 = vrot.slane %v1537_v58, 1  ;;  %v663_v62 = vrot.slane %v1537_v58, 2 }
  0x23   : > { %v664_v63 = vrot.slane %v1537_v58, 3  ;;  %v796_v24 = vrot.slane %v1596_v19, 1  ;;  %v801_v29 = vrot.slane %v1597_v20, 3  ;;  %v802_v31 = vrot.slane %v1598_v23, 1 }
  0x24   : > { %v278_v54 = vld [vmem:[#allocation1] sm:$0xff]  ;;  %v673_v3 = vsel %vm204_vm3, %v1537_v58, %v662_v61  ;;  %v667_v13 = vsel %vm193_vm0, %v1537_v58, %v662_v61  ;;  %v803_v32 = vrot.slane %v1598_v23, 2  ;;  %v804_v33 = vrot.slane %v1598_v23, 3 }
  0x25   : > { %1494 = vmatmul.msk.bf16.vlgmr.msra.gmra.mxu0 %vm291_vm6, %v278_v54  ;;  %314 = vst [vmem:[#allocation1] ss:$9 sm:$0xff] %v202_v22  ;;  %v497_v22 = vrot.slane %v1536_v14, 1  ;;  %v674_v4 = vsel %vm206_vm4, %v663_v62, %v664_v63  ;;  %vm1410_vm7 = vsmask.f32 256 }
  0x26   : > { %323 = vst [vmem:[#allocation1 + $0x3] ss:$9 sm:$0xff] %v1852_v35  ;;  %vm1411_vm8 = vmand %vm193_vm0, %vm1410_vm7 }
  0x27   : > { %317 = vst [vmem:[#allocation1 + $0x1] ss:$9 sm:$0xff] %v1495_v50  ;;  %v534_v35 = vsel %vm204_vm3, %v1536_v14, %v497_v22  ;;  %v1940_v50 = vpack.i.b16 %v1930_v43, %v543_v44 }
  0x28   : > { %320 = vst [vmem:[#allocation1 + $0x2] ss:$9 sm:$0xff] %v1496_v55  ;;  %v536_v40 = vsel %vm208_vm5, %v534_v35, %v535_v36  ;;  %v813_v36 = vsel %vm204_vm3, %v1596_v19, %v796_v24 }
  0x29   : > { %326 = vst [vmem:[#allocation1 + $0x4] ss:$9 sm:$0xff] %v246_v56  ;;  %v1933_v45 = vrot.slane %v536_v40, 1 }
  0x2b   : > { %v547_v53 = vunpack.i.l.s16 %v1933_v45  ;;  %v605_v2 = vunpack.i.h.s16 %v1933_v45 }
  0x30   : > { %v327_v6 = vld [vmem:[#allocation1] sm:$0xff] }
  0x31   : > { %1505 = vmatmul.msk.bf16.vlgmr.msra.gmra.mxu1 %vm291_vm6, %v327_v6  ;;  %386 = vst [vmem:[#allocation1] ss:$9 sm:$0xff] %v1842_v27  ;;  %v508_v27 = vsel %vm204_vm3, %v1534_v9, %v491_v15  ;;  %v1743_v6 = vld [vmem:[%s2119_s1 + $0x68] sm:$0xff]  ;;  %v1740_v9 = vld [vmem:[%s2119_s1 + $0x40] sm:$0xff] }
  0x32   : > { %391 = vst [vmem:[#allocation1 + $0x2] ss:$9 sm:$0xff] %v1485_v47  ;;  %v510_v34 = vsel %vm208_vm5, %v508_v27, %v509_v28  ;;  %v528_v47 = vsel %vm193_vm0, %v1536_v14, %v497_v22  ;;  %956 = vmatpush.bf16.msra.mxu1 %v1743_v6  ;;  %v670_v14 = vsel %vm197_vm1, %v663_v62, %v664_v63  ;;  %v799_v27 = vrot.slane %v1597_v20, 1  ;;  %v1747_v63 = vld [vmem:[%s2119_s1 + $0xe8] sm:$0xff] }
  0x33   : > { %389 = vst [vmem:[#allocation1 + $0x1] ss:$9 sm:$0xff] %v1510_v5  ;;  %v512_v39 = vrot.slane %v510_v34, 1  ;;  %v1944_v52 = vsel %vm201_vm2, %v528_v47, %v531_v48  ;;  %v1741_v5 = vld [vmem:[%s2119_s1 + $0x48] sm:$0xff]  ;;  %v800_v28 = vrot.slane %v1597_v20, 2 }
  0x34   : > { %394 = vst [vmem:[#allocation1 + $0x3] ss:$9 sm:$0xff] %v366_v7  ;;  %v546_v57 = vunpack.i.h.s16 %v1944_v52  ;;  %v1745_v7 = vld [vmem:[%s2119_s1 + $0xc8] sm:$0xff]  ;;  %898 = vmatpush.bf16.msra.mxu0 %v1741_v5  ;;  %v1572_v15 = vpack.i.b16 %v1944_v52, %v1930_v43  ;;  %v820_v38 = vsel %vm193_vm0, %v1597_v20, %v799_v27 }
  0x35   : > { %397 = vst [vmem:[#allocation1 + $0x4] ss:$9 sm:$0xff] %v375_v8  ;;  %v1542_v49 = vpack.i.b16 %v1924_v37, %v512_v39  ;;  %v603_v56 = vunpack.i.h.s16 %v512_v39  ;;  %v675_v8 = vsel %vm208_vm5, %v673_v3, %v674_v4  ;;  %v823_v40 = vsel %vm197_vm1, %v800_v28, %v801_v29  ;;  %v1599_v4 = vld [vmem:[%s1828_s5 + $0x16] sm:$0x3] }
  0x36   : > { %v1558_v1 = vpack.i.b16 %v1933_v45, %v546_v57  ;;  %v677_v12 = vrot.slane %v675_v8, 1  ;;  %957 = vmatpush.bf16.msra.mxu1 %v1742_v10  ;;  %v824_v47 = vsel %vm201_vm2, %v820_v38, %v823_v40  ;;  %v968_v8 = vrot.slane %v1599_v4, 2  ;;  %v1750_v38 = vld [vmem:[%s2119_s1 + $0x70] sm:$0xff] }
  0x37   : > { %v612_v60 = vpack.i.b16 %v543_v44, %v603_v56  ;;  %v839_v44 = vsel %vm204_vm3, %v1598_v23, %v802_v31  ;;  %v833_v56 = vsel %vm193_vm0, %v1598_v23, %v802_v31 }
  0x38   : > { %899 = vmatpush.bf16.msra.mxu0 %v1740_v9  ;;  %v680_v18 = vunpack.i.l.s16 %v677_v12  ;;  %v969_v9 = vrot.slane %v1599_v4, 3 }
  0x3c   : > { %v398_v25 = vld [vmem:[#allocation1] sm:$0xff] }
  0x3d   : > { %1519 = vmatmul.msk.bf16.vlgmr.msra.gmra.mxu2 %vm291_vm6, %v398_v25  ;;  %439 = vst [vmem:[#allocation1] ss:$9 sm:$0xff] %v1496_v55  ;;  %v1738_v55 = vld [vmem:[%s2119_s1 + $0xb0] sm:$0xff]  ;;  %v797_v25 = vrot.slane %v1596_v19, 2 }
  0x3e   : > { %445 = vst [vmem:[#allocation1 + $0x2] ss:$9 sm:$0xff] %v1859_v42  ;;  %v505_v42 = vsel %vm197_vm1, %v492_v16, %v493_v17  ;;  %779 = vmatpush.bf16.msrb.mxu3 %v1738_v55  ;;  %1029 = vmatpush.bf16.msra.mxu2 %v1745_v7  ;;  %v671_v17 = vsel %vm201_vm2, %v667_v13, %v670_v14  ;;  %v967_v7 = vrot.slane %v1599_v4, 1 }
  0x3f   : > { %442 = vst [vmem:[#allocation1 + $0x1] ss:$9 sm:$0xff] %v435_v21  ;;  %v506_v46 = vsel %vm201_vm2, %v502_v41, %v505_v42  ;;  %v604_v21 = vunpack.i.h.s16 %v1930_v43  ;;  %v679_v22 = vunpack.i.h.s16 %v671_v17  ;;  %v826_v41 = vsel %vm204_vm3, %v1597_v20, %v799_v27 }
  0x40   : > { %448 = vst [vmem:[#allocation1 + $0x3] ss:$9 sm:$0xff] %v1524_v26  ;;  %v540_v54 = vunpack.i.h.s16 %v506_v46  ;;  %v798_v26 = vrot.slane %v1596_v19, 3  ;;  %v827_v42 = vsel %vm206_vm4, %v800_v28, %v801_v29  ;;  %v978_v13 = vsel %vm204_vm3, %v1599_v4, %v967_v7  ;;  %v1660_v29 = vld [vmem:[%s1828_s5 + $0x1c] sm:$0x3] }
  0x41   : > { %451 = vst [vmem:[#allocation1 + $0x4] ss:$9 sm:$0xff] %v429_v30  ;;  %v740_v30 = vpack.i.b16 %v546_v57, %v604_v21  ;;  %v1586_v35 = vpack.i.b16 %v677_v12, %v679_v22  ;;  %v828_v48 = vsel %vm208_vm5, %v826_v41, %v827_v42  ;;  %v836_v57 = vsel %vm197_vm1, %v803_v32, %v804_v33 }
  0x42   : > { %v1557_v59 = vpack.i.b16 %v512_v39, %v540_v54  ;;  %1030 = vmatpush.bf16.msra.mxu2 %v1744_v11  ;;  %v734_v39 = vunpack.i.h.s16 %v677_v12  ;;  %v2019_v61 = vsel %vm201_vm2, %v833_v56, %v836_v57  ;;  %v979_v14 = vsel %vm206_vm4, %v968_v8, %v969_v9 }
  0x43   : > { %v851_v3 = vunpack.i.h.s16 %v2019_v61  ;;  %v975_v20 = vsel %vm197_vm1, %v968_v8, %v969_v9  ;;  %v1107_v40 = vrot.slane %v1660_v29, 1  ;;  %v1108_v41 = vrot.slane %v1660_v29, 2 }
  0x44   : > { %v1109_v42 = vrot.slane %v1660_v29, 3 }
  0x48   : > { %v452_v51 = vld [vmem:[#allocation1] sm:$0xff] }
  0x49   : > { %1533 = vmatmul.msk.bf16.vlgmr.msra.gmra.mxu3 %vm291_vm6, %v452_v51  ;;  %559 = vst [vmem:[#allocation1] ss:$9 sm:$0xff] %v506_v46  ;;  %v840_v46 = vsel %vm206_vm4, %v803_v32, %v804_v33  ;;  %v807_v51 = vsel %vm193_vm0, %v1596_v19, %v796_v24  ;;  %v972_v19 = vsel %vm193_vm0, %v1599_v4, %v967_v7 }
  0x4a   : > { %562 = vst [vmem:[#allocation1 + $0x1] ss:$9 sm:$0xff] %v1542_v49  ;;  %1083 = vmatpush.bf16.msra.mxu3 %v1747_v63  ;;  %v976_v23 = vsel %vm201_vm2, %v972_v19, %v975_v20  ;;  %v1755_v63 = vld [vmem:[%s2119_s1 + $0xf8] sm:$0xff]  ;;  %v1141_v4 = vsel %vm197_vm1, %v1108_v41, %v1109_v42 }
  0x4b   : > { %565 = vst [vmem:[#allocation1 + $0x2] ss:$9 sm:$0xff] %v1940_v50  ;;  %v984_v28 = vunpack.i.h.s16 %v976_v23 }
  0x4c   : > { %568 = vst [vmem:[#allocation1 + $0x3] ss:$9 sm:$0xff] %v1944_v52  ;;  %v2007_v52 = vrot.slane %v828_v48, 1 }
  0x4d   : > { %571 = vst [vmem:[#allocation1 + $0x4] ss:$9 sm:$0xff] %v547_v53  ;;  %v848_v53 = vunpack.i.h.s16 %v824_v47 }
  0x4e   : > { %v1634_v21 = vpack.i.b16 %v2019_v61, %v2007_v52  ;;  %v909_v27 = vunpack.i.h.s16 %v2007_v52 }
  0x54   : > { %v572_v0 = vld [vmem:[#allocation1] sm:$0xff] }
  0x55   : > { %1552 = vmatmul.msk.bf16.vlgmr.msrb.gmra.mxu0 %vm291_vm6, %v572_v0  ;;  %623 = vst [vmem:[#allocation1 + $0x2] ss:$9 sm:$0xff] %v1930_v43 }
  0x56   : > { %617 = vst [vmem:[#allocation1] ss:$9 sm:$0xff] %v1557_v59  ;;  %v2015_v59 = vpack.i.b16 %v2007_v52, %v848_v53 }
  0x57   : > { %620 = vst [vmem:[#allocation1 + $0x1] ss:$9 sm:$0xff] %v612_v60 }
  0x58   : > { %626 = vst [vmem:[#allocation1 + $0x3] ss:$9 sm:$0xff] %v1558_v1 }
  0x59   : > { %629 = vst [vmem:[#allocation1 + $0x4] ss:$9 sm:$0xff] %v605_v2  ;;  %v1746_v2 = vld [vmem:[%s2119_s1 + $0xe0] sm:$0xff] }
  0x5a   : > { %1084 = vmatpush.bf16.msra.mxu3 %v1746_v2 }
  0x60   : > { %v630_v16 = vld [vmem:[#allocation1] sm:$0xff] }
  0x61   : > { %1567 = vmatmul.msk.bf16.vlgmr.msrb.gmra.mxu1 %vm291_vm6, %v630_v16  ;;  %691 = vst [vmem:[#allocation1] ss:$9 sm:$0xff] %v1924_v37  ;;  %v814_v37 = vsel %vm206_vm4, %v797_v25, %v798_v26  ;;  %v980_v16 = vsel %vm208_vm5, %v978_v13, %v979_v14  ;;  %v1661_v13 = vld [vmem:[%s1828_s5 + $0x1e] sm:$0x3] }
  0x62   : > { %696 = vst [vmem:[#allocation1 + $0x2] ss:$9 sm:$0xff] %v1558_v1  ;;  %v815_v43 = vsel %vm208_vm5, %v813_v36, %v814_v37  ;;  %v1753_v37 = vld [vmem:[%s2119_s1 + $0xd8] sm:$0xff]  ;;  %v1274_v19 = vrot.slane %v1661_v13, 3 }
  0x63   : > { %694 = vst [vmem:[#allocation1 + $0x1] ss:$9 sm:$0xff] %v1572_v15  ;;  %v817_v49 = vrot.slane %v815_v43, 1  ;;  %v1749_v15 = vld [vmem:[%s2119_s1 + $0x58] sm:$0xff] }
  0x64   : > { %699 = vst [vmem:[#allocation1 + $0x3] ss:$9 sm:$0xff] %v671_v17  ;;  %1203 = vmatpush.bf16.msrb.mxu0 %v1749_v15  ;;  %v1748_v17 = vld [vmem:[%s2119_s1 + $0x50] sm:$0xff] }
  0x65   : > { %702 = vst [vmem:[#allocation1 + $0x4] ss:$9 sm:$0xff] %v680_v18  ;;  %v1604_v58 = vpack.i.b16 %v824_v47, %v817_v49  ;;  %v908_v1 = vunpack.i.h.s16 %v817_v49  ;;  %v982_v18 = vrot.slane %v980_v16, 1  ;;  %v1754_v15 = vld [vmem:[%s2119_s1 + $0xf0] sm:$0xff] }
  0x67   : > { %v917_v6 = vpack.i.b16 %v848_v53, %v908_v1  ;;  %v985_v24 = vunpack.i.l.s16 %v982_v18  ;;  %v1144_v53 = vsel %vm204_vm3, %v1660_v29, %v1107_v40 }
  0x68   : > { %1204 = vmatpush.bf16.msrb.mxu0 %v1748_v17  ;;  %v1272_v17 = vrot.slane %v1661_v13, 1 }
  0x6c   : > { %v703_v34 = vld [vmem:[#allocation1] sm:$0xff] }
  0x6d   : > { %1581 = vmatmul.msk.bf16.vlgmr.msrb.gmra.mxu2 %vm291_vm6, %v703_v34  ;;  %744 = vst [vmem:[#allocation1] ss:$9 sm:$0xff] %v1940_v50  ;;  %v841_v50 = vsel %vm208_vm5, %v839_v44, %v840_v46  ;;  %v1751_v34 = vld [vmem:[%s2119_s1 + $0x78] sm:$0xff]  ;;  %v1648_v44 = vpack.i.b16 %v982_v18, %v984_v28  ;;  %v1277_v28 = vsel %vm193_vm0, %v1661_v13, %v1272_v17 }
  0x6e   : > { %750 = vst [vmem:[#allocation1 + $0x2] ss:$9 sm:$0xff] %v1933_v45  ;;  %v810_v45 = vsel %vm197_vm1, %v797_v25, %v798_v26  ;;  %v2009_v54 = vrot.slane %v841_v50, 1  ;;  %v1658_v25 = vld [vmem:[%s1828_s5 + $0x18] sm:$0x3]  ;;  %1261 = vmatpush.bf16.msrb.mxu1 %v1751_v34  ;;  %1334 = vmatpush.bf16.msrb.mxu2 %v1753_v37 }
  0x6f   : > { %747 = vst [vmem:[#allocation1 + $0x1] ss:$9 sm:$0xff] %v740_v30  ;;  %v811_v55 = vsel %vm201_vm2, %v807_v51, %v810_v45  ;;  %v1659_v26 = vld [vmem:[%s1828_s5 + $0x1a] sm:$0x3]  ;;  %v1101_v30 = vrot.slane %v1658_v25, 1  ;;  %v1102_v31 = vrot.slane %v1658_v25, 2 }
  0x70   : > { %753 = vst [vmem:[#allocation1 + $0x3] ss:$9 sm:$0xff] %v1586_v35  ;;  %v852_v62 = vunpack.i.l.s16 %v2009_v54  ;;  %v845_v0 = vunpack.i.h.s16 %v811_v55  ;;  %v1620_v11 = vpack.i.b16 %v2009_v54, %v851_v3  ;;  %v910_v12 = vunpack.i.h.s16 %v2009_v54 }
  0x71   : > { %756 = vst [vmem:[#allocation1 + $0x4] ss:$9 sm:$0xff] %v734_v39  ;;  %v1103_v32 = vrot.slane %v1658_v25, 3  ;;  %v1104_v33 = vrot.slane %v1659_v26, 1  ;;  %v1105_v35 = vrot.slane %v1659_v26, 2  ;;  %v1106_v36 = vrot.slane %v1659_v26, 3 }
  0x72   : > { %v1619_v5 = vpack.i.b16 %v817_v49, %v845_v0  ;;  %v1045_v39 = vpack.i.b16 %v851_v3, %v909_v27  ;;  %v1118_v46 = vsel %vm204_vm3, %v1658_v25, %v1101_v30  ;;  %v1039_v49 = vunpack.i.h.s16 %v982_v18  ;;  %1262 = vmatpush.bf16.msrb.mxu1 %v1750_v38  ;;  %v1752_v0 = vld [vmem:[%s2119_s1 + $0xd0] sm:$0xff] }
  0x73   : > { %v1125_v48 = vsel %vm193_vm0, %v1659_v26, %v1104_v33  ;;  %v1128_v50 = vsel %vm197_vm1, %v1105_v35, %v1106_v36  ;;  %v1131_v51 = vsel %vm204_vm3, %v1659_v26, %v1104_v33  ;;  %v1132_v45 = vsel %vm206_vm4, %v1105_v35, %v1106_v36  ;;  %1335 = vmatpush.bf16.msrb.mxu2 %v1752_v0 }
  0x74   : > { %v1129_v56 = vsel %vm201_vm2, %v1125_v48, %v1128_v50  ;;  %v1133_v57 = vsel %vm208_vm5, %v1131_v51, %v1132_v45  ;;  %v1138_v3 = vsel %vm193_vm0, %v1660_v29, %v1107_v40  ;;  %v1273_v18 = vrot.slane %v1661_v13, 2 }
  0x75   : > { %v1142_v8 = vsel %vm201_vm2, %v1138_v3, %v1141_v4 }
  0x76   : > { %v1280_v29 = vsel %vm197_vm1, %v1273_v18, %v1274_v19 }
  0x78   : > { %v757_v60 = vld [vmem:[#allocation1] sm:$0xff] }
  0x79   : > { %1595 = vmatmul.msk.bf16.vlgmr.msrb.gmra.mxu3 %vm291_vm6, %v757_v60  ;;  %864 = vst [vmem:[#allocation1] ss:$9 sm:$0xff] %v811_v55  ;;  %v1145_v55 = vsel %vm206_vm4, %v1108_v41, %v1109_v42  ;;  %v1112_v60 = vsel %vm193_vm0, %v1658_v25, %v1101_v30 }
  0x7a   : > { %867 = vst [vmem:[#allocation1 + $0x1] ss:$9 sm:$0xff] %v1604_v58  ;;  %1388 = vmatpush.bf16.msrb.mxu3 %v1755_v63 }
  0x7b   : > { %870 = vst [vmem:[#allocation1 + $0x2] ss:$9 sm:$0xff] %v2015_v59 }
  0x7c   : > { %873 = vst [vmem:[#allocation1 + $0x3] ss:$9 sm:$0xff] %v2019_v61  ;;  %v1135_v61 = vrot.slane %v1133_v57, 1 }
  0x7d   : > { %876 = vst [vmem:[#allocation1 + $0x4] ss:$9 sm:$0xff] %v852_v62  ;;  %v1153_v62 = vunpack.i.h.s16 %v1129_v56 }
  0x7e   : > { %1389 = vmatpush.bf16.msrb.mxu3 %v1754_v15  ;;  %v1696_v27 = vpack.i.b16 %v1142_v8, %v1135_v61  ;;  %v1214_v33 = vunpack.i.h.s16 %v1135_v61 }
  0x84   : > { %v877_v10 = vld [vmem:[#allocation1] sm:$0xff] }
  0x85   : > { %1614 = vmatmul.msk.bf16.vlgmr.msra.gmra.mxu0 %vm291_vm6, %v877_v10  ;;  %928 = vst [vmem:[#allocation1 + $0x2] ss:$9 sm:$0xff] %v2007_v52 }
  0x86   : > { %922 = vst [vmem:[#allocation1] ss:$9 sm:$0xff] %v1619_v5 }
  0x87   : > { %925 = vst [vmem:[#allocation1 + $0x1] ss:$9 sm:$0xff] %v917_v6  ;;  %v1667_v6 = vpack.i.b16 %v1135_v61, %v1153_v62 }
  0x88   : > { %931 = vst [vmem:[#allocation1 + $0x3] ss:$9 sm:$0xff] %v1620_v11 }
  0x89   : > { %934 = vst [vmem:[#allocation1 + $0x4] ss:$9 sm:$0xff] %v910_v12  ;;  %v1156_v12 = vunpack.i.h.s16 %v1142_v8 }
  0x8b   : > { %v1350_v35 = vpack.i.b16 %v1156_v12, %v1214_v33 }
  0x90   : > { %v935_v22 = vld [vmem:[#allocation1] sm:$0xff] }
  0x91   : > { %1629 = vmatmul.msk.bf16.vlgmr.msra.gmra.mxu1 %vm291_vm6, %v935_v22  ;;  %996 = vst [vmem:[#allocation1] ss:$9 sm:$0xff] %v824_v47  ;;  %v1119_v47 = vsel %vm206_vm4, %v1102_v31, %v1103_v32 }
  0x92   : > { %1001 = vst [vmem:[#allocation1 + $0x2] ss:$9 sm:$0xff] %v1620_v11  ;;  %v1120_v52 = vsel %vm208_vm5, %v1118_v46, %v1119_v47 }
  0x93   : > { %999 = vst [vmem:[#allocation1 + $0x1] ss:$9 sm:$0xff] %v1634_v21  ;;  %v1122_v58 = vrot.slane %v1120_v52, 1 }
  0x94   : > { %1004 = vst [vmem:[#allocation1 + $0x3] ss:$9 sm:$0xff] %v976_v23  ;;  %v1283_v23 = vsel %vm204_vm3, %v1661_v13, %v1272_v17 }
  0x95   : > { %1007 = vst [vmem:[#allocation1 + $0x4] ss:$9 sm:$0xff] %v985_v24  ;;  %v1666_v5 = vpack.i.b16 %v1129_v56, %v1122_v58  ;;  %v1213_v11 = vunpack.i.h.s16 %v1122_v58  ;;  %v1284_v24 = vsel %vm206_vm4, %v1273_v18, %v1274_v19 }
  0x96   : > { %v1285_v25 = vsel %vm208_vm5, %v1283_v23, %v1284_v24 }
  0x97   : > { %v1222_v16 = vpack.i.b16 %v1153_v62, %v1213_v11  ;;  %v1287_v26 = vrot.slane %v1285_v25, 1 }
  0x99   : > { %v1344_v38 = vunpack.i.h.s16 %v1287_v26 }
  0x9c   : > { %v1008_v43 = vld [vmem:[#allocation1] sm:$0xff] }
  0x9d   : > { %1643 = vmatmul.msk.bf16.vlgmr.msra.gmra.mxu2 %vm291_vm6, %v1008_v43  ;;  %1049 = vst [vmem:[#allocation1] ss:$9 sm:$0xff] %v2015_v59  ;;  %v1146_v59 = vsel %vm208_vm5, %v1144_v53, %v1145_v55 }
  0x9e   : > { %1055 = vst [vmem:[#allocation1 + $0x2] ss:$9 sm:$0xff] %v2009_v54  ;;  %v1115_v54 = vsel %vm197_vm1, %v1102_v31, %v1103_v32  ;;  %v1148_v1 = vrot.slane %v1146_v59, 1  ;;  %v1281_v31 = vsel %vm201_vm2, %v1277_v28, %v1280_v29  ;;  %v1290_v32 = vunpack.i.l.s16 %v1287_v26  ;;  %v1764_v28 = vld [vmem:[%s2120_s2] ss:$0 sm:$0xff] }
  0x9f   : > { %1052 = vst [vmem:[#allocation1 + $0x1] ss:$9 sm:$0xff] %v1045_v39  ;;  %v1116_v2 = vsel %vm201_vm2, %v1112_v60, %v1115_v54  ;;  %v1289_v34 = vunpack.i.h.s16 %v1281_v31 }
  0xa0   : > { %1058 = vst [vmem:[#allocation1 + $0x3] ss:$9 sm:$0xff] %v1648_v44  ;;  %v1157_v9 = vunpack.i.l.s16 %v1148_v1  ;;  %v1150_v10 = vunpack.i.h.s16 %v1116_v2  ;;  %v1682_v21 = vpack.i.b16 %v1148_v1, %v1156_v12  ;;  %v1215_v22 = vunpack.i.h.s16 %v1148_v1 }
  0xa1   : > { %1061 = vst [vmem:[#allocation1 + $0x4] ss:$9 sm:$0xff] %v1039_v49  ;;  %v1710_v37 = vpack.i.b16 %v1287_v26, %v1289_v34 }
  0xa2   : > { %v1681_v14 = vpack.i.b16 %v1122_v58, %v1150_v10  ;;  %v303_v40 = vpop.f32.mrf.mxu0 }
  0xa8   : > { %v1062_v7 = vld [vmem:[#allocation1] sm:$0xff] }
  0xa9   : > { %1657 = vmatmul.msk.bf16.vlgmr.msra.gmra.mxu3 %vm291_vm6, %v1062_v7  ;;  %1169 = vst [vmem:[#allocation1] ss:$9 sm:$0xff] %v1116_v2 }
  0xaa   : > { %1172 = vst [vmem:[#allocation1 + $0x1] ss:$9 sm:$0xff] %v1666_v5  ;;  %v305_v43 = vpop.f32.mrf.mxu0 }
  0xab   : > { %1175 = vst [vmem:[#allocation1 + $0x2] ss:$9 sm:$0xff] %v1667_v6 }
  0xac   : > { %1178 = vst [vmem:[#allocation1 + $0x3] ss:$9 sm:$0xff] %v1142_v8 }
  0xad   : > { %1181 = vst [vmem:[#allocation1 + $0x4] ss:$9 sm:$0xff] %v1157_v9 }
  0xae   : > { %v351_v41 = vpop.f32.mrf.mxu1 }
  0xaf   : > { %v352_v49 = vadd.f32 %v351_v41, %v303_v40 }
  0xb4   : > { %v1182_v20 = vld [vmem:[#allocation1] sm:$0xff] }
  0xb5   : > { %1676 = vmatmul.msk.bf16.vlgmr.msrb.gmra.mxu0 %vm291_vm6, %v1182_v20  ;;  %1227 = vst [vmem:[#allocation1] ss:$9 sm:$0xff] %v1681_v14 }
  0xb6   : > { %1230 = vst [vmem:[#allocation1 + $0x1] ss:$9 sm:$0xff] %v1222_v16  ;;  %v353_v44 = vpop.f32.mrf.mxu1 }
  0xb7   : > { %1233 = vst [vmem:[#allocation1 + $0x2] ss:$9 sm:$0xff] %v1135_v61 }
  0xb8   : > { %1236 = vst [vmem:[#allocation1 + $0x3] ss:$9 sm:$0xff] %v1682_v21 }
  0xb9   : > { %1239 = vst [vmem:[#allocation1 + $0x4] ss:$9 sm:$0xff] %v1215_v22 }
  0xc0   : > { %v1240_v30 = vld [vmem:[#allocation1] sm:$0xff]  ;;  %v422_v42 = vpop.f32.mrf.mxu2 }
  0xc1   : > { %1691 = vmatmul.msk.bf16.vlgmr.msrb.gmra.mxu1 %vm291_vm6, %v1240_v30  ;;  %1301 = vst [vmem:[#allocation1] ss:$9 sm:$0xff] %v1129_v56  ;;  %v427_v52 = vadd.f32 %v422_v42, %v352_v49  ;;  %v354_v56 = vadd.f32 %v353_v44, %v305_v43  ;;  %v1412_v44 = vld [vmem:[%s175_s14 + $0x4] sm:$0x1] }
  0xc2   : > { %1304 = vst [vmem:[#allocation1 + $0x1] ss:$9 sm:$0xff] %v1696_v27 }
  0xc3   : > { %1306 = vst [vmem:[#allocation1 + $0x2] ss:$9 sm:$0xff] %v1682_v21 }
  0xc4   : > { %1309 = vst [vmem:[#allocation1 + $0x3] ss:$9 sm:$0xff] %v1281_v31 }
  0xc5   : > { %1312 = vst [vmem:[#allocation1 + $0x4] ss:$9 sm:$0xff] %v1290_v32 }
  0xc8   : > { %v424_v47 = vpop.f32.mrf.mxu2 }
  0xc9   : > { %v428_v54 = vadd.f32 %v424_v47, %v354_v56 }
  0xcc   : > { %v1313_v36 = vld [vmem:[#allocation1] sm:$0xff]  ;;  %v476_v46 = vpop.f32.mrf.mxu3 }
  0xcd   : > { %1705 = vmatmul.msk.bf16.vlgmr.msrb.gmra.mxu2 %vm291_vm6, %v1313_v36  ;;  %1354 = vst [vmem:[#allocation1] ss:$9 sm:$0xff] %v1667_v6  ;;  %v481_v53 = vadd.f32 %v476_v46, %v427_v52 }
  0xce   : > { %1357 = vst [vmem:[#allocation1 + $0x1] ss:$9 sm:$0xff] %v1350_v35 }
  0xcf   : > { %1360 = vst [vmem:[#allocation1 + $0x2] ss:$9 sm:$0xff] %v1148_v1 }
  0xd0   : > { %1363 = vst [vmem:[#allocation1 + $0x3] ss:$9 sm:$0xff] %v1710_v37 }
  0xd1   : > { %1366 = vst [vmem:[#allocation1 + $0x4] ss:$9 sm:$0xff] %v1344_v38 }
  0xd2   : > { %v596_v48 = vpop.f32.mrf.mxu0 }
  0xd3   : > { %v601_v59 = vadd.f32 %v596_v48, %v481_v53 }
  0xd4   : > { %v478_v51 = vpop.f32.mrf.mxu3 }
  0xd5   : > { %v482_v62 = vadd.f32 %v478_v51, %v428_v54 }
  0xd8   : > { %v1367_v39 = vld [vmem:[#allocation1] sm:$0xff] }
  0xd9   : > { %1719 = vmatmul.msk.bf16.vlgmr.msrb.gmra.mxu3 %vm291_vm6, %v1367_v39 }
  0xda   : > { %v598_v55 = vpop.f32.mrf.mxu0 }
  0xdb   : > { %v602_v3 = vadd.f32 %v598_v55, %v482_v62 }
  0xde   : > { %v654_v50 = vpop.f32.mrf.mxu1 }
  0xdf   : > { %v659_v61 = vadd.f32 %v654_v50, %v601_v59 }
  0xe6   : > { %v656_v57 = vpop.f32.mrf.mxu1 }
  0xe7   : > { %v660_v6 = vadd.f32 %v656_v57, %v602_v3 }
  0xf0   : > { %v727_v45 = vpop.f32.mrf.mxu2 }
  0xf1   : > { %v732_v0 = vadd.f32 %v727_v45, %v659_v61 }
  0xf8   : > { %v729_v60 = vpop.f32.mrf.mxu2 }
  0xf9   : > { %v733_v10 = vadd.f32 %v729_v60, %v660_v6 }
  0xfc   : > { %v781_v58 = vpop.f32.mrf.mxu3 }
  0xfd   : > { %v786_v5 = vadd.f32 %v781_v58, %v732_v0 }
 0x102   : > { %v901_v63 = vpop.f32.mrf.mxu0 }
 0x103   : > { %v906_v7 = vadd.f32 %v901_v63, %v786_v5 }
 0x104   : > { %v783_v2 = vpop.f32.mrf.mxu3 }
 0x105   : > { %v787_v14 = vadd.f32 %v783_v2, %v733_v10 }
 0x10a   : > { %v903_v8 = vpop.f32.mrf.mxu0 }
 0x10b   : > { %v907_v17 = vadd.f32 %v903_v8, %v787_v14 }
 0x10e   : > { %v959_v1 = vpop.f32.mrf.mxu1 }
 0x10f   : > { %v964_v12 = vadd.f32 %v959_v1, %v906_v7 }
 0x116   : > { %v961_v11 = vpop.f32.mrf.mxu1 }
 0x117   : > { %v965_v22 = vadd.f32 %v961_v11, %v907_v17 }
 0x120   : > { %v1032_v4 = vpop.f32.mrf.mxu2 }
 0x121   : > { %v1037_v15 = vadd.f32 %v1032_v4, %v964_v12 }
 0x128   : > { %v1034_v13 = vpop.f32.mrf.mxu2 }
 0x129   : > { %v1038_v24 = vadd.f32 %v1034_v13, %v965_v22 }
 0x12c   : > { %v1086_v9 = vpop.f32.mrf.mxu3 }
 0x12d   : > { %v1091_v18 = vadd.f32 %v1086_v9, %v1037_v15 }
 0x132   : > { %v1206_v16 = vpop.f32.mrf.mxu0 }
 0x133   : > { %v1211_v23 = vadd.f32 %v1206_v16, %v1091_v18 }
 0x134   : > { %v1088_v19 = vpop.f32.mrf.mxu3 }
 0x135   : > { %v1092_v26 = vadd.f32 %v1088_v19, %v1038_v24 }
 0x13a   : > { %v1208_v29 = vpop.f32.mrf.mxu0 }
 0x13b   : > { %v1212_v33 = vadd.f32 %v1208_v29, %v1092_v26 }
 0x13e   : > { %v1264_v20 = vpop.f32.mrf.mxu1 }
 0x13f   : > { %v1269_v25 = vadd.f32 %v1264_v20, %v1211_v23 }
 0x146   : > { %v1266_v32 = vpop.f32.mrf.mxu1 }
 0x147   : > { %v1270_v36 = vadd.f32 %v1266_v32, %v1212_v33 }
 0x150   : > { %v1337_v21 = vpop.f32.mrf.mxu2 }
 0x151   : > { %v1342_v27 = vadd.f32 %v1337_v21, %v1269_v25 }
 0x158   : > { %v1339_v35 = vpop.f32.mrf.mxu2 }
 0x159   : > { %v1343_v38 = vadd.f32 %v1339_v35, %v1270_v36 }
 0x15c   : > { %v1391_v30 = vpop.f32.mrf.mxu3 }
 0x15d   : > { %v1396_v31 = vadd.f32 %v1391_v30, %v1342_v27 }
 0x15f   : > { %v1402_v34 = vadd.f32 %v1764_v28, %v1396_v31 }
 0x161   : > { %v1404_v37 = vmax.f32 %v1402_v34, 0.0 }
 0x163   : > { %v1406_v39 = vpack.c.bf16 %v1404_v37, %v1404_v37 }
 0x164   : > { %v1393_v40 = vpop.f32.mrf.mxu3 }
 0x165   : > { %1408 = vst [vmem:[%s175_s14] sm:$0xf] %v1406_v39  ;;  %v1397_v41 = vadd.f32 %v1393_v40, %v1343_v38 }
 0x167   : > { %v1403_v42 = vadd.f32 %v1764_v28, %v1397_v41 }
 0x169   : > { %v1405_v43 = vmax.f32 %v1403_v42, 0.0 }
 0x16b   : > { %v1407_v46 = vpack.c.bf16 %v1405_v43, %v1405_v43 }
 0x16d   : > { %v1413_v47 = vsel %vm1411_vm8, %v1407_v46, %v1412_v44 }
 0x16e   : > { %1414 = vst [vmem:[%s175_s14 + $0x4] sm:$0x1] %v1413_v47 }
 0x16f PF: > { %s13_s12 = sadd.s32 1, %s1771_s12  }
 0x170   : > { %p10_p5 = scmp.ge.s32.totalorder %s13_s12, 4  }
 0x172   :  { %12 = sbr.rel (!%p10_p5) target bundleno = 1 (0x1), region = 144 }

// kernel: nature_conv_forward.7
= control target key start
LH: loop header
LB: loop body
LE: loop exit
PB: predicated region body
PF: predicated region fallthrough
CT: control target
= control target key end

     0   :  { %8 = vsyncpa [#allocation4], 0  ;;  %s724_s0 = inlined_call_operand.vmem [shape: bf16[2,64], index: 0, kind: input, shape index: {}]   ;;  %s725_s1 = inlined_call_operand.vmem [shape: bf16[64,512], index: 1, kind: input, shape index: {}]   ;;  %s726_s2 = inlined_call_operand.vmem [shape: f32[1,512], index: 2, kind: input, shape index: {}]   ;;  %s727_s3 = inlined_call_operand.hbm [shape: f32[2,512], index: 3, kind: output, shape index: {}]  }
   0x1   :  { %10 = vsyncpa [#allocation4 + $0x1], 0  ;;  %s622_s12 = smov 0   ;;  %s624_s13 = smov 0  }
   0x2   :  { %s626_s14 = smov 0   ;;  %s628_s15 = smov 0  }
   0x3 LB: > { %s643_s16 = sadd.s32 4294967295, %s600_s15   ;;  %s440_s17 = sadd.s32 4294967294, %s600_s15   ;;  %s600_s15 = sphi %s628_s15, %s733_s15   ;;  %s596_s14 = sphi %s626_s14, %s732_s14   ;;  %s592_s13 = sphi %s624_s13, %s731_s13   ;;  %s588_s12 = sphi %s622_s12, %s730_s12  }
   0x4   : > { %s647_s18 = sadd.s32 1, %s600_s15   ;;  %s44_s19 = sadd.s32 1, %s596_s14 }
   0x5   : > { %s41_s20 = ssub.s32 %s600_s15, %s647_s18  ;;  %p51_p0 = scmp.ne.s32.totalorder %s596_s14, %s592_s13 }
   0x6   : > { %p42_p1 = scmp.eq.s32.totalorder %s41_s20, 0  ;;  %p52_p2 = scmp.eq.s32.totalorder %s600_s15, 0 }
   0x7   : > { %p107_p3 = scmp.eq.s32.totalorder %s643_s16, 1  ;;  %p112_p4 = scmp.ne.s32.totalorder %s592_s13, %s588_s12 }
   0x8   : > { %s659_s21 = scalar_select %p42_p1, %s596_s14, %s44_s19  }
   0x9   : > { %p53_p5 = por %p52_p2, %p51_p0  ;;  %p661_p6 = por %p107_p3, %p51_p0 }
   0xa   : > { %p113_p7 = scmp.eq.s32.totalorder %s440_s17, 1  ;;  %p442_p9 = scmp.ge.s32.totalorder %s600_s15, 2 }
   0xc   : > { %p665_p8 = por %p113_p7, %p112_p4  ;;  %132 = sbr.rel (%p442_p9) target bundleno = 29 (0x1d), region = 20 }
  0x11   : > { %135 = sbr.rel (!%p53_p5) target bundleno = 29 (0x1d), region = 24  ;;  %s137_s24 = sand.u32 (%p53_p5), 1, %s596_s14  }
  0x12   : > { %s489_s25 = sshll.u32 (%p53_p5), %s600_s15, 3  ;;  %s443_s26 = sshll.u32 (%p53_p5), %s137_s24, 6 }
  0x13   : > { %s142_s29 = scalar_lea.vmem (%p53_p5), %s725_s1, %s489_s25  ;;  %s139_s30 = scalar_lea.vmem (%p53_p5), [#allocation2], %s443_s26 }
  0x14   : > { %v185_v0 = vld [vmem:[%s142_s29] sm:$0xff] (%p53_p5)  ;;  %v187_v1 = vld [vmem:[%s142_s29 + $0x10] sm:$0xff] (%p53_p5) }
  0x15   : > { %v189_v2 = vld [vmem:[%s142_s29 + $0x20] sm:$0xff] (%p53_p5)  ;;  %186 = vst [vmem:[%s139_s30] sm:$0xff] (%p53_p5), %v185_v0  ;;  %v191_v3 = vld [vmem:[%s142_s29 + $0x30] sm:$0xff] (%p53_p5) }
  0x16   : > { %188 = vst [vmem:[%s139_s30 + $0x8] sm:$0xff] %v187_v1  ;;  %v193_v4 = vld [vmem:[%s142_s29 + $0x40] sm:$0xff]  ;;  %v195_v5 = vld [vmem:[%s142_s29 + $0x50] sm:$0xff] }
  0x17   : > { %190 = vst [vmem:[%s139_s30 + $0x10] sm:$0xff] %v189_v2  ;;  %v197_v6 = vld [vmem:[%s142_s29 + $0x60] sm:$0xff]  ;;  %v199_v7 = vld [vmem:[%s142_s29 + $0x70] sm:$0xff] }
  0x18   : > { %192 = vst [vmem:[%s139_s30 + $0x18] sm:$0xff] %v191_v3 }
  0x19   : > { %194 = vst [vmem:[%s139_s30 + $0x20] sm:$0xff] %v193_v4 }
  0x1a   : > { %196 = vst [vmem:[%s139_s30 + $0x28] sm:$0xff] %v195_v5 }
  0x1b   : > { %198 = vst [vmem:[%s139_s30 + $0x30] sm:$0xff] %v197_v6 }
  0x1c   : > { %200 = vst [vmem:[%s139_s30 + $0x38] sm:$0xff] %v199_v7 }
  0x1d PF: > { %p446_p10 = scmp.ge.s32.totalorder %s600_s15, 1  ;;  %p213_p11 = scmp.lt.s32.totalorder %s600_s15, 3 }
  0x1f   : > { %p214_p12 = pnand %p446_p10, %p213_p11 }
  0x20   : > { %s680_s4 = sand.u32 (!%p214_p12), 1, %s592_s13   ;;  %s449_s9 = sshll.u32 (!%p214_p12), %s643_s16, 1 }
  0x21   : > { %217 = sbr.rel (%p214_p12) target bundleno = 193 (0xc1), region = 66  ;;  %s447_s5 = sshll.u32 (!%p214_p12), %s680_s4, 6 }
  0x22   : > { %s222_s6 = scalar_lea.vmem (!%p214_p12), [#allocation2], %s447_s5  ;;  %p249_p13 = scmp.lt.s32.totalorder (!%p214_p12), %s449_s9, 3 }
  0x23   : > { %s448_s19 = sshll.u32 (!%p214_p12), %s680_s4, 2  ;;  %s498_s20 = sshll.u32 (!%p214_p12), %s643_s16, 2 }
  0x24   : > { %s361_s26 = scalar_lea.hbm (!%p214_p12), %s727_s3, %s498_s20  ;;  %s246_s27 = scalar_lea.vmem (!%p214_p12), [#allocation3], %s448_s19 }
  0x25   : > { %s363_s28 = sshll.u32 (!%p214_p12), %s246_s27, 4  ;;  %s365_s29 = sshll.u32 (!%p214_p12), %s361_s26, 4  ;;  %s364_s28 = int_to_ptr.vmem [resolvable:$true] %s363_s28  ;;  %s366_s29 = int_to_ptr.hbm [resolvable:$true] %s365_s29 }
  0x26   : > { %v476_v8 = vld [vmem:[%s222_s6 + $0x30] sm:$0xf]  ;;  %v497_v9 = vld [vmem:[%s222_s6 + $0x34] sm:$0xf0]  ;;  %v496_v10 = vld [vmem:[%s222_s6 + $0x34] sm:$0xf] }
  0x27   : > { %v477_v11 = vor.u32 %v497_v9, %v476_v8  ;;  %v478_v12 = vld [vmem:[%s222_s6 + $0x38] sm:$0xf0]  ;;  %v468_v13 = vld [vmem:[%s222_s6 + $0x20] sm:$0xf]  ;;  %v495_v14 = vld [vmem:[%s222_s6 + $0x24] sm:$0xf0] }
  0x28   : > { %v481_v15 = vor.u32 %v496_v10, %v478_v12  ;;  %v494_v16 = vld [vmem:[%s222_s6 + $0x24] sm:$0xf]  ;;  %v470_v17 = vld [vmem:[%s222_s6 + $0x28] sm:$0xf0]  ;;  %v469_v18 = vor.u32 %v495_v14, %v468_v13  ;;  %v460_v20 = vld [vmem:[%s222_s6 + $0x10] sm:$0xf] }
  0x29   : > { %318 = vmatpush.bf16.msra.mxu0 %v477_v11  ;;  %v473_v19 = vor.u32 %v494_v16, %v470_v17  ;;  %v493_v21 = vld [vmem:[%s222_s6 + $0x14] sm:$0xf0]  ;;  %v492_v22 = vld [vmem:[%s222_s6 + $0x14] sm:$0xf]  ;;  %v462_v23 = vld [vmem:[%s222_s6 + $0x18] sm:$0xf0] }
  0x2a   : > { %331 = vmatpush.bf16.msra.mxu1 %v481_v15  ;;  %v461_v24 = vor.u32 %v493_v21, %v460_v20  ;;  %v465_v25 = vor.u32 %v492_v22, %v462_v23  ;;  %v452_v26 = vld [vmem:[%s222_s6] sm:$0xf]  ;;  %v491_v27 = vld [vmem:[%s222_s6 + $0x4] sm:$0xf0]  ;;  %v490_v28 = vld [vmem:[%s222_s6 + $0x4] sm:$0xf] }
  0x2b   : > { %v454_v29 = vld [vmem:[%s222_s6 + $0x8] sm:$0xf0]  ;;  %v453_v30 = vor.u32 %v491_v27, %v452_v26  ;;  %v255_v32 = vld [vmem:[%s724_s0] sm:$0x1]  ;;  %vm310_vm0 = vcmask 523264   ;;  %s735_s9 = smov (!%p249_p13, %s449_s9), 3 }
  0x2c   : > { %v457_v31 = vor.u32 %v490_v28, %v454_v29  ;;  %s251_s17 = scalar_lea.vmem %s726_s2, %s735_s9  ;;  %vm345_vm1 = vcmask 1041408   ;;  %s350_s16 = scalar_lea.sflag [#allocation4], %s680_s4 }
  0x2d   : > { %319 = vmatpush.bf16.msra.mxu0 %v469_v18  ;;  %v264_v33 = vld [vmem:[%s251_s17] sm:$0x3]  ;;  %s552_s30 = sshra.s32 %s366_s29, 4  ;;  %s558_s8 = scalar_lea.hbm %s727_s3, 8  ;;  %s553_s30 = int_to_ptr.hbm [resolvable:$true] %s552_s30 }
  0x2e   : > { %332 = vmatpush.bf16.msra.mxu1 %v473_v19  ;;  %v266_v34 = vperm.slane %v264_v33, 0  ;;  %v267_v35 = vperm.slane %v264_v33, 1  ;;  %s554_s5 = scalar_lea.hbm %s553_s30, 4  ;;  %p559_p3 = scmp.lt.s32.totalorder %s553_s30, %s727_s3 }
  0x2f   : > { %p555_p0 = scmp.ne.s32.totalorder %s553_s30, %s554_s5  ;;  %p560_p4 = scmp.lt.s32.totalorder %s558_s8, %s554_s5 }
  0x31   : > { %320 = vmatpush.bf16.msra.mxu0 %v461_v24  ;;  %p556_p1 = pnand %p555_p0, %p661_p6  ;;  %p561_p5 = por %p560_p4, %p559_p3 }
  0x32   : > { %333 = vmatpush.bf16.msra.mxu1 %v465_v25 }
  0x33   : > { %p557_p2 = pneg %p556_p1 }
  0x35   : > { %321 = vmatpush.bf16.msra.mxu0 %v453_v30  ;;  %p562_p7 = pnand %p561_p5, %p557_p2 }
  0x36   : > { %334 = vmatpush.bf16.msra.mxu1 %v457_v31 }
  0x38   : > { %482 = vmatmul.msk.bf16.vlgmr.msra.gmra.mxu0 %vm310_vm0, %v255_v32 }
  0x39   : > { %483 = vmatmul.msk.bf16.vlgmr.msra.gmra.mxu1 %vm310_vm0, %v255_v32 }
  0xb5   : > { %v323_v36 = vpop.f32.mrf.mxu0 }
  0xb6   : > { %v324_v37 = vadd.f32 %v323_v36, %v266_v34  ;;  %v336_v38 = vpop.f32.mrf.mxu1 }
  0xb7   : > { %v337_v39 = vadd.f32 %v336_v38, %v267_v35 }
  0xb8   : > { %v340_v40 = vmax.f32 %v324_v37, 0.0 }
  0xb9   : > { %v341_v41 = vmax.f32 %v337_v39, 0.0 }
  0xbb   : > { %v344_v42 = vrot.slane %v341_v41, 6 }
  0xbd   : > { %v325_v43 = vpop.f32.mrf.mxu0  ;;  %v346_v44 = vsel %vm345_vm1, %v340_v40, %v344_v42 }
  0xbe   : > { %v338_v45 = vpop.f32.mrf.mxu1  ;;  %348 = vst [vmem:[%s246_s27] sm:$0xf] %v346_v44 }
  0xbf   : > { %565 = shalt.err (!%p562_p7)
}
  0xc0   : > { %499 = dma.vmem_to_hbm [thread:$0]  (%p661_p6), %s364_s28, 64, %s366_s29, %s350_s16  }
  0xc1 PF: > { %s377_s4 = sand.u32 1, %s588_s12   ;;  %p502_p10 = pnand %p442_p9, %p665_p8 }
  0xc2   : > { %s378_s11 = scalar_lea.sflag [#allocation4], %s377_s4 }
  0xc3   : > { %p503_p11 = pneg %p502_p10 }
  0xc5   : > { %583 = dma.done.wait (%p503_p11), %s378_s11, 64  }
  0xc6   : > { %585 = vsyncadd (%p503_p11), %s378_s11, 4294967232  ;;  %p13_p12 = scmp.ge.s32.totalorder %s647_s18, 4   ;;  %s730_s12 = smov %s592_s13 }
  0xc7   : > { %s731_s13 = smov %s596_s14  ;;  %s732_s14 = smov %s659_s21 }
  0xc8   : > { %s733_s15 = smov %s647_s18  ;;  %15 = sbr.rel (!%p13_p12) target bundleno = 3 (0x3), region = 113 }
  0xcd   :  { %384 = vsyncpa [#allocation4], 1 }
  0xce   :  { %386 = vsyncpa [#allocation4 + $0x1], 1 }

// kernel: nature_conv_forward.6
= control target key start
LH: loop header
LB: loop body
LE: loop exit
PB: predicated region body
PF: predicated region fallthrough
CT: control target
= control target key end

     0   :  { %s998_s12 = smov 0   ;;  %s1144_s0 = inlined_call_operand.vmem [shape: bf16[2,3,3,64], index: 0, kind: input, shape index: {}]   ;;  %s1145_s1 = inlined_call_operand.vmem [shape: bf16[9,64,128], index: 1, kind: input, shape index: {}]   ;;  %s1146_s2 = inlined_call_operand.vmem [shape: f32[1,128], index: 2, kind: input, shape index: {}]   ;;  %s1147_s3 = inlined_call_operand.vmem [shape: bf16[2,1,128], index: 3, kind: output, shape index: {}]  }
   0x1 LB: > { %s700_s13 = sadd.s32 4294967295, %s976_s12   ;;  %p704_p0 = scmp.ge.s32.totalorder %s976_s12, 1  ;;  %s976_s12 = sphi %s998_s12, %s13_s12  }
   0x2   : > { %p137_p1 = scmp.lt.s32.totalorder %s976_s12, 3 }
   0x4   : > { %p138_p2 = pnand %p704_p0, %p137_p1 }
   0x5   : > { %p159_p3 = scmp.lt.s32.totalorder (!%p138_p2), %s700_s13, 1 }
   0x6   : > { %141 = sbr.rel (%p138_p2) target bundleno = 202 (0xca), region = 32 }
   0xb   : > { %v932_v0 = vld [vmem:[%s1145_s1 + $0x38] sm:$0xff]  ;;  %v931_v4 = vld [vmem:[%s1145_s1 + $0x30] sm:$0xff]  ;;  %s1149_s13 = smov (!%p159_p3, %s700_s13), 1  ;;  %v930_v8 = vld [vmem:[%s1145_s1 + $0x28] sm:$0xff]  ;;  %vm217_vm0 = vcmask 523264   ;;  %vm647_vm1 = vcmask 1040384  }
   0xc   : > { %v928_v1 = vld [vmem:[%s1145_s1 + $0x18] sm:$0xff]  ;;  %225 = vmatpush.bf16.msra.mxu0 %v932_v0  ;;  %v927_v5 = vld [vmem:[%s1145_s1 + $0x10] sm:$0xff]  ;;  %s961_s30 = smul.u32 6, %s1149_s13  ;;  %v926_v10 = vld [vmem:[%s1145_s1 + $0x8] sm:$0xff]  ;;  %s166_s20 = scalar_lea.vmem %s1147_s3, %s1149_s13  ;;  %vm648_vm2 = vsmask.f32 256 }
   0xd   : > { %v936_v2 = vld [vmem:[%s1145_s1 + $0x58] sm:$0xff]  ;;  %264 = vmatpush.bf16.msra.mxu1 %v928_v1  ;;  %v935_v6 = vld [vmem:[%s1145_s1 + $0x50] sm:$0xff]  ;;  %v934_v11 = vld [vmem:[%s1145_s1 + $0x48] sm:$0xff] }
   0xe   : > { %v940_v3 = vld [vmem:[%s1145_s1 + $0x78] sm:$0xff]  ;;  %317 = vmatpush.bf16.msra.mxu2 %v936_v2  ;;  %v939_v7 = vld [vmem:[%s1145_s1 + $0x70] sm:$0xff]  ;;  %s1039_s8 = scalar_lea.vmem %s1144_s0, %s961_s30  ;;  %v938_v12 = vld [vmem:[%s1145_s1 + $0x68] sm:$0xff] }
   0xf   : > { %367 = vmatpush.bf16.msra.mxu3 %v940_v3  ;;  %v168_v9 = vld [vmem:[%s1039_s8] sm:$0x3]  ;;  %v944_v14 = vld [vmem:[%s1145_s1 + $0x98] sm:$0xff]  ;;  %v943_v21 = vld [vmem:[%s1145_s1 + $0x90] sm:$0xff] }
  0x10   : > { %226 = vmatpush.bf16.msra.mxu0 %v931_v4  ;;  %189 = vst [vmem:[#allocation1] ss:$4 sm:$0xff] %v168_v9  ;;  %v929_v13 = vld [vmem:[%s1145_s1 + $0x20] sm:$0xff]  ;;  %v948_v18 = vld [vmem:[%s1145_s1 + $0xb8] sm:$0xff]  ;;  %v947_v24 = vld [vmem:[%s1145_s1 + $0xb0] sm:$0xff] }
  0x11   : > { %265 = vmatpush.bf16.msra.mxu1 %v927_v5  ;;  %v925_v15 = vld [vmem:[%s1145_s1] sm:$0xff]  ;;  %v952_v19 = vld [vmem:[%s1145_s1 + $0xd8] sm:$0xff]  ;;  %v951_v25 = vld [vmem:[%s1145_s1 + $0xd0] sm:$0xff] }
  0x12   : > { %318 = vmatpush.bf16.msra.mxu2 %v935_v6  ;;  %v933_v16 = vld [vmem:[%s1145_s1 + $0x40] sm:$0xff]  ;;  %v956_v23 = vld [vmem:[%s1145_s1 + $0xf8] sm:$0xff]  ;;  %v942_v27 = vld [vmem:[%s1145_s1 + $0x88] sm:$0xff] }
  0x13   : > { %368 = vmatpush.bf16.msra.mxu3 %v939_v7  ;;  %v937_v17 = vld [vmem:[%s1145_s1 + $0x60] sm:$0xff]  ;;  %v955_v28 = vld [vmem:[%s1145_s1 + $0xf0] sm:$0xff]  ;;  %v946_v29 = vld [vmem:[%s1145_s1 + $0xa8] sm:$0xff] }
  0x14   : > { %227 = vmatpush.bf16.msra.mxu0 %v930_v8  ;;  %v169_v26 = vld [vmem:[%s1039_s8 + $0x2] sm:$0x3]  ;;  %v950_v30 = vld [vmem:[%s1145_s1 + $0xc8] sm:$0xff]  ;;  %v960_v35 = vld [vmem:[%s1145_s1 + $0x118] sm:$0xff] }
  0x15   : > { %266 = vmatpush.bf16.msra.mxu1 %v926_v10  ;;  %v941_v32 = vld [vmem:[%s1145_s1 + $0x80] sm:$0xff]  ;;  %v954_v34 = vld [vmem:[%s1145_s1 + $0xe8] sm:$0xff]  ;;  %v959_v39 = vld [vmem:[%s1145_s1 + $0x110] sm:$0xff] }
  0x16   : > { %319 = vmatpush.bf16.msra.mxu2 %v934_v11  ;;  %v945_v36 = vld [vmem:[%s1145_s1 + $0xa0] sm:$0xff]  ;;  %v958_v42 = vld [vmem:[%s1145_s1 + $0x108] sm:$0xff]  ;;  %vm649_vm3 = vmand %vm647_vm1, %vm648_vm2 }
  0x17   : > { %369 = vmatpush.bf16.msra.mxu3 %v938_v12  ;;  %v190_v20 = vld.sshfl [vmem:[#allocation1] sm:$0xff pattern:$0x73625140] }
  0x18   : > { %228 = vmatpush.bf16.msra.mxu0 %v929_v13  ;;  %v191_v22 = vshrl.u32 %v190_v20, 16  ;;  %282 = vst [vmem:[#allocation1] ss:$4 sm:$0xff] %v168_v9  ;;  %v949_v37 = vld [vmem:[%s1145_s1 + $0xc0] sm:$0xff] }
  0x19   : > { %267 = vmatpush.bf16.msra.mxu1 %v925_v15  ;;  %v953_v38 = vld [vmem:[%s1145_s1 + $0xe0] sm:$0xff] }
  0x1a   : > { %320 = vmatpush.bf16.msra.mxu2 %v933_v16  ;;  %v957_v43 = vld [vmem:[%s1145_s1 + $0x100] sm:$0xff] }
  0x1b   : > { %370 = vmatpush.bf16.msra.mxu3 %v937_v17  ;;  %730 = vmatmul.msk.bf16.vlgmr.msra.gmra.mxu0 %vm217_vm0, %v191_v22  ;;  %v170_v44 = vld [vmem:[%s1039_s8 + $0x4] sm:$0x3]  ;;  %v643_v10 = vld [vmem:[%s1146_s2] sm:$0x1] }
  0x1c   : > { %421 = vmatpush.bf16.msrb.mxu0 %v944_v14  ;;  %747 = vmatmul.msk.bf16.vlgmr.msra.gmra.mxu1 %vm217_vm0, %v168_v9  ;;  %v650_v14 = vld [vmem:[%s166_s20] sm:$0x1] }
  0x1d   : > { %475 = vmatpush.bf16.msrb.mxu1 %v948_v18 }
  0x1e   : > { %525 = vmatpush.bf16.msrb.mxu2 %v952_v19  ;;  %797 = vmatmul.msk.bf16.vlgmr.msra.gmra.mxu3 %vm217_vm0, %v169_v26 }
  0x1f   : > { %579 = vmatpush.bf16.msrb.mxu3 %v956_v23  ;;  %v283_v31 = vld.sshfl [vmem:[#allocation1] sm:$0xff pattern:$0x73625140] }
  0x20   : > { %422 = vmatpush.bf16.msrb.mxu0 %v943_v21  ;;  %v285_v33 = vrot.slane %v283_v31, 1  ;;  %386 = vst [vmem:[#allocation1] ss:$4 sm:$0xff] %v169_v26 }
  0x21   : > { %476 = vmatpush.bf16.msrb.mxu1 %v947_v24 }
  0x22   : > { %526 = vmatpush.bf16.msrb.mxu2 %v951_v25 }
  0x23   : > { %580 = vmatpush.bf16.msrb.mxu3 %v955_v28  ;;  %772 = vmatmul.msk.bf16.vlgmr.msra.gmra.mxu2 %vm217_vm0, %v285_v33 }
  0x24   : > { %423 = vmatpush.bf16.msrb.mxu0 %v942_v27 }
  0x25   : > { %477 = vmatpush.bf16.msrb.mxu1 %v946_v29 }
  0x26   : > { %527 = vmatpush.bf16.msrb.mxu2 %v950_v30 }
  0x27   : > { %581 = vmatpush.bf16.msrb.mxu3 %v954_v34  ;;  %v387_v40 = vld.sshfl [vmem:[#allocation1] sm:$0xff pattern:$0x73625140] }
  0x28   : > { %424 = vmatpush.bf16.msrb.mxu0 %v941_v32  ;;  %440 = vst [vmem:[#allocation1] ss:$4 sm:$0xff] %v169_v26  ;;  %v388_v41 = vshrl.u32 %v387_v40, 16 }
  0x29   : > { %478 = vmatpush.bf16.msrb.mxu1 %v945_v36 }
  0x2a   : > { %528 = vmatpush.bf16.msrb.mxu2 %v949_v37 }
  0x2b   : > { %582 = vmatpush.bf16.msrb.mxu3 %v953_v38  ;;  %822 = vmatmul.msk.bf16.vlgmr.msrb.gmra.mxu0 %vm217_vm0, %v388_v41 }
  0x2c   : > { %633 = vmatpush.bf16.msra.mxu0 %v960_v35 }
  0x2f   : > { %v441_v45 = vld.sshfl [vmem:[#allocation1] sm:$0xff pattern:$0x73625140] }
  0x30   : > { %634 = vmatpush.bf16.msra.mxu0 %v959_v39  ;;  %v443_v46 = vrot.slane %v441_v45, 1  ;;  %544 = vst [vmem:[#allocation1] ss:$4 sm:$0xff] %v170_v44 }
  0x32   : > { %847 = vmatmul.msk.bf16.vlgmr.msrb.gmra.mxu1 %vm217_vm0, %v443_v46 }
  0x33   : > { %872 = vmatmul.msk.bf16.vlgmr.msrb.gmra.mxu2 %vm217_vm0, %v170_v44 }
  0x34   : > { %635 = vmatpush.bf16.msra.mxu0 %v958_v42 }
  0x37   : > { %v545_v47 = vld.sshfl [vmem:[#allocation1] sm:$0xff pattern:$0x73625140] }
  0x38   : > { %636 = vmatpush.bf16.msra.mxu0 %v957_v43  ;;  %v546_v48 = vshrl.u32 %v545_v47, 16  ;;  %598 = vst [vmem:[#allocation1] ss:$4 sm:$0xff] %v170_v44 }
  0x3a   : > { %897 = vmatmul.msk.bf16.vlgmr.msrb.gmra.mxu3 %vm217_vm0, %v546_v48 }
  0x3f   : > { %v599_v49 = vld.sshfl [vmem:[#allocation1] sm:$0xff pattern:$0x73625140] }
  0x40   : > { %v601_v50 = vrot.slane %v599_v49, 1 }
  0x42   : > { %922 = vmatmul.msk.bf16.vlgmr.msra.gmra.mxu0 %vm217_vm0, %v601_v50 }
  0x98   : > { %v230_v51 = vpop.f32.mrf.mxu0 }
  0x99   : > { %v269_v52 = vpop.f32.mrf.mxu1 }
  0x9a   : > { %v270_v60 = vadd.f32 %v269_v52, %v230_v51 }
  0xa0   : > { %v232_v54 = vpop.f32.mrf.mxu0 }
  0xa1   : > { %v372_v53 = vpop.f32.mrf.mxu3  ;;  %v271_v55 = vpop.f32.mrf.mxu1 }
  0xa6   : > { %v322_v56 = vpop.f32.mrf.mxu2 }
  0xa7   : > { %v326_v63 = vadd.f32 %v322_v56, %v270_v60 }
  0xa8   : > { %v426_v58 = vpop.f32.mrf.mxu0 }
  0xa9   : > { %v374_v57 = vpop.f32.mrf.mxu3  ;;  %v376_v0 = vadd.f32 %v372_v53, %v326_v63 }
  0xab   : > { %v430_v3 = vadd.f32 %v426_v58, %v376_v0 }
  0xae   : > { %v324_v59 = vpop.f32.mrf.mxu2 }
  0xaf   : > { %v480_v62 = vpop.f32.mrf.mxu1 }
  0xb0   : > { %v428_v61 = vpop.f32.mrf.mxu0  ;;  %v484_v4 = vadd.f32 %v480_v62, %v430_v3 }
  0xb6   : > { %v530_v1 = vpop.f32.mrf.mxu2 }
  0xb7   : > { %v482_v2 = vpop.f32.mrf.mxu1  ;;  %v534_v5 = vadd.f32 %v530_v1, %v484_v4 }
  0xbd   : > { %v584_v7 = vpop.f32.mrf.mxu3 }
  0xbe   : > { %v532_v6 = vpop.f32.mrf.mxu2  ;;  %v588_v8 = vadd.f32 %v584_v7, %v534_v5 }
  0xbf   : > { %v638_v9 = vpop.f32.mrf.mxu0 }
  0xc0   : > { %v642_v11 = vadd.f32 %v638_v9, %v588_v8 }
  0xc2   : > { %v644_v12 = vadd.f32 %v643_v10, %v642_v11 }
  0xc4   : > { %v645_v13 = vmax.f32 %v644_v12, 0.0 }
  0xc5   : > { %v586_v15 = vpop.f32.mrf.mxu3 }
  0xc6   : > { %v646_v16 = vpack.c.bf16 %v645_v13, %v645_v13 }
  0xc7   : > { %v640_v17 = vpop.f32.mrf.mxu0 }
  0xc8   : > { %v651_v18 = vsel %vm649_vm3, %v646_v16, %v650_v14 }
  0xc9   : > { %652 = vst [vmem:[%s166_s20] sm:$0x1] %v651_v18 }
  0xca PF: > { %s13_s12 = sadd.s32 1, %s976_s12  }
  0xcb   : > { %p10_p4 = scmp.ge.s32.totalorder %s13_s12, 4  }
  0xcd   :  { %12 = sbr.rel (!%p10_p4) target bundleno = 1 (0x1), region = 70 }

// kernel: nature_conv_forward.4
= control target key start
LH: loop header
LB: loop body
LE: loop exit
PB: predicated region body
PF: predicated region fallthrough
CT: control target
= control target key end

     0   :  { %s7381_s12 = smov 0   ;;  %s9854_s0 = inlined_call_operand.vmem [shape: bf16[32,9,9,4], index: 0, kind: input, shape index: {}]   ;;  %s9855_s1 = inlined_call_operand.vmem [shape: bf16[64,4,128], index: 1, kind: input, shape index: {}]   ;;  %s9856_s2 = inlined_call_operand.vmem [shape: f32[1,128], index: 2, kind: input, shape index: {}]   ;;  %s9857_s3 = inlined_call_operand.vmem [shape: bf16[2,64,128], index: 3, kind: output, shape index: {}]  }
   0x1 LB: > { %s7387_s13 = sadd.s32 4294967295, %s7359_s12   ;;  %p6723_p0 = scmp.ge.s32.totalorder %s7359_s12, 1  ;;  %s7359_s12 = sphi %s7381_s12, %s13_s12  }
   0x2   : > { %p139_p1 = scmp.lt.s32.totalorder %s7359_s12, 3 }
   0x4   : > { %p140_p2 = pnand %p6723_p0, %p139_p1 }
   0x5   : > { %s6724_s18 = sshll.u32 (!%p140_p2), %s7387_s13, 4  ;;  %p171_p4 = scmp.lt.s32.totalorder (!%p140_p2), %s7387_s13, 1 }
   0x6   : > { %143 = sbr.rel (%p140_p2) target bundleno = 1189 (0x4a5), region = 32  ;;  %p165_p3 = scmp.lt.s32.totalorder (!%p140_p2), %s6724_s18, 31 }
   0xb   : > { %vm338_vm0 = vcmask 1041408   ;;  %v6737_v0 = vld [vmem:[%s9855_s1 + $0x40] sm:$0x3]  ;;  %v6728_v4 = vld [vmem:[%s9855_s1 + $0x8] sm:$0x3]  ;;  %s9861_s18 = smov (!%p165_p3, %s6724_s18), 31 }
   0xc   : > { %v195_v1 = vld [vmem:[%s9855_s1] sm:$0x3]  ;;  %v456_v2 = vsel %vm338_vm0, %v6737_v0, 0  ;;  %v340_v5 = vsel %vm338_vm0, %v6728_v4, 0  ;;  %v6742_v6 = vld [vmem:[%s9855_s1 + $0x48] sm:$0x3] }
   0xd   : > { %v404_v3 = vsel %vm338_vm0, %v195_v1, 0  ;;  %465 = vmatpush.bf16.msra.mxu2 %v456_v2  ;;  %v6775_v7 = vld [vmem:[%s9855_s1 + $0x42] sm:$0x3]  ;;  %349 = vmatpush.bf16.msra.mxu0 %v340_v5  ;;  %v529_v8 = vsel %vm338_vm0, %v6742_v6, 0  ;;  %v6780_v11 = vld [vmem:[%s9855_s1 + $0x4a] sm:$0x3] }
   0xe   : > { %413 = vmatpush.bf16.msra.mxu1 %v404_v3  ;;  %v860_v9 = vsel %vm338_vm0, %v6775_v7, 0  ;;  %538 = vmatpush.bf16.msra.mxu3 %v529_v8  ;;  %v6765_v10 = vld [vmem:[%s9855_s1 + $0x2] sm:$0x3]  ;;  %s7343_s29 = smul.u32 72, %s9861_s18  ;;  %v933_v13 = vsel %vm338_vm0, %v6780_v11, 0  ;;  %vm325_vm1 = vcmask 31744  }
   0xf   : > { %v622_v12 = vsel %vm338_vm0, %v6765_v10, 0  ;;  %v6770_v14 = vld [vmem:[%s9855_s1 + $0xa] sm:$0x3]  ;;  %vm196_vm2 = vsmask.f32 3328  ;;  %s9863_s13 = smov (!%p171_p4, %s7387_s13), 1 }
  0x10   : > { %v800_v15 = vsel %vm338_vm0, %v6770_v14, 0  ;;  %s7427_s7 = scalar_lea.vmem %s9854_s0, %s7343_s29  ;;  %vm197_vm3 = vsmask.f32 7440  ;;  %s7319_s27 = sshll.u32 %s9863_s13, 5 }
  0x11   : > { %869 = vmatpush.bf16.msrb.mxu2 %v860_v9  ;;  %631 = vmatpush.bf16.msrb.mxu0 %v622_v12  ;;  %v179_v16 = vld [vmem:[%s7427_s7 + $0x8] sm:$0xf]  ;;  %v7431_v17 = vld [vmem:[%s7427_s7 + $0x10] sm:$0xf]  ;;  %v177_v18 = vld [vmem:[%s7427_s7] sm:$0xf]  ;;  %s9827_s30 = scalar_lea.vmem %s9857_s3, %s7319_s27 }
  0x12   : > { %942 = vmatpush.bf16.msrb.mxu3 %v933_v13  ;;  %809 = vmatpush.bf16.msrb.mxu1 %v800_v15  ;;  %v214_v19 = vshrl.u32 %v179_v16, 16  ;;  %v217_v20 = vshll.u32 %v179_v16, 16  ;;  %v228_v21 = vshrl.u32 %v7431_v17, 16  ;;  %v231_v22 = vshll.u32 %v7431_v17, 16  ;;  %v178_v23 = vld [vmem:[%s7427_s7 + $0x4] sm:$0x1]  ;;  %vm7446_vm4 = vmor %vm196_vm2, %vm197_vm3 }
  0x13   : > { %v380_v24 = vunpack.c.l.b16 %v179_v16  ;;  %v381_v25 = vunpack.c.l.b16 %v7431_v17  ;;  %v200_v26 = vshrl.u32 %v177_v18, 16  ;;  %v203_v27 = vshll.u32 %v177_v18, 16  ;;  %v180_v28 = vld [vmem:[%s7427_s7 + $0xc] sm:$0x1]  ;;  %v182_v29 = vld [vmem:[%s7427_s7 + $0x14] sm:$0x1] }
  0x14   : > { %v216_v30 = vrot.slane %v214_v19, 4  ;;  %v219_v31 = vrot.slane %v217_v20, 5  ;;  %v230_v32 = vrot.slane %v228_v21, 4  ;;  %v233_v33 = vrot.slane %v231_v22, 5  ;;  %v183_v34 = vld [vmem:[%s7427_s7 + $0x18] sm:$0xf] }
  0x15   : > { %v439_v35 = vpack.c.b16 %v381_v25, %v380_v24  ;;  %v202_v36 = vrot.slane %v200_v26, 4  ;;  %v205_v37 = vrot.slane %v203_v27, 5  ;;  %v379_v38 = vunpack.c.l.b16 %v177_v18  ;;  %v7451_v47 = vld [vmem:[%s7427_s7 + $0x20] sm:$0xf]  ;;  %v184_v60 = vld [vmem:[%s7427_s7 + $0x1c] sm:$0x1] }
  0x16   : > { %v209_v39 = vshll.u32 %v178_v23, 16  ;;  %v220_v40 = vor.u32 %v219_v31, %v216_v30  ;;  %v223_v41 = vshll.u32 %v180_v28, 16  ;;  %v234_v42 = vor.u32 %v233_v33, %v230_v32  ;;  %v186_v1 = vld [vmem:[%s7427_s7 + $0x24] sm:$0x1]  ;;  %v187_v19 = vld [vmem:[%s7427_s7 + $0x28] sm:$0xf] }
  0x17   : > { %6738 = vmatmul.msk.bf16.vlgmr.msra.gmra.mxu2 %vm325_vm1, %v439_v35  ;;  %v387_v43 = vpack.c.b16 %v380_v24, %v379_v38  ;;  %v206_v45 = vor.u32 %v205_v37, %v202_v36  ;;  %v237_v46 = vshll.u32 %v182_v29, 16  ;;  %v242_v48 = vshrl.u32 %v183_v34, 16  ;;  %v7469_v20 = vld [vmem:[%s7427_s7 + $0x30] sm:$0xf]  ;;  %v190_v35 = vld [vmem:[%s7427_s7 + $0x34] sm:$0x1] }
  0x18   : > { %v211_v49 = vrot.slane %v209_v39, 5  ;;  %v221_v50 = vrot.slane %v220_v40, 4  ;;  %v225_v51 = vrot.slane %v223_v41, 5  ;;  %v235_v52 = vrot.slane %v234_v42, 4 }
  0x19   : > { %6733 = vmatmul.msk.bf16.vlgmr.msra.gmra.mxu1 %vm325_vm1, %v387_v43  ;;  %v207_v53 = vrot.slane %v206_v45, 4  ;;  %v239_v54 = vrot.slane %v237_v46, 5  ;;  %v244_v55 = vrot.slane %v242_v48, 4  ;;  %v245_v56 = vshll.u32 %v183_v34, 16  ;;  %v7490_v45 = vld [vmem:[%s7427_s7 + $0x38] sm:$0xf] }
  0x1a   : > { %v226_v57 = vsel %vm7446_vm4, %v221_v50, %v225_v51  ;;  %v256_v58 = vshrl.u32 %v7451_v47, 16  ;;  %v259_v59 = vshll.u32 %v7451_v47, 16  ;;  %v251_v7 = vshll.u32 %v184_v60, 16  ;;  %v193_v50 = vld [vmem:[%s7427_s7 + $0x40] sm:$0xf] }
  0x1b   : > { %v212_v61 = vsel %vm7446_vm4, %v207_v53, %v211_v49  ;;  %v314_v62 = vunpack.c.l.b16 %v226_v57  ;;  %v240_v63 = vsel %vm7446_vm4, %v235_v52, %v239_v54  ;;  %v247_v0 = vrot.slane %v245_v56, 5 }
  0x1c   : > { %v313_v2 = vunpack.c.l.b16 %v212_v61  ;;  %v315_v3 = vunpack.c.l.b16 %v240_v63  ;;  %v258_v4 = vrot.slane %v256_v58, 4  ;;  %v261_v5 = vrot.slane %v259_v59, 5  ;;  %v192_v63 = vld [vmem:[%s7427_s7 + $0x3c] sm:$0x1] }
  0x1d   : > { %v248_v6 = vor.u32 %v247_v0, %v244_v55  ;;  %v265_v11 = vshll.u32 %v186_v1, 16  ;;  %v382_v12 = vunpack.c.l.b16 %v183_v34  ;;  %v383_v13 = vunpack.c.l.b16 %v7451_v47  ;;  %v188_v34 = vld [vmem:[%s7427_s7 + $0x2c] sm:$0x1]  ;;  %v194_v0 = vld [vmem:[%s7427_s7 + $0x44] sm:$0x1] }
  0x1e   : > { %v321_v8 = vpack.c.b16 %v314_v62, %v313_v2  ;;  %v512_v9 = vpack.c.b16 %v315_v3, %v314_v62  ;;  %v262_v10 = vor.u32 %v261_v5, %v258_v4  ;;  %v253_v15 = vrot.slane %v251_v7, 5 }
  0x1f   : > { %v249_v14 = vrot.slane %v248_v6, 4  ;;  %v267_v18 = vrot.slane %v265_v11, 5  ;;  %v440_v21 = vpack.c.b16 %v383_v13, %v382_v12  ;;  %v388_v22 = vpack.c.b16 %v382_v12, %v381_v25 }
  0x20   : > { %6729 = vmatmul.msk.bf16.vlgmr.msra.gmra.mxu0 %vm325_vm1, %v321_v8  ;;  %6743 = vmatmul.msk.bf16.vlgmr.msra.gmra.mxu3 %vm325_vm1, %v512_v9  ;;  %v263_v16 = vrot.slane %v262_v10, 4  ;;  %v270_v23 = vshrl.u32 %v187_v19, 16  ;;  %v273_v24 = vshll.u32 %v187_v19, 16  ;;  %v284_v28 = vshrl.u32 %v7469_v20, 16  ;;  %v7512_v8 = vld [vmem:[%s7427_s7 + $0x50] sm:$0xf] }
  0x21   : > { %v254_v26 = vsel %vm7446_vm4, %v249_v14, %v253_v15  ;;  %v287_v29 = vshll.u32 %v7469_v20, 16  ;;  %v279_v39 = vshll.u32 %v188_v34, 16  ;;  %v293_v41 = vshll.u32 %v190_v35, 16  ;;  %v7515_v9 = vld [vmem:[%s7427_s7 + $0x48] sm:$0xf] }
  0x22   : > { %v268_v27 = vsel %vm7446_vm4, %v263_v16, %v267_v18  ;;  %v316_v30 = vunpack.c.l.b16 %v254_v26  ;;  %v272_v17 = vrot.slane %v270_v23, 4  ;;  %v275_v25 = vrot.slane %v273_v24, 5  ;;  %v6803_v24 = vld [vmem:[%s9855_s1 + $0x4] sm:$0x3]  ;;  %v6818_v26 = vld [vmem:[%s9855_s1 + $0x4c] sm:$0x3] }
  0x23   : > { %v7480_v31 = vunpack.c.l.b16 %v268_v27  ;;  %v286_v32 = vrot.slane %v284_v28, 4  ;;  %v289_v33 = vrot.slane %v287_v29, 5  ;;  %v384_v42 = vunpack.c.l.b16 %v187_v19  ;;  %v6808_v27 = vld [vmem:[%s9855_s1 + $0xc] sm:$0x3] }
  0x24   : > { %v322_v36 = vpack.c.b16 %v316_v30, %v315_v3  ;;  %v276_v38 = vor.u32 %v275_v25, %v272_v17  ;;  %v385_v43 = vunpack.c.l.b16 %v7469_v20  ;;  %v281_v47 = vrot.slane %v279_v39, 5  ;;  %v6813_v3 = vld [vmem:[%s9855_s1 + $0x44] sm:$0x3]  ;;  %v7539_v17 = vld [vmem:[%s7427_s7 + $0x58] sm:$0xf] }
  0x25   : > { %v513_v37 = vpack.c.b16 %v7480_v31, %v316_v30  ;;  %v290_v40 = vor.u32 %v289_v33, %v286_v32  ;;  %v295_v49 = vrot.slane %v293_v41, 5  ;;  %v298_v52 = vshrl.u32 %v7490_v45, 16 }
  0x26   : > { %v277_v46 = vrot.slane %v276_v38, 4  ;;  %v441_v51 = vpack.c.b16 %v385_v43, %v384_v42  ;;  %v301_v53 = vshll.u32 %v7490_v45, 16  ;;  %v389_v54 = vpack.c.b16 %v384_v42, %v383_v13 }
  0x27   : > { %6739 = vmatmul.msk.bf16.gmra.mxu2 %vm325_vm1, %v440_v21  ;;  %v291_v48 = vrot.slane %v290_v40, 4  ;;  %v496_v57 = vshrl.u32 %v193_v50, 16  ;;  %v499_v58 = vshll.u32 %v193_v50, 16  ;;  %v300_v59 = vrot.slane %v298_v52, 4 }
  0x28   : > { %v282_v55 = vsel %vm7446_vm4, %v277_v46, %v281_v47  ;;  %v303_v60 = vrot.slane %v301_v53, 5  ;;  %v1264_v4 = vsel %vm338_vm0, %v6813_v3, 0  ;;  %v307_v6 = vshll.u32 %v192_v63, 16 }
  0x29   : > { %6734 = vmatmul.msk.bf16.gmra.mxu1 %vm325_vm1, %v388_v22  ;;  %v296_v56 = vsel %vm7446_vm4, %v291_v48, %v295_v49  ;;  %v318_v61 = vunpack.c.l.b16 %v282_v55  ;;  %v498_v1 = vrot.slane %v496_v57, 4  ;;  %v501_v2 = vrot.slane %v499_v58, 5  ;;  %1273 = vmatpush.bf16.msra.mxu2 %v1264_v4  ;;  %v6752_v55 = vld [vmem:[%s7427_s7 + $0x5c] sm:$0x1] }
  0x2a   : > { %v7502_v62 = vunpack.c.l.b16 %v296_v56  ;;  %v304_v5 = vor.u32 %v303_v60, %v300_v59  ;;  %v505_v7 = vshll.u32 %v194_v0, 16  ;;  %v386_v12 = vunpack.c.l.b16 %v7490_v45  ;;  %v7555_v56 = vld [vmem:[%s7427_s7 + $0x60] sm:$0xf] }
  0x2b   : > { %v323_v10 = vpack.c.b16 %v318_v61, %v7480_v31  ;;  %v502_v13 = vor.u32 %v501_v2, %v498_v1  ;;  %v676_v14 = vshrl.u32 %v7512_v8, 16  ;;  %v679_v15 = vshll.u32 %v7512_v8, 16 }
  0x2c   : > { %v514_v11 = vpack.c.b16 %v7502_v62, %v318_v61  ;;  %v662_v16 = vshrl.u32 %v7515_v9, 16  ;;  %v665_v18 = vshll.u32 %v7515_v9, 16  ;;  %v438_v19 = vunpack.c.l.b16 %v193_v50 }
  0x2d   : > { %v305_v21 = vrot.slane %v304_v5, 4  ;;  %v309_v22 = vrot.slane %v307_v6, 5  ;;  %v507_v23 = vrot.slane %v505_v7, 5  ;;  %v503_v28 = vrot.slane %v502_v13, 4  ;;  %v7569_v7 = vld [vmem:[%s7427_s7 + $0x68] sm:$0xf] }
  0x2e   : > { %v1026_v29 = vsel %vm338_vm0, %v6803_v24, 0  ;;  %v1337_v30 = vsel %vm338_vm0, %v6818_v26, 0  ;;  %v1204_v31 = vsel %vm338_vm0, %v6808_v27, 0  ;;  %v678_v25 = vrot.slane %v676_v14, 4  ;;  %v6754_v13 = vld [vmem:[%s7427_s7 + $0x64] sm:$0x1] }
  0x2f   : > { %v681_v32 = vrot.slane %v679_v15, 5  ;;  %v664_v33 = vrot.slane %v662_v16, 4  ;;  %v667_v34 = vrot.slane %v665_v18, 5  ;;  %1035 = vmatpush.bf16.msra.mxu0 %v1026_v29  ;;  %1346 = vmatpush.bf16.msra.mxu3 %v1337_v30  ;;  %v442_v35 = vpack.c.b16 %v438_v19, %v386_v12  ;;  %v7580_v26 = vld [vmem:[%s7427_s7 + $0x70] sm:$0xf] }
  0x30   : > { %6730 = vmatmul.msk.bf16.gmra.mxu0 %vm325_vm1, %v322_v36  ;;  %6744 = vmatmul.msk.bf16.gmra.mxu3 %vm325_vm1, %v513_v37  ;;  %v6748_v36 = vld [vmem:[%s7427_s7 + $0x4c] sm:$0x1]  ;;  %v6750_v37 = vld [vmem:[%s7427_s7 + $0x54] sm:$0x1]  ;;  %v390_v38 = vpack.c.b16 %v386_v12, %v385_v43  ;;  %v310_v39 = vsel %vm7446_vm4, %v305_v21, %v309_v22  ;;  %v508_v40 = vsel %vm7446_vm4, %v503_v28, %v507_v23  ;;  %v690_v41 = vshrl.u32 %v7539_v17, 16 }
  0x31   : > { %1213 = vmatpush.bf16.msra.mxu1 %v1204_v31  ;;  %v693_v42 = vshll.u32 %v7539_v17, 16  ;;  %v668_v45 = vor.u32 %v667_v34, %v664_v33  ;;  %v671_v46 = vshll.u32 %v6748_v36, 16  ;;  %v682_v47 = vor.u32 %v681_v32, %v678_v25  ;;  %v6756_v29 = vld [vmem:[%s7427_s7 + $0x6c] sm:$0x1] }
  0x32   : > { %v685_v48 = vshll.u32 %v6750_v37, 16  ;;  %v320_v20 = vunpack.c.l.b16 %v310_v39  ;;  %v511_v43 = vunpack.c.l.b16 %v508_v40  ;;  %v692_v49 = vrot.slane %v690_v41, 4  ;;  %v6758_v41 = vld [vmem:[%s7427_s7 + $0x74] sm:$0x1] }
  0x33   : > { %v695_v50 = vrot.slane %v693_v42, 5  ;;  %v673_v52 = vrot.slane %v671_v46, 5  ;;  %v683_v53 = vrot.slane %v682_v47, 4  ;;  %v699_v60 = vshll.u32 %v6752_v55, 16  ;;  %v7593_v42 = vld [vmem:[%s7427_s7 + $0x78] sm:$0xf] }
  0x34   : > { %v324_v57 = vpack.c.b16 %v320_v20, %v7502_v62  ;;  %v515_v58 = vpack.c.b16 %v511_v43, %v320_v20  ;;  %v704_v0 = vshrl.u32 %v7555_v56, 16  ;;  %v707_v1 = vshll.u32 %v7555_v56, 16  ;;  %v6760_v55 = vld [vmem:[%s7427_s7 + $0x7c] sm:$0x1] }
  0x35   : > { %v696_v59 = vor.u32 %v695_v50, %v692_v49  ;;  %v598_v2 = vunpack.c.l.b16 %v7512_v8  ;;  %v599_v3 = vunpack.c.l.b16 %v7539_v17  ;;  %v701_v6 = vrot.slane %v699_v60, 5 }
  0x36   : > { %v718_v15 = vshrl.u32 %v7569_v7, 16  ;;  %v721_v16 = vshll.u32 %v7569_v7, 16  ;;  %v713_v19 = vshll.u32 %v6754_v13, 16  ;;  %v597_v21 = vunpack.c.l.b16 %v7515_v9 }
  0x37   : > { %6740 = vmatmul.msk.bf16.gmra.mxu2 %vm325_vm1, %v441_v51  ;;  %v669_v51 = vrot.slane %v668_v45, 4  ;;  %v697_v5 = vrot.slane %v696_v59, 4  ;;  %v843_v12 = vpack.c.b16 %v599_v3, %v598_v2  ;;  %v732_v17 = vshrl.u32 %v7580_v26, 16 }
  0x38   : > { %v720_v23 = vrot.slane %v718_v15, 4  ;;  %v723_v24 = vrot.slane %v721_v16, 5  ;;  %v715_v28 = vrot.slane %v713_v19, 5  ;;  %v605_v30 = vpack.c.b16 %v598_v2, %v597_v21 }
  0x39   : > { %6735 = vmatmul.msk.bf16.gmra.mxu1 %vm325_vm1, %v389_v54  ;;  %v687_v54 = vrot.slane %v685_v48, 5  ;;  %v674_v61 = vsel %vm7446_vm4, %v669_v51, %v673_v52  ;;  %v702_v8 = vsel %vm7446_vm4, %v697_v5, %v701_v6  ;;  %v735_v25 = vshll.u32 %v7580_v26, 16 }
  0x3a   : > { %v775_v62 = vunpack.c.l.b16 %v674_v61  ;;  %v777_v22 = vunpack.c.l.b16 %v702_v8  ;;  %v724_v32 = vor.u32 %v723_v24, %v720_v23  ;;  %v727_v9 = vshll.u32 %v6756_v29, 16  ;;  %v6764_v23 = vld [vmem:[%s7427_s7 + $0x8c] sm:$0x1]  ;;  %v7624_v24 = vld [vmem:[%s7427_s7 + $0x98] sm:$0xf] }
  0x3b   : > { %v688_v63 = vsel %vm7446_vm4, %v683_v53, %v687_v54  ;;  %v600_v34 = vunpack.c.l.b16 %v7555_v56  ;;  %v734_v36 = vrot.slane %v732_v17, 4  ;;  %v737_v37 = vrot.slane %v735_v25, 5  ;;  %v7605_v56 = vld [vmem:[%s7427_s7 + $0x80] sm:$0xf] }
  0x3c   : > { %v776_v4 = vunpack.c.l.b16 %v688_v63  ;;  %v725_v39 = vrot.slane %v724_v32, 4  ;;  %v729_v40 = vrot.slane %v727_v9, 5  ;;  %v741_v47 = vshll.u32 %v6758_v41, 16  ;;  %v6841_v41 = vld [vmem:[%s9855_s1 + $0x6] sm:$0x3] }
  0x3d   : > { %v738_v46 = vor.u32 %v737_v37, %v734_v36  ;;  %v746_v43 = vshrl.u32 %v7593_v42, 16  ;;  %v749_v49 = vshll.u32 %v7593_v42, 16  ;;  %v755_v61 = vshll.u32 %v6760_v55, 16 }
  0x3e   : > { %v783_v14 = vpack.c.b16 %v776_v4, %v775_v62  ;;  %v916_v31 = vpack.c.b16 %v777_v22, %v776_v4  ;;  %v730_v20 = vsel %vm7446_vm4, %v725_v39, %v729_v40  ;;  %v743_v52 = vrot.slane %v741_v47, 5  ;;  %v6763_v62 = vld [vmem:[%s7427_s7 + $0x88] sm:$0xf] }
  0x3f   : > { %v779_v50 = vunpack.c.l.b16 %v730_v20  ;;  %v739_v51 = vrot.slane %v738_v46, 4  ;;  %v748_v53 = vrot.slane %v746_v43, 4  ;;  %v751_v54 = vrot.slane %v749_v49, 5  ;;  %v7654_v43 = vld [vmem:[%s7427_s7 + $0xa0] sm:$0xf] }
  0x40   : > { %6731 = vmatmul.msk.bf16.gmra.mxu0 %vm325_vm1, %v323_v10  ;;  %6745 = vmatmul.msk.bf16.gmra.mxu3 %vm325_vm1, %v514_v11  ;;  %v706_v10 = vrot.slane %v704_v0, 4  ;;  %v709_v11 = vrot.slane %v707_v1, 5  ;;  %v760_v63 = vshrl.u32 %v7605_v56, 16  ;;  %v763_v0 = vshll.u32 %v7605_v56, 16 }
  0x41   : > { %v744_v59 = vsel %vm7446_vm4, %v739_v51, %v743_v52  ;;  %v752_v60 = vor.u32 %v751_v54, %v748_v53  ;;  %v602_v1 = vunpack.c.l.b16 %v7580_v26  ;;  %v603_v2 = vunpack.c.l.b16 %v7593_v42  ;;  %v6846_v51 = vld [vmem:[%s9855_s1 + $0xe] sm:$0x3]  ;;  %v6786_v53 = vld [vmem:[%s7427_s7 + $0x94] sm:$0x1]  ;;  %v6788_v54 = vld [vmem:[%s7427_s7 + $0x9c] sm:$0x1] }
  0x42   : > { %v710_v18 = vor.u32 %v709_v11, %v706_v10  ;;  %v757_v5 = vrot.slane %v755_v61, 5  ;;  %v762_v6 = vrot.slane %v760_v63, 4  ;;  %v765_v10 = vrot.slane %v763_v0, 5  ;;  %v6762_v11 = vld [vmem:[%s7427_s7 + $0x84] sm:$0x1] }
  0x43   : > { %v753_v4 = vrot.slane %v752_v60, 4  ;;  %v900_v13 = vshrl.u32 %v6763_v62, 16  ;;  %v909_v29 = vshll.u32 %v6764_v23, 16  ;;  %v1083_v9 = vshll.u32 %v7624_v24, 16 }
  0x44   : > { %v711_v27 = vrot.slane %v710_v18, 4  ;;  %v766_v16 = vor.u32 %v765_v10, %v762_v6  ;;  %v769_v18 = vshll.u32 %v6762_v11, 16  ;;  %v842_v37 = vunpack.c.l.b16 %v6763_v62  ;;  %v6790_v11 = vld [vmem:[%s7427_s7 + $0xa4] sm:$0x1] }
  0x45   : > { %v758_v15 = vsel %vm7446_vm4, %v753_v4, %v757_v5  ;;  %v902_v19 = vrot.slane %v900_v13, 4  ;;  %v911_v39 = vrot.slane %v909_v29, 5  ;;  %v1085_v46 = vrot.slane %v1083_v9, 5 }
  0x46   : > { %v716_v33 = vsel %vm7446_vm4, %v711_v27, %v715_v28  ;;  %v767_v26 = vrot.slane %v766_v16, 4  ;;  %v771_v27 = vrot.slane %v769_v18, 5  ;;  %v1608_v55 = vsel %vm338_vm0, %v6846_v51, 0 }
  0x47   : > { %6741 = vmatmul.msk.bf16.gmra.mxu2 %vm325_vm1, %v442_v35  ;;  %v601_v35 = vunpack.c.l.b16 %v7569_v7  ;;  %v1075_v61 = vshll.u32 %v6786_v53, 16  ;;  %v1089_v0 = vshll.u32 %v6788_v54, 16  ;;  %v1003_v42 = vunpack.c.l.b16 %v7654_v43 }
  0x48   : > { %v772_v32 = vsel %vm7446_vm4, %v767_v26, %v771_v27 }
  0x49   : > { %6736 = vmatmul.msk.bf16.gmra.mxu1 %vm325_vm1, %v390_v38  ;;  %v778_v38 = vunpack.c.l.b16 %v716_v33  ;;  %v844_v45 = vpack.c.b16 %v601_v35, %v600_v34  ;;  %v607_v17 = vpack.c.b16 %v602_v1, %v601_v35  ;;  %v604_v33 = vunpack.c.l.b16 %v7605_v56  ;;  %v6851_v35 = vld [vmem:[%s9855_s1 + $0x46] sm:$0x3] }
  0x4a   : > { %v782_v7 = vunpack.c.l.b16 %v772_v32  ;;  %v1668_v47 = vsel %vm338_vm0, %v6851_v35, 0  ;;  %v1077_v5 = vrot.slane %v1075_v61, 5  ;;  %v1091_v10 = vrot.slane %v1089_v0, 5  ;;  %v7698_v35 = vld [vmem:[%s7427_s7 + $0xb8] sm:$0xf] }
  0x4b   : > { %v784_v48 = vpack.c.b16 %v778_v38, %v777_v22  ;;  %v781_v22 = vunpack.c.l.b16 %v758_v15  ;;  %v846_v52 = vpack.c.b16 %v842_v37, %v604_v33  ;;  %v608_v13 = vpack.c.b16 %v604_v33, %v603_v2 }
  0x4c   : > { %v1103_v15 = vshll.u32 %v6790_v11, 16 }
  0x4d   : > { %v786_v56 = vpack.c.b16 %v782_v7, %v781_v22 }
  0x4e   : > { %v1105_v27 = vrot.slane %v1103_v15, 5 }
  0x50   : > { %6732 = vmatmul.msk.bf16.gmra.mxu0 %vm325_vm1, %v324_v57  ;;  %6746 = vmatmul.msk.bf16.gmra.mxu3 %vm325_vm1, %v515_v58  ;;  %v606_v57 = vpack.c.b16 %v600_v34, %v599_v3  ;;  %v917_v58 = vpack.c.b16 %v779_v50, %v778_v38  ;;  %v780_v3 = vunpack.c.l.b16 %v744_v59  ;;  %v1097_v59 = vshll.u32 %v7654_v43, 16 }
  0x52   : > { %v785_v8 = vpack.c.b16 %v780_v3, %v779_v50  ;;  %v918_v25 = vpack.c.b16 %v781_v22, %v780_v3  ;;  %v1002_v22 = vunpack.c.l.b16 %v7624_v24 }
  0x57   : > { %6776 = vmatmul.msk.bf16.vlgmr.msrb.gmra.mxu2 %vm325_vm1, %v843_v12  ;;  %v845_v12 = vpack.c.b16 %v603_v2, %v602_v1 }
  0x58   : > { %1677 = vmatpush.bf16.msrb.mxu2 %v1668_v47  ;;  %v6794_v47 = vld [vmem:[%s7427_s7 + $0xb4] sm:$0x1] }
  0x59   : > { %6771 = vmatmul.msk.bf16.vlgmr.msrb.gmra.mxu1 %vm325_vm1, %v783_v14  ;;  %v903_v14 = vshll.u32 %v6763_v62, 16  ;;  %v1099_v62 = vrot.slane %v1097_v59, 5 }
  0x5a   : > { %1617 = vmatpush.bf16.msrb.mxu1 %v1608_v55 }
  0x5b   : > { %v905_v21 = vrot.slane %v903_v14, 5 }
  0x5d   : > { %v906_v28 = vor.u32 %v905_v21, %v902_v19 }
  0x5f   : > { %v907_v38 = vrot.slane %v906_v28, 4  ;;  %v7685_v28 = vld [vmem:[%s7427_s7 + $0xb0] sm:$0xf] }
  0x60   : > { %6766 = vmatmul.msk.bf16.vlgmr.msrb.gmra.mxu0 %vm325_vm1, %v605_v30  ;;  %6781 = vmatmul.msk.bf16.vlgmr.msrb.gmra.mxu3 %vm325_vm1, %v916_v31  ;;  %v1080_v30 = vshrl.u32 %v7624_v24, 16  ;;  %v7629_v31 = vld [vmem:[%s7427_s7 + $0x90] sm:$0xf]  ;;  %v1122_v9 = vshrl.u32 %v7685_v28, 16  ;;  %v1125_v33 = vshll.u32 %v7685_v28, 16 }
  0x61   : > { %v1066_v34 = vshrl.u32 %v7629_v31, 16  ;;  %v1069_v36 = vshll.u32 %v7629_v31, 16 }
  0x62   : > { %v1082_v40 = vrot.slane %v1080_v30, 4 }
  0x63   : > { %v1068_v49 = vrot.slane %v1066_v34, 4  ;;  %v1071_v50 = vrot.slane %v1069_v36, 5 }
  0x64   : > { %v1086_v63 = vor.u32 %v1085_v46, %v1082_v40  ;;  %v1124_v40 = vrot.slane %v1122_v9, 4 }
  0x65   : > { %v1072_v60 = vor.u32 %v1071_v50, %v1068_v49  ;;  %v1136_v49 = vshrl.u32 %v7698_v35, 16  ;;  %v1139_v50 = vshll.u32 %v7698_v35, 16 }
  0x66   : > { %v1087_v6 = vrot.slane %v1086_v63, 4 }
  0x67   : > { %6777 = vmatmul.msk.bf16.gmra.mxu2 %vm325_vm1, %v844_v45  ;;  %v6856_v45 = vld [vmem:[%s9855_s1 + $0x4e] sm:$0x3]  ;;  %v1073_v4 = vrot.slane %v1072_v60, 4  ;;  %v1138_v59 = vrot.slane %v1136_v49, 4  ;;  %v1141_v60 = vrot.slane %v1139_v50, 5 }
  0x68   : > { %v1741_v20 = vsel %vm338_vm0, %v6856_v45, 0  ;;  %v1092_v18 = vsel %vm7446_vm4, %v1087_v6, %v1091_v10 }
  0x69   : > { %6772 = vmatmul.msk.bf16.gmra.mxu1 %vm325_vm1, %v784_v48  ;;  %v1430_v48 = vsel %vm338_vm0, %v6841_v41, 0  ;;  %1750 = vmatpush.bf16.msrb.mxu3 %v1741_v20  ;;  %v1078_v16 = vsel %vm7446_vm4, %v1073_v4, %v1077_v5  ;;  %v1180_v23 = vunpack.c.l.b16 %v1092_v18  ;;  %v1142_v10 = vor.u32 %v1141_v60, %v1138_v59 }
  0x6a   : > { %1439 = vmatpush.bf16.msrb.mxu0 %v1430_v48  ;;  %v1179_v2 = vunpack.c.l.b16 %v1078_v16 }
  0x6c   : > { %v1187_v24 = vpack.c.b16 %v1180_v23, %v1179_v2 }
  0x70   : > { %6767 = vmatmul.msk.bf16.gmra.mxu0 %vm325_vm1, %v606_v57  ;;  %6782 = vmatmul.msk.bf16.gmra.mxu3 %vm325_vm1, %v917_v58  ;;  %v912_v57 = vsel %vm7446_vm4, %v907_v38, %v911_v39  ;;  %v1094_v58 = vshrl.u32 %v7654_v43, 16  ;;  %v1001_v38 = vunpack.c.l.b16 %v7629_v31  ;;  %v7738_v43 = vld [vmem:[%s7427_s7 + $0xd0] sm:$0xf] }
  0x71   : > { %v915_v1 = vunpack.c.l.b16 %v912_v57  ;;  %v1005_v57 = vunpack.c.l.b16 %v7685_v28  ;;  %v1304_v50 = vshrl.u32 %v7738_v43, 16 }
  0x72   : > { %v1096_v3 = vrot.slane %v1094_v58, 4  ;;  %v1009_v48 = vpack.c.b16 %v1002_v22, %v1001_v38 }
  0x73   : > { %v919_v14 = vpack.c.b16 %v915_v1, %v782_v7  ;;  %v1127_v7 = vrot.slane %v1125_v33, 5  ;;  %v6796_v1 = vld [vmem:[%s7427_s7 + $0xbc] sm:$0x1] }
  0x74   : > { %v1145_v11 = vshll.u32 %v6796_v1, 16 }
  0x75   : > { %v1128_v31 = vor.u32 %v1127_v7, %v1124_v40  ;;  %v1006_v7 = vunpack.c.l.b16 %v7698_v35  ;;  %v6800_v35 = vld [vmem:[%s7427_s7 + $0xcc] sm:$0x1] }
  0x76   : > { %v1147_v2 = vrot.slane %v1145_v11, 5  ;;  %v1173_v59 = vshll.u32 %v6800_v35, 16 }
  0x77   : > { %6778 = vmatmul.msk.bf16.gmra.mxu2 %vm325_vm1, %v845_v12  ;;  %v7670_v12 = vld [vmem:[%s7427_s7 + $0xa8] sm:$0xf]  ;;  %v1129_v63 = vrot.slane %v1128_v31, 4 }
  0x78   : > { %v1108_v19 = vshrl.u32 %v7670_v12, 16  ;;  %v1111_v21 = vshll.u32 %v7670_v12, 16 }
  0x79   : > { %6773 = vmatmul.msk.bf16.gmra.mxu1 %vm325_vm1, %v785_v8  ;;  %v1100_v8 = vor.u32 %v1099_v62, %v1096_v3  ;;  %v7711_v62 = vld [vmem:[%s7427_s7 + $0xc0] sm:$0xf] }
  0x7a   : > { %v1110_v29 = vrot.slane %v1108_v19, 4  ;;  %v1113_v30 = vrot.slane %v1111_v21, 5  ;;  %v1153_v15 = vshll.u32 %v7711_v62, 16 }
  0x7b   : > { %v1101_v26 = vrot.slane %v1100_v8, 4  ;;  %v1150_v8 = vshrl.u32 %v7711_v62, 16 }
  0x7c   : > { %v1114_v36 = vor.u32 %v1113_v30, %v1110_v29  ;;  %v6798_v29 = vld [vmem:[%s7427_s7 + $0xc4] sm:$0x1]  ;;  %v7725_v30 = vld [vmem:[%s7427_s7 + $0xc8] sm:$0xf] }
  0x7d   : > { %v1106_v32 = vsel %vm7446_vm4, %v1101_v26, %v1105_v27  ;;  %v1155_v26 = vrot.slane %v1153_v15, 5  ;;  %v1167_v38 = vshll.u32 %v7725_v30, 16 }
  0x7e   : > { %v1181_v39 = vunpack.c.l.b16 %v1106_v32  ;;  %v1115_v45 = vrot.slane %v1114_v36, 4  ;;  %v1159_v36 = vshll.u32 %v6798_v29, 16 }
  0x80   : > { %6768 = vmatmul.msk.bf16.gmra.mxu0 %vm325_vm1, %v607_v17  ;;  %6783 = vmatmul.msk.bf16.gmra.mxu3 %vm325_vm1, %v918_v25  ;;  %v1247_v17 = vpack.c.b16 %v1003_v42, %v1002_v22  ;;  %v6792_v25 = vld [vmem:[%s7427_s7 + $0xac] sm:$0x1]  ;;  %v1320_v20 = vpack.c.b16 %v1181_v39, %v1180_v23  ;;  %v1143_v22 = vrot.slane %v1142_v10, 4  ;;  %v1152_v23 = vrot.slane %v1150_v8, 4  ;;  %v7759_v10 = vld [vmem:[%s7427_s7 + $0xd8] sm:$0xf] }
  0x81   : > { %v1117_v37 = vshll.u32 %v6792_v25, 16 }
  0x82   : > { %v1148_v9 = vsel %vm7446_vm4, %v1143_v22, %v1147_v2  ;;  %v1011_v22 = vpack.c.b16 %v1006_v7, %v1005_v57 }
  0x83   : > { %v1119_v46 = vrot.slane %v1117_v37, 5  ;;  %v1164_v37 = vshrl.u32 %v7725_v30, 16 }
  0x85   : > { %v1120_v55 = vsel %vm7446_vm4, %v1115_v45, %v1119_v46  ;;  %v1184_v45 = vunpack.c.l.b16 %v1148_v9 }
  0x86   : > { %v1182_v61 = vunpack.c.l.b16 %v1120_v55 }
  0x87   : > { %6779 = vmatmul.msk.bf16.gmra.mxu2 %vm325_vm1, %v846_v52  ;;  %v1131_v52 = vshll.u32 %v6794_v47, 16  ;;  %v1161_v47 = vrot.slane %v1159_v36, 5 }
  0x89   : > { %6774 = vmatmul.msk.bf16.gmra.mxu1 %vm325_vm1, %v786_v56  ;;  %v1004_v56 = vunpack.c.l.b16 %v7670_v12  ;;  %v1133_v0 = vrot.slane %v1131_v52, 5 }
  0x8b   : > { %v1248_v5 = vpack.c.b16 %v1005_v57, %v1004_v56 }
  0x90   : > { %6769 = vmatmul.msk.bf16.gmra.mxu0 %vm325_vm1, %v608_v13  ;;  %6784 = vmatmul.msk.bf16.gmra.mxu3 %vm325_vm1, %v919_v14  ;;  %v1188_v13 = vpack.c.b16 %v1182_v61, %v1181_v39  ;;  %v1134_v14 = vsel %vm7446_vm4, %v1129_v63, %v1133_v0  ;;  %v1306_v63 = vrot.slane %v1304_v50, 4  ;;  %v6826_v50 = vld [vmem:[%s7427_s7 + $0xe4] sm:$0x1] }
  0x91   : > { %v1183_v21 = vunpack.c.l.b16 %v1134_v14 }
  0x93   : > { %v1321_v32 = vpack.c.b16 %v1183_v21, %v1182_v61  ;;  %v1189_v55 = vpack.c.b16 %v1184_v45, %v1183_v21 }
  0x96   : > { %v415_v34 = vpop.f32.mrf.mxu1 }
  0x97   : > { %6814 = vmatmul.msk.bf16.vlgmr.msra.gmra.mxu2 %vm325_vm1, %v1247_v17 }
  0x99   : > { %6809 = vmatmul.msk.bf16.vlgmr.msra.gmra.mxu1 %vm325_vm1, %v1187_v24  ;;  %v1010_v24 = vpack.c.b16 %v1004_v56, %v1003_v42 }
  0x9a   : > { %v467_v41 = vpop.f32.mrf.mxu2 }
  0x9d   : > { %v351_v51 = vpop.f32.mrf.mxu0 }
  0x9e   : > { %v416_v53 = vadd.f32 %v415_v34, %v351_v51  ;;  %v417_v54 = vpop.f32.mrf.mxu1  ;;  %v1156_v34 = vor.u32 %v1155_v26, %v1152_v23  ;;  %v1307_v51 = vshll.u32 %v7738_v43, 16 }
  0xa0   : > { %v487_v58 = vadd.f32 %v467_v41, %v416_v53  ;;  %6804 = vmatmul.msk.bf16.vlgmr.msra.gmra.mxu0 %vm325_vm1, %v1009_v48  ;;  %6819 = vmatmul.msk.bf16.vlgmr.msra.gmra.mxu3 %vm325_vm1, %v1320_v20  ;;  %v1007_v41 = vunpack.c.l.b16 %v7711_v62  ;;  %v1157_v46 = vrot.slane %v1156_v34, 4  ;;  %v1166_v48 = vrot.slane %v1164_v37, 4 }
  0xa1   : > { %v1169_v20 = vrot.slane %v1167_v38, 5  ;;  %v1309_v0 = vrot.slane %v1307_v51, 5  ;;  %v6879_v38 = vld [vmem:[%s9855_s1 + $0x10] sm:$0x3] }
  0xa2   : > { %v469_v3 = vpop.f32.mrf.mxu2  ;;  %v1249_v52 = vpack.c.b16 %v1007_v41, %v1006_v7  ;;  %v1162_v56 = vsel %vm7446_vm4, %v1157_v46, %v1161_v47  ;;  %v7792_v46 = vld [vmem:[%s7427_s7 + $0xe8] sm:$0xf]  ;;  %v6824_v47 = vld [vmem:[%s7427_s7 + $0xdc] sm:$0x1] }
  0xa3   : > { %v540_v4 = vpop.f32.mrf.mxu3  ;;  %v1310_v14 = vor.u32 %v1309_v0, %v1306_v63  ;;  %v1493_v0 = vshll.u32 %v6826_v50, 16 }
  0xa4   : > { %v7715_v6 = vadd.f32 %v540_v4, %v487_v58  ;;  %v1170_v58 = vor.u32 %v1169_v20, %v1166_v48  ;;  %v6802_v4 = vld [vmem:[%s7427_s7 + $0xd4] sm:$0x1]  ;;  %v6884_v48 = vld [vmem:[%s9855_s1 + $0x18] sm:$0x3] }
  0xa5   : > { %v353_v12 = vpop.f32.mrf.mxu0  ;;  %v1313_v15 = vshll.u32 %v6802_v4, 16  ;;  %v1311_v9 = vrot.slane %v1310_v14, 4  ;;  %v2012_v51 = vsel %vm338_vm0, %v6884_v48, 0 }
  0xa6   : > { %v418_v16 = vadd.f32 %v417_v54, %v353_v12  ;;  %v420_v18 = vpop.f32.mrf.mxu1  ;;  %v1171_v11 = vrot.slane %v1170_v58, 4  ;;  %v1175_v12 = vrot.slane %v1173_v59, 5  ;;  %2021 = vmatpush.bf16.msra.mxu1 %v2012_v51  ;;  %v1479_v59 = vshll.u32 %v6824_v47, 16 }
  0xa7   : > { %6815 = vmatmul.msk.bf16.gmra.mxu2 %vm325_vm1, %v1248_v5  ;;  %v7756_v5 = vld [vmem:[%s7427_s7 + $0xe0] sm:$0xf] }
  0xa8   : > { %v488_v19 = vadd.f32 %v469_v3, %v418_v16  ;;  %v7752_v3 = vunpack.c.l.b16 %v1162_v56  ;;  %v1484_v16 = vshrl.u32 %v7756_v5, 16  ;;  %v1176_v26 = vsel %vm7446_vm4, %v1171_v11, %v1175_v12 }
  0xa9   : > { %6810 = vmatmul.msk.bf16.gmra.mxu1 %vm325_vm1, %v1188_v13  ;;  %v7777_v37 = vunpack.c.l.b16 %v1176_v26  ;;  %v1501_v56 = vshll.u32 %v7792_v46, 16  ;;  %v1406_v62 = vunpack.c.l.b16 %v7756_v5 }
  0xaa   : > { %v472_v27 = vpop.f32.mrf.mxu2  ;;  %v1322_v2 = vpack.c.b16 %v7752_v3, %v1184_v45  ;;  %v1486_v34 = vrot.slane %v1484_v16, 4  ;;  %v6828_v16 = vld [vmem:[%s7427_s7 + $0xec] sm:$0x1] }
  0xab   : > { %v542_v17 = vpop.f32.mrf.mxu3  ;;  %v1503_v11 = vrot.slane %v1501_v56, 5 }
  0xac   : > { %v7727_v25 = vadd.f32 %v542_v17, %v488_v19  ;;  %v1470_v19 = vshrl.u32 %v7759_v10, 16 }
  0xad   : > { %v356_v33 = vpop.f32.mrf.mxu0 }
  0xae   : > { %v421_v39 = vadd.f32 %v420_v18, %v356_v33  ;;  %v422_v40 = vpop.f32.mrf.mxu1  ;;  %v1487_v18 = vshll.u32 %v7756_v5, 16  ;;  %v1315_v33 = vrot.slane %v1313_v15, 5  ;;  %v1472_v57 = vrot.slane %v1470_v19, 4  ;;  %v7812_v19 = vld [vmem:[%s7427_s7 + $0xf0] sm:$0xf] }
  0xaf   : > { %v1495_v15 = vrot.slane %v1493_v0, 5 }
  0xb0   : > { %v489_v42 = vadd.f32 %v472_v27, %v421_v39  ;;  %6805 = vmatmul.msk.bf16.gmra.mxu0 %vm325_vm1, %v1010_v24  ;;  %6820 = vmatmul.msk.bf16.gmra.mxu3 %vm325_vm1, %v1321_v32  ;;  %v1473_v27 = vshll.u32 %v7759_v10, 16  ;;  %v1008_v24 = vunpack.c.l.b16 %v7725_v30  ;;  %v1246_v32 = vunpack.c.l.b16 %v7738_v43  ;;  %v6889_v30 = vld [vmem:[%s9855_s1 + $0x50] sm:$0x3]  ;;  %v6894_v39 = vld [vmem:[%s9855_s1 + $0x58] sm:$0x3] }
  0xb1   : > { %v1489_v28 = vrot.slane %v1487_v18, 5  ;;  %v2072_v7 = vsel %vm338_vm0, %v6889_v30, 0  ;;  %v1834_v43 = vsel %vm338_vm0, %v6879_v38, 0 }
  0xb2   : > { %v474_v49 = vpop.f32.mrf.mxu2  ;;  %2081 = vmatpush.bf16.msra.mxu2 %v2072_v7  ;;  %1843 = vmatpush.bf16.msra.mxu0 %v1834_v43 }
  0xb3   : > { %v545_v31 = vpop.f32.mrf.mxu3  ;;  %v1490_v63 = vor.u32 %v1489_v28, %v1486_v34  ;;  %v1512_v34 = vshrl.u32 %v7812_v19, 16  ;;  %v1515_v28 = vshll.u32 %v7812_v19, 16 }
  0xb4   : > { %v7747_v53 = vadd.f32 %v545_v31, %v489_v42  ;;  %v2145_v42 = vsel %vm338_vm0, %v6894_v39, 0  ;;  %v1190_v31 = vpack.c.b16 %v7777_v37, %v7752_v3  ;;  %v7830_v39 = vld [vmem:[%s7427_s7 + $0xf8] sm:$0xf] }
  0xb5   : > { %v358_v54 = vpop.f32.mrf.mxu0  ;;  %2154 = vmatpush.bf16.msra.mxu3 %v2145_v42  ;;  %v1517_v7 = vrot.slane %v1515_v28, 5  ;;  %v6830_v42 = vld [vmem:[%s7427_s7 + $0xf4] sm:$0x1]  ;;  %v1529_v50 = vshll.u32 %v7830_v39, 16 }
  0xb6   : > { %v423_v60 = vadd.f32 %v422_v40, %v358_v54  ;;  %v425_v61 = vpop.f32.mrf.mxu1  ;;  %v1475_v40 = vrot.slane %v1473_v27, 5 }
  0xb7   : > { %6816 = vmatmul.msk.bf16.gmra.mxu2 %vm325_vm1, %v1249_v52  ;;  %v1316_v52 = vsel %vm7446_vm4, %v1311_v9, %v1315_v33 }
  0xb8   : > { %v490_v1 = vadd.f32 %v474_v49, %v423_v60  ;;  %v1250_v49 = vpack.c.b16 %v1246_v32, %v1008_v24  ;;  %v1476_v58 = vor.u32 %v1475_v40, %v1472_v57  ;;  %v1319_v3 = vunpack.c.l.b16 %v1316_v52 }
  0xb9   : > { %6811 = vmatmul.msk.bf16.gmra.mxu1 %vm325_vm1, %v1189_v55  ;;  %v1498_v55 = vshrl.u32 %v7792_v46, 16  ;;  %v1514_v40 = vrot.slane %v1512_v34, 4 }
  0xba   : > { %v477_v13 = vpop.f32.mrf.mxu2  ;;  %v1477_v12 = vrot.slane %v1476_v58, 4 }
  0xbb   : > { %v547_v8 = vpop.f32.mrf.mxu3  ;;  %v1500_v4 = vrot.slane %v1498_v55, 4  ;;  %v1518_v52 = vor.u32 %v1517_v7, %v1514_v40  ;;  %v1405_v55 = vunpack.c.l.b16 %v7759_v10 }
  0xbc   : > { %v7765_v21 = vadd.f32 %v547_v8, %v490_v1  ;;  %v1491_v8 = vrot.slane %v1490_v63, 4 }
  0xbd   : > { %v361_v23 = vpop.f32.mrf.mxu0  ;;  %v1519_v0 = vrot.slane %v1518_v52, 4 }
  0xbe   : > { %v426_v29 = vadd.f32 %v425_v61, %v361_v23  ;;  %v427_v17 = vpop.f32.mrf.mxu1  ;;  %v1323_v23 = vpack.c.b16 %v1319_v3, %v7777_v37  ;;  %v1496_v33 = vsel %vm7446_vm4, %v1491_v8, %v1495_v15  ;;  %v6832_v3 = vld [vmem:[%s7427_s7 + $0xfc] sm:$0x1] }
  0xc0   : > { %v491_v36 = vadd.f32 %v477_v13, %v426_v29  ;;  %6806 = vmatmul.msk.bf16.gmra.mxu0 %vm325_vm1, %v1011_v22  ;;  %6821 = vmatmul.msk.bf16.gmra.mxu3 %vm325_vm1, %v1322_v2  ;;  %v1481_v13 = vrot.slane %v1479_v59, 5  ;;  %v1012_v2 = vpack.c.b16 %v1008_v24, %v1007_v41  ;;  %v1504_v29 = vor.u32 %v1503_v11, %v1500_v4 }
  0xc1   : > { %v1407_v41 = vunpack.c.l.b16 %v7792_v46  ;;  %v1413_v11 = vpack.c.b16 %v1406_v62, %v1405_v55  ;;  %v6836_v55 = vld [vmem:[%s7427_s7 + $0x10c] sm:$0x1] }
  0xc2   : > { %v479_v45 = vpop.f32.mrf.mxu2  ;;  %v1482_v27 = vsel %vm7446_vm4, %v1477_v12, %v1481_v13  ;;  %v1505_v37 = vrot.slane %v1504_v29, 4 }
  0xc3   : > { %v550_v20 = vpop.f32.mrf.mxu3  ;;  %v1583_v57 = vunpack.c.l.b16 %v1482_v27  ;;  %v1651_v5 = vpack.c.b16 %v1407_v41, %v1406_v62  ;;  %v1409_v27 = vunpack.c.l.b16 %v7830_v39 }
  0xc4   : > { %v7800_v35 = vadd.f32 %v550_v20, %v491_v36  ;;  %v1584_v36 = vunpack.c.l.b16 %v1496_v33 }
  0xc5   : > { %v363_v54 = vpop.f32.mrf.mxu0 }
  0xc6   : > { %v428_v60 = vadd.f32 %v427_v17, %v363_v54  ;;  %v430_v61 = vpop.f32.mrf.mxu1  ;;  %v1507_v17 = vshll.u32 %v6828_v16, 16  ;;  %v1591_v48 = vpack.c.b16 %v1584_v36, %v1583_v57  ;;  %v1521_v54 = vshll.u32 %v6830_v42, 16 }
  0xc7   : > { %6817 = vmatmul.msk.bf16.gmra.mxu2 %vm325_vm1, %v1250_v49  ;;  %v1526_v49 = vshrl.u32 %v7830_v39, 16  ;;  %v1535_v16 = vshll.u32 %v6832_v3, 16  ;;  %v1563_v3 = vshll.u32 %v6836_v55, 16 }
  0xc8   : > { %v492_v1 = vadd.f32 %v479_v45, %v428_v60  ;;  %v1509_v30 = vrot.slane %v1507_v17, 5  ;;  %v1531_v60 = vrot.slane %v1529_v50, 5 }
  0xc9   : > { %6812 = vmatmul.msk.bf16.gmra.mxu1 %vm325_vm1, %v1190_v31  ;;  %v1528_v59 = vrot.slane %v1526_v49, 4  ;;  %v1537_v34 = vrot.slane %v1535_v16, 5 }
  0xca   : > { %v482_v14 = vpop.f32.mrf.mxu2  ;;  %v1510_v20 = vsel %vm7446_vm4, %v1505_v37, %v1509_v30 }
  0xcb   : > { %v552_v18 = vpop.f32.mrf.mxu3  ;;  %v1585_v58 = vunpack.c.l.b16 %v1510_v20  ;;  %v1532_v15 = vor.u32 %v1531_v60, %v1528_v59 }
  0xcc   : > { %v7814_v22 = vadd.f32 %v552_v18, %v492_v1  ;;  %v1523_v1 = vrot.slane %v1521_v54, 5 }
  0xcd   : > { %v366_v26 = vpop.f32.mrf.mxu0  ;;  %v1724_v13 = vpack.c.b16 %v1585_v58, %v1584_v36  ;;  %v1533_v33 = vrot.slane %v1532_v15, 4 }
  0xce   : > { %v431_v32 = vadd.f32 %v430_v61, %v366_v26  ;;  %v432_v9 = vpop.f32.mrf.mxu1  ;;  %v7845_v61 = vld [vmem:[%s7427_s7 + $0x100] sm:$0xf]  ;;  %v1408_v26 = vunpack.c.l.b16 %v7812_v19 }
  0xcf   : > { %v1543_v10 = vshll.u32 %v7845_v61, 16  ;;  %v1538_v7 = vsel %vm7446_vm4, %v1533_v33, %v1537_v34 }
  0xd0   : > { %v493_v24 = vadd.f32 %v482_v14, %v431_v32  ;;  %6807 = vmatmul.msk.bf16.gmra.mxu0 %vm325_vm1, %v1012_v2  ;;  %6822 = vmatmul.msk.bf16.gmra.mxu3 %vm325_vm1, %v1323_v23  ;;  %v1540_v14 = vshrl.u32 %v7845_v61, 16  ;;  %v1524_v23 = vsel %vm7446_vm4, %v1519_v0, %v1523_v1  ;;  %v1652_v19 = vpack.c.b16 %v1409_v27, %v1408_v26 }
  0xd1   : > { %v1545_v32 = vrot.slane %v1543_v10, 5  ;;  %v1587_v20 = vunpack.c.l.b16 %v1538_v7  ;;  %v1410_v10 = vunpack.c.l.b16 %v7845_v61 }
  0xd2   : > { %v484_v38 = vpop.f32.mrf.mxu2  ;;  %v1542_v17 = vrot.slane %v1540_v14, 4 }
  0xd3   : > { %v555_v43 = vpop.f32.mrf.mxu3 }
  0xd4   : > { %v7835_v45 = vadd.f32 %v555_v43, %v493_v24  ;;  %v7861_v24 = vld [vmem:[%s7427_s7 + $0x108] sm:$0xf]  ;;  %v1546_v37 = vor.u32 %v1545_v32, %v1542_v17  ;;  %v6838_v17 = vld [vmem:[%s7427_s7 + $0x114] sm:$0x1] }
  0xd5   : > { %v368_v47 = vpop.f32.mrf.mxu0  ;;  %v1554_v43 = vshrl.u32 %v7861_v24, 16  ;;  %v1411_v46 = vunpack.c.l.b16 %v7861_v24 }
  0xd6   : > { %v433_v51 = vadd.f32 %v432_v9, %v368_v47  ;;  %v811_v31 = vpop.f32.mrf.mxu1  ;;  %v1586_v9 = vunpack.c.l.b16 %v1524_v23  ;;  %v1547_v49 = vrot.slane %v1546_v37, 4 }
  0xd7   : > { %6852 = vmatmul.msk.bf16.vlgmr.msrb.gmra.mxu2 %vm325_vm1, %v1651_v5  ;;  %v1557_v5 = vshll.u32 %v7861_v24, 16 }
  0xd8   : > { %v494_v56 = vadd.f32 %v484_v38, %v433_v51  ;;  %v1592_v40 = vpack.c.b16 %v1586_v9, %v1585_v58  ;;  %v1556_v51 = vrot.slane %v1554_v43, 4  ;;  %v1725_v60 = vpack.c.b16 %v1587_v20, %v1586_v9  ;;  %v6840_v43 = vld [vmem:[%s7427_s7 + $0x11c] sm:$0x1] }
  0xd9   : > { %6847 = vmatmul.msk.bf16.vlgmr.msrb.gmra.mxu1 %vm325_vm1, %v1591_v48  ;;  %v1653_v9 = vpack.c.b16 %v1411_v46, %v1410_v10 }
  0xda   : > { %v871_v63 = vpop.f32.mrf.mxu2 }
  0xdb   : > { %v557_v4 = vpop.f32.mrf.mxu3 }
  0xdc   : > { %v7848_v12 = vadd.f32 %v557_v4, %v494_v56  ;;  %v7876_v56 = vld [vmem:[%s7427_s7 + $0x110] sm:$0xf] }
  0xdd   : > { %v633_v8 = vpop.f32.mrf.mxu0  ;;  %v1568_v4 = vshrl.u32 %v7876_v56, 16 }
  0xde   : > { %v653_v18 = vadd.f32 %v633_v8, %v7715_v6  ;;  %v813_v2 = vpop.f32.mrf.mxu1  ;;  %v6834_v6 = vld [vmem:[%s7427_s7 + $0x104] sm:$0x1] }
  0xdf   : > { %v1549_v30 = vshll.u32 %v6834_v6, 16 }
  0xe0   : > { %v831_v29 = vadd.f32 %v811_v31, %v653_v18  ;;  %6842 = vmatmul.msk.bf16.vlgmr.msrb.gmra.mxu0 %vm325_vm1, %v1413_v11  ;;  %6857 = vmatmul.msk.bf16.vlgmr.msrb.gmra.mxu3 %vm325_vm1, %v1724_v13  ;;  %v1559_v31 = vrot.slane %v1557_v5, 5  ;;  %v1571_v11 = vshll.u32 %v7876_v56, 16  ;;  %v1565_v18 = vrot.slane %v1563_v3, 5  ;;  %v7909_v5 = vld [vmem:[%s7427_s7 + $0x128] sm:$0xf] }
  0xe1   : > { %v1551_v50 = vrot.slane %v1549_v30, 5 }
  0xe2   : > { %v873_v28 = vpop.f32.mrf.mxu2  ;;  %v891_v62 = vadd.f32 %v871_v63, %v831_v29  ;;  %v1560_v1 = vor.u32 %v1559_v31, %v1556_v51  ;;  %v1573_v23 = vrot.slane %v1571_v11, 5  ;;  %v1717_v51 = vshll.u32 %v6840_v43, 16 }
  0xe3   : > { %v944_v57 = vpop.f32.mrf.mxu3  ;;  %v1552_v63 = vsel %vm7446_vm4, %v1547_v49, %v1551_v50  ;;  %v1888_v31 = vshrl.u32 %v7909_v5, 16 }
  0xe4   : > { %v7865_v36 = vadd.f32 %v944_v57, %v891_v62  ;;  %v1588_v15 = vunpack.c.l.b16 %v1552_v63  ;;  %v1561_v16 = vrot.slane %v1560_v1, 4  ;;  %v1577_v57 = vshll.u32 %v6838_v17, 16  ;;  %v6922_v17 = vld [vmem:[%s9855_s1 + $0x1a] sm:$0x3] }
  0xe5   : > { %v635_v38 = vpop.f32.mrf.mxu0 }
  0xe6   : > { %v654_v42 = vadd.f32 %v635_v38, %v7727_v25  ;;  %v816_v47 = vpop.f32.mrf.mxu1  ;;  %v1414_v25 = vpack.c.b16 %v1408_v26, %v1407_v41  ;;  %v7890_v41 = vld [vmem:[%s7427_s7 + $0x118] sm:$0xf]  ;;  %v1593_v6 = vpack.c.b16 %v1588_v15, %v1587_v20 }
  0xe7   : > { %6853 = vmatmul.msk.bf16.gmra.mxu2 %vm325_vm1, %v1652_v19  ;;  %v1708_v29 = vshrl.u32 %v7890_v41, 16  ;;  %v1711_v61 = vshll.u32 %v7890_v41, 16  ;;  %v1650_v11 = vunpack.c.l.b16 %v7890_v41  ;;  %v6932_v41 = vld [vmem:[%s9855_s1 + $0x5a] sm:$0x3] }
  0xe8   : > { %v832_v48 = vadd.f32 %v813_v2, %v654_v42  ;;  %v1570_v2 = vrot.slane %v1568_v4, 4  ;;  %v7912_v42 = vld [vmem:[%s7427_s7 + $0x120] sm:$0xf]  ;;  %v1412_v4 = vunpack.c.l.b16 %v7876_v56  ;;  %v6917_v56 = vld [vmem:[%s9855_s1 + $0x12] sm:$0x3] }
  0xe9   : > { %6848 = vmatmul.msk.bf16.gmra.mxu1 %vm325_vm1, %v1592_v40  ;;  %v1710_v30 = vrot.slane %v1708_v29, 4  ;;  %v1713_v38 = vrot.slane %v1711_v61, 5  ;;  %v7946_v29 = vld [vmem:[%s7427_s7 + $0x130] sm:$0xf]  ;;  %v6862_v61 = vld [vmem:[%s7427_s7 + $0x124] sm:$0x1] }
  0xea   : > { %v876_v52 = vpop.f32.mrf.mxu2  ;;  %v892_v54 = vadd.f32 %v873_v28, %v832_v48  ;;  %v1566_v28 = vsel %vm7446_vm4, %v1561_v16, %v1565_v18  ;;  %v1574_v62 = vor.u32 %v1573_v23, %v1570_v2  ;;  %v1579_v48 = vrot.slane %v1577_v57, 5 }
  0xeb   : > { %v946_v58 = vpop.f32.mrf.mxu3  ;;  %v7905_v7 = vunpack.c.l.b16 %v1566_v28  ;;  %v2238_v2 = vsel %vm338_vm0, %v6917_v56, 0  ;;  %v2549_v23 = vsel %vm338_vm0, %v6932_v41, 0 }
  0xec   : > { %v7878_v59 = vadd.f32 %v946_v58, %v892_v54  ;;  %v1874_v54 = vshrl.u32 %v7912_v42, 16  ;;  %v1415_v58 = vpack.c.b16 %v1410_v10, %v1409_v27  ;;  %2247 = vmatpush.bf16.msrb.mxu0 %v2238_v2  ;;  %2558 = vmatpush.bf16.msrb.mxu3 %v2549_v23  ;;  %v7986_v23 = vld [vmem:[%s7427_s7 + $0x140] sm:$0xf] }
  0xed   : > { %v638_v0 = vpop.f32.mrf.mxu0 }
  0xee   : > { %v655_v13 = vadd.f32 %v638_v0, %v7747_v53  ;;  %v818_v14 = vpop.f32.mrf.mxu1  ;;  %v1877_v0 = vshll.u32 %v7912_v42, 16  ;;  %v1876_v27 = vrot.slane %v1874_v54, 4 }
  0xf0   : > { %v833_v8 = vadd.f32 %v816_v47, %v655_v13  ;;  %6843 = vmatmul.msk.bf16.gmra.mxu0 %vm325_vm1, %v1414_v25  ;;  %6858 = vmatmul.msk.bf16.gmra.mxu3 %vm325_vm1, %v1725_v60  ;;  %v1575_v47 = vrot.slane %v1574_v62, 4  ;;  %v1726_v25 = vpack.c.b16 %v7905_v7, %v1588_v15  ;;  %v1879_v16 = vrot.slane %v1877_v0, 5 }
  0xf2   : > { %v878_v26 = vpop.f32.mrf.mxu2  ;;  %v893_v53 = vadd.f32 %v876_v52, %v833_v8  ;;  %v1891_v52 = vshll.u32 %v7909_v5, 16  ;;  %v1580_v63 = vsel %vm7446_vm4, %v1575_v47, %v1579_v48  ;;  %v1890_v8 = vrot.slane %v1888_v31, 4 }
  0xf3   : > { %v949_v32 = vpop.f32.mrf.mxu3  ;;  %v7931_v15 = vunpack.c.l.b16 %v1580_v63  ;;  %v7967_v63 = vld [vmem:[%s7427_s7 + $0x138] sm:$0xf] }
  0xf4   : > { %v7899_v33 = vadd.f32 %v949_v32, %v893_v53  ;;  %v1893_v39 = vrot.slane %v1891_v52, 5  ;;  %v1919_v24 = vshll.u32 %v7967_v63, 16 }
  0xf5   : > { %v640_v34 = vpop.f32.mrf.mxu0  ;;  %v1594_v62 = vpack.c.b16 %v7931_v15, %v7905_v7 }
  0xf6   : > { %v656_v19 = vadd.f32 %v640_v34, %v7765_v21  ;;  %v821_v37 = vpop.f32.mrf.mxu1  ;;  %v1714_v21 = vor.u32 %v1713_v38, %v1710_v30  ;;  %v6864_v34 = vld [vmem:[%s7427_s7 + $0x12c] sm:$0x1]  ;;  %v1905_v30 = vshll.u32 %v7946_v29, 16  ;;  %v1880_v38 = vor.u32 %v1879_v16, %v1876_v27 }
  0xf7   : > { %6854 = vmatmul.msk.bf16.gmra.mxu2 %vm325_vm1, %v1653_v9  ;;  %v1654_v9 = vpack.c.b16 %v1650_v11, %v1412_v4  ;;  %v1894_v48 = vor.u32 %v1893_v39, %v1890_v8 }
  0xf8   : > { %v834_v40 = vadd.f32 %v818_v14, %v656_v19  ;;  %v1715_v13 = vrot.slane %v1714_v21, 4  ;;  %v1719_v14 = vrot.slane %v1717_v51, 5  ;;  %v1881_v51 = vrot.slane %v1880_v38, 4 }
  0xf9   : > { %6849 = vmatmul.msk.bf16.gmra.mxu1 %vm325_vm1, %v1593_v6  ;;  %v2416_v6 = vsel %vm338_vm0, %v6922_v17, 0  ;;  %v6868_v17 = vld [vmem:[%s7427_s7 + $0x13c] sm:$0x1] }
  0xfa   : > { %v881_v20 = vpop.f32.mrf.mxu2  ;;  %v894_v49 = vadd.f32 %v878_v26, %v834_v40  ;;  %v1720_v57 = vsel %vm7446_vm4, %v1715_v13, %v1719_v14  ;;  %2425 = vmatpush.bf16.msrb.mxu1 %v2416_v6  ;;  %v1883_v40 = vshll.u32 %v6862_v61, 16  ;;  %v1925_v38 = vshll.u32 %v6868_v17, 16 }
  0xfb   : > { %v951_v50 = vpop.f32.mrf.mxu3 }
  0xfc   : > { %v7918_v55 = vadd.f32 %v951_v50, %v894_v49  ;;  %v1723_v49 = vunpack.c.l.b16 %v1720_v57  ;;  %v1907_v50 = vrot.slane %v1905_v30, 5  ;;  %v1885_v31 = vrot.slane %v1883_v40, 5 }
  0xfd   : > { %v643_v60 = vpop.f32.mrf.mxu0  ;;  %v1933_v57 = vshll.u32 %v7986_v23, 16  ;;  %v1809_v40 = vunpack.c.l.b16 %v7912_v42 }
  0xfe   : > { %v657_v1 = vadd.f32 %v643_v60, %v7800_v35  ;;  %v823_v3 = vpop.f32.mrf.mxu1  ;;  %v6927_v35 = vld [vmem:[%s9855_s1 + $0x52] sm:$0x3]  ;;  %v1886_v13 = vsel %vm7446_vm4, %v1881_v51, %v1885_v31  ;;  %v6870_v51 = vld [vmem:[%s7427_s7 + $0x144] sm:$0x1] }
  0xff   : > { %v2476_v18 = vsel %vm338_vm0, %v6927_v35, 0  ;;  %v1916_v35 = vshrl.u32 %v7967_v63, 16 }
 0x100   : > { %v835_v10 = vadd.f32 %v821_v37, %v657_v1  ;;  %6844 = vmatmul.msk.bf16.gmra.mxu0 %vm325_vm1, %v1415_v58  ;;  %6859 = vmatmul.msk.bf16.gmra.mxu3 %vm325_vm1, %v1726_v25  ;;  %v1902_v37 = vshrl.u32 %v7946_v29, 16  ;;  %v1895_v58 = vrot.slane %v1894_v48, 4  ;;  %v1416_v1 = vpack.c.b16 %v1412_v4, %v1411_v46 }
 0x101   : > { %2485 = vmatpush.bf16.msrb.mxu2 %v2476_v18  ;;  %v1810_v46 = vunpack.c.l.b16 %v7909_v5  ;;  %v1811_v4 = vunpack.c.l.b16 %v7946_v29 }
 0x102   : > { %v883_v26 = vpop.f32.mrf.mxu2  ;;  %v895_v53 = vadd.f32 %v881_v20, %v835_v10  ;;  %v1897_v20 = vshll.u32 %v6864_v34, 16  ;;  %v1904_v21 = vrot.slane %v1902_v37, 4 }
 0x103   : > { %v954_v32 = vpop.f32.mrf.mxu3  ;;  %v2055_v5 = vpack.c.b16 %v1811_v4, %v1810_v46 }
 0x104   : > { %v7954_v28 = vadd.f32 %v954_v32, %v895_v53  ;;  %v1899_v25 = vrot.slane %v1897_v20, 5  ;;  %v1908_v14 = vor.u32 %v1907_v50, %v1904_v21  ;;  %v1921_v53 = vrot.slane %v1919_v24, 5 }
 0x105   : > { %v645_v19 = vpop.f32.mrf.mxu0  ;;  %v1935_v20 = vrot.slane %v1933_v57, 5 }
 0x106   : > { %v658_v43 = vadd.f32 %v645_v19, %v7814_v22  ;;  %v826_v47 = vpop.f32.mrf.mxu1  ;;  %v6866_v22 = vld [vmem:[%s7427_s7 + $0x134] sm:$0x1]  ;;  %v1900_v10 = vsel %vm7446_vm4, %v1895_v58, %v1899_v25  ;;  %v1909_v41 = vrot.slane %v1908_v14, 4  ;;  %v1812_v14 = vunpack.c.l.b16 %v7967_v63 }
 0x107   : > { %6855 = vmatmul.msk.bf16.gmra.mxu2 %vm325_vm1, %v1654_v9  ;;  %v1911_v8 = vshll.u32 %v6866_v22, 16  ;;  %v1988_v56 = vunpack.c.l.b16 %v1900_v10 }
 0x108   : > { %v836_v7 = vadd.f32 %v823_v3, %v658_v43  ;;  %v1727_v3 = vpack.c.b16 %v1723_v49, %v7931_v15 }
 0x109   : > { %6850 = vmatmul.msk.bf16.gmra.mxu1 %vm325_vm1, %v1594_v62  ;;  %v1913_v16 = vrot.slane %v1911_v8, 5  ;;  %v1930_v62 = vshrl.u32 %v7986_v23, 16  ;;  %v1813_v8 = vunpack.c.l.b16 %v7986_v23 }
 0x10a   : > { %v886_v52 = vpop.f32.mrf.mxu2  ;;  %v896_v54 = vadd.f32 %v883_v26, %v836_v7  ;;  %v1918_v26 = vrot.slane %v1916_v35, 4  ;;  %v8002_v7 = vld [vmem:[%s7427_s7 + $0x148] sm:$0xf] }
 0x10b   : > { %v956_v60 = vpop.f32.mrf.mxu3  ;;  %v1914_v6 = vsel %vm7446_vm4, %v1909_v41, %v1913_v16  ;;  %v1932_v48 = vrot.slane %v1930_v62, 4  ;;  %v1944_v42 = vshrl.u32 %v8002_v7, 16  ;;  %v1947_v25 = vshll.u32 %v8002_v7, 16 }
 0x10c   : > { %v7969_v0 = vadd.f32 %v956_v60, %v896_v54  ;;  %v1922_v30 = vor.u32 %v1921_v53, %v1918_v26  ;;  %v2056_v63 = vpack.c.b16 %v1813_v8, %v1812_v14 }
 0x10d   : > { %v648_v11 = vpop.f32.mrf.mxu0  ;;  %v1936_v60 = vor.u32 %v1935_v20, %v1932_v48  ;;  %v1949_v10 = vrot.slane %v1947_v25, 5  ;;  %v1814_v25 = vunpack.c.l.b16 %v8002_v7 }
 0x10e   : > { %v659_v39 = vadd.f32 %v648_v11, %v7835_v45  ;;  %v828_v27 = vpop.f32.mrf.mxu1  ;;  %v1987_v45 = vunpack.c.l.b16 %v1886_v13  ;;  %v1923_v50 = vrot.slane %v1922_v30, 4 }
 0x10f   : > { %v1937_v24 = vrot.slane %v1936_v60, 4 }
 0x110   : > { %v837_v15 = vadd.f32 %v826_v47, %v659_v39  ;;  %6845 = vmatmul.msk.bf16.gmra.mxu0 %vm325_vm1, %v1416_v1  ;;  %6860 = vmatmul.msk.bf16.gmra.mxu3 %vm325_vm1, %v1727_v3  ;;  %v1995_v34 = vpack.c.b16 %v1988_v56, %v1987_v45  ;;  %v1989_v47 = vunpack.c.l.b16 %v1914_v6  ;;  %v1939_v1 = vshll.u32 %v6870_v51, 16 }
 0x112   : > { %v888_v18 = vpop.f32.mrf.mxu2  ;;  %v897_v2 = vadd.f32 %v886_v52, %v837_v15  ;;  %v1817_v52 = vpack.c.b16 %v1810_v46, %v1809_v40  ;;  %v2128_v58 = vpack.c.b16 %v1989_v47, %v1988_v56  ;;  %v1941_v46 = vrot.slane %v1939_v1, 5  ;;  %v8018_v56 = vld [vmem:[%s7427_s7 + $0x150] sm:$0xf] }
 0x113   : > { %v959_v61 = vpop.f32.mrf.mxu3  ;;  %v1961_v17 = vshll.u32 %v8018_v56, 16  ;;  %v1815_v29 = vunpack.c.l.b16 %v8018_v56 }
 0x114   : > { %v7991_v32 = vadd.f32 %v959_v61, %v897_v2  ;;  %v1942_v61 = vsel %vm7446_vm4, %v1937_v24, %v1941_v46 }
 0x115   : > { %v650_v9 = vpop.f32.mrf.mxu0  ;;  %v1991_v62 = vunpack.c.l.b16 %v1942_v61  ;;  %v1963_v30 = vrot.slane %v1961_v17, 5  ;;  %v8066_v17 = vld [vmem:[%s7427_s7 + $0x170] sm:$0xf] }
 0x116   : > { %v660_v19 = vadd.f32 %v650_v9, %v7848_v12  ;;  %v1215_v37 = vpop.f32.mrf.mxu1  ;;  %v1927_v12 = vrot.slane %v1925_v38, 5 }
 0x117   : > { %6890 = vmatmul.msk.bf16.vlgmr.msra.gmra.mxu2 %vm325_vm1, %v2055_v5  ;;  %v1958_v5 = vshrl.u32 %v8018_v56, 16 }
 0x118   : > { %v838_v43 = vadd.f32 %v828_v27, %v660_v19  ;;  %v1928_v13 = vsel %vm7446_vm4, %v1923_v50, %v1927_v12  ;;  %v1946_v27 = vrot.slane %v1944_v42, 4 }
 0x119   : > { %6885 = vmatmul.msk.bf16.vlgmr.msra.gmra.mxu1 %vm325_vm1, %v1995_v34  ;;  %v1990_v35 = vunpack.c.l.b16 %v1928_v13 }
 0x11a   : > { %v1275_v49 = vpop.f32.mrf.mxu2  ;;  %v898_v21 = vadd.f32 %v888_v18, %v838_v43  ;;  %v1950_v18 = vor.u32 %v1949_v10, %v1946_v27  ;;  %v6874_v43 = vld [vmem:[%s7427_s7 + $0x154] sm:$0x1]  ;;  %v6876_v27 = vld [vmem:[%s7427_s7 + $0x15c] sm:$0x1] }
 0x11b   : > { %v961_v31 = vpop.f32.mrf.mxu3  ;;  %v1996_v53 = vpack.c.b16 %v1990_v35, %v1989_v47  ;;  %v8033_v47 = vld [vmem:[%s7427_s7 + $0x158] sm:$0xf]  ;;  %v1967_v51 = vshll.u32 %v6874_v43, 16 }
 0x11c   : > { %v8005_v54 = vadd.f32 %v961_v31, %v898_v21  ;;  %v1951_v57 = vrot.slane %v1950_v18, 4  ;;  %v1972_v31 = vshrl.u32 %v8033_v47, 16 }
 0x11d   : > { %v1037_v22 = vpop.f32.mrf.mxu0 }
 0x11e   : > { %v1057_v3 = vadd.f32 %v1037_v22, %v7865_v36  ;;  %v1217_v11 = vpop.f32.mrf.mxu1  ;;  %v6872_v36 = vld [vmem:[%s7427_s7 + $0x14c] sm:$0x1] }
 0x11f   : > { %v1953_v2 = vshll.u32 %v6872_v36, 16 }
 0x120   : > { %v1235_v39 = vadd.f32 %v1215_v37, %v1057_v3  ;;  %6880 = vmatmul.msk.bf16.vlgmr.msra.gmra.mxu0 %vm325_vm1, %v1817_v52  ;;  %6895 = vmatmul.msk.bf16.vlgmr.msra.gmra.mxu3 %vm325_vm1, %v2128_v58  ;;  %v1960_v37 = vrot.slane %v1958_v5, 4  ;;  %v1975_v52 = vshll.u32 %v8033_v47, 16  ;;  %v1969_v3 = vrot.slane %v1967_v51, 5  ;;  %v6878_v5 = vld [vmem:[%s7427_s7 + $0x164] sm:$0x1] }
 0x121   : > { %v1955_v19 = vrot.slane %v1953_v2, 5 }
 0x122   : > { %v1277_v15 = vpop.f32.mrf.mxu2  ;;  %v1295_v45 = vadd.f32 %v1275_v49, %v1235_v39  ;;  %v2129_v49 = vpack.c.b16 %v1991_v62, %v1990_v35  ;;  %v1964_v12 = vor.u32 %v1963_v30, %v1960_v37  ;;  %v1977_v13 = vrot.slane %v1975_v52, 5 }
 0x123   : > { %v1348_v41 = vpop.f32.mrf.mxu3  ;;  %v1956_v21 = vsel %vm7446_vm4, %v1951_v57, %v1955_v19  ;;  %v2057_v35 = vpack.c.b16 %v1815_v29, %v1814_v25  ;;  %v2121_v37 = vshll.u32 %v6878_v5, 16  ;;  %v2292_v30 = vshrl.u32 %v8066_v17, 16 }
 0x124   : > { %v8022_v16 = vadd.f32 %v1348_v41, %v1295_v45  ;;  %v1992_v60 = vunpack.c.l.b16 %v1956_v21  ;;  %v1965_v1 = vrot.slane %v1964_v12, 4  ;;  %v1981_v41 = vshll.u32 %v6876_v27, 16  ;;  %v6960_v27 = vld [vmem:[%s9855_s1 + $0x1c] sm:$0x3] }
 0x125   : > { %v1039_v26 = vpop.f32.mrf.mxu0 }
 0x126   : > { %v1058_v9 = vadd.f32 %v1039_v26, %v7878_v59  ;;  %v1220_v34 = vpop.f32.mrf.mxu1  ;;  %v1818_v59 = vpack.c.b16 %v1812_v14, %v1811_v4  ;;  %v8047_v4 = vld [vmem:[%s7427_s7 + $0x160] sm:$0xf]  ;;  %v1997_v36 = vpack.c.b16 %v1992_v60, %v1991_v62 }
 0x127   : > { %6891 = vmatmul.msk.bf16.gmra.mxu2 %vm325_vm1, %v2056_v63  ;;  %v2112_v39 = vshrl.u32 %v8047_v4, 16  ;;  %v2115_v7 = vshll.u32 %v8047_v4, 16  ;;  %v2054_v52 = vunpack.c.l.b16 %v8047_v4  ;;  %v6970_v4 = vld [vmem:[%s9855_s1 + $0x5c] sm:$0x3] }
 0x128   : > { %v1236_v6 = vadd.f32 %v1217_v11, %v1058_v9  ;;  %v1974_v11 = vrot.slane %v1972_v31, 4  ;;  %v8069_v9 = vld [vmem:[%s7427_s7 + $0x168] sm:$0xf]  ;;  %v1816_v31 = vunpack.c.l.b16 %v8033_v47  ;;  %v6955_v47 = vld [vmem:[%s9855_s1 + $0x14] sm:$0x3] }
 0x129   : > { %6886 = vmatmul.msk.bf16.gmra.mxu1 %vm325_vm1, %v1996_v53  ;;  %v2114_v2 = vrot.slane %v2112_v39, 4  ;;  %v2117_v26 = vrot.slane %v2115_v7, 5  ;;  %v8103_v39 = vld [vmem:[%s7427_s7 + $0x178] sm:$0xf]  ;;  %v6900_v7 = vld [vmem:[%s7427_s7 + $0x16c] sm:$0x1] }
 0x12a   : > { %v1280_v38 = vpop.f32.mrf.mxu2  ;;  %v1296_v40 = vadd.f32 %v1277_v15, %v1236_v6  ;;  %v1970_v15 = vsel %vm7446_vm4, %v1965_v1, %v1969_v3  ;;  %v1978_v45 = vor.u32 %v1977_v13, %v1974_v11  ;;  %v1983_v6 = vrot.slane %v1981_v41, 5 }
 0x12b   : > { %v1350_v48 = vpop.f32.mrf.mxu3  ;;  %v8062_v61 = vunpack.c.l.b16 %v1970_v15  ;;  %v2642_v11 = vsel %vm338_vm0, %v6955_v47, 0  ;;  %v2953_v13 = vsel %vm338_vm0, %v6970_v4, 0 }
 0x12c   : > { %v8035_v20 = vadd.f32 %v1350_v48, %v1296_v40  ;;  %v2278_v40 = vshrl.u32 %v8069_v9, 16  ;;  %v1819_v48 = vpack.c.b16 %v1814_v25, %v1813_v8  ;;  %2651 = vmatpush.bf16.msra.mxu0 %v2642_v11  ;;  %2962 = vmatpush.bf16.msra.mxu3 %v2953_v13  ;;  %v8143_v13 = vld [vmem:[%s7427_s7 + $0x188] sm:$0xf] }
 0x12d   : > { %v1042_v50 = vpop.f32.mrf.mxu0 }
 0x12e   : > { %v1059_v58 = vadd.f32 %v1042_v50, %v7899_v33  ;;  %v1222_v42 = vpop.f32.mrf.mxu1  ;;  %v2281_v50 = vshll.u32 %v8069_v9, 16  ;;  %v2280_v8 = vrot.slane %v2278_v40, 4 }
 0x130   : > { %v1237_v22 = vadd.f32 %v1220_v34, %v1059_v58  ;;  %6881 = vmatmul.msk.bf16.gmra.mxu0 %vm325_vm1, %v1818_v59  ;;  %6896 = vmatmul.msk.bf16.gmra.mxu3 %vm325_vm1, %v2129_v49  ;;  %v1979_v34 = vrot.slane %v1978_v45, 4  ;;  %v2130_v59 = vpack.c.b16 %v8062_v61, %v1992_v60  ;;  %v2283_v1 = vrot.slane %v2281_v50, 5 }
 0x132   : > { %v1282_v14 = vpop.f32.mrf.mxu2  ;;  %v1297_v33 = vadd.f32 %v1280_v38, %v1237_v22  ;;  %v2295_v38 = vshll.u32 %v8066_v17, 16  ;;  %v1984_v21 = vsel %vm7446_vm4, %v1979_v34, %v1983_v6  ;;  %v2294_v22 = vrot.slane %v2292_v30, 4 }
 0x133   : > { %v1353_v10 = vpop.f32.mrf.mxu3  ;;  %v8088_v60 = vunpack.c.l.b16 %v1984_v21  ;;  %v8124_v21 = vld [vmem:[%s7427_s7 + $0x180] sm:$0xf] }
 0x134   : > { %v8056_v24 = vadd.f32 %v1353_v10, %v1297_v33  ;;  %v2297_v23 = vrot.slane %v2295_v38, 5  ;;  %v2323_v56 = vshll.u32 %v8124_v21, 16 }
 0x135   : > { %v1044_v46 = vpop.f32.mrf.mxu0  ;;  %v1998_v45 = vpack.c.b16 %v8088_v60, %v8062_v61 }
 0x136   : > { %v1060_v63 = vadd.f32 %v1044_v46, %v7918_v55  ;;  %v1225_v18 = vpop.f32.mrf.mxu1  ;;  %v2118_v55 = vor.u32 %v2117_v26, %v2114_v2  ;;  %v6902_v46 = vld [vmem:[%s7427_s7 + $0x174] sm:$0x1]  ;;  %v2309_v2 = vshll.u32 %v8103_v39, 16  ;;  %v2284_v26 = vor.u32 %v2283_v1, %v2280_v8 }
 0x137   : > { %6892 = vmatmul.msk.bf16.gmra.mxu2 %vm325_vm1, %v2057_v35  ;;  %v2058_v35 = vpack.c.b16 %v2054_v52, %v1816_v31  ;;  %v2298_v6 = vor.u32 %v2297_v23, %v2294_v22 }
 0x138   : > { %v1238_v53 = vadd.f32 %v1222_v42, %v1060_v63  ;;  %v2119_v58 = vrot.slane %v2118_v55, 4  ;;  %v2123_v42 = vrot.slane %v2121_v37, 5  ;;  %v2285_v37 = vrot.slane %v2284_v26, 4 }
 0x139   : > { %6887 = vmatmul.msk.bf16.gmra.mxu1 %vm325_vm1, %v1997_v36  ;;  %v2820_v36 = vsel %vm338_vm0, %v6960_v27, 0  ;;  %v6906_v27 = vld [vmem:[%s7427_s7 + $0x184] sm:$0x1] }
 0x13a   : > { %v1285_v62 = vpop.f32.mrf.mxu2  ;;  %v1298_v57 = vadd.f32 %v1282_v14, %v1238_v53  ;;  %v2124_v41 = vsel %vm7446_vm4, %v2119_v58, %v2123_v42  ;;  %2829 = vmatpush.bf16.msra.mxu1 %v2820_v36  ;;  %v2287_v53 = vshll.u32 %v6900_v7, 16  ;;  %v2329_v26 = vshll.u32 %v6906_v27, 16 }
 0x13b   : > { %v1355_v19 = vpop.f32.mrf.mxu3 }
 0x13c   : > { %v8075_v43 = vadd.f32 %v1355_v19, %v1298_v57  ;;  %v2127_v57 = vunpack.c.l.b16 %v2124_v41  ;;  %v2311_v19 = vrot.slane %v2309_v2, 5  ;;  %v2289_v30 = vrot.slane %v2287_v53, 5 }
 0x13d   : > { %v1047_v49 = vpop.f32.mrf.mxu0  ;;  %v2337_v41 = vshll.u32 %v8143_v13, 16  ;;  %v2213_v53 = vunpack.c.l.b16 %v8069_v9 }
 0x13e   : > { %v1061_v12 = vadd.f32 %v1047_v49, %v7954_v28  ;;  %v1227_v51 = vpop.f32.mrf.mxu1  ;;  %v6965_v28 = vld [vmem:[%s9855_s1 + $0x54] sm:$0x3]  ;;  %v2290_v58 = vsel %vm7446_vm4, %v2285_v37, %v2289_v30  ;;  %v6908_v37 = vld [vmem:[%s7427_s7 + $0x18c] sm:$0x1] }
 0x13f   : > { %v2880_v3 = vsel %vm338_vm0, %v6965_v28, 0  ;;  %v2320_v28 = vshrl.u32 %v8124_v21, 16 }
 0x140   : > { %v1239_v25 = vadd.f32 %v1225_v18, %v1061_v12  ;;  %6882 = vmatmul.msk.bf16.gmra.mxu0 %vm325_vm1, %v1819_v48  ;;  %6897 = vmatmul.msk.bf16.gmra.mxu3 %vm325_vm1, %v2130_v59  ;;  %v2306_v18 = vshrl.u32 %v8103_v39, 16  ;;  %v2299_v48 = vrot.slane %v2298_v6, 4  ;;  %v1820_v12 = vpack.c.b16 %v1816_v31, %v1815_v29 }
 0x141   : > { %2889 = vmatpush.bf16.msra.mxu2 %v2880_v3  ;;  %v2214_v29 = vunpack.c.l.b16 %v8066_v17  ;;  %v2215_v31 = vunpack.c.l.b16 %v8103_v39 }
 0x142   : > { %v1287_v14 = vpop.f32.mrf.mxu2  ;;  %v1299_v33 = vadd.f32 %v1285_v62, %v1239_v25  ;;  %v2301_v62 = vshll.u32 %v6902_v46, 16  ;;  %v2308_v55 = vrot.slane %v2306_v18, 4 }
 0x143   : > { %v1358_v10 = vpop.f32.mrf.mxu3  ;;  %v2459_v17 = vpack.c.b16 %v2215_v31, %v2214_v29 }
 0x144   : > { %v8111_v15 = vadd.f32 %v1358_v10, %v1299_v33  ;;  %v2303_v59 = vrot.slane %v2301_v62, 5  ;;  %v2312_v42 = vor.u32 %v2311_v19, %v2308_v55  ;;  %v2325_v33 = vrot.slane %v2323_v56, 5 }
 0x145   : > { %v1049_v63 = vpop.f32.mrf.mxu0  ;;  %v2339_v62 = vrot.slane %v2337_v41, 5 }
 0x146   : > { %v1062_v5 = vadd.f32 %v1049_v63, %v7969_v0  ;;  %v1230_v34 = vpop.f32.mrf.mxu1  ;;  %v6904_v0 = vld [vmem:[%s7427_s7 + $0x17c] sm:$0x1]  ;;  %v2304_v25 = vsel %vm7446_vm4, %v2299_v48, %v2303_v59  ;;  %v2313_v4 = vrot.slane %v2312_v42, 4  ;;  %v2216_v42 = vunpack.c.l.b16 %v8124_v21 }
 0x147   : > { %6893 = vmatmul.msk.bf16.gmra.mxu2 %vm325_vm1, %v2058_v35  ;;  %v2315_v22 = vshll.u32 %v6904_v0, 16  ;;  %v2392_v47 = vunpack.c.l.b16 %v2304_v25 }
 0x148   : > { %v1240_v61 = vadd.f32 %v1227_v51, %v1062_v5  ;;  %v2131_v51 = vpack.c.b16 %v2127_v57, %v8088_v60 }
 0x149   : > { %6888 = vmatmul.msk.bf16.gmra.mxu1 %vm325_vm1, %v1998_v45  ;;  %v2317_v1 = vrot.slane %v2315_v22, 5  ;;  %v2334_v45 = vshrl.u32 %v8143_v13, 16  ;;  %v2217_v22 = vunpack.c.l.b16 %v8143_v13 }
 0x14a   : > { %v1290_v38 = vpop.f32.mrf.mxu2  ;;  %v1300_v40 = vadd.f32 %v1287_v14, %v1240_v61  ;;  %v2322_v14 = vrot.slane %v2320_v28, 4  ;;  %v8159_v61 = vld [vmem:[%s7427_s7 + $0x190] sm:$0xf] }
 0x14b   : > { %v1360_v49 = vpop.f32.mrf.mxu3  ;;  %v2318_v36 = vsel %vm7446_vm4, %v2313_v4, %v2317_v1  ;;  %v2336_v6 = vrot.slane %v2334_v45, 4  ;;  %v2348_v9 = vshrl.u32 %v8159_v61, 16  ;;  %v2351_v59 = vshll.u32 %v8159_v61, 16 }
 0x14c   : > { %v8126_v50 = vadd.f32 %v1360_v49, %v1300_v40  ;;  %v2326_v2 = vor.u32 %v2325_v33, %v2322_v14  ;;  %v2460_v21 = vpack.c.b16 %v2217_v22, %v2216_v42 }
 0x14d   : > { %v1052_v52 = vpop.f32.mrf.mxu0  ;;  %v2340_v49 = vor.u32 %v2339_v62, %v2336_v6  ;;  %v2353_v25 = vrot.slane %v2351_v59, 5  ;;  %v2218_v59 = vunpack.c.l.b16 %v8159_v61 }
 0x14e   : > { %v1063_v23 = vadd.f32 %v1052_v52, %v7991_v32  ;;  %v1232_v8 = vpop.f32.mrf.mxu1  ;;  %v2391_v32 = vunpack.c.l.b16 %v2290_v58  ;;  %v2327_v19 = vrot.slane %v2326_v2, 4 }
 0x14f   : > { %v2341_v56 = vrot.slane %v2340_v49, 4 }
 0x150   : > { %v1241_v60 = vadd.f32 %v1230_v34, %v1063_v23  ;;  %6883 = vmatmul.msk.bf16.gmra.mxu0 %vm325_vm1, %v1820_v12  ;;  %6898 = vmatmul.msk.bf16.gmra.mxu3 %vm325_vm1, %v2131_v51  ;;  %v2399_v46 = vpack.c.b16 %v2392_v47, %v2391_v32  ;;  %v2393_v34 = vunpack.c.l.b16 %v2318_v36  ;;  %v2343_v12 = vshll.u32 %v6908_v37, 16 }
 0x152   : > { %v1292_v3 = vpop.f32.mrf.mxu2  ;;  %v1301_v11 = vadd.f32 %v1290_v38, %v1241_v60  ;;  %v2221_v38 = vpack.c.b16 %v2214_v29, %v2213_v53  ;;  %v2532_v48 = vpack.c.b16 %v2393_v34, %v2392_v47  ;;  %v2345_v29 = vrot.slane %v2343_v12, 5  ;;  %v8175_v47 = vld [vmem:[%s7427_s7 + $0x198] sm:$0xf] }
 0x153   : > { %v1363_v7 = vpop.f32.mrf.mxu3  ;;  %v2365_v27 = vshll.u32 %v8175_v47, 16  ;;  %v2219_v39 = vunpack.c.l.b16 %v8175_v47 }
 0x154   : > { %v8148_v10 = vadd.f32 %v1363_v7, %v1301_v11  ;;  %v2346_v7 = vsel %vm7446_vm4, %v2341_v56, %v2345_v29 }
 0x155   : > { %v1054_v35 = vpop.f32.mrf.mxu0  ;;  %v2395_v45 = vunpack.c.l.b16 %v2346_v7  ;;  %v2367_v2 = vrot.slane %v2365_v27, 5  ;;  %v8223_v27 = vld [vmem:[%s7427_s7 + $0x1b8] sm:$0xf] }
 0x156   : > { %v1064_v63 = vadd.f32 %v1054_v35, %v8005_v54  ;;  %v1619_v18 = vpop.f32.mrf.mxu1  ;;  %v2331_v54 = vrot.slane %v2329_v26, 5 }
 0x157   : > { %6928 = vmatmul.msk.bf16.vlgmr.msrb.gmra.mxu2 %vm325_vm1, %v2459_v17  ;;  %v2362_v17 = vshrl.u32 %v8175_v47, 16 }
 0x158   : > { %v1242_v5 = vadd.f32 %v1232_v8, %v1064_v63  ;;  %v2332_v58 = vsel %vm7446_vm4, %v2327_v19, %v2331_v54  ;;  %v2350_v8 = vrot.slane %v2348_v9, 4 }
 0x159   : > { %6923 = vmatmul.msk.bf16.vlgmr.msrb.gmra.mxu1 %vm325_vm1, %v2399_v46  ;;  %v2394_v28 = vunpack.c.l.b16 %v2332_v58 }
 0x15a   : > { %v1679_v57 = vpop.f32.mrf.mxu2  ;;  %v1302_v55 = vadd.f32 %v1292_v3, %v1242_v5  ;;  %v2354_v3 = vor.u32 %v2353_v25, %v2350_v8  ;;  %v6912_v5 = vld [vmem:[%s7427_s7 + $0x19c] sm:$0x1]  ;;  %v6914_v8 = vld [vmem:[%s7427_s7 + $0x1a4] sm:$0x1] }
 0x15b   : > { %v1365_v30 = vpop.f32.mrf.mxu3  ;;  %v2400_v33 = vpack.c.b16 %v2394_v28, %v2393_v34  ;;  %v8190_v34 = vld [vmem:[%s7427_s7 + $0x1a0] sm:$0xf]  ;;  %v2371_v37 = vshll.u32 %v6912_v5, 16 }
 0x15c   : > { %v8162_v40 = vadd.f32 %v1365_v30, %v1302_v55  ;;  %v2355_v41 = vrot.slane %v2354_v3, 4  ;;  %v2376_v30 = vshrl.u32 %v8190_v34, 16 }
 0x15d   : > { %v1441_v0 = vpop.f32.mrf.mxu0 }
 0x15e   : > { %v1461_v51 = vadd.f32 %v1441_v0, %v8022_v16  ;;  %v1621_v52 = vpop.f32.mrf.mxu1  ;;  %v6910_v16 = vld [vmem:[%s7427_s7 + $0x194] sm:$0x1] }
 0x15f   : > { %v2357_v11 = vshll.u32 %v6910_v16, 16 }
 0x160   : > { %v1639_v23 = vadd.f32 %v1619_v18, %v1461_v51  ;;  %6918 = vmatmul.msk.bf16.vlgmr.msrb.gmra.mxu0 %vm325_vm1, %v2221_v38  ;;  %6933 = vmatmul.msk.bf16.vlgmr.msrb.gmra.mxu3 %vm325_vm1, %v2532_v48  ;;  %v2364_v18 = vrot.slane %v2362_v17, 4  ;;  %v2379_v38 = vshll.u32 %v8190_v34, 16  ;;  %v2373_v51 = vrot.slane %v2371_v37, 5  ;;  %v6916_v17 = vld [vmem:[%s7427_s7 + $0x1ac] sm:$0x1] }
 0x161   : > { %v2359_v63 = vrot.slane %v2357_v11, 5 }
 0x162   : > { %v1681_v60 = vpop.f32.mrf.mxu2  ;;  %v1699_v32 = vadd.f32 %v1679_v57, %v1639_v23  ;;  %v2533_v57 = vpack.c.b16 %v2395_v45, %v2394_v28  ;;  %v2368_v54 = vor.u32 %v2367_v2, %v2364_v18  ;;  %v2381_v58 = vrot.slane %v2379_v38, 5 }
 0x163   : > { %v1752_v4 = vpop.f32.mrf.mxu3  ;;  %v2360_v55 = vsel %vm7446_vm4, %v2355_v41, %v2359_v63  ;;  %v2461_v28 = vpack.c.b16 %v2219_v39, %v2218_v59  ;;  %v2525_v18 = vshll.u32 %v6916_v17, 16  ;;  %v2696_v2 = vshrl.u32 %v8223_v27, 16 }
 0x164   : > { %v8179_v1 = vadd.f32 %v1752_v4, %v1699_v32  ;;  %v2396_v49 = vunpack.c.l.b16 %v2360_v55  ;;  %v2369_v12 = vrot.slane %v2368_v54, 4  ;;  %v2385_v4 = vshll.u32 %v6914_v8, 16  ;;  %v6998_v8 = vld [vmem:[%s9855_s1 + $0x1e] sm:$0x3] }
 0x165   : > { %v1443_v14 = vpop.f32.mrf.mxu0 }
 0x166   : > { %v1462_v35 = vadd.f32 %v1443_v14, %v8035_v20  ;;  %v1624_v46 = vpop.f32.mrf.mxu1  ;;  %v2222_v20 = vpack.c.b16 %v2216_v42, %v2215_v31  ;;  %v8204_v31 = vld [vmem:[%s7427_s7 + $0x1a8] sm:$0xf]  ;;  %v2401_v16 = vpack.c.b16 %v2396_v49, %v2395_v45 }
 0x167   : > { %6929 = vmatmul.msk.bf16.gmra.mxu2 %vm325_vm1, %v2460_v21  ;;  %v2516_v23 = vshrl.u32 %v8204_v31, 16  ;;  %v2519_v61 = vshll.u32 %v8204_v31, 16  ;;  %v2458_v38 = vunpack.c.l.b16 %v8204_v31  ;;  %v7008_v31 = vld [vmem:[%s9855_s1 + $0x5e] sm:$0x3] }
 0x168   : > { %v1640_v36 = vadd.f32 %v1621_v52, %v1462_v35  ;;  %v2378_v52 = vrot.slane %v2376_v30, 4  ;;  %v8226_v35 = vld [vmem:[%s7427_s7 + $0x1b0] sm:$0xf]  ;;  %v2220_v30 = vunpack.c.l.b16 %v8190_v34  ;;  %v6993_v34 = vld [vmem:[%s9855_s1 + $0x16] sm:$0x3] }
 0x169   : > { %6924 = vmatmul.msk.bf16.gmra.mxu1 %vm325_vm1, %v2400_v33  ;;  %v2518_v11 = vrot.slane %v2516_v23, 4  ;;  %v2521_v14 = vrot.slane %v2519_v61, 5  ;;  %v8260_v23 = vld [vmem:[%s7427_s7 + $0x1c0] sm:$0xf]  ;;  %v6938_v61 = vld [vmem:[%s7427_s7 + $0x1b4] sm:$0x1] }
 0x16a   : > { %v1684_v26 = vpop.f32.mrf.mxu2  ;;  %v1700_v53 = vadd.f32 %v1681_v60, %v1640_v36  ;;  %v2374_v60 = vsel %vm7446_vm4, %v2369_v12, %v2373_v51  ;;  %v2382_v32 = vor.u32 %v2381_v58, %v2378_v52  ;;  %v2387_v36 = vrot.slane %v2385_v4, 5 }
 0x16b   : > { %v1754_v6 = vpop.f32.mrf.mxu3  ;;  %v8219_v7 = vunpack.c.l.b16 %v2374_v60  ;;  %v3046_v52 = vsel %vm338_vm0, %v6993_v34, 0  ;;  %v3357_v58 = vsel %vm338_vm0, %v7008_v31, 0 }
 0x16c   : > { %v8192_v62 = vadd.f32 %v1754_v6, %v1700_v53  ;;  %v2682_v53 = vshrl.u32 %v8226_v35, 16  ;;  %v2223_v6 = vpack.c.b16 %v2218_v59, %v2217_v22  ;;  %3055 = vmatpush.bf16.msrb.mxu0 %v3046_v52  ;;  %3366 = vmatpush.bf16.msrb.mxu3 %v3357_v58  ;;  %v8300_v58 = vld [vmem:[%s7427_s7 + $0x1d0] sm:$0xf] }
 0x16d   : > { %v1446_v19 = vpop.f32.mrf.mxu0 }
 0x16e   : > { %v1463_v48 = vadd.f32 %v1446_v19, %v8056_v24  ;;  %v1626_v9 = vpop.f32.mrf.mxu1  ;;  %v2685_v19 = vshll.u32 %v8226_v35, 16  ;;  %v2684_v22 = vrot.slane %v2682_v53, 4 }
 0x170   : > { %v1641_v0 = vadd.f32 %v1624_v46, %v1463_v48  ;;  %6919 = vmatmul.msk.bf16.gmra.mxu0 %vm325_vm1, %v2222_v20  ;;  %6934 = vmatmul.msk.bf16.gmra.mxu3 %vm325_vm1, %v2533_v57  ;;  %v2383_v46 = vrot.slane %v2382_v32, 4  ;;  %v2534_v20 = vpack.c.b16 %v8219_v7, %v2396_v49  ;;  %v2687_v12 = vrot.slane %v2685_v19, 5 }
 0x172   : > { %v1686_v42 = vpop.f32.mrf.mxu2  ;;  %v1701_v24 = vadd.f32 %v1684_v26, %v1641_v0  ;;  %v2699_v26 = vshll.u32 %v8223_v27, 16  ;;  %v2388_v55 = vsel %vm7446_vm4, %v2383_v46, %v2387_v36  ;;  %v2698_v0 = vrot.slane %v2696_v2, 4 }
 0x173   : > { %v1757_v25 = vpop.f32.mrf.mxu3  ;;  %v8245_v49 = vunpack.c.l.b16 %v2388_v55  ;;  %v8281_v55 = vld [vmem:[%s7427_s7 + $0x1c8] sm:$0xf] }
 0x174   : > { %v8213_v56 = vadd.f32 %v1757_v25, %v1701_v24  ;;  %v2701_v13 = vrot.slane %v2699_v26, 5  ;;  %v2727_v47 = vshll.u32 %v8281_v55, 16 }
 0x175   : > { %v1448_v29 = vpop.f32.mrf.mxu0  ;;  %v2402_v32 = vpack.c.b16 %v8245_v49, %v8219_v7 }
 0x176   : > { %v1464_v21 = vadd.f32 %v1448_v29, %v8075_v43  ;;  %v1629_v3 = vpop.f32.mrf.mxu1  ;;  %v2522_v43 = vor.u32 %v2521_v14, %v2518_v11  ;;  %v6940_v29 = vld [vmem:[%s7427_s7 + $0x1bc] sm:$0x1]  ;;  %v2713_v11 = vshll.u32 %v8260_v23, 16  ;;  %v2688_v14 = vor.u32 %v2687_v12, %v2684_v22 }
 0x177   : > { %6930 = vmatmul.msk.bf16.gmra.mxu2 %vm325_vm1, %v2461_v28  ;;  %v2462_v28 = vpack.c.b16 %v2458_v38, %v2220_v30  ;;  %v2702_v36 = vor.u32 %v2701_v13, %v2698_v0 }
 0x178   : > { %v1642_v33 = vadd.f32 %v1626_v9, %v1464_v21  ;;  %v2523_v48 = vrot.slane %v2522_v43, 4  ;;  %v2527_v9 = vrot.slane %v2525_v18, 5  ;;  %v2689_v18 = vrot.slane %v2688_v14, 4 }
 0x179   : > { %6925 = vmatmul.msk.bf16.gmra.mxu1 %vm325_vm1, %v2401_v16  ;;  %v3224_v16 = vsel %vm338_vm0, %v6998_v8, 0  ;;  %v6944_v8 = vld [vmem:[%s7427_s7 + $0x1cc] sm:$0x1] }
 0x17a   : > { %v1689_v45 = vpop.f32.mrf.mxu2  ;;  %v1702_v41 = vadd.f32 %v1686_v42, %v1642_v33  ;;  %v2528_v4 = vsel %vm7446_vm4, %v2523_v48, %v2527_v9  ;;  %3233 = vmatpush.bf16.msrb.mxu1 %v3224_v16  ;;  %v2691_v33 = vshll.u32 %v6938_v61, 16  ;;  %v2733_v14 = vshll.u32 %v6944_v8, 16 }
 0x17b   : > { %v1759_v63 = vpop.f32.mrf.mxu3 }
 0x17c   : > { %v8232_v5 = vadd.f32 %v1759_v63, %v1702_v41  ;;  %v2531_v41 = vunpack.c.l.b16 %v2528_v4  ;;  %v2715_v63 = vrot.slane %v2713_v11, 5  ;;  %v2693_v2 = vrot.slane %v2691_v33, 5 }
 0x17d   : > { %v1451_v57 = vpop.f32.mrf.mxu0  ;;  %v2741_v4 = vshll.u32 %v8300_v58, 16  ;;  %v2617_v33 = vunpack.c.l.b16 %v8226_v35 }
 0x17e   : > { %v1465_v54 = vadd.f32 %v1451_v57, %v8111_v15  ;;  %v1631_v37 = vpop.f32.mrf.mxu1  ;;  %v7003_v15 = vld [vmem:[%s9855_s1 + $0x56] sm:$0x3]  ;;  %v2694_v48 = vsel %vm7446_vm4, %v2689_v18, %v2693_v2  ;;  %v6946_v18 = vld [vmem:[%s7427_s7 + $0x1d4] sm:$0x1] }
 0x17f   : > { %v3284_v51 = vsel %vm338_vm0, %v7003_v15, 0  ;;  %v2724_v15 = vshrl.u32 %v8281_v55, 16 }
 0x180   : > { %v1643_v59 = vadd.f32 %v1629_v3, %v1465_v54  ;;  %6920 = vmatmul.msk.bf16.gmra.mxu0 %vm325_vm1, %v2223_v6  ;;  %6935 = vmatmul.msk.bf16.gmra.mxu3 %vm325_vm1, %v2534_v20  ;;  %v2710_v3 = vshrl.u32 %v8260_v23, 16  ;;  %v2703_v6 = vrot.slane %v2702_v36, 4  ;;  %v2224_v54 = vpack.c.b16 %v2220_v30, %v2219_v39 }
 0x181   : > { %3293 = vmatpush.bf16.msrb.mxu2 %v3284_v51  ;;  %v2618_v39 = vunpack.c.l.b16 %v8223_v27  ;;  %v2619_v30 = vunpack.c.l.b16 %v8260_v23 }
 0x182   : > { %v1691_v42 = vpop.f32.mrf.mxu2  ;;  %v1703_v24 = vadd.f32 %v1689_v45, %v1643_v59  ;;  %v2705_v45 = vshll.u32 %v6940_v29, 16  ;;  %v2712_v43 = vrot.slane %v2710_v3, 4 }
 0x183   : > { %v1762_v25 = vpop.f32.mrf.mxu3  ;;  %v2863_v27 = vpack.c.b16 %v2619_v30, %v2618_v39 }
 0x184   : > { %v8268_v60 = vadd.f32 %v1762_v25, %v1703_v24  ;;  %v2707_v20 = vrot.slane %v2705_v45, 5  ;;  %v2716_v9 = vor.u32 %v2715_v63, %v2712_v43  ;;  %v2729_v24 = vrot.slane %v2727_v47, 5 }
 0x185   : > { %v1453_v21 = vpop.f32.mrf.mxu0  ;;  %v2743_v45 = vrot.slane %v2741_v4, 5 }
 0x186   : > { %v1466_v17 = vadd.f32 %v1453_v21, %v8126_v50  ;;  %v1634_v46 = vpop.f32.mrf.mxu1  ;;  %v6942_v50 = vld [vmem:[%s7427_s7 + $0x1c4] sm:$0x1]  ;;  %v2708_v59 = vsel %vm7446_vm4, %v2703_v6, %v2707_v20  ;;  %v2717_v31 = vrot.slane %v2716_v9, 4  ;;  %v2620_v9 = vunpack.c.l.b16 %v8281_v55 }
 0x187   : > { %6931 = vmatmul.msk.bf16.gmra.mxu2 %vm325_vm1, %v2462_v28  ;;  %v2719_v0 = vshll.u32 %v6942_v50, 16  ;;  %v2796_v34 = vunpack.c.l.b16 %v2708_v59 }
 0x188   : > { %v1644_v7 = vadd.f32 %v1631_v37, %v1466_v17  ;;  %v2535_v37 = vpack.c.b16 %v2531_v41, %v8245_v49 }
 0x189   : > { %6926 = vmatmul.msk.bf16.gmra.mxu1 %vm325_vm1, %v2402_v32  ;;  %v2721_v12 = vrot.slane %v2719_v0, 5  ;;  %v2738_v32 = vshrl.u32 %v8300_v58, 16  ;;  %v2621_v0 = vunpack.c.l.b16 %v8300_v58 }
 0x18a   : > { %v1694_v26 = vpop.f32.mrf.mxu2  ;;  %v1704_v53 = vadd.f32 %v1691_v42, %v1644_v7  ;;  %v2726_v42 = vrot.slane %v2724_v15, 4  ;;  %v8316_v7 = vld [vmem:[%s7427_s7 + $0x1d8] sm:$0xf] }
 0x18b   : > { %v1764_v57 = vpop.f32.mrf.mxu3  ;;  %v2722_v16 = vsel %vm7446_vm4, %v2717_v31, %v2721_v12  ;;  %v2740_v36 = vrot.slane %v2738_v32, 4  ;;  %v2752_v35 = vshrl.u32 %v8316_v7, 16  ;;  %v2755_v20 = vshll.u32 %v8316_v7, 16 }
 0x18c   : > { %v8283_v19 = vadd.f32 %v1764_v57, %v1704_v53  ;;  %v2730_v11 = vor.u32 %v2729_v24, %v2726_v42  ;;  %v2864_v55 = vpack.c.b16 %v2621_v0, %v2620_v9 }
 0x18d   : > { %v1456_v38 = vpop.f32.mrf.mxu0  ;;  %v2744_v57 = vor.u32 %v2743_v45, %v2740_v36  ;;  %v2757_v59 = vrot.slane %v2755_v20, 5  ;;  %v2622_v20 = vunpack.c.l.b16 %v8316_v7 }
 0x18e   : > { %v1467_v13 = vadd.f32 %v1456_v38, %v8148_v10  ;;  %v1636_v22 = vpop.f32.mrf.mxu1  ;;  %v2795_v10 = vunpack.c.l.b16 %v2694_v48  ;;  %v2731_v63 = vrot.slane %v2730_v11, 4 }
 0x18f   : > { %v2745_v47 = vrot.slane %v2744_v57, 4 }
 0x190   : > { %v1645_v49 = vadd.f32 %v1634_v46, %v1467_v13  ;;  %6921 = vmatmul.msk.bf16.gmra.mxu0 %vm325_vm1, %v2224_v54  ;;  %6936 = vmatmul.msk.bf16.gmra.mxu3 %vm325_vm1, %v2535_v37  ;;  %v2803_v29 = vpack.c.b16 %v2796_v34, %v2795_v10  ;;  %v2797_v46 = vunpack.c.l.b16 %v2722_v16  ;;  %v2747_v54 = vshll.u32 %v6946_v18, 16 }
 0x192   : > { %v1696_v51 = vpop.f32.mrf.mxu2  ;;  %v1705_v52 = vadd.f32 %v1694_v26, %v1645_v49  ;;  %v2625_v26 = vpack.c.b16 %v2618_v39, %v2617_v33  ;;  %v2936_v6 = vpack.c.b16 %v2797_v46, %v2796_v34  ;;  %v2749_v39 = vrot.slane %v2747_v54, 5  ;;  %v8332_v34 = vld [vmem:[%s7427_s7 + $0x1e0] sm:$0xf] }
 0x193   : > { %v1767_v61 = vpop.f32.mrf.mxu3  ;;  %v2769_v8 = vshll.u32 %v8332_v34, 16  ;;  %v2623_v23 = vunpack.c.l.b16 %v8332_v34 }
 0x194   : > { %v8305_v25 = vadd.f32 %v1767_v61, %v1705_v52  ;;  %v2750_v61 = vsel %vm7446_vm4, %v2745_v47, %v2749_v39 }
 0x195   : > { %v1458_v28 = vpop.f32.mrf.mxu0  ;;  %v2799_v32 = vunpack.c.l.b16 %v2750_v61  ;;  %v2771_v11 = vrot.slane %v2769_v8, 5  ;;  %v8380_v8 = vld [vmem:[%s7427_s7 + $0x200] sm:$0xf] }
 0x196   : > { %v1468_v21 = vadd.f32 %v1458_v28, %v8162_v40  ;;  %v2023_v3 = vpop.f32.mrf.mxu1  ;;  %v2735_v40 = vrot.slane %v2733_v14, 5 }
 0x197   : > { %6966 = vmatmul.msk.bf16.vlgmr.msra.gmra.mxu2 %vm325_vm1, %v2863_v27  ;;  %v2766_v27 = vshrl.u32 %v8332_v34, 16 }
 0x198   : > { %v1646_v17 = vadd.f32 %v1636_v22, %v1468_v21  ;;  %v2736_v48 = vsel %vm7446_vm4, %v2731_v63, %v2735_v40  ;;  %v2754_v22 = vrot.slane %v2752_v35, 4 }
 0x199   : > { %6961 = vmatmul.msk.bf16.vlgmr.msra.gmra.mxu1 %vm325_vm1, %v2803_v29  ;;  %v2798_v15 = vunpack.c.l.b16 %v2736_v48 }
 0x19a   : > { %v2083_v41 = vpop.f32.mrf.mxu2  ;;  %v1706_v43 = vadd.f32 %v1696_v51, %v1646_v17  ;;  %v2758_v51 = vor.u32 %v2757_v59, %v2754_v22  ;;  %v6950_v17 = vld [vmem:[%s7427_s7 + $0x1e4] sm:$0x1]  ;;  %v6952_v22 = vld [vmem:[%s7427_s7 + $0x1ec] sm:$0x1] }
 0x19b   : > { %v1769_v2 = vpop.f32.mrf.mxu3  ;;  %v2804_v24 = vpack.c.b16 %v2798_v15, %v2797_v46  ;;  %v8347_v46 = vld [vmem:[%s7427_s7 + $0x1e8] sm:$0xf]  ;;  %v2775_v18 = vshll.u32 %v6950_v17, 16 }
 0x19c   : > { %v8319_v53 = vadd.f32 %v1769_v2, %v1706_v43  ;;  %v2759_v4 = vrot.slane %v2758_v51, 4  ;;  %v2780_v2 = vshrl.u32 %v8347_v46, 16 }
 0x19d   : > { %v1845_v50 = vpop.f32.mrf.mxu0 }
 0x19e   : > { %v1865_v37 = vadd.f32 %v1845_v50, %v8179_v1  ;;  %v2025_v38 = vpop.f32.mrf.mxu1  ;;  %v6948_v1 = vld [vmem:[%s7427_s7 + $0x1dc] sm:$0x1] }
 0x19f   : > { %v2761_v52 = vshll.u32 %v6948_v1, 16 }
 0x1a0   : > { %v2043_v13 = vadd.f32 %v2023_v3, %v1865_v37  ;;  %6956 = vmatmul.msk.bf16.vlgmr.msra.gmra.mxu0 %vm325_vm1, %v2625_v26  ;;  %6971 = vmatmul.msk.bf16.vlgmr.msra.gmra.mxu3 %vm325_vm1, %v2936_v6  ;;  %v2768_v3 = vrot.slane %v2766_v27, 4  ;;  %v2783_v26 = vshll.u32 %v8347_v46, 16  ;;  %v2777_v37 = vrot.slane %v2775_v18, 5  ;;  %v6954_v27 = vld [vmem:[%s7427_s7 + $0x1f4] sm:$0x1] }
 0x1a1   : > { %v2763_v21 = vrot.slane %v2761_v52, 5 }
 0x1a2   : > { %v2085_v49 = vpop.f32.mrf.mxu2  ;;  %v2103_v10 = vadd.f32 %v2083_v41, %v2043_v13  ;;  %v2937_v41 = vpack.c.b16 %v2799_v32, %v2798_v15  ;;  %v2772_v40 = vor.u32 %v2771_v11, %v2768_v3  ;;  %v2785_v48 = vrot.slane %v2783_v26, 5 }
 0x1a3   : > { %v2156_v31 = vpop.f32.mrf.mxu3  ;;  %v2764_v43 = vsel %vm7446_vm4, %v2759_v4, %v2763_v21  ;;  %v2865_v15 = vpack.c.b16 %v2623_v23, %v2622_v20  ;;  %v2929_v3 = vshll.u32 %v6954_v27, 16  ;;  %v3100_v11 = vshrl.u32 %v8380_v8, 16 }
 0x1a4   : > { %v8336_v12 = vadd.f32 %v2156_v31, %v2103_v10  ;;  %v2800_v57 = vunpack.c.l.b16 %v2764_v43  ;;  %v2773_v54 = vrot.slane %v2772_v40, 4  ;;  %v2789_v31 = vshll.u32 %v6952_v22, 16  ;;  %v7036_v22 = vld [vmem:[%s9855_s1 + $0x28] sm:$0x3] }
 0x1a5   : > { %v1847_v42 = vpop.f32.mrf.mxu0 }
 0x1a6   : > { %v1866_v28 = vadd.f32 %v1847_v42, %v8192_v62  ;;  %v2028_v29 = vpop.f32.mrf.mxu1  ;;  %v2626_v62 = vpack.c.b16 %v2620_v9, %v2619_v30  ;;  %v8361_v30 = vld [vmem:[%s7427_s7 + $0x1f0] sm:$0xf]  ;;  %v2805_v1 = vpack.c.b16 %v2800_v57, %v2799_v32 }
 0x1a7   : > { %6967 = vmatmul.msk.bf16.gmra.mxu2 %vm325_vm1, %v2864_v55  ;;  %v2920_v13 = vshrl.u32 %v8361_v30, 16  ;;  %v2923_v7 = vshll.u32 %v8361_v30, 16  ;;  %v2862_v26 = vunpack.c.l.b16 %v8361_v30  ;;  %v7046_v30 = vld [vmem:[%s9855_s1 + $0x68] sm:$0x3] }
 0x1a8   : > { %v2044_v16 = vadd.f32 %v2025_v38, %v1866_v28  ;;  %v2782_v38 = vrot.slane %v2780_v2, 4  ;;  %v8383_v28 = vld [vmem:[%s7427_s7 + $0x1f8] sm:$0xf]  ;;  %v2624_v2 = vunpack.c.l.b16 %v8347_v46  ;;  %v7031_v46 = vld [vmem:[%s9855_s1 + $0x20] sm:$0x3] }
 0x1a9   : > { %6962 = vmatmul.msk.bf16.gmra.mxu1 %vm325_vm1, %v2804_v24  ;;  %v2922_v52 = vrot.slane %v2920_v13, 4  ;;  %v2925_v42 = vrot.slane %v2923_v7, 5  ;;  %v8417_v13 = vld [vmem:[%s7427_s7 + $0x208] sm:$0xf]  ;;  %v6976_v7 = vld [vmem:[%s7427_s7 + $0x1fc] sm:$0x1] }
 0x1aa   : > { %v2088_v14 = vpop.f32.mrf.mxu2  ;;  %v2104_v33 = vadd.f32 %v2085_v49, %v2044_v16  ;;  %v2778_v49 = vsel %vm7446_vm4, %v2773_v54, %v2777_v37  ;;  %v2786_v10 = vor.u32 %v2785_v48, %v2782_v38  ;;  %v2791_v16 = vrot.slane %v2789_v31, 5 }
 0x1ab   : > { %v2158_v36 = vpop.f32.mrf.mxu3  ;;  %v8376_v61 = vunpack.c.l.b16 %v2778_v49  ;;  %v3450_v38 = vsel %vm338_vm0, %v7031_v46, 0  ;;  %v3761_v48 = vsel %vm338_vm0, %v7046_v30, 0 }
 0x1ac   : > { %v8349_v45 = vadd.f32 %v2158_v36, %v2104_v33  ;;  %v3086_v33 = vshrl.u32 %v8383_v28, 16  ;;  %v2627_v36 = vpack.c.b16 %v2622_v20, %v2621_v0  ;;  %3459 = vmatpush.bf16.msra.mxu0 %v3450_v38  ;;  %3770 = vmatpush.bf16.msra.mxu3 %v3761_v48  ;;  %v8457_v48 = vld [vmem:[%s7427_s7 + $0x218] sm:$0xf] }
 0x1ad   : > { %v1850_v63 = vpop.f32.mrf.mxu0 }
 0x1ae   : > { %v1867_v6 = vadd.f32 %v1850_v63, %v8213_v56  ;;  %v2030_v35 = vpop.f32.mrf.mxu1  ;;  %v3089_v63 = vshll.u32 %v8383_v28, 16  ;;  %v3088_v0 = vrot.slane %v3086_v33, 4 }
 0x1b0   : > { %v2045_v50 = vadd.f32 %v2028_v29, %v1867_v6  ;;  %6957 = vmatmul.msk.bf16.gmra.mxu0 %vm325_vm1, %v2626_v62  ;;  %6972 = vmatmul.msk.bf16.gmra.mxu3 %vm325_vm1, %v2937_v41  ;;  %v2787_v29 = vrot.slane %v2786_v10, 4  ;;  %v2938_v62 = vpack.c.b16 %v8376_v61, %v2800_v57  ;;  %v3091_v54 = vrot.slane %v3089_v63, 5 }
 0x1b2   : > { %v2090_v9 = vpop.f32.mrf.mxu2  ;;  %v2105_v56 = vadd.f32 %v2088_v14, %v2045_v50  ;;  %v3103_v14 = vshll.u32 %v8380_v8, 16  ;;  %v2792_v43 = vsel %vm7446_vm4, %v2787_v29, %v2791_v16  ;;  %v3102_v50 = vrot.slane %v3100_v11, 4 }
 0x1b3   : > { %v2161_v59 = vpop.f32.mrf.mxu3  ;;  %v8402_v57 = vunpack.c.l.b16 %v2792_v43  ;;  %v8438_v43 = vld [vmem:[%s7427_s7 + $0x210] sm:$0xf] }
 0x1b4   : > { %v8370_v47 = vadd.f32 %v2161_v59, %v2105_v56  ;;  %v3105_v58 = vrot.slane %v3103_v14, 5  ;;  %v3131_v34 = vshll.u32 %v8438_v43, 16 }
 0x1b5   : > { %v1852_v39 = vpop.f32.mrf.mxu0  ;;  %v2806_v10 = vpack.c.b16 %v8402_v57, %v8376_v61 }
 0x1b6   : > { %v1868_v55 = vadd.f32 %v1852_v39, %v8232_v5  ;;  %v2033_v51 = vpop.f32.mrf.mxu1  ;;  %v2926_v5 = vor.u32 %v2925_v42, %v2922_v52  ;;  %v6978_v39 = vld [vmem:[%s7427_s7 + $0x204] sm:$0x1]  ;;  %v3117_v52 = vshll.u32 %v8417_v13, 16  ;;  %v3092_v42 = vor.u32 %v3091_v54, %v3088_v0 }
 0x1b7   : > { %6968 = vmatmul.msk.bf16.gmra.mxu2 %vm325_vm1, %v2865_v15  ;;  %v2866_v15 = vpack.c.b16 %v2862_v26, %v2624_v2  ;;  %v3106_v16 = vor.u32 %v3105_v58, %v3102_v50 }
 0x1b8   : > { %v2046_v24 = vadd.f32 %v2030_v35, %v1868_v55  ;;  %v2927_v6 = vrot.slane %v2926_v5, 4  ;;  %v2931_v35 = vrot.slane %v2929_v3, 5  ;;  %v3093_v3 = vrot.slane %v3092_v42, 4 }
 0x1b9   : > { %6963 = vmatmul.msk.bf16.gmra.mxu1 %vm325_vm1, %v2805_v1  ;;  %v3628_v1 = vsel %vm338_vm0, %v7036_v22, 0  ;;  %v6982_v22 = vld [vmem:[%s7427_s7 + $0x214] sm:$0x1] }
 0x1ba   : > { %v2093_v32 = vpop.f32.mrf.mxu2  ;;  %v2106_v4 = vadd.f32 %v2090_v9, %v2046_v24  ;;  %v2932_v31 = vsel %vm7446_vm4, %v2927_v6, %v2931_v35  ;;  %3637 = vmatpush.bf16.msra.mxu1 %v3628_v1  ;;  %v3095_v24 = vshll.u32 %v6976_v7, 16  ;;  %v3137_v42 = vshll.u32 %v6982_v22, 16 }
 0x1bb   : > { %v2163_v21 = vpop.f32.mrf.mxu3 }
 0x1bc   : > { %v8389_v17 = vadd.f32 %v2163_v21, %v2106_v4  ;;  %v2935_v4 = vunpack.c.l.b16 %v2932_v31  ;;  %v3119_v21 = vrot.slane %v3117_v52, 5  ;;  %v3097_v11 = vrot.slane %v3095_v24, 5 }
 0x1bd   : > { %v1855_v41 = vpop.f32.mrf.mxu0  ;;  %v3145_v31 = vshll.u32 %v8457_v48, 16  ;;  %v3021_v24 = vunpack.c.l.b16 %v8383_v28 }
 0x1be   : > { %v1869_v40 = vadd.f32 %v1855_v41, %v8268_v60  ;;  %v2035_v18 = vpop.f32.mrf.mxu1  ;;  %v7041_v60 = vld [vmem:[%s9855_s1 + $0x60] sm:$0x3]  ;;  %v3098_v6 = vsel %vm7446_vm4, %v3093_v3, %v3097_v11  ;;  %v6984_v3 = vld [vmem:[%s7427_s7 + $0x21c] sm:$0x1] }
 0x1bf   : > { %v3688_v37 = vsel %vm338_vm0, %v7041_v60, 0  ;;  %v3128_v60 = vshrl.u32 %v8438_v43, 16 }
 0x1c0   : > { %v2047_v20 = vadd.f32 %v2033_v51, %v1869_v40  ;;  %6958 = vmatmul.msk.bf16.gmra.mxu0 %vm325_vm1, %v2627_v36  ;;  %6973 = vmatmul.msk.bf16.gmra.mxu3 %vm325_vm1, %v2938_v62  ;;  %v3114_v51 = vshrl.u32 %v8417_v13, 16  ;;  %v3107_v36 = vrot.slane %v3106_v16, 4  ;;  %v2628_v40 = vpack.c.b16 %v2624_v2, %v2623_v23 }
 0x1c1   : > { %3697 = vmatpush.bf16.msra.mxu2 %v3688_v37  ;;  %v3022_v23 = vunpack.c.l.b16 %v8380_v8  ;;  %v3023_v2 = vunpack.c.l.b16 %v8417_v13 }
 0x1c2   : > { %v2095_v9 = vpop.f32.mrf.mxu2  ;;  %v2107_v56 = vadd.f32 %v2093_v32, %v2047_v20  ;;  %v3109_v32 = vshll.u32 %v6978_v39, 16  ;;  %v3116_v5 = vrot.slane %v3114_v51, 4 }
 0x1c3   : > { %v2166_v59 = vpop.f32.mrf.mxu3  ;;  %v3267_v8 = vpack.c.b16 %v3023_v2, %v3022_v23 }
 0x1c4   : > { %v8425_v49 = vadd.f32 %v2166_v59, %v2107_v56  ;;  %v3111_v62 = vrot.slane %v3109_v32, 5  ;;  %v3120_v35 = vor.u32 %v3119_v21, %v3116_v5  ;;  %v3133_v56 = vrot.slane %v3131_v34, 5 }
 0x1c5   : > { %v1857_v55 = vpop.f32.mrf.mxu0  ;;  %v3147_v32 = vrot.slane %v3145_v31, 5 }
 0x1c6   : > { %v1870_v27 = vadd.f32 %v1857_v55, %v8283_v19  ;;  %v2038_v29 = vpop.f32.mrf.mxu1  ;;  %v6980_v19 = vld [vmem:[%s7427_s7 + $0x20c] sm:$0x1]  ;;  %v3112_v20 = vsel %vm7446_vm4, %v3107_v36, %v3111_v62  ;;  %v3121_v30 = vrot.slane %v3120_v35, 4  ;;  %v3024_v35 = vunpack.c.l.b16 %v8438_v43 }
 0x1c7   : > { %6969 = vmatmul.msk.bf16.gmra.mxu2 %vm325_vm1, %v2866_v15  ;;  %v3123_v50 = vshll.u32 %v6980_v19, 16  ;;  %v3200_v46 = vunpack.c.l.b16 %v3112_v20 }
 0x1c8   : > { %v2048_v61 = vadd.f32 %v2035_v18, %v1870_v27  ;;  %v2939_v18 = vpack.c.b16 %v2935_v4, %v8402_v57 }
 0x1c9   : > { %6964 = vmatmul.msk.bf16.gmra.mxu1 %vm325_vm1, %v2806_v10  ;;  %v3125_v54 = vrot.slane %v3123_v50, 5  ;;  %v3142_v10 = vshrl.u32 %v8457_v48, 16  ;;  %v3025_v50 = vunpack.c.l.b16 %v8457_v48 }
 0x1ca   : > { %v2098_v14 = vpop.f32.mrf.mxu2  ;;  %v2108_v33 = vadd.f32 %v2095_v9, %v2048_v61  ;;  %v3130_v9 = vrot.slane %v3128_v60, 4  ;;  %v8473_v61 = vld [vmem:[%s7427_s7 + $0x220] sm:$0xf] }
 0x1cb   : > { %v2168_v41 = vpop.f32.mrf.mxu3  ;;  %v3126_v1 = vsel %vm7446_vm4, %v3121_v30, %v3125_v54  ;;  %v3144_v16 = vrot.slane %v3142_v10, 4  ;;  %v3156_v28 = vshrl.u32 %v8473_v61, 16  ;;  %v3159_v62 = vshll.u32 %v8473_v61, 16 }
 0x1cc   : > { %v8440_v63 = vadd.f32 %v2168_v41, %v2108_v33  ;;  %v3134_v52 = vor.u32 %v3133_v56, %v3130_v9  ;;  %v3268_v43 = vpack.c.b16 %v3025_v50, %v3024_v35 }
 0x1cd   : > { %v1860_v26 = vpop.f32.mrf.mxu0  ;;  %v3148_v41 = vor.u32 %v3147_v32, %v3144_v16  ;;  %v3161_v20 = vrot.slane %v3159_v62, 5  ;;  %v3026_v62 = vunpack.c.l.b16 %v8473_v61 }
 0x1ce   : > { %v1871_v58 = vadd.f32 %v1860_v26, %v8305_v25  ;;  %v2040_v0 = vpop.f32.mrf.mxu1  ;;  %v3199_v25 = vunpack.c.l.b16 %v3098_v6  ;;  %v3135_v21 = vrot.slane %v3134_v52, 4 }
 0x1cf   : > { %v3149_v34 = vrot.slane %v3148_v41, 4 }
 0x1d0   : > { %v2049_v57 = vadd.f32 %v2038_v29, %v1871_v58  ;;  %6959 = vmatmul.msk.bf16.gmra.mxu0 %vm325_vm1, %v2628_v40  ;;  %6974 = vmatmul.msk.bf16.gmra.mxu3 %vm325_vm1, %v2939_v18  ;;  %v3207_v39 = vpack.c.b16 %v3200_v46, %v3199_v25  ;;  %v3201_v29 = vunpack.c.l.b16 %v3126_v1  ;;  %v3151_v40 = vshll.u32 %v6984_v3, 16 }
 0x1d2   : > { %v2100_v37 = vpop.f32.mrf.mxu2  ;;  %v2109_v38 = vadd.f32 %v2098_v14, %v2049_v57  ;;  %v3029_v14 = vpack.c.b16 %v3022_v23, %v3021_v24  ;;  %v3340_v36 = vpack.c.b16 %v3201_v29, %v3200_v46  ;;  %v3153_v23 = vrot.slane %v3151_v40, 5  ;;  %v8489_v46 = vld [vmem:[%s7427_s7 + $0x228] sm:$0xf] }
 0x1d3   : > { %v2171_v7 = vpop.f32.mrf.mxu3  ;;  %v3173_v22 = vshll.u32 %v8489_v46, 16  ;;  %v3027_v13 = vunpack.c.l.b16 %v8489_v46 }
 0x1d4   : > { %v8462_v59 = vadd.f32 %v2171_v7, %v2109_v38  ;;  %v3154_v7 = vsel %vm7446_vm4, %v3149_v34, %v3153_v23 }
 0x1d5   : > { %v1862_v15 = vpop.f32.mrf.mxu0  ;;  %v3203_v10 = vunpack.c.l.b16 %v3154_v7  ;;  %v3175_v52 = vrot.slane %v3173_v22, 5  ;;  %v8537_v22 = vld [vmem:[%s7427_s7 + $0x248] sm:$0xf] }
 0x1d6   : > { %v1872_v55 = vadd.f32 %v1862_v15, %v8319_v53  ;;  %v2427_v51 = vpop.f32.mrf.mxu1  ;;  %v3139_v53 = vrot.slane %v3137_v42, 5 }
 0x1d7   : > { %7004 = vmatmul.msk.bf16.vlgmr.msrb.gmra.mxu2 %vm325_vm1, %v3267_v8  ;;  %v3170_v8 = vshrl.u32 %v8489_v46, 16 }
 0x1d8   : > { %v2050_v27 = vadd.f32 %v2040_v0, %v1872_v55  ;;  %v3140_v6 = vsel %vm7446_vm4, %v3135_v21, %v3139_v53  ;;  %v3158_v0 = vrot.slane %v3156_v28, 4 }
 0x1d9   : > { %6999 = vmatmul.msk.bf16.vlgmr.msrb.gmra.mxu1 %vm325_vm1, %v3207_v39  ;;  %v3202_v60 = vunpack.c.l.b16 %v3140_v6 }
 0x1da   : > { %v2487_v4 = vpop.f32.mrf.mxu2  ;;  %v2110_v5 = vadd.f32 %v2100_v37, %v2050_v27  ;;  %v3162_v37 = vor.u32 %v3161_v20, %v3158_v0  ;;  %v6988_v27 = vld [vmem:[%s7427_s7 + $0x22c] sm:$0x1]  ;;  %v6990_v0 = vld [vmem:[%s7427_s7 + $0x234] sm:$0x1] }
 0x1db   : > { %v2173_v11 = vpop.f32.mrf.mxu3  ;;  %v3208_v56 = vpack.c.b16 %v3202_v60, %v3201_v29  ;;  %v8504_v29 = vld [vmem:[%s7427_s7 + $0x230] sm:$0xf]  ;;  %v3179_v3 = vshll.u32 %v6988_v27, 16 }
 0x1dc   : > { %v8476_v33 = vadd.f32 %v2173_v11, %v2110_v5  ;;  %v3163_v31 = vrot.slane %v3162_v37, 4  ;;  %v3184_v11 = vshrl.u32 %v8504_v29, 16 }
 0x1dd   : > { %v2249_v19 = vpop.f32.mrf.mxu0 }
 0x1de   : > { %v2269_v18 = vadd.f32 %v2249_v19, %v8336_v12  ;;  %v2429_v26 = vpop.f32.mrf.mxu1  ;;  %v6986_v12 = vld [vmem:[%s7427_s7 + $0x224] sm:$0x1] }
 0x1df   : > { %v3165_v38 = vshll.u32 %v6986_v12, 16 }
 0x1e0   : > { %v2447_v58 = vadd.f32 %v2427_v51, %v2269_v18  ;;  %6994 = vmatmul.msk.bf16.vlgmr.msrb.gmra.mxu0 %vm325_vm1, %v3029_v14  ;;  %7009 = vmatmul.msk.bf16.vlgmr.msrb.gmra.mxu3 %vm325_vm1, %v3340_v36  ;;  %v3172_v51 = vrot.slane %v3170_v8, 4  ;;  %v3187_v14 = vshll.u32 %v8504_v29, 16  ;;  %v3181_v18 = vrot.slane %v3179_v3, 5  ;;  %v6992_v8 = vld [vmem:[%s7427_s7 + $0x23c] sm:$0x1] }
 0x1e1   : > { %v3167_v55 = vrot.slane %v3165_v38, 5 }
 0x1e2   : > { %v2489_v57 = vpop.f32.mrf.mxu2  ;;  %v2507_v25 = vadd.f32 %v2487_v4, %v2447_v58  ;;  %v3341_v4 = vpack.c.b16 %v3203_v10, %v3202_v60  ;;  %v3176_v53 = vor.u32 %v3175_v52, %v3172_v51  ;;  %v3189_v6 = vrot.slane %v3187_v14, 5 }
 0x1e3   : > { %v2560_v30 = vpop.f32.mrf.mxu3  ;;  %v3168_v5 = vsel %vm7446_vm4, %v3163_v31, %v3167_v55  ;;  %v3269_v60 = vpack.c.b16 %v3027_v13, %v3026_v62  ;;  %v3333_v51 = vshll.u32 %v6992_v8, 16  ;;  %v3504_v52 = vshrl.u32 %v8537_v22, 16 }
 0x1e4   : > { %v8493_v54 = vadd.f32 %v2560_v30, %v2507_v25  ;;  %v3204_v41 = vunpack.c.l.b16 %v3168_v5  ;;  %v3177_v40 = vrot.slane %v3176_v53, 4  ;;  %v3193_v30 = vshll.u32 %v6990_v0, 16  ;;  %v7074_v0 = vld [vmem:[%s9855_s1 + $0x2a] sm:$0x3] }
 0x1e5   : > { %v2251_v9 = vpop.f32.mrf.mxu0 }
 0x1e6   : > { %v2270_v15 = vadd.f32 %v2251_v9, %v8349_v45  ;;  %v2432_v39 = vpop.f32.mrf.mxu1  ;;  %v3030_v45 = vpack.c.b16 %v3024_v35, %v3023_v2  ;;  %v8518_v2 = vld [vmem:[%s7427_s7 + $0x238] sm:$0xf]  ;;  %v3209_v12 = vpack.c.b16 %v3204_v41, %v3203_v10 }
 0x1e7   : > { %7005 = vmatmul.msk.bf16.gmra.mxu2 %vm325_vm1, %v3268_v43  ;;  %v3324_v58 = vshrl.u32 %v8518_v2, 16  ;;  %v3327_v61 = vshll.u32 %v8518_v2, 16  ;;  %v3266_v14 = vunpack.c.l.b16 %v8518_v2  ;;  %v7084_v2 = vld [vmem:[%s9855_s1 + $0x6a] sm:$0x3] }
 0x1e8   : > { %v2448_v1 = vadd.f32 %v2429_v26, %v2270_v15  ;;  %v3186_v26 = vrot.slane %v3184_v11, 4  ;;  %v8540_v15 = vld [vmem:[%s7427_s7 + $0x240] sm:$0xf]  ;;  %v3028_v11 = vunpack.c.l.b16 %v8504_v29 }
 0x1e9   : > { %7000 = vmatmul.msk.bf16.gmra.mxu1 %vm325_vm1, %v3208_v56  ;;  %v3326_v38 = vrot.slane %v3324_v58, 4  ;;  %v3329_v9 = vrot.slane %v3327_v61, 5  ;;  %v7069_v29 = vld [vmem:[%s9855_s1 + $0x22] sm:$0x3]  ;;  %v8574_v58 = vld [vmem:[%s7427_s7 + $0x250] sm:$0xf] }
 0x1ea   : > { %v2492_v42 = vpop.f32.mrf.mxu2  ;;  %v2508_v24 = vadd.f32 %v2489_v57, %v2448_v1  ;;  %v3182_v57 = vsel %vm7446_vm4, %v3177_v40, %v3181_v18  ;;  %v3190_v25 = vor.u32 %v3189_v6, %v3186_v26  ;;  %v3195_v1 = vrot.slane %v3193_v30, 5  ;;  %v7014_v61 = vld [vmem:[%s7427_s7 + $0x244] sm:$0x1] }
 0x1eb   : > { %v2562_v16 = vpop.f32.mrf.mxu3  ;;  %v8533_v7 = vunpack.c.l.b16 %v3182_v57  ;;  %v3854_v26 = vsel %vm338_vm0, %v7069_v29, 0  ;;  %v4165_v6 = vsel %vm338_vm0, %v7084_v2, 0 }
 0x1ec   : > { %v8506_v32 = vadd.f32 %v2562_v16, %v2508_v24  ;;  %v3490_v24 = vshrl.u32 %v8540_v15, 16  ;;  %v3031_v16 = vpack.c.b16 %v3026_v62, %v3025_v50  ;;  %3863 = vmatpush.bf16.msrb.mxu0 %v3854_v26  ;;  %4174 = vmatpush.bf16.msrb.mxu3 %v4165_v6  ;;  %v8614_v6 = vld [vmem:[%s7427_s7 + $0x260] sm:$0xf] }
 0x1ed   : > { %v2254_v21 = vpop.f32.mrf.mxu0 }
 0x1ee   : > { %v2271_v36 = vadd.f32 %v2254_v21, %v8370_v47  ;;  %v2434_v28 = vpop.f32.mrf.mxu1  ;;  %v3493_v21 = vshll.u32 %v8540_v15, 16  ;;  %v3492_v50 = vrot.slane %v3490_v24, 4 }
 0x1f0   : > { %v2449_v19 = vadd.f32 %v2432_v39, %v2271_v36  ;;  %6995 = vmatmul.msk.bf16.gmra.mxu0 %vm325_vm1, %v3030_v45  ;;  %7010 = vmatmul.msk.bf16.gmra.mxu3 %vm325_vm1, %v3341_v4  ;;  %v3191_v39 = vrot.slane %v3190_v25, 4  ;;  %v3342_v45 = vpack.c.b16 %v8533_v7, %v3204_v41  ;;  %v3495_v40 = vrot.slane %v3493_v21, 5 }
 0x1f2   : > { %v2494_v35 = vpop.f32.mrf.mxu2  ;;  %v2509_v47 = vadd.f32 %v2492_v42, %v2449_v19  ;;  %v3507_v42 = vshll.u32 %v8537_v22, 16  ;;  %v3196_v5 = vsel %vm7446_vm4, %v3191_v39, %v3195_v1  ;;  %v3506_v19 = vrot.slane %v3504_v52, 4 }
 0x1f3   : > { %v2565_v20 = vpop.f32.mrf.mxu3  ;;  %v8559_v41 = vunpack.c.l.b16 %v3196_v5  ;;  %v8595_v5 = vld [vmem:[%s7427_s7 + $0x258] sm:$0xf] }
 0x1f4   : > { %v8527_v34 = vadd.f32 %v2565_v20, %v2509_v47  ;;  %v3509_v48 = vrot.slane %v3507_v42, 5  ;;  %v3535_v46 = vshll.u32 %v8595_v5, 16 }
 0x1f5   : > { %v2256_v23 = vpop.f32.mrf.mxu0  ;;  %v3210_v25 = vpack.c.b16 %v8559_v41, %v8533_v7 }
 0x1f6   : > { %v2272_v43 = vadd.f32 %v2256_v23, %v8389_v17  ;;  %v2437_v37 = vpop.f32.mrf.mxu1  ;;  %v3330_v17 = vor.u32 %v3329_v9, %v3326_v38  ;;  %v7016_v23 = vld [vmem:[%s7427_s7 + $0x24c] sm:$0x1]  ;;  %v3521_v38 = vshll.u32 %v8574_v58, 16  ;;  %v3496_v9 = vor.u32 %v3495_v40, %v3492_v50 }
 0x1f7   : > { %7006 = vmatmul.msk.bf16.gmra.mxu2 %vm325_vm1, %v3269_v60  ;;  %v3270_v60 = vpack.c.b16 %v3266_v14, %v3028_v11  ;;  %v3510_v1 = vor.u32 %v3509_v48, %v3506_v19 }
 0x1f8   : > { %v2450_v56 = vadd.f32 %v2434_v28, %v2272_v43  ;;  %v3331_v36 = vrot.slane %v3330_v17, 4  ;;  %v3335_v28 = vrot.slane %v3333_v51, 5  ;;  %v3497_v51 = vrot.slane %v3496_v9, 4 }
 0x1f9   : > { %7001 = vmatmul.msk.bf16.gmra.mxu1 %vm325_vm1, %v3209_v12  ;;  %v4032_v12 = vsel %vm338_vm0, %v7074_v0, 0  ;;  %v7020_v0 = vld [vmem:[%s7427_s7 + $0x25c] sm:$0x1] }
 0x1fa   : > { %v2497_v10 = vpop.f32.mrf.mxu2  ;;  %v2510_v31 = vadd.f32 %v2494_v35, %v2450_v56  ;;  %v3336_v30 = vsel %vm7446_vm4, %v3331_v36, %v3335_v28  ;;  %4041 = vmatpush.bf16.msrb.mxu1 %v4032_v12  ;;  %v3499_v56 = vshll.u32 %v7014_v61, 16  ;;  %v3541_v9 = vshll.u32 %v7020_v0, 16 }
 0x1fb   : > { %v2567_v55 = vpop.f32.mrf.mxu3 }
 0x1fc   : > { %v8546_v27 = vadd.f32 %v2567_v55, %v2510_v31  ;;  %v3339_v31 = vunpack.c.l.b16 %v3336_v30  ;;  %v3523_v55 = vrot.slane %v3521_v38, 5  ;;  %v3501_v52 = vrot.slane %v3499_v56, 5 }
 0x1fd   : > { %v2259_v4 = vpop.f32.mrf.mxu0  ;;  %v3549_v30 = vshll.u32 %v8614_v6, 16  ;;  %v3425_v56 = vunpack.c.l.b16 %v8540_v15 }
 0x1fe   : > { %v2273_v53 = vadd.f32 %v2259_v4, %v8425_v49  ;;  %v2439_v3 = vpop.f32.mrf.mxu1  ;;  %v7079_v49 = vld [vmem:[%s9855_s1 + $0x62] sm:$0x3]  ;;  %v3502_v36 = vsel %vm7446_vm4, %v3497_v51, %v3501_v52  ;;  %v7022_v51 = vld [vmem:[%s7427_s7 + $0x264] sm:$0x1] }
 0x1ff   : > { %v4092_v18 = vsel %vm338_vm0, %v7079_v49, 0  ;;  %v3532_v49 = vshrl.u32 %v8595_v5, 16 }
 0x200   : > { %v2451_v62 = vadd.f32 %v2437_v37, %v2273_v53  ;;  %6996 = vmatmul.msk.bf16.gmra.mxu0 %vm325_vm1, %v3031_v16  ;;  %7011 = vmatmul.msk.bf16.gmra.mxu3 %vm325_vm1, %v3342_v45  ;;  %v3518_v37 = vshrl.u32 %v8574_v58, 16  ;;  %v3511_v16 = vrot.slane %v3510_v1, 4  ;;  %v3032_v53 = vpack.c.b16 %v3028_v11, %v3027_v13 }
 0x201   : > { %4101 = vmatpush.bf16.msrb.mxu2 %v4092_v18  ;;  %v3426_v13 = vunpack.c.l.b16 %v8537_v22  ;;  %v3427_v11 = vunpack.c.l.b16 %v8574_v58 }
 0x202   : > { %v2499_v35 = vpop.f32.mrf.mxu2  ;;  %v2511_v47 = vadd.f32 %v2497_v10, %v2451_v62  ;;  %v3513_v10 = vshll.u32 %v7016_v23, 16  ;;  %v3520_v17 = vrot.slane %v3518_v37, 4 }
 0x203   : > { %v2570_v20 = vpop.f32.mrf.mxu3  ;;  %v3671_v22 = vpack.c.b16 %v3427_v11, %v3426_v13 }
 0x204   : > { %v8582_v57 = vadd.f32 %v2570_v20, %v2511_v47  ;;  %v3515_v45 = vrot.slane %v3513_v10, 5  ;;  %v3524_v28 = vor.u32 %v3523_v55, %v3520_v17  ;;  %v3537_v47 = vrot.slane %v3535_v46, 5 }
 0x205   : > { %v2261_v43 = vpop.f32.mrf.mxu0  ;;  %v3551_v10 = vrot.slane %v3549_v30, 5 }
 0x206   : > { %v2274_v8 = vadd.f32 %v2261_v43, %v8440_v63  ;;  %v2442_v39 = vpop.f32.mrf.mxu1  ;;  %v7018_v63 = vld [vmem:[%s7427_s7 + $0x254] sm:$0x1]  ;;  %v3516_v62 = vsel %vm7446_vm4, %v3511_v16, %v3515_v45  ;;  %v3525_v2 = vrot.slane %v3524_v28, 4  ;;  %v3428_v28 = vunpack.c.l.b16 %v8595_v5 }
 0x207   : > { %7007 = vmatmul.msk.bf16.gmra.mxu2 %vm325_vm1, %v3270_v60  ;;  %v3527_v19 = vshll.u32 %v7018_v63, 16  ;;  %v3604_v29 = vunpack.c.l.b16 %v3516_v62 }
 0x208   : > { %v2452_v7 = vadd.f32 %v2439_v3, %v2274_v8  ;;  %v3343_v3 = vpack.c.b16 %v3339_v31, %v8559_v41 }
 0x209   : > { %7002 = vmatmul.msk.bf16.gmra.mxu1 %vm325_vm1, %v3210_v25  ;;  %v3529_v40 = vrot.slane %v3527_v19, 5  ;;  %v3546_v25 = vshrl.u32 %v8614_v6, 16  ;;  %v3429_v19 = vunpack.c.l.b16 %v8614_v6 }
 0x20a   : > { %v2502_v42 = vpop.f32.mrf.mxu2  ;;  %v2512_v24 = vadd.f32 %v2499_v35, %v2452_v7  ;;  %v3534_v35 = vrot.slane %v3532_v49, 4  ;;  %v8630_v7 = vld [vmem:[%s7427_s7 + $0x268] sm:$0xf] }
 0x20b   : > { %v2572_v4 = vpop.f32.mrf.mxu3  ;;  %v3530_v12 = vsel %vm7446_vm4, %v3525_v2, %v3529_v40  ;;  %v3548_v1 = vrot.slane %v3546_v25, 4  ;;  %v3560_v15 = vshrl.u32 %v8630_v7, 16  ;;  %v3563_v45 = vshll.u32 %v8630_v7, 16 }
 0x20c   : > { %v8597_v21 = vadd.f32 %v2572_v4, %v2512_v24  ;;  %v3538_v38 = vor.u32 %v3537_v47, %v3534_v35  ;;  %v3672_v5 = vpack.c.b16 %v3429_v19, %v3428_v28 }
 0x20d   : > { %v2264_v14 = vpop.f32.mrf.mxu0  ;;  %v3552_v4 = vor.u32 %v3551_v10, %v3548_v1  ;;  %v3565_v62 = vrot.slane %v3563_v45, 5  ;;  %v3430_v45 = vunpack.c.l.b16 %v8630_v7 }
 0x20e   : > { %v2275_v48 = vadd.f32 %v2264_v14, %v8462_v59  ;;  %v2444_v50 = vpop.f32.mrf.mxu1  ;;  %v3603_v59 = vunpack.c.l.b16 %v3502_v36  ;;  %v3539_v55 = vrot.slane %v3538_v38, 4 }
 0x20f   : > { %v3553_v46 = vrot.slane %v3552_v4, 4 }
 0x210   : > { %v2453_v41 = vadd.f32 %v2442_v39, %v2275_v48  ;;  %6997 = vmatmul.msk.bf16.gmra.mxu0 %vm325_vm1, %v3032_v53  ;;  %7012 = vmatmul.msk.bf16.gmra.mxu3 %vm325_vm1, %v3343_v3  ;;  %v3611_v23 = vpack.c.b16 %v3604_v29, %v3603_v59  ;;  %v3605_v39 = vunpack.c.l.b16 %v3530_v12  ;;  %v3555_v53 = vshll.u32 %v7022_v51, 16 }
 0x212   : > { %v2504_v18 = vpop.f32.mrf.mxu2  ;;  %v2513_v26 = vadd.f32 %v2502_v42, %v2453_v41  ;;  %v3433_v42 = vpack.c.b16 %v3426_v13, %v3425_v56  ;;  %v3744_v16 = vpack.c.b16 %v3605_v39, %v3604_v29  ;;  %v3557_v13 = vrot.slane %v3555_v53, 5  ;;  %v8646_v29 = vld [vmem:[%s7427_s7 + $0x270] sm:$0xf] }
 0x213   : > { %v2575_v61 = vpop.f32.mrf.mxu3  ;;  %v3577_v0 = vshll.u32 %v8646_v29, 16  ;;  %v3431_v58 = vunpack.c.l.b16 %v8646_v29 }
 0x214   : > { %v8619_v20 = vadd.f32 %v2575_v61, %v2513_v26  ;;  %v3558_v61 = vsel %vm7446_vm4, %v3553_v46, %v3557_v13 }
 0x215   : > { %v2266_v60 = vpop.f32.mrf.mxu0  ;;  %v3607_v25 = vunpack.c.l.b16 %v3558_v61  ;;  %v3579_v38 = vrot.slane %v3577_v0, 5  ;;  %v8694_v0 = vld [vmem:[%s7427_s7 + $0x290] sm:$0xf] }
 0x216   : > { %v2276_v43 = vadd.f32 %v2266_v60, %v8476_v33  ;;  %v2831_v37 = vpop.f32.mrf.mxu1  ;;  %v3543_v33 = vrot.slane %v3541_v9, 5 }
 0x217   : > { %7042 = vmatmul.msk.bf16.vlgmr.msra.gmra.mxu2 %vm325_vm1, %v3671_v22  ;;  %v3574_v22 = vshrl.u32 %v8646_v29, 16 }
 0x218   : > { %v2454_v8 = vadd.f32 %v2444_v50, %v2276_v43  ;;  %v3544_v36 = vsel %vm7446_vm4, %v3539_v55, %v3543_v33  ;;  %v3562_v50 = vrot.slane %v3560_v15, 4 }
 0x219   : > { %7037 = vmatmul.msk.bf16.vlgmr.msra.gmra.mxu1 %vm325_vm1, %v3611_v23  ;;  %v3606_v49 = vunpack.c.l.b16 %v3544_v36 }
 0x21a   : > { %v2891_v31 = vpop.f32.mrf.mxu2  ;;  %v2514_v17 = vadd.f32 %v2504_v18, %v2454_v8  ;;  %v3566_v18 = vor.u32 %v3565_v62, %v3562_v50  ;;  %v7026_v8 = vld [vmem:[%s7427_s7 + $0x274] sm:$0x1]  ;;  %v7028_v50 = vld [vmem:[%s7427_s7 + $0x27c] sm:$0x1] }
 0x21b   : > { %v2577_v52 = vpop.f32.mrf.mxu3  ;;  %v3612_v47 = vpack.c.b16 %v3606_v49, %v3605_v39  ;;  %v8661_v39 = vld [vmem:[%s7427_s7 + $0x278] sm:$0xf]  ;;  %v3583_v51 = vshll.u32 %v7026_v8, 16 }
 0x21c   : > { %v8633_v24 = vadd.f32 %v2577_v52, %v2514_v17  ;;  %v3567_v30 = vrot.slane %v3566_v18, 4  ;;  %v3588_v52 = vshrl.u32 %v8661_v39, 16 }
 0x21d   : > { %v2653_v63 = vpop.f32.mrf.mxu0 }
 0x21e   : > { %v2673_v3 = vadd.f32 %v2653_v63, %v8493_v54  ;;  %v2833_v14 = vpop.f32.mrf.mxu1  ;;  %v7024_v54 = vld [vmem:[%s7427_s7 + $0x26c] sm:$0x1] }
 0x21f   : > { %v3569_v26 = vshll.u32 %v7024_v54, 16 }
 0x220   : > { %v2851_v48 = vadd.f32 %v2831_v37, %v2673_v3  ;;  %7032 = vmatmul.msk.bf16.vlgmr.msra.gmra.mxu0 %vm325_vm1, %v3433_v42  ;;  %7047 = vmatmul.msk.bf16.vlgmr.msra.gmra.mxu3 %vm325_vm1, %v3744_v16  ;;  %v3576_v37 = vrot.slane %v3574_v22, 4  ;;  %v3591_v42 = vshll.u32 %v8661_v39, 16  ;;  %v3585_v3 = vrot.slane %v3583_v51, 5  ;;  %v7030_v22 = vld [vmem:[%s7427_s7 + $0x284] sm:$0x1] }
 0x221   : > { %v3571_v43 = vrot.slane %v3569_v26, 5 }
 0x222   : > { %v2893_v41 = vpop.f32.mrf.mxu2  ;;  %v2911_v59 = vadd.f32 %v2891_v31, %v2851_v48  ;;  %v3745_v31 = vpack.c.b16 %v3607_v25, %v3606_v49  ;;  %v3580_v33 = vor.u32 %v3579_v38, %v3576_v37  ;;  %v3593_v36 = vrot.slane %v3591_v42, 5 }
 0x223   : > { %v2964_v2 = vpop.f32.mrf.mxu3  ;;  %v3572_v17 = vsel %vm7446_vm4, %v3567_v30, %v3571_v43  ;;  %v3673_v49 = vpack.c.b16 %v3431_v58, %v3430_v45  ;;  %v3737_v37 = vshll.u32 %v7030_v22, 16  ;;  %v3908_v38 = vshrl.u32 %v8694_v0, 16 }
 0x224   : > { %v8650_v40 = vadd.f32 %v2964_v2, %v2911_v59  ;;  %v3608_v4 = vunpack.c.l.b16 %v3572_v17  ;;  %v3581_v53 = vrot.slane %v3580_v33, 4  ;;  %v3597_v2 = vshll.u32 %v7028_v50, 16  ;;  %v7112_v50 = vld [vmem:[%s9855_s1 + $0x2c] sm:$0x3] }
 0x225   : > { %v2655_v35 = vpop.f32.mrf.mxu0 }
 0x226   : > { %v2674_v60 = vadd.f32 %v2655_v35, %v8506_v32  ;;  %v2836_v23 = vpop.f32.mrf.mxu1  ;;  %v3434_v32 = vpack.c.b16 %v3428_v28, %v3427_v11  ;;  %v8675_v11 = vld [vmem:[%s7427_s7 + $0x280] sm:$0xf]  ;;  %v3613_v54 = vpack.c.b16 %v3608_v4, %v3607_v25 }
 0x227   : > { %7043 = vmatmul.msk.bf16.gmra.mxu2 %vm325_vm1, %v3672_v5  ;;  %v3728_v48 = vshrl.u32 %v8675_v11, 16  ;;  %v3731_v7 = vshll.u32 %v8675_v11, 16  ;;  %v3670_v42 = vunpack.c.l.b16 %v8675_v11  ;;  %v7122_v11 = vld [vmem:[%s9855_s1 + $0x6c] sm:$0x3] }
 0x228   : > { %v2852_v12 = vadd.f32 %v2833_v14, %v2674_v60  ;;  %v3590_v14 = vrot.slane %v3588_v52, 4  ;;  %v8697_v60 = vld [vmem:[%s7427_s7 + $0x288] sm:$0xf]  ;;  %v3432_v52 = vunpack.c.l.b16 %v8661_v39  ;;  %v7107_v39 = vld [vmem:[%s9855_s1 + $0x24] sm:$0x3] }
 0x229   : > { %7038 = vmatmul.msk.bf16.gmra.mxu1 %vm325_vm1, %v3612_v47  ;;  %v3730_v26 = vrot.slane %v3728_v48, 4  ;;  %v3733_v35 = vrot.slane %v3731_v7, 5  ;;  %v8731_v48 = vld [vmem:[%s7427_s7 + $0x298] sm:$0xf]  ;;  %v7052_v7 = vld [vmem:[%s7427_s7 + $0x28c] sm:$0x1] }
 0x22a   : > { %v2896_v9 = vpop.f32.mrf.mxu2  ;;  %v2912_v56 = vadd.f32 %v2893_v41, %v2852_v12  ;;  %v3586_v41 = vsel %vm7446_vm4, %v3581_v53, %v3585_v3  ;;  %v3594_v59 = vor.u32 %v3593_v36, %v3590_v14  ;;  %v3599_v12 = vrot.slane %v3597_v2, 5 }
 0x22b   : > { %v2966_v1 = vpop.f32.mrf.mxu3  ;;  %v8690_v61 = vunpack.c.l.b16 %v3586_v41  ;;  %v4258_v14 = vsel %vm338_vm0, %v7107_v39, 0  ;;  %v4569_v36 = vsel %vm338_vm0, %v7122_v11, 0 }
 0x22c   : > { %v8663_v10 = vadd.f32 %v2966_v1, %v2912_v56  ;;  %v3894_v56 = vshrl.u32 %v8697_v60, 16  ;;  %v3435_v1 = vpack.c.b16 %v3430_v45, %v3429_v19  ;;  %4267 = vmatpush.bf16.msra.mxu0 %v4258_v14  ;;  %4578 = vmatpush.bf16.msra.mxu3 %v4569_v36  ;;  %v8771_v36 = vld [vmem:[%s7427_s7 + $0x2a8] sm:$0xf] }
 0x22d   : > { %v2658_v55 = vpop.f32.mrf.mxu0 }
 0x22e   : > { %v2675_v16 = vadd.f32 %v2658_v55, %v8527_v34  ;;  %v2838_v15 = vpop.f32.mrf.mxu1  ;;  %v3897_v55 = vshll.u32 %v8697_v60, 16  ;;  %v3896_v19 = vrot.slane %v3894_v56, 4 }
 0x230   : > { %v2853_v63 = vadd.f32 %v2836_v23, %v2675_v16  ;;  %7033 = vmatmul.msk.bf16.gmra.mxu0 %vm325_vm1, %v3434_v32  ;;  %7048 = vmatmul.msk.bf16.gmra.mxu3 %vm325_vm1, %v3745_v31  ;;  %v3595_v23 = vrot.slane %v3594_v59, 4  ;;  %v3746_v32 = vpack.c.b16 %v8690_v61, %v3608_v4  ;;  %v3899_v53 = vrot.slane %v3897_v55, 5 }
 0x232   : > { %v2898_v28 = vpop.f32.mrf.mxu2  ;;  %v2913_v34 = vadd.f32 %v2896_v9, %v2853_v63  ;;  %v3911_v9 = vshll.u32 %v8694_v0, 16  ;;  %v3600_v17 = vsel %vm7446_vm4, %v3595_v23, %v3599_v12  ;;  %v3910_v63 = vrot.slane %v3908_v38, 4 }
 0x233   : > { %v2969_v62 = vpop.f32.mrf.mxu3  ;;  %v8716_v4 = vunpack.c.l.b16 %v3600_v17  ;;  %v8752_v17 = vld [vmem:[%s7427_s7 + $0x2a0] sm:$0xf] }
 0x234   : > { %v8684_v46 = vadd.f32 %v2969_v62, %v2913_v34  ;;  %v3913_v6 = vrot.slane %v3911_v9, 5  ;;  %v3939_v29 = vshll.u32 %v8752_v17, 16 }
 0x235   : > { %v2660_v13 = vpop.f32.mrf.mxu0  ;;  %v3614_v59 = vpack.c.b16 %v8716_v4, %v8690_v61 }
 0x236   : > { %v2676_v5 = vadd.f32 %v2660_v13, %v8546_v27  ;;  %v2841_v18 = vpop.f32.mrf.mxu1  ;;  %v3734_v27 = vor.u32 %v3733_v35, %v3730_v26  ;;  %v7054_v13 = vld [vmem:[%s7427_s7 + $0x294] sm:$0x1]  ;;  %v3925_v26 = vshll.u32 %v8731_v48, 16  ;;  %v3900_v35 = vor.u32 %v3899_v53, %v3896_v19 }
 0x237   : > { %7044 = vmatmul.msk.bf16.gmra.mxu2 %vm325_vm1, %v3673_v49  ;;  %v3674_v49 = vpack.c.b16 %v3670_v42, %v3432_v52  ;;  %v3914_v12 = vor.u32 %v3913_v6, %v3910_v63 }
 0x238   : > { %v2854_v47 = vadd.f32 %v2838_v15, %v2676_v5  ;;  %v3735_v16 = vrot.slane %v3734_v27, 4  ;;  %v3739_v15 = vrot.slane %v3737_v37, 5  ;;  %v3901_v37 = vrot.slane %v3900_v35, 4 }
 0x239   : > { %7039 = vmatmul.msk.bf16.gmra.mxu1 %vm325_vm1, %v3613_v54  ;;  %v4436_v54 = vsel %vm338_vm0, %v7112_v50, 0  ;;  %v7058_v50 = vld [vmem:[%s7427_s7 + $0x2a4] sm:$0x1] }
 0x23a   : > { %v2901_v25 = vpop.f32.mrf.mxu2  ;;  %v2914_v30 = vadd.f32 %v2898_v28, %v2854_v47  ;;  %v3740_v2 = vsel %vm7446_vm4, %v3735_v16, %v3739_v15  ;;  %4445 = vmatpush.bf16.msra.mxu1 %v4436_v54  ;;  %v3903_v47 = vshll.u32 %v7052_v7, 16  ;;  %v3945_v35 = vshll.u32 %v7058_v50, 16 }
 0x23b   : > { %v2971_v43 = vpop.f32.mrf.mxu3 }
 0x23c   : > { %v8703_v8 = vadd.f32 %v2971_v43, %v2914_v30  ;;  %v3743_v30 = vunpack.c.l.b16 %v3740_v2  ;;  %v3927_v43 = vrot.slane %v3925_v26, 5  ;;  %v3905_v38 = vrot.slane %v3903_v47, 5 }
 0x23d   : > { %v2663_v31 = vpop.f32.mrf.mxu0  ;;  %v3953_v2 = vshll.u32 %v8771_v36, 16  ;;  %v3829_v47 = vunpack.c.l.b16 %v8697_v60 }
 0x23e   : > { %v2677_v33 = vadd.f32 %v2663_v31, %v8582_v57  ;;  %v2843_v51 = vpop.f32.mrf.mxu1  ;;  %v7117_v57 = vld [vmem:[%s9855_s1 + $0x64] sm:$0x3]  ;;  %v3906_v16 = vsel %vm7446_vm4, %v3901_v37, %v3905_v38  ;;  %v7060_v37 = vld [vmem:[%s7427_s7 + $0x2ac] sm:$0x1] }
 0x23f   : > { %v4496_v3 = vsel %vm338_vm0, %v7117_v57, 0  ;;  %v3936_v57 = vshrl.u32 %v8752_v17, 16 }
 0x240   : > { %v2855_v45 = vadd.f32 %v2841_v18, %v2677_v33  ;;  %7034 = vmatmul.msk.bf16.gmra.mxu0 %vm325_vm1, %v3435_v1  ;;  %7049 = vmatmul.msk.bf16.gmra.mxu3 %vm325_vm1, %v3746_v32  ;;  %v3922_v18 = vshrl.u32 %v8731_v48, 16  ;;  %v3915_v1 = vrot.slane %v3914_v12, 4  ;;  %v3436_v33 = vpack.c.b16 %v3432_v52, %v3431_v58 }
 0x241   : > { %4505 = vmatpush.bf16.msra.mxu2 %v4496_v3  ;;  %v3830_v58 = vunpack.c.l.b16 %v8694_v0  ;;  %v3831_v52 = vunpack.c.l.b16 %v8731_v48 }
 0x242   : > { %v2903_v28 = vpop.f32.mrf.mxu2  ;;  %v2915_v34 = vadd.f32 %v2901_v25, %v2855_v45  ;;  %v3917_v25 = vshll.u32 %v7054_v13, 16  ;;  %v3924_v27 = vrot.slane %v3922_v18, 4 }
 0x243   : > { %v2974_v62 = vpop.f32.mrf.mxu3  ;;  %v4075_v0 = vpack.c.b16 %v3831_v52, %v3830_v58 }
 0x244   : > { %v8739_v41 = vadd.f32 %v2974_v62, %v2915_v34  ;;  %v3919_v32 = vrot.slane %v3917_v25, 5  ;;  %v3928_v15 = vor.u32 %v3927_v43, %v3924_v27  ;;  %v3941_v34 = vrot.slane %v3939_v29, 5 }
 0x245   : > { %v2665_v5 = vpop.f32.mrf.mxu0  ;;  %v3955_v25 = vrot.slane %v3953_v2, 5 }
 0x246   : > { %v2678_v22 = vadd.f32 %v2665_v5, %v8597_v21  ;;  %v2846_v23 = vpop.f32.mrf.mxu1  ;;  %v7056_v21 = vld [vmem:[%s7427_s7 + $0x29c] sm:$0x1]  ;;  %v3920_v45 = vsel %vm7446_vm4, %v3915_v1, %v3919_v32  ;;  %v3929_v11 = vrot.slane %v3928_v15, 4  ;;  %v3832_v15 = vunpack.c.l.b16 %v8752_v17 }
 0x247   : > { %7045 = vmatmul.msk.bf16.gmra.mxu2 %vm325_vm1, %v3674_v49  ;;  %v3931_v63 = vshll.u32 %v7056_v21, 16  ;;  %v4008_v39 = vunpack.c.l.b16 %v3920_v45 }
 0x248   : > { %v2856_v61 = vadd.f32 %v2843_v51, %v2678_v22  ;;  %v3747_v51 = vpack.c.b16 %v3743_v30, %v8716_v4 }
 0x249   : > { %7040 = vmatmul.msk.bf16.gmra.mxu1 %vm325_vm1, %v3614_v59  ;;  %v3933_v53 = vrot.slane %v3931_v63, 5  ;;  %v3950_v59 = vshrl.u32 %v8771_v36, 16  ;;  %v3833_v63 = vunpack.c.l.b16 %v8771_v36 }
 0x24a   : > { %v2906_v9 = vpop.f32.mrf.mxu2  ;;  %v2916_v56 = vadd.f32 %v2903_v28, %v2856_v61  ;;  %v3938_v28 = vrot.slane %v3936_v57, 4  ;;  %v8787_v61 = vld [vmem:[%s7427_s7 + $0x2b0] sm:$0xf] }
 0x24b   : > { %v2976_v31 = vpop.f32.mrf.mxu3  ;;  %v3934_v54 = vsel %vm7446_vm4, %v3929_v11, %v3933_v53  ;;  %v3952_v12 = vrot.slane %v3950_v59, 4  ;;  %v3964_v60 = vshrl.u32 %v8787_v61, 16  ;;  %v3967_v32 = vshll.u32 %v8787_v61, 16 }
 0x24c   : > { %v8754_v55 = vadd.f32 %v2976_v31, %v2916_v56  ;;  %v3942_v26 = vor.u32 %v3941_v34, %v3938_v28  ;;  %v4076_v17 = vpack.c.b16 %v3833_v63, %v3832_v15 }
 0x24d   : > { %v2668_v42 = vpop.f32.mrf.mxu0  ;;  %v3956_v31 = vor.u32 %v3955_v25, %v3952_v12  ;;  %v3969_v45 = vrot.slane %v3967_v32, 5  ;;  %v3834_v32 = vunpack.c.l.b16 %v8787_v61 }
 0x24e   : > { %v2679_v6 = vadd.f32 %v2668_v42, %v8619_v20  ;;  %v2848_v19 = vpop.f32.mrf.mxu1  ;;  %v4007_v20 = vunpack.c.l.b16 %v3906_v16  ;;  %v3943_v43 = vrot.slane %v3942_v26, 4 }
 0x24f   : > { %v3957_v29 = vrot.slane %v3956_v31, 4 }
 0x250   : > { %v2857_v4 = vadd.f32 %v2846_v23, %v2679_v6  ;;  %7035 = vmatmul.msk.bf16.gmra.mxu0 %vm325_vm1, %v3436_v33  ;;  %7050 = vmatmul.msk.bf16.gmra.mxu3 %vm325_vm1, %v3747_v51  ;;  %v4015_v13 = vpack.c.b16 %v4008_v39, %v4007_v20  ;;  %v4009_v23 = vunpack.c.l.b16 %v3934_v54  ;;  %v3959_v33 = vshll.u32 %v7060_v37, 16 }
 0x252   : > { %v2908_v3 = vpop.f32.mrf.mxu2  ;;  %v2917_v14 = vadd.f32 %v2906_v9, %v2857_v4  ;;  %v3837_v9 = vpack.c.b16 %v3830_v58, %v3829_v47  ;;  %v4148_v1 = vpack.c.b16 %v4009_v23, %v4008_v39  ;;  %v3961_v58 = vrot.slane %v3959_v33, 5  ;;  %v8803_v39 = vld [vmem:[%s7427_s7 + $0x2b8] sm:$0xf] }
 0x253   : > { %v2979_v7 = vpop.f32.mrf.mxu3  ;;  %v3981_v50 = vshll.u32 %v8803_v39, 16  ;;  %v3835_v48 = vunpack.c.l.b16 %v8803_v39 }
 0x254   : > { %v8776_v62 = vadd.f32 %v2979_v7, %v2917_v14  ;;  %v3962_v7 = vsel %vm7446_vm4, %v3957_v29, %v3961_v58 }
 0x255   : > { %v2670_v49 = vpop.f32.mrf.mxu0  ;;  %v4011_v59 = vunpack.c.l.b16 %v3962_v7  ;;  %v3983_v26 = vrot.slane %v3981_v50, 5  ;;  %v8851_v50 = vld [vmem:[%s7427_s7 + $0x2d8] sm:$0xf] }
 0x256   : > { %v2680_v5 = vadd.f32 %v2670_v49, %v8633_v24  ;;  %v3235_v18 = vpop.f32.mrf.mxu1  ;;  %v3947_v24 = vrot.slane %v3945_v35, 5 }
 0x257   : > { %7080 = vmatmul.msk.bf16.vlgmr.msrb.gmra.mxu2 %vm325_vm1, %v4075_v0  ;;  %v3978_v0 = vshrl.u32 %v8803_v39, 16 }
 0x258   : > { %v2858_v22 = vadd.f32 %v2848_v19, %v2680_v5  ;;  %v3948_v16 = vsel %vm7446_vm4, %v3943_v43, %v3947_v24  ;;  %v3966_v19 = vrot.slane %v3964_v60, 4 }
 0x259   : > { %7075 = vmatmul.msk.bf16.vlgmr.msrb.gmra.mxu1 %vm325_vm1, %v4015_v13  ;;  %v4010_v57 = vunpack.c.l.b16 %v3948_v16 }
 0x25a   : > { %v3295_v30 = vpop.f32.mrf.mxu2  ;;  %v2918_v27 = vadd.f32 %v2908_v3, %v2858_v22  ;;  %v3970_v3 = vor.u32 %v3969_v45, %v3966_v19  ;;  %v7064_v22 = vld [vmem:[%s7427_s7 + $0x2bc] sm:$0x1]  ;;  %v7066_v19 = vld [vmem:[%s7427_s7 + $0x2c4] sm:$0x1] }
 0x25b   : > { %v2981_v38 = vpop.f32.mrf.mxu3  ;;  %v4016_v34 = vpack.c.b16 %v4010_v57, %v4009_v23  ;;  %v8818_v23 = vld [vmem:[%s7427_s7 + $0x2c0] sm:$0xf]  ;;  %v3987_v37 = vshll.u32 %v7064_v22, 16 }
 0x25c   : > { %v8790_v56 = vadd.f32 %v2981_v38, %v2918_v27  ;;  %v3971_v2 = vrot.slane %v3970_v3, 4  ;;  %v3992_v38 = vshrl.u32 %v8818_v23, 16 }
 0x25d   : > { %v3057_v21 = vpop.f32.mrf.mxu0 }
 0x25e   : > { %v3077_v51 = vadd.f32 %v3057_v21, %v8650_v40  ;;  %v3237_v42 = vpop.f32.mrf.mxu1  ;;  %v7062_v40 = vld [vmem:[%s7427_s7 + $0x2b4] sm:$0x1] }
 0x25f   : > { %v3973_v14 = vshll.u32 %v7062_v40, 16 }
 0x260   : > { %v3255_v6 = vadd.f32 %v3235_v18, %v3077_v51  ;;  %7070 = vmatmul.msk.bf16.vlgmr.msrb.gmra.mxu0 %vm325_vm1, %v3837_v9  ;;  %7085 = vmatmul.msk.bf16.vlgmr.msrb.gmra.mxu3 %vm325_vm1, %v4148_v1  ;;  %v3980_v18 = vrot.slane %v3978_v0, 4  ;;  %v3995_v9 = vshll.u32 %v8818_v23, 16  ;;  %v3989_v51 = vrot.slane %v3987_v37, 5  ;;  %v7068_v0 = vld [vmem:[%s7427_s7 + $0x2cc] sm:$0x1] }
 0x261   : > { %v3975_v5 = vrot.slane %v3973_v14, 5 }
 0x262   : > { %v3297_v4 = vpop.f32.mrf.mxu2  ;;  %v3315_v20 = vadd.f32 %v3295_v30, %v3255_v6  ;;  %v4149_v30 = vpack.c.b16 %v4011_v59, %v4010_v57  ;;  %v3984_v24 = vor.u32 %v3983_v26, %v3980_v18  ;;  %v3997_v16 = vrot.slane %v3995_v9, 5 }
 0x263   : > { %v3368_v11 = vpop.f32.mrf.mxu3  ;;  %v3976_v27 = vsel %vm7446_vm4, %v3971_v2, %v3975_v5  ;;  %v4077_v57 = vpack.c.b16 %v3835_v48, %v3834_v32  ;;  %v4141_v18 = vshll.u32 %v7068_v0, 16  ;;  %v4312_v26 = vshrl.u32 %v8851_v50, 16 }
 0x264   : > { %v8807_v53 = vadd.f32 %v3368_v11, %v3315_v20  ;;  %v4012_v31 = vunpack.c.l.b16 %v3976_v27  ;;  %v3985_v33 = vrot.slane %v3984_v24, 4  ;;  %v4001_v11 = vshll.u32 %v7066_v19, 16  ;;  %v7150_v19 = vld [vmem:[%s9855_s1 + $0x2e] sm:$0x3] }
 0x265   : > { %v3059_v28 = vpop.f32.mrf.mxu0 }
 0x266   : > { %v3078_v49 = vadd.f32 %v3059_v28, %v8663_v10  ;;  %v3240_v13 = vpop.f32.mrf.mxu1  ;;  %v3838_v10 = vpack.c.b16 %v3832_v15, %v3831_v52  ;;  %v8832_v52 = vld [vmem:[%s7427_s7 + $0x2c8] sm:$0xf]  ;;  %v4017_v40 = vpack.c.b16 %v4012_v31, %v4011_v59 }
 0x267   : > { %7081 = vmatmul.msk.bf16.gmra.mxu2 %vm325_vm1, %v4076_v17  ;;  %v4132_v6 = vshrl.u32 %v8832_v52, 16  ;;  %v4135_v61 = vshll.u32 %v8832_v52, 16  ;;  %v4074_v9 = vunpack.c.l.b16 %v8832_v52  ;;  %v7160_v52 = vld [vmem:[%s9855_s1 + $0x6e] sm:$0x3] }
 0x268   : > { %v3256_v54 = vadd.f32 %v3237_v42, %v3078_v49  ;;  %v3994_v42 = vrot.slane %v3992_v38, 4  ;;  %v8854_v49 = vld [vmem:[%s7427_s7 + $0x2d0] sm:$0xf]  ;;  %v3836_v38 = vunpack.c.l.b16 %v8818_v23  ;;  %v7145_v23 = vld [vmem:[%s9855_s1 + $0x26] sm:$0x3] }
 0x269   : > { %7076 = vmatmul.msk.bf16.gmra.mxu1 %vm325_vm1, %v4016_v34  ;;  %v4134_v14 = vrot.slane %v4132_v6, 4  ;;  %v4137_v28 = vrot.slane %v4135_v61, 5  ;;  %v8888_v6 = vld [vmem:[%s7427_s7 + $0x2e0] sm:$0xf]  ;;  %v7090_v61 = vld [vmem:[%s7427_s7 + $0x2d4] sm:$0x1] }
 0x26a   : > { %v3300_v35 = vpop.f32.mrf.mxu2  ;;  %v3316_v47 = vadd.f32 %v3297_v4, %v3256_v54  ;;  %v3990_v4 = vsel %vm7446_vm4, %v3985_v33, %v3989_v51  ;;  %v3998_v20 = vor.u32 %v3997_v16, %v3994_v42  ;;  %v4003_v54 = vrot.slane %v4001_v11, 5 }
 0x26b   : > { %v3370_v12 = vpop.f32.mrf.mxu3  ;;  %v8847_v7 = vunpack.c.l.b16 %v3990_v4  ;;  %v4662_v42 = vsel %vm338_vm0, %v7145_v23, 0  ;;  %v4973_v16 = vsel %vm338_vm0, %v7160_v52, 0 }
 0x26c   : > { %v8820_v25 = vadd.f32 %v3370_v12, %v3316_v47  ;;  %v4298_v47 = vshrl.u32 %v8854_v49, 16  ;;  %v3839_v12 = vpack.c.b16 %v3834_v32, %v3833_v63  ;;  %4671 = vmatpush.bf16.msrb.mxu0 %v4662_v42  ;;  %4982 = vmatpush.bf16.msrb.mxu3 %v4973_v16  ;;  %v8928_v16 = vld [vmem:[%s7427_s7 + $0x2f0] sm:$0xf] }
 0x26d   : > { %v3062_v43 = vpop.f32.mrf.mxu0 }
 0x26e   : > { %v3079_v1 = vadd.f32 %v3062_v43, %v8684_v46  ;;  %v3242_v60 = vpop.f32.mrf.mxu1  ;;  %v4301_v43 = vshll.u32 %v8854_v49, 16  ;;  %v4300_v63 = vrot.slane %v4298_v47, 4 }
 0x270   : > { %v3257_v21 = vadd.f32 %v3240_v13, %v3079_v1  ;;  %7071 = vmatmul.msk.bf16.gmra.mxu0 %vm325_vm1, %v3838_v10  ;;  %7086 = vmatmul.msk.bf16.gmra.mxu3 %vm325_vm1, %v4149_v30  ;;  %v3999_v13 = vrot.slane %v3998_v20, 4  ;;  %v4150_v10 = vpack.c.b16 %v8847_v7, %v4012_v31  ;;  %v4303_v33 = vrot.slane %v4301_v43, 5 }
 0x272   : > { %v3302_v15 = vpop.f32.mrf.mxu2  ;;  %v3317_v46 = vadd.f32 %v3300_v35, %v3257_v21  ;;  %v4315_v35 = vshll.u32 %v8851_v50, 16  ;;  %v4004_v27 = vsel %vm7446_vm4, %v3999_v13, %v4003_v54  ;;  %v4314_v21 = vrot.slane %v4312_v26, 4 }
 0x273   : > { %v3373_v45 = vpop.f32.mrf.mxu3  ;;  %v8873_v31 = vunpack.c.l.b16 %v4004_v27  ;;  %v8909_v27 = vld [vmem:[%s7427_s7 + $0x2e8] sm:$0xf] }
 0x274   : > { %v8841_v29 = vadd.f32 %v3373_v45, %v3317_v46  ;;  %v4317_v36 = vrot.slane %v4315_v35, 5  ;;  %v4343_v39 = vshll.u32 %v8909_v27, 16 }
 0x275   : > { %v3064_v58 = vpop.f32.mrf.mxu0  ;;  %v4018_v20 = vpack.c.b16 %v8873_v31, %v8847_v7 }
 0x276   : > { %v3080_v17 = vadd.f32 %v3064_v58, %v8703_v8  ;;  %v3245_v3 = vpop.f32.mrf.mxu1  ;;  %v4138_v8 = vor.u32 %v4137_v28, %v4134_v14  ;;  %v7092_v58 = vld [vmem:[%s7427_s7 + $0x2dc] sm:$0x1]  ;;  %v4329_v14 = vshll.u32 %v8888_v6, 16  ;;  %v4304_v28 = vor.u32 %v4303_v33, %v4300_v63 }
 0x277   : > { %7082 = vmatmul.msk.bf16.gmra.mxu2 %vm325_vm1, %v4077_v57  ;;  %v4078_v57 = vpack.c.b16 %v4074_v9, %v3836_v38  ;;  %v4318_v54 = vor.u32 %v4317_v36, %v4314_v21 }
 0x278   : > { %v3258_v34 = vadd.f32 %v3242_v60, %v3080_v17  ;;  %v4139_v1 = vrot.slane %v4138_v8, 4  ;;  %v4143_v60 = vrot.slane %v4141_v18, 5  ;;  %v4305_v18 = vrot.slane %v4304_v28, 4 }
 0x279   : > { %7077 = vmatmul.msk.bf16.gmra.mxu1 %vm325_vm1, %v4017_v40  ;;  %v4840_v40 = vsel %vm338_vm0, %v7150_v19, 0  ;;  %v7096_v19 = vld [vmem:[%s7427_s7 + $0x2ec] sm:$0x1] }
 0x27a   : > { %v3305_v59 = vpop.f32.mrf.mxu2  ;;  %v3318_v2 = vadd.f32 %v3302_v15, %v3258_v34  ;;  %v4144_v11 = vsel %vm7446_vm4, %v4139_v1, %v4143_v60  ;;  %4849 = vmatpush.bf16.msrb.mxu1 %v4840_v40  ;;  %v4307_v34 = vshll.u32 %v7090_v61, 16  ;;  %v4349_v28 = vshll.u32 %v7096_v19, 16 }
 0x27b   : > { %v3375_v5 = vpop.f32.mrf.mxu3 }
 0x27c   : > { %v8860_v22 = vadd.f32 %v3375_v5, %v3318_v2  ;;  %v4147_v2 = vunpack.c.l.b16 %v4144_v11  ;;  %v4331_v5 = vrot.slane %v4329_v14, 5  ;;  %v4309_v26 = vrot.slane %v4307_v34, 5 }
 0x27d   : > { %v3067_v30 = vpop.f32.mrf.mxu0  ;;  %v4357_v11 = vshll.u32 %v8928_v16, 16  ;;  %v4233_v34 = vunpack.c.l.b16 %v8854_v49 }
 0x27e   : > { %v3081_v24 = vadd.f32 %v3067_v30, %v8739_v41  ;;  %v3247_v37 = vpop.f32.mrf.mxu1  ;;  %v7155_v41 = vld [vmem:[%s9855_s1 + $0x66] sm:$0x3]  ;;  %v4310_v1 = vsel %vm7446_vm4, %v4305_v18, %v4309_v26  ;;  %v7098_v18 = vld [vmem:[%s7427_s7 + $0x2f4] sm:$0x1] }
 0x27f   : > { %v4900_v51 = vsel %vm338_vm0, %v7155_v41, 0  ;;  %v4340_v41 = vshrl.u32 %v8909_v27, 16 }
 0x280   : > { %v3259_v32 = vadd.f32 %v3245_v3, %v3081_v24  ;;  %7072 = vmatmul.msk.bf16.gmra.mxu0 %vm325_vm1, %v3839_v12  ;;  %7087 = vmatmul.msk.bf16.gmra.mxu3 %vm325_vm1, %v4150_v10  ;;  %v4326_v3 = vshrl.u32 %v8888_v6, 16  ;;  %v4319_v12 = vrot.slane %v4318_v54, 4  ;;  %v3840_v24 = vpack.c.b16 %v3836_v38, %v3835_v48 }
 0x281   : > { %4909 = vmatpush.bf16.msrb.mxu2 %v4900_v51  ;;  %v4234_v48 = vunpack.c.l.b16 %v8851_v50  ;;  %v4235_v38 = vunpack.c.l.b16 %v8888_v6 }
 0x282   : > { %v3307_v15 = vpop.f32.mrf.mxu2  ;;  %v3319_v46 = vadd.f32 %v3305_v59, %v3259_v32  ;;  %v4321_v59 = vshll.u32 %v7092_v58, 16  ;;  %v4328_v8 = vrot.slane %v4326_v3, 4 }
 0x283   : > { %v3378_v45 = vpop.f32.mrf.mxu3  ;;  %v4479_v50 = vpack.c.b16 %v4235_v38, %v4234_v48 }
 0x284   : > { %v8896_v4 = vadd.f32 %v3378_v45, %v3319_v46  ;;  %v4323_v10 = vrot.slane %v4321_v59, 5  ;;  %v4332_v60 = vor.u32 %v4331_v5, %v4328_v8  ;;  %v4345_v46 = vrot.slane %v4343_v39, 5 }
 0x285   : > { %v3069_v17 = vpop.f32.mrf.mxu0  ;;  %v4359_v59 = vrot.slane %v4357_v11, 5 }
 0x286   : > { %v3082_v0 = vadd.f32 %v3069_v17, %v8754_v55  ;;  %v3250_v13 = vpop.f32.mrf.mxu1  ;;  %v7094_v55 = vld [vmem:[%s7427_s7 + $0x2e4] sm:$0x1]  ;;  %v4324_v32 = vsel %vm7446_vm4, %v4319_v12, %v4323_v10  ;;  %v4333_v52 = vrot.slane %v4332_v60, 4  ;;  %v4236_v60 = vunpack.c.l.b16 %v8909_v27 }
 0x287   : > { %7083 = vmatmul.msk.bf16.gmra.mxu2 %vm325_vm1, %v4078_v57  ;;  %v4335_v21 = vshll.u32 %v7094_v55, 16  ;;  %v4412_v23 = vunpack.c.l.b16 %v4324_v32 }
 0x288   : > { %v3260_v7 = vadd.f32 %v3247_v37, %v3082_v0  ;;  %v4151_v37 = vpack.c.b16 %v4147_v2, %v8873_v31 }
 0x289   : > { %7078 = vmatmul.msk.bf16.gmra.mxu1 %vm325_vm1, %v4018_v20  ;;  %v4337_v33 = vrot.slane %v4335_v21, 5  ;;  %v4354_v20 = vshrl.u32 %v8928_v16, 16  ;;  %v4237_v21 = vunpack.c.l.b16 %v8928_v16 }
 0x28a   : > { %v3310_v35 = vpop.f32.mrf.mxu2  ;;  %v3320_v47 = vadd.f32 %v3307_v15, %v3260_v7  ;;  %v4342_v15 = vrot.slane %v4340_v41, 4  ;;  %v8944_v7 = vld [vmem:[%s7427_s7 + $0x2f8] sm:$0xf] }
 0x28b   : > { %v3380_v30 = vpop.f32.mrf.mxu3  ;;  %v4338_v40 = vsel %vm7446_vm4, %v4333_v52, %v4337_v33  ;;  %v4356_v54 = vrot.slane %v4354_v20, 4  ;;  %v4368_v49 = vshrl.u32 %v8944_v7, 16  ;;  %v4371_v10 = vshll.u32 %v8944_v7, 16 }
 0x28c   : > { %v8911_v43 = vadd.f32 %v3380_v30, %v3320_v47  ;;  %v4346_v14 = vor.u32 %v4345_v46, %v4342_v15  ;;  %v4480_v27 = vpack.c.b16 %v4237_v21, %v4236_v60 }
 0x28d   : > { %v3072_v9 = vpop.f32.mrf.mxu0  ;;  %v4360_v30 = vor.u32 %v4359_v59, %v4356_v54  ;;  %v4373_v32 = vrot.slane %v4371_v10, 5  ;;  %v4238_v10 = vunpack.c.l.b16 %v8944_v7 }
 0x28e   : > { %v3083_v36 = vadd.f32 %v3072_v9, %v8776_v62  ;;  %v3252_v63 = vpop.f32.mrf.mxu1  ;;  %v4411_v62 = vunpack.c.l.b16 %v4310_v1  ;;  %v4347_v5 = vrot.slane %v4346_v14, 4 }
 0x28f   : > { %v4361_v39 = vrot.slane %v4360_v30, 4 }
 0x290   : > { %v3261_v31 = vadd.f32 %v3250_v13, %v3083_v36  ;;  %7073 = vmatmul.msk.bf16.gmra.mxu0 %vm325_vm1, %v3840_v24  ;;  %7088 = vmatmul.msk.bf16.gmra.mxu3 %vm325_vm1, %v4151_v37  ;;  %v4419_v58 = vpack.c.b16 %v4412_v23, %v4411_v62  ;;  %v4413_v13 = vunpack.c.l.b16 %v4338_v40  ;;  %v4363_v24 = vshll.u32 %v7098_v18, 16 }
 0x292   : > { %v3312_v51 = vpop.f32.mrf.mxu2  ;;  %v3321_v42 = vadd.f32 %v3310_v35, %v3261_v31  ;;  %v4241_v35 = vpack.c.b16 %v4234_v48, %v4233_v34  ;;  %v4552_v12 = vpack.c.b16 %v4413_v13, %v4412_v23  ;;  %v4365_v48 = vrot.slane %v4363_v24, 5  ;;  %v8960_v23 = vld [vmem:[%s7427_s7 + $0x300] sm:$0xf] }
 0x293   : > { %v3383_v61 = vpop.f32.mrf.mxu3  ;;  %v4385_v19 = vshll.u32 %v8960_v23, 16  ;;  %v4239_v6 = vunpack.c.l.b16 %v8960_v23 }
 0x294   : > { %v8933_v45 = vadd.f32 %v3383_v61, %v3321_v42  ;;  %v4366_v61 = vsel %vm7446_vm4, %v4361_v39, %v4365_v48 }
 0x295   : > { %v3074_v57 = vpop.f32.mrf.mxu0  ;;  %v4415_v20 = vunpack.c.l.b16 %v4366_v61  ;;  %v4387_v14 = vrot.slane %v4385_v19, 5  ;;  %v9008_v19 = vld [vmem:[%s7427_s7 + $0x320] sm:$0xf] }
 0x296   : > { %v3084_v17 = vadd.f32 %v3074_v57, %v8790_v56  ;;  %v3639_v3 = vpop.f32.mrf.mxu1  ;;  %v4351_v56 = vrot.slane %v4349_v28, 5 }
 0x297   : > { %7118 = vmatmul.msk.bf16.vlgmr.msra.gmra.mxu2 %vm325_vm1, %v4479_v50  ;;  %v4382_v50 = vshrl.u32 %v8960_v23, 16 }
 0x298   : > { %v3262_v0 = vadd.f32 %v3252_v63, %v3084_v17  ;;  %v4352_v1 = vsel %vm7446_vm4, %v4347_v5, %v4351_v56  ;;  %v4370_v63 = vrot.slane %v4368_v49, 4 }
 0x299   : > { %7113 = vmatmul.msk.bf16.vlgmr.msra.gmra.mxu1 %vm325_vm1, %v4419_v58  ;;  %v4414_v41 = vunpack.c.l.b16 %v4352_v1 }
 0x29a   : > { %v3699_v2 = vpop.f32.mrf.mxu2  ;;  %v3322_v8 = vadd.f32 %v3312_v51, %v3262_v0  ;;  %v4374_v51 = vor.u32 %v4373_v32, %v4370_v63  ;;  %v7102_v0 = vld [vmem:[%s7427_s7 + $0x304] sm:$0x1]  ;;  %v7104_v63 = vld [vmem:[%s7427_s7 + $0x30c] sm:$0x1] }
 0x29b   : > { %v3385_v26 = vpop.f32.mrf.mxu3  ;;  %v4420_v46 = vpack.c.b16 %v4414_v41, %v4413_v13  ;;  %v8975_v13 = vld [vmem:[%s7427_s7 + $0x308] sm:$0xf]  ;;  %v4391_v18 = vshll.u32 %v7102_v0, 16 }
 0x29c   : > { %v8947_v47 = vadd.f32 %v3385_v26, %v3322_v8  ;;  %v4375_v11 = vrot.slane %v4374_v51, 4  ;;  %v4396_v26 = vshrl.u32 %v8975_v13, 16 }
 0x29d   : > { %v3461_v55 = vpop.f32.mrf.mxu0 }
 0x29e   : > { %v3481_v37 = vadd.f32 %v3461_v55, %v8807_v53  ;;  %v3641_v9 = vpop.f32.mrf.mxu1  ;;  %v7100_v53 = vld [vmem:[%s7427_s7 + $0x2fc] sm:$0x1] }
 0x29f   : > { %v4377_v42 = vshll.u32 %v7100_v53, 16 }
 0x2a0   : > { %v3659_v36 = vadd.f32 %v3639_v3, %v3481_v37  ;;  %7108 = vmatmul.msk.bf16.vlgmr.msra.gmra.mxu0 %vm325_vm1, %v4241_v35  ;;  %7123 = vmatmul.msk.bf16.vlgmr.msra.gmra.mxu3 %vm325_vm1, %v4552_v12  ;;  %v4384_v3 = vrot.slane %v4382_v50, 4  ;;  %v4399_v35 = vshll.u32 %v8975_v13, 16  ;;  %v4393_v37 = vrot.slane %v4391_v18, 5  ;;  %v7106_v50 = vld [vmem:[%s7427_s7 + $0x314] sm:$0x1] }
 0x2a1   : > { %v4379_v17 = vrot.slane %v4377_v42, 5 }
 0x2a2   : > { %v3701_v31 = vpop.f32.mrf.mxu2  ;;  %v3719_v62 = vadd.f32 %v3699_v2, %v3659_v36  ;;  %v4553_v2 = vpack.c.b16 %v4415_v20, %v4414_v41  ;;  %v4388_v56 = vor.u32 %v4387_v14, %v4384_v3  ;;  %v4401_v1 = vrot.slane %v4399_v35, 5 }
 0x2a3   : > { %v3772_v52 = vpop.f32.mrf.mxu3  ;;  %v4380_v8 = vsel %vm7446_vm4, %v4375_v11, %v4379_v17  ;;  %v4481_v41 = vpack.c.b16 %v4239_v6, %v4238_v10  ;;  %v4545_v3 = vshll.u32 %v7106_v50, 16  ;;  %v4716_v14 = vshrl.u32 %v9008_v19, 16 }
 0x2a4   : > { %v8964_v33 = vadd.f32 %v3772_v52, %v3719_v62  ;;  %v4416_v30 = vunpack.c.l.b16 %v4380_v8  ;;  %v4389_v24 = vrot.slane %v4388_v56, 4  ;;  %v4405_v52 = vshll.u32 %v7104_v63, 16  ;;  %v7188_v63 = vld [vmem:[%s9855_s1 + $0x38] sm:$0x3] }
 0x2a5   : > { %v3463_v15 = vpop.f32.mrf.mxu0 }
 0x2a6   : > { %v3482_v57 = vadd.f32 %v3463_v15, %v8820_v25  ;;  %v3644_v58 = vpop.f32.mrf.mxu1  ;;  %v4242_v25 = vpack.c.b16 %v4236_v60, %v4235_v38  ;;  %v8989_v38 = vld [vmem:[%s7427_s7 + $0x310] sm:$0xf]  ;;  %v4421_v53 = vpack.c.b16 %v4416_v30, %v4415_v20 }
 0x2a7   : > { %7119 = vmatmul.msk.bf16.gmra.mxu2 %vm325_vm1, %v4480_v27  ;;  %v4536_v36 = vshrl.u32 %v8989_v38, 16  ;;  %v4539_v7 = vshll.u32 %v8989_v38, 16  ;;  %v4478_v35 = vunpack.c.l.b16 %v8989_v38  ;;  %v7198_v38 = vld [vmem:[%s9855_s1 + $0x78] sm:$0x3] }
 0x2a8   : > { %v3660_v40 = vadd.f32 %v3641_v9, %v3482_v57  ;;  %v4398_v9 = vrot.slane %v4396_v26, 4  ;;  %v9011_v57 = vld [vmem:[%s7427_s7 + $0x318] sm:$0xf]  ;;  %v4240_v26 = vunpack.c.l.b16 %v8975_v13  ;;  %v7183_v13 = vld [vmem:[%s9855_s1 + $0x30] sm:$0x3] }
 0x2a9   : > { %7114 = vmatmul.msk.bf16.gmra.mxu1 %vm325_vm1, %v4420_v46  ;;  %v4538_v42 = vrot.slane %v4536_v36, 4  ;;  %v4541_v15 = vrot.slane %v4539_v7, 5  ;;  %v9045_v36 = vld [vmem:[%s7427_s7 + $0x328] sm:$0xf]  ;;  %v7128_v7 = vld [vmem:[%s7427_s7 + $0x31c] sm:$0x1] }
 0x2aa   : > { %v3704_v28 = vpop.f32.mrf.mxu2  ;;  %v3720_v34 = vadd.f32 %v3701_v31, %v3660_v40  ;;  %v4394_v31 = vsel %vm7446_vm4, %v4389_v24, %v4393_v37  ;;  %v4402_v62 = vor.u32 %v4401_v1, %v4398_v9  ;;  %v4407_v40 = vrot.slane %v4405_v52, 5 }
 0x2ab   : > { %v3774_v54 = vpop.f32.mrf.mxu3  ;;  %v9004_v61 = vunpack.c.l.b16 %v4394_v31  ;;  %v5066_v9 = vsel %vm338_vm0, %v7183_v13, 0  ;;  %v5377_v1 = vsel %vm338_vm0, %v7198_v38, 0 }
 0x2ac   : > { %v8977_v59 = vadd.f32 %v3774_v54, %v3720_v34  ;;  %v4702_v34 = vshrl.u32 %v9011_v57, 16  ;;  %v4243_v54 = vpack.c.b16 %v4238_v10, %v4237_v21  ;;  %5075 = vmatpush.bf16.msra.mxu0 %v5066_v9  ;;  %5386 = vmatpush.bf16.msra.mxu3 %v5377_v1  ;;  %v9085_v1 = vld [vmem:[%s7427_s7 + $0x338] sm:$0xf] }
 0x2ad   : > { %v3466_v5 = vpop.f32.mrf.mxu0 }
 0x2ae   : > { %v3483_v12 = vadd.f32 %v3466_v5, %v8841_v29  ;;  %v3646_v49 = vpop.f32.mrf.mxu1  ;;  %v4705_v5 = vshll.u32 %v9011_v57, 16  ;;  %v4704_v21 = vrot.slane %v4702_v34, 4 }
 0x2b0   : > { %v3661_v55 = vadd.f32 %v3644_v58, %v3483_v12  ;;  %7109 = vmatmul.msk.bf16.gmra.mxu0 %vm325_vm1, %v4242_v25  ;;  %7124 = vmatmul.msk.bf16.gmra.mxu3 %vm325_vm1, %v4553_v2  ;;  %v4403_v58 = vrot.slane %v4402_v62, 4  ;;  %v4554_v25 = vpack.c.b16 %v9004_v61, %v4416_v30  ;;  %v4707_v24 = vrot.slane %v4705_v5, 5 }
 0x2b2   : > { %v3706_v60 = vpop.f32.mrf.mxu2  ;;  %v3721_v29 = vadd.f32 %v3704_v28, %v3661_v55  ;;  %v4719_v28 = vshll.u32 %v9008_v19, 16  ;;  %v4408_v8 = vsel %vm7446_vm4, %v4403_v58, %v4407_v40  ;;  %v4718_v55 = vrot.slane %v4716_v14, 4 }
 0x2b3   : > { %v3777_v32 = vpop.f32.mrf.mxu3  ;;  %v9030_v30 = vunpack.c.l.b16 %v4408_v8  ;;  %v9066_v8 = vld [vmem:[%s7427_s7 + $0x330] sm:$0xf] }
 0x2b4   : > { %v8998_v39 = vadd.f32 %v3777_v32, %v3721_v29  ;;  %v4721_v16 = vrot.slane %v4719_v28, 5  ;;  %v4747_v23 = vshll.u32 %v9066_v8, 16 }
 0x2b5   : > { %v3468_v48 = vpop.f32.mrf.mxu0  ;;  %v4422_v62 = vpack.c.b16 %v9030_v30, %v9004_v61 }
 0x2b6   : > { %v3484_v27 = vadd.f32 %v3468_v48, %v8860_v22  ;;  %v3649_v51 = vpop.f32.mrf.mxu1  ;;  %v4542_v22 = vor.u32 %v4541_v15, %v4538_v42  ;;  %v7130_v48 = vld [vmem:[%s7427_s7 + $0x324] sm:$0x1]  ;;  %v4733_v42 = vshll.u32 %v9045_v36, 16  ;;  %v4708_v15 = vor.u32 %v4707_v24, %v4704_v21 }
 0x2b7   : > { %7120 = vmatmul.msk.bf16.gmra.mxu2 %vm325_vm1, %v4481_v41  ;;  %v4482_v41 = vpack.c.b16 %v4478_v35, %v4240_v26  ;;  %v4722_v40 = vor.u32 %v4721_v16, %v4718_v55 }
 0x2b8   : > { %v3662_v46 = vadd.f32 %v3646_v49, %v3484_v27  ;;  %v4543_v12 = vrot.slane %v4542_v22, 4  ;;  %v4547_v49 = vrot.slane %v4545_v3, 5  ;;  %v4709_v3 = vrot.slane %v4708_v15, 4 }
 0x2b9   : > { %7115 = vmatmul.msk.bf16.gmra.mxu1 %vm325_vm1, %v4421_v53  ;;  %v5244_v53 = vsel %vm338_vm0, %v7188_v63, 0  ;;  %v7134_v63 = vld [vmem:[%s7427_s7 + $0x334] sm:$0x1] }
 0x2ba   : > { %v3709_v20 = vpop.f32.mrf.mxu2  ;;  %v3722_v11 = vadd.f32 %v3706_v60, %v3662_v46  ;;  %v4548_v52 = vsel %vm7446_vm4, %v4543_v12, %v4547_v49  ;;  %5253 = vmatpush.bf16.msra.mxu1 %v5244_v53  ;;  %v4711_v46 = vshll.u32 %v7128_v7, 16  ;;  %v4753_v15 = vshll.u32 %v7134_v63, 16 }
 0x2bb   : > { %v3779_v17 = vpop.f32.mrf.mxu3 }
 0x2bc   : > { %v9017_v0 = vadd.f32 %v3779_v17, %v3722_v11  ;;  %v4551_v11 = vunpack.c.l.b16 %v4548_v52  ;;  %v4735_v17 = vrot.slane %v4733_v42, 5  ;;  %v4713_v14 = vrot.slane %v4711_v46, 5 }
 0x2bd   : > { %v3471_v2 = vpop.f32.mrf.mxu0  ;;  %v4761_v52 = vshll.u32 %v9085_v1, 16  ;;  %v4637_v46 = vunpack.c.l.b16 %v9011_v57 }
 0x2be   : > { %v3485_v56 = vadd.f32 %v3471_v2, %v8896_v4  ;;  %v3651_v18 = vpop.f32.mrf.mxu1  ;;  %v7193_v4 = vld [vmem:[%s9855_s1 + $0x70] sm:$0x3]  ;;  %v4714_v12 = vsel %vm7446_vm4, %v4709_v3, %v4713_v14  ;;  %v7136_v3 = vld [vmem:[%s7427_s7 + $0x33c] sm:$0x1] }
 0x2bf   : > { %v5304_v37 = vsel %vm338_vm0, %v7193_v4, 0  ;;  %v4744_v4 = vshrl.u32 %v9066_v8, 16 }
 0x2c0   : > { %v3663_v10 = vadd.f32 %v3649_v51, %v3485_v56  ;;  %7110 = vmatmul.msk.bf16.gmra.mxu0 %vm325_vm1, %v4243_v54  ;;  %7125 = vmatmul.msk.bf16.gmra.mxu3 %vm325_vm1, %v4554_v25  ;;  %v4730_v51 = vshrl.u32 %v9045_v36, 16  ;;  %v4723_v54 = vrot.slane %v4722_v40, 4  ;;  %v4244_v56 = vpack.c.b16 %v4240_v26, %v4239_v6 }
 0x2c1   : > { %5313 = vmatpush.bf16.msra.mxu2 %v5304_v37  ;;  %v4638_v6 = vunpack.c.l.b16 %v9008_v19  ;;  %v4639_v26 = vunpack.c.l.b16 %v9045_v36 }
 0x2c2   : > { %v3711_v60 = vpop.f32.mrf.mxu2  ;;  %v3723_v29 = vadd.f32 %v3709_v20, %v3663_v10  ;;  %v4725_v20 = vshll.u32 %v7130_v48, 16  ;;  %v4732_v22 = vrot.slane %v4730_v51, 4 }
 0x2c3   : > { %v3782_v32 = vpop.f32.mrf.mxu3  ;;  %v4883_v19 = vpack.c.b16 %v4639_v26, %v4638_v6 }
 0x2c4   : > { %v9053_v31 = vadd.f32 %v3782_v32, %v3723_v29  ;;  %v4727_v25 = vrot.slane %v4725_v20, 5  ;;  %v4736_v49 = vor.u32 %v4735_v17, %v4732_v22  ;;  %v4749_v29 = vrot.slane %v4747_v23, 5 }
 0x2c5   : > { %v3473_v27 = vpop.f32.mrf.mxu0  ;;  %v4763_v20 = vrot.slane %v4761_v52, 5 }
 0x2c6   : > { %v3486_v50 = vadd.f32 %v3473_v27, %v8911_v43  ;;  %v3654_v58 = vpop.f32.mrf.mxu1  ;;  %v7132_v43 = vld [vmem:[%s7427_s7 + $0x32c] sm:$0x1]  ;;  %v4728_v10 = vsel %vm7446_vm4, %v4723_v54, %v4727_v25  ;;  %v4737_v38 = vrot.slane %v4736_v49, 4  ;;  %v4640_v49 = vunpack.c.l.b16 %v9066_v8 }
 0x2c7   : > { %7121 = vmatmul.msk.bf16.gmra.mxu2 %vm325_vm1, %v4482_v41  ;;  %v4739_v55 = vshll.u32 %v7132_v43, 16  ;;  %v4816_v13 = vunpack.c.l.b16 %v4728_v10 }
 0x2c8   : > { %v3664_v61 = vadd.f32 %v3651_v18, %v3486_v50  ;;  %v4555_v18 = vpack.c.b16 %v4551_v11, %v9030_v30 }
 0x2c9   : > { %7116 = vmatmul.msk.bf16.gmra.mxu1 %vm325_vm1, %v4422_v62  ;;  %v4741_v24 = vrot.slane %v4739_v55, 5  ;;  %v4758_v62 = vshrl.u32 %v9085_v1, 16  ;;  %v4641_v55 = vunpack.c.l.b16 %v9085_v1 }
 0x2ca   : > { %v3714_v28 = vpop.f32.mrf.mxu2  ;;  %v3724_v34 = vadd.f32 %v3711_v60, %v3664_v61  ;;  %v4746_v60 = vrot.slane %v4744_v4, 4  ;;  %v9101_v61 = vld [vmem:[%s7427_s7 + $0x340] sm:$0xf] }
 0x2cb   : > { %v3784_v2 = vpop.f32.mrf.mxu3  ;;  %v4742_v53 = vsel %vm7446_vm4, %v4737_v38, %v4741_v24  ;;  %v4760_v40 = vrot.slane %v4758_v62, 4  ;;  %v4772_v57 = vshrl.u32 %v9101_v61, 16  ;;  %v4775_v25 = vshll.u32 %v9101_v61, 16 }
 0x2cc   : > { %v9068_v5 = vadd.f32 %v3784_v2, %v3724_v34  ;;  %v4750_v42 = vor.u32 %v4749_v29, %v4746_v60  ;;  %v4884_v8 = vpack.c.b16 %v4641_v55, %v4640_v49 }
 0x2cd   : > { %v3476_v35 = vpop.f32.mrf.mxu0  ;;  %v4764_v2 = vor.u32 %v4763_v20, %v4760_v40  ;;  %v4777_v10 = vrot.slane %v4775_v25, 5  ;;  %v4642_v25 = vunpack.c.l.b16 %v9101_v61 }
 0x2ce   : > { %v3487_v16 = vadd.f32 %v3476_v35, %v8933_v45  ;;  %v3656_v21 = vpop.f32.mrf.mxu1  ;;  %v4815_v45 = vunpack.c.l.b16 %v4714_v12  ;;  %v4751_v17 = vrot.slane %v4750_v42, 4 }
 0x2cf   : > { %v4765_v23 = vrot.slane %v4764_v2, 4 }
 0x2d0   : > { %v3665_v30 = vadd.f32 %v3654_v58, %v3487_v16  ;;  %7111 = vmatmul.msk.bf16.gmra.mxu0 %vm325_vm1, %v4244_v56  ;;  %7126 = vmatmul.msk.bf16.gmra.mxu3 %vm325_vm1, %v4555_v18  ;;  %v4823_v48 = vpack.c.b16 %v4816_v13, %v4815_v45  ;;  %v4817_v58 = vunpack.c.l.b16 %v4742_v53  ;;  %v4767_v56 = vshll.u32 %v7136_v3, 16 }
 0x2d2   : > { %v3716_v37 = vpop.f32.mrf.mxu2  ;;  %v3725_v9 = vadd.f32 %v3714_v28, %v3665_v30  ;;  %v4645_v28 = vpack.c.b16 %v4638_v6, %v4637_v46  ;;  %v4956_v54 = vpack.c.b16 %v4817_v58, %v4816_v13  ;;  %v4769_v6 = vrot.slane %v4767_v56, 5  ;;  %v9117_v13 = vld [vmem:[%s7427_s7 + $0x348] sm:$0xf] }
 0x2d3   : > { %v3787_v7 = vpop.f32.mrf.mxu3  ;;  %v4789_v63 = vshll.u32 %v9117_v13, 16  ;;  %v4643_v36 = vunpack.c.l.b16 %v9117_v13 }
 0x2d4   : > { %v9090_v32 = vadd.f32 %v3787_v7, %v3725_v9  ;;  %v4770_v7 = vsel %vm7446_vm4, %v4765_v23, %v4769_v6 }
 0x2d5   : > { %v3478_v41 = vpop.f32.mrf.mxu0  ;;  %v4819_v62 = vunpack.c.l.b16 %v4770_v7  ;;  %v4791_v42 = vrot.slane %v4789_v63, 5  ;;  %v9165_v63 = vld [vmem:[%s7427_s7 + $0x368] sm:$0xf] }
 0x2d6   : > { %v3488_v27 = vadd.f32 %v3478_v41, %v8947_v47  ;;  %v4043_v51 = vpop.f32.mrf.mxu1  ;;  %v4755_v47 = vrot.slane %v4753_v15, 5 }
 0x2d7   : > { %7156 = vmatmul.msk.bf16.vlgmr.msrb.gmra.mxu2 %vm325_vm1, %v4883_v19  ;;  %v4786_v19 = vshrl.u32 %v9117_v13, 16 }
 0x2d8   : > { %v3666_v50 = vadd.f32 %v3656_v21, %v3488_v27  ;;  %v4756_v12 = vsel %vm7446_vm4, %v4751_v17, %v4755_v47  ;;  %v4774_v21 = vrot.slane %v4772_v57, 4 }
 0x2d9   : > { %7151 = vmatmul.msk.bf16.vlgmr.msrb.gmra.mxu1 %vm325_vm1, %v4823_v48  ;;  %v4818_v4 = vunpack.c.l.b16 %v4756_v12 }
 0x2da   : > { %v4103_v11 = vpop.f32.mrf.mxu2  ;;  %v3726_v22 = vadd.f32 %v3716_v37, %v3666_v50  ;;  %v4778_v37 = vor.u32 %v4777_v10, %v4774_v21  ;;  %v7140_v50 = vld [vmem:[%s7427_s7 + $0x34c] sm:$0x1]  ;;  %v7142_v21 = vld [vmem:[%s7427_s7 + $0x354] sm:$0x1] }
 0x2db   : > { %v3789_v14 = vpop.f32.mrf.mxu3  ;;  %v4824_v29 = vpack.c.b16 %v4818_v4, %v4817_v58  ;;  %v9132_v58 = vld [vmem:[%s7427_s7 + $0x350] sm:$0xf]  ;;  %v4795_v3 = vshll.u32 %v7140_v50, 16 }
 0x2dc   : > { %v9104_v34 = vadd.f32 %v3789_v14, %v3726_v22  ;;  %v4779_v52 = vrot.slane %v4778_v37, 4  ;;  %v4800_v14 = vshrl.u32 %v9132_v58, 16 }
 0x2dd   : > { %v3865_v43 = vpop.f32.mrf.mxu0 }
 0x2de   : > { %v3885_v18 = vadd.f32 %v3865_v43, %v8964_v33  ;;  %v4045_v35 = vpop.f32.mrf.mxu1  ;;  %v7138_v33 = vld [vmem:[%s7427_s7 + $0x344] sm:$0x1] }
 0x2df   : > { %v4781_v9 = vshll.u32 %v7138_v33, 16 }
 0x2e0   : > { %v4063_v16 = vadd.f32 %v4043_v51, %v3885_v18  ;;  %7146 = vmatmul.msk.bf16.vlgmr.msrb.gmra.mxu0 %vm325_vm1, %v4645_v28  ;;  %7161 = vmatmul.msk.bf16.vlgmr.msrb.gmra.mxu3 %vm325_vm1, %v4956_v54  ;;  %v4788_v51 = vrot.slane %v4786_v19, 4  ;;  %v4803_v28 = vshll.u32 %v9132_v58, 16  ;;  %v4797_v18 = vrot.slane %v4795_v3, 5  ;;  %v7144_v19 = vld [vmem:[%s7427_s7 + $0x35c] sm:$0x1] }
 0x2e1   : > { %v4783_v27 = vrot.slane %v4781_v9, 5 }
 0x2e2   : > { %v4105_v30 = vpop.f32.mrf.mxu2  ;;  %v4123_v45 = vadd.f32 %v4103_v11, %v4063_v16  ;;  %v4957_v11 = vpack.c.b16 %v4819_v62, %v4818_v4  ;;  %v4792_v47 = vor.u32 %v4791_v42, %v4788_v51  ;;  %v4805_v12 = vrot.slane %v4803_v28, 5 }
 0x2e3   : > { %v4176_v38 = vpop.f32.mrf.mxu3  ;;  %v4784_v22 = vsel %vm7446_vm4, %v4779_v52, %v4783_v27  ;;  %v4885_v4 = vpack.c.b16 %v4643_v36, %v4642_v25  ;;  %v4949_v51 = vshll.u32 %v7144_v19, 16  ;;  %v5120_v42 = vshrl.u32 %v9165_v63, 16 }
 0x2e4   : > { %v9121_v24 = vadd.f32 %v4176_v38, %v4123_v45  ;;  %v4820_v2 = vunpack.c.l.b16 %v4784_v22  ;;  %v4793_v56 = vrot.slane %v4792_v47, 4  ;;  %v4809_v38 = vshll.u32 %v7142_v21, 16  ;;  %v7226_v21 = vld [vmem:[%s9855_s1 + $0x3a] sm:$0x3] }
 0x2e5   : > { %v3867_v60 = vpop.f32.mrf.mxu0 }
 0x2e6   : > { %v3886_v41 = vadd.f32 %v3867_v60, %v8977_v59  ;;  %v4048_v48 = vpop.f32.mrf.mxu1  ;;  %v4646_v59 = vpack.c.b16 %v4640_v49, %v4639_v26  ;;  %v9146_v26 = vld [vmem:[%s7427_s7 + $0x358] sm:$0xf]  ;;  %v4825_v33 = vpack.c.b16 %v4820_v2, %v4819_v62 }
 0x2e7   : > { %7157 = vmatmul.msk.bf16.gmra.mxu2 %vm325_vm1, %v4884_v8  ;;  %v4940_v16 = vshrl.u32 %v9146_v26, 16  ;;  %v4943_v61 = vshll.u32 %v9146_v26, 16  ;;  %v4882_v28 = vunpack.c.l.b16 %v9146_v26  ;;  %v7236_v26 = vld [vmem:[%s9855_s1 + $0x7a] sm:$0x3] }
 0x2e8   : > { %v4064_v53 = vadd.f32 %v4045_v35, %v3886_v41  ;;  %v4802_v35 = vrot.slane %v4800_v14, 4  ;;  %v9168_v41 = vld [vmem:[%s7427_s7 + $0x360] sm:$0xf]  ;;  %v4644_v14 = vunpack.c.l.b16 %v9132_v58  ;;  %v7221_v58 = vld [vmem:[%s9855_s1 + $0x32] sm:$0x3] }
 0x2e9   : > { %7152 = vmatmul.msk.bf16.gmra.mxu1 %vm325_vm1, %v4824_v29  ;;  %v4942_v9 = vrot.slane %v4940_v16, 4  ;;  %v4945_v60 = vrot.slane %v4943_v61, 5  ;;  %v9202_v16 = vld [vmem:[%s7427_s7 + $0x370] sm:$0xf]  ;;  %v7166_v61 = vld [vmem:[%s7427_s7 + $0x364] sm:$0x1] }
 0x2ea   : > { %v4108_v15 = vpop.f32.mrf.mxu2  ;;  %v4124_v46 = vadd.f32 %v4105_v30, %v4064_v53  ;;  %v4798_v30 = vsel %vm7446_vm4, %v4793_v56, %v4797_v18  ;;  %v4806_v45 = vor.u32 %v4805_v12, %v4802_v35  ;;  %v4811_v53 = vrot.slane %v4809_v38, 5 }
 0x2eb   : > { %v4178_v40 = vpop.f32.mrf.mxu3  ;;  %v9161_v7 = vunpack.c.l.b16 %v4798_v30  ;;  %v5470_v35 = vsel %vm338_vm0, %v7221_v58, 0  ;;  %v5781_v12 = vsel %vm338_vm0, %v7236_v26, 0 }
 0x2ec   : > { %v9134_v20 = vadd.f32 %v4178_v40, %v4124_v46  ;;  %v5106_v46 = vshrl.u32 %v9168_v41, 16  ;;  %v4647_v40 = vpack.c.b16 %v4642_v25, %v4641_v55  ;;  %5479 = vmatpush.bf16.msrb.mxu0 %v5470_v35  ;;  %5790 = vmatpush.bf16.msrb.mxu3 %v5781_v12  ;;  %v9242_v12 = vld [vmem:[%s7427_s7 + $0x380] sm:$0xf] }
 0x2ed   : > { %v3870_v17 = vpop.f32.mrf.mxu0 }
 0x2ee   : > { %v3887_v54 = vadd.f32 %v3870_v17, %v8998_v39  ;;  %v4050_v57 = vpop.f32.mrf.mxu1  ;;  %v5109_v17 = vshll.u32 %v9168_v41, 16  ;;  %v5108_v55 = vrot.slane %v5106_v46, 4 }
 0x2f0   : > { %v4065_v43 = vadd.f32 %v4048_v48, %v3887_v54  ;;  %7147 = vmatmul.msk.bf16.gmra.mxu0 %vm325_vm1, %v4646_v59  ;;  %7162 = vmatmul.msk.bf16.gmra.mxu3 %vm325_vm1, %v4957_v11  ;;  %v4807_v48 = vrot.slane %v4806_v45, 4  ;;  %v4958_v59 = vpack.c.b16 %v9161_v7, %v4820_v2  ;;  %v5111_v56 = vrot.slane %v5109_v17, 5 }
 0x2f2   : > { %v4110_v49 = vpop.f32.mrf.mxu2  ;;  %v4125_v39 = vadd.f32 %v4108_v15, %v4065_v43  ;;  %v5123_v15 = vshll.u32 %v9165_v63, 16  ;;  %v4812_v22 = vsel %vm7446_vm4, %v4807_v48, %v4811_v53  ;;  %v5122_v43 = vrot.slane %v5120_v42, 4 }
 0x2f3   : > { %v4181_v10 = vpop.f32.mrf.mxu3  ;;  %v9187_v2 = vunpack.c.l.b16 %v4812_v22  ;;  %v9223_v22 = vld [vmem:[%s7427_s7 + $0x378] sm:$0xf] }
 0x2f4   : > { %v9155_v23 = vadd.f32 %v4181_v10, %v4125_v39  ;;  %v5125_v1 = vrot.slane %v5123_v15, 5  ;;  %v5151_v13 = vshll.u32 %v9223_v22, 16 }
 0x2f5   : > { %v3872_v6 = vpop.f32.mrf.mxu0  ;;  %v4826_v45 = vpack.c.b16 %v9187_v2, %v9161_v7 }
 0x2f6   : > { %v3888_v8 = vadd.f32 %v3872_v6, %v9017_v0  ;;  %v4053_v37 = vpop.f32.mrf.mxu1  ;;  %v4946_v0 = vor.u32 %v4945_v60, %v4942_v9  ;;  %v7168_v6 = vld [vmem:[%s7427_s7 + $0x36c] sm:$0x1]  ;;  %v5137_v9 = vshll.u32 %v9202_v16, 16  ;;  %v5112_v60 = vor.u32 %v5111_v56, %v5108_v55 }
 0x2f7   : > { %7158 = vmatmul.msk.bf16.gmra.mxu2 %vm325_vm1, %v4885_v4  ;;  %v4886_v4 = vpack.c.b16 %v4882_v28, %v4644_v14  ;;  %v5126_v53 = vor.u32 %v5125_v1, %v5122_v43 }
 0x2f8   : > { %v4066_v29 = vadd.f32 %v4050_v57, %v3888_v8  ;;  %v4947_v54 = vrot.slane %v4946_v0, 4  ;;  %v4951_v57 = vrot.slane %v4949_v51, 5  ;;  %v5113_v51 = vrot.slane %v5112_v60, 4 }
 0x2f9   : > { %7153 = vmatmul.msk.bf16.gmra.mxu1 %vm325_vm1, %v4825_v33  ;;  %v5648_v33 = vsel %vm338_vm0, %v7226_v21, 0  ;;  %v7172_v21 = vld [vmem:[%s7427_s7 + $0x37c] sm:$0x1] }
 0x2fa   : > { %v4113_v62 = vpop.f32.mrf.mxu2  ;;  %v4126_v52 = vadd.f32 %v4110_v49, %v4066_v29  ;;  %v4952_v38 = vsel %vm7446_vm4, %v4947_v54, %v4951_v57  ;;  %5657 = vmatpush.bf16.msrb.mxu1 %v5648_v33  ;;  %v5115_v29 = vshll.u32 %v7166_v61, 16  ;;  %v5157_v60 = vshll.u32 %v7172_v21, 16 }
 0x2fb   : > { %v4183_v27 = vpop.f32.mrf.mxu3 }
 0x2fc   : > { %v9174_v50 = vadd.f32 %v4183_v27, %v4126_v52  ;;  %v4955_v52 = vunpack.c.l.b16 %v4952_v38  ;;  %v5139_v27 = vrot.slane %v5137_v9, 5  ;;  %v5117_v42 = vrot.slane %v5115_v29, 5 }
 0x2fd   : > { %v3875_v11 = vpop.f32.mrf.mxu0  ;;  %v5165_v38 = vshll.u32 %v9242_v12, 16  ;;  %v5041_v29 = vunpack.c.l.b16 %v9168_v41 }
 0x2fe   : > { %v3889_v47 = vadd.f32 %v3875_v11, %v9053_v31  ;;  %v4055_v3 = vpop.f32.mrf.mxu1  ;;  %v7231_v31 = vld [vmem:[%s9855_s1 + $0x72] sm:$0x3]  ;;  %v5118_v54 = vsel %vm7446_vm4, %v5113_v51, %v5117_v42  ;;  %v7174_v51 = vld [vmem:[%s7427_s7 + $0x384] sm:$0x1] }
 0x2ff   : > { %v5708_v18 = vsel %vm338_vm0, %v7231_v31, 0  ;;  %v5148_v31 = vshrl.u32 %v9223_v22, 16 }
 0x300   : > { %v4067_v25 = vadd.f32 %v4053_v37, %v3889_v47  ;;  %7148 = vmatmul.msk.bf16.gmra.mxu0 %vm325_vm1, %v4647_v40  ;;  %7163 = vmatmul.msk.bf16.gmra.mxu3 %vm325_vm1, %v4958_v59  ;;  %v5134_v37 = vshrl.u32 %v9202_v16, 16  ;;  %v5127_v40 = vrot.slane %v5126_v53, 4  ;;  %v4648_v47 = vpack.c.b16 %v4644_v14, %v4643_v36 }
 0x301   : > { %5717 = vmatpush.bf16.msrb.mxu2 %v5708_v18  ;;  %v5042_v36 = vunpack.c.l.b16 %v9165_v63  ;;  %v5043_v14 = vunpack.c.l.b16 %v9202_v16 }
 0x302   : > { %v4115_v49 = vpop.f32.mrf.mxu2  ;;  %v4127_v39 = vadd.f32 %v4113_v62, %v4067_v25  ;;  %v5129_v62 = vshll.u32 %v7168_v6, 16  ;;  %v5136_v0 = vrot.slane %v5134_v37, 4 }
 0x303   : > { %v4186_v10 = vpop.f32.mrf.mxu3  ;;  %v5287_v63 = vpack.c.b16 %v5043_v14, %v5042_v36 }
 0x304   : > { %v9210_v30 = vadd.f32 %v4186_v10, %v4127_v39  ;;  %v5131_v59 = vrot.slane %v5129_v62, 5  ;;  %v5140_v57 = vor.u32 %v5139_v27, %v5136_v0  ;;  %v5153_v39 = vrot.slane %v5151_v13, 5 }
 0x305   : > { %v3877_v8 = vpop.f32.mrf.mxu0  ;;  %v5167_v62 = vrot.slane %v5165_v38, 5 }
 0x306   : > { %v3890_v19 = vadd.f32 %v3877_v8, %v9068_v5  ;;  %v4058_v48 = vpop.f32.mrf.mxu1  ;;  %v7170_v5 = vld [vmem:[%s7427_s7 + $0x374] sm:$0x1]  ;;  %v5132_v25 = vsel %vm7446_vm4, %v5127_v40, %v5131_v59  ;;  %v5141_v26 = vrot.slane %v5140_v57, 4  ;;  %v5044_v57 = vunpack.c.l.b16 %v9223_v22 }
 0x307   : > { %7159 = vmatmul.msk.bf16.gmra.mxu2 %vm325_vm1, %v4886_v4  ;;  %v5143_v43 = vshll.u32 %v7170_v5, 16  ;;  %v5220_v58 = vunpack.c.l.b16 %v5132_v25 }
 0x308   : > { %v4068_v7 = vadd.f32 %v4055_v3, %v3890_v19  ;;  %v4959_v3 = vpack.c.b16 %v4955_v52, %v9187_v2 }
 0x309   : > { %7154 = vmatmul.msk.bf16.gmra.mxu1 %vm325_vm1, %v4826_v45  ;;  %v5145_v56 = vrot.slane %v5143_v43, 5  ;;  %v5162_v45 = vshrl.u32 %v9242_v12, 16  ;;  %v5045_v43 = vunpack.c.l.b16 %v9242_v12 }
 0x30a   : > { %v4118_v15 = vpop.f32.mrf.mxu2  ;;  %v4128_v46 = vadd.f32 %v4115_v49, %v4068_v7  ;;  %v5150_v49 = vrot.slane %v5148_v31, 4  ;;  %v9258_v7 = vld [vmem:[%s7427_s7 + $0x388] sm:$0xf] }
 0x30b   : > { %v4188_v11 = vpop.f32.mrf.mxu3  ;;  %v5146_v33 = vsel %vm7446_vm4, %v5141_v26, %v5145_v56  ;;  %v5164_v53 = vrot.slane %v5162_v45, 4  ;;  %v5176_v41 = vshrl.u32 %v9258_v7, 16  ;;  %v5179_v59 = vshll.u32 %v9258_v7, 16 }
 0x30c   : > { %v9225_v17 = vadd.f32 %v4188_v11, %v4128_v46  ;;  %v5154_v9 = vor.u32 %v5153_v39, %v5150_v49  ;;  %v5288_v22 = vpack.c.b16 %v5045_v43, %v5044_v57 }
 0x30d   : > { %v3880_v28 = vpop.f32.mrf.mxu0  ;;  %v5168_v11 = vor.u32 %v5167_v62, %v5164_v53  ;;  %v5181_v25 = vrot.slane %v5179_v59, 5  ;;  %v5046_v59 = vunpack.c.l.b16 %v9258_v7 }
 0x30e   : > { %v3891_v1 = vadd.f32 %v3880_v28, %v9090_v32  ;;  %v4060_v55 = vpop.f32.mrf.mxu1  ;;  %v5219_v32 = vunpack.c.l.b16 %v5118_v54  ;;  %v5155_v27 = vrot.slane %v5154_v9, 4 }
 0x30f   : > { %v5169_v13 = vrot.slane %v5168_v11, 4 }
 0x310   : > { %v4069_v2 = vadd.f32 %v4058_v48, %v3891_v1  ;;  %7149 = vmatmul.msk.bf16.gmra.mxu0 %vm325_vm1, %v4648_v47  ;;  %7164 = vmatmul.msk.bf16.gmra.mxu3 %vm325_vm1, %v4959_v3  ;;  %v5227_v6 = vpack.c.b16 %v5220_v58, %v5219_v32  ;;  %v5221_v48 = vunpack.c.l.b16 %v5146_v33  ;;  %v5171_v47 = vshll.u32 %v7174_v51, 16 }
 0x312   : > { %v4120_v18 = vpop.f32.mrf.mxu2  ;;  %v4129_v35 = vadd.f32 %v4118_v15, %v4069_v2  ;;  %v5049_v15 = vpack.c.b16 %v5042_v36, %v5041_v29  ;;  %v5360_v40 = vpack.c.b16 %v5221_v48, %v5220_v58  ;;  %v5173_v36 = vrot.slane %v5171_v47, 5  ;;  %v9274_v58 = vld [vmem:[%s7427_s7 + $0x390] sm:$0xf] }
 0x313   : > { %v4191_v61 = vpop.f32.mrf.mxu3  ;;  %v5193_v21 = vshll.u32 %v9274_v58, 16  ;;  %v5047_v16 = vunpack.c.l.b16 %v9274_v58 }
 0x314   : > { %v9247_v10 = vadd.f32 %v4191_v61, %v4129_v35  ;;  %v5174_v61 = vsel %vm7446_vm4, %v5169_v13, %v5173_v36 }
 0x315   : > { %v3882_v4 = vpop.f32.mrf.mxu0  ;;  %v5223_v45 = vunpack.c.l.b16 %v5174_v61  ;;  %v5195_v9 = vrot.slane %v5193_v21, 5  ;;  %v9322_v21 = vld [vmem:[%s7427_s7 + $0x3b0] sm:$0xf] }
 0x316   : > { %v3892_v8 = vadd.f32 %v3882_v4, %v9104_v34  ;;  %v4447_v37 = vpop.f32.mrf.mxu1  ;;  %v5159_v34 = vrot.slane %v5157_v60, 5 }
 0x317   : > { %7194 = vmatmul.msk.bf16.vlgmr.msra.gmra.mxu2 %vm325_vm1, %v5287_v63  ;;  %v5190_v63 = vshrl.u32 %v9274_v58, 16 }
 0x318   : > { %v4070_v19 = vadd.f32 %v4060_v55, %v3892_v8  ;;  %v5160_v54 = vsel %vm7446_vm4, %v5155_v27, %v5159_v34  ;;  %v5178_v55 = vrot.slane %v5176_v41, 4 }
 0x319   : > { %7189 = vmatmul.msk.bf16.vlgmr.msra.gmra.mxu1 %vm325_vm1, %v5227_v6  ;;  %v5222_v31 = vunpack.c.l.b16 %v5160_v54 }
 0x31a   : > { %v4507_v52 = vpop.f32.mrf.mxu2  ;;  %v4130_v0 = vadd.f32 %v4120_v18, %v4070_v19  ;;  %v5182_v18 = vor.u32 %v5181_v25, %v5178_v55  ;;  %v7178_v19 = vld [vmem:[%s7427_s7 + $0x394] sm:$0x1]  ;;  %v7180_v55 = vld [vmem:[%s7427_s7 + $0x39c] sm:$0x1] }
 0x31b   : > { %v4193_v42 = vpop.f32.mrf.mxu3  ;;  %v5228_v39 = vpack.c.b16 %v5222_v31, %v5221_v48  ;;  %v9289_v48 = vld [vmem:[%s7427_s7 + $0x398] sm:$0xf]  ;;  %v5199_v51 = vshll.u32 %v7178_v19, 16 }
 0x31c   : > { %v9261_v46 = vadd.f32 %v4193_v42, %v4130_v0  ;;  %v5183_v38 = vrot.slane %v5182_v18, 4  ;;  %v5204_v42 = vshrl.u32 %v9289_v48, 16 }
 0x31d   : > { %v4269_v5 = vpop.f32.mrf.mxu0 }
 0x31e   : > { %v4289_v3 = vadd.f32 %v4269_v5, %v9121_v24  ;;  %v4449_v28 = vpop.f32.mrf.mxu1  ;;  %v7176_v24 = vld [vmem:[%s7427_s7 + $0x38c] sm:$0x1] }
 0x31f   : > { %v5185_v35 = vshll.u32 %v7176_v24, 16 }
 0x320   : > { %v4467_v1 = vadd.f32 %v4447_v37, %v4289_v3  ;;  %7184 = vmatmul.msk.bf16.vlgmr.msra.gmra.mxu0 %vm325_vm1, %v5049_v15  ;;  %7199 = vmatmul.msk.bf16.vlgmr.msra.gmra.mxu3 %vm325_vm1, %v5360_v40  ;;  %v5192_v37 = vrot.slane %v5190_v63, 4  ;;  %v5207_v15 = vshll.u32 %v9289_v48, 16  ;;  %v5201_v3 = vrot.slane %v5199_v51, 5  ;;  %v7182_v63 = vld [vmem:[%s7427_s7 + $0x3a4] sm:$0x1] }
 0x321   : > { %v5187_v8 = vrot.slane %v5185_v35, 5 }
 0x322   : > { %v4509_v2 = vpop.f32.mrf.mxu2  ;;  %v4527_v32 = vadd.f32 %v4507_v52, %v4467_v1  ;;  %v5361_v52 = vpack.c.b16 %v5223_v45, %v5222_v31  ;;  %v5196_v34 = vor.u32 %v5195_v9, %v5192_v37  ;;  %v5209_v54 = vrot.slane %v5207_v15, 5 }
 0x323   : > { %v4580_v26 = vpop.f32.mrf.mxu3  ;;  %v5188_v0 = vsel %vm7446_vm4, %v5183_v38, %v5187_v8  ;;  %v5289_v31 = vpack.c.b16 %v5047_v16, %v5046_v59  ;;  %v5353_v37 = vshll.u32 %v7182_v63, 16  ;;  %v5524_v9 = vshrl.u32 %v9322_v21, 16 }
 0x324   : > { %v9278_v56 = vadd.f32 %v4580_v26, %v4527_v32  ;;  %v5224_v11 = vunpack.c.l.b16 %v5188_v0  ;;  %v5197_v47 = vrot.slane %v5196_v34, 4  ;;  %v5213_v26 = vshll.u32 %v7180_v55, 16  ;;  %v7264_v55 = vld [vmem:[%s9855_s1 + $0x3c] sm:$0x3] }
 0x325   : > { %v4271_v49 = vpop.f32.mrf.mxu0 }
 0x326   : > { %v4290_v4 = vadd.f32 %v4271_v49, %v9134_v20  ;;  %v4452_v6 = vpop.f32.mrf.mxu1  ;;  %v5050_v20 = vpack.c.b16 %v5044_v57, %v5043_v14  ;;  %v9303_v14 = vld [vmem:[%s7427_s7 + $0x3a0] sm:$0xf]  ;;  %v5229_v24 = vpack.c.b16 %v5224_v11, %v5223_v45 }
 0x327   : > { %7195 = vmatmul.msk.bf16.gmra.mxu2 %vm325_vm1, %v5288_v22  ;;  %v5344_v1 = vshrl.u32 %v9303_v14, 16  ;;  %v5347_v7 = vshll.u32 %v9303_v14, 16  ;;  %v5286_v15 = vunpack.c.l.b16 %v9303_v14  ;;  %v7274_v14 = vld [vmem:[%s9855_s1 + $0x7c] sm:$0x3] }
 0x328   : > { %v4468_v33 = vadd.f32 %v4449_v28, %v4290_v4  ;;  %v5206_v28 = vrot.slane %v5204_v42, 4  ;;  %v9325_v4 = vld [vmem:[%s7427_s7 + $0x3a8] sm:$0xf]  ;;  %v5048_v42 = vunpack.c.l.b16 %v9289_v48  ;;  %v7259_v48 = vld [vmem:[%s9855_s1 + $0x34] sm:$0x3] }
 0x329   : > { %7190 = vmatmul.msk.bf16.gmra.mxu1 %vm325_vm1, %v5228_v39  ;;  %v5346_v35 = vrot.slane %v5344_v1, 4  ;;  %v5349_v49 = vrot.slane %v5347_v7, 5  ;;  %v9359_v1 = vld [vmem:[%s7427_s7 + $0x3b8] sm:$0xf]  ;;  %v7204_v7 = vld [vmem:[%s7427_s7 + $0x3ac] sm:$0x1] }
 0x32a   : > { %v4512_v60 = vpop.f32.mrf.mxu2  ;;  %v4528_v29 = vadd.f32 %v4509_v2, %v4468_v33  ;;  %v5202_v2 = vsel %vm7446_vm4, %v5197_v47, %v5201_v3  ;;  %v5210_v32 = vor.u32 %v5209_v54, %v5206_v28  ;;  %v5215_v33 = vrot.slane %v5213_v26, 5 }
 0x32b   : > { %v4582_v53 = vpop.f32.mrf.mxu3  ;;  %v9318_v61 = vunpack.c.l.b16 %v5202_v2  ;;  %v5874_v28 = vsel %vm338_vm0, %v7259_v48, 0  ;;  %v6185_v54 = vsel %vm338_vm0, %v7274_v14, 0 }
 0x32c   : > { %v9291_v62 = vadd.f32 %v4582_v53, %v4528_v29  ;;  %v5510_v29 = vshrl.u32 %v9325_v4, 16  ;;  %v5051_v53 = vpack.c.b16 %v5046_v59, %v5045_v43  ;;  %5883 = vmatpush.bf16.msra.mxu0 %v5874_v28  ;;  %6194 = vmatpush.bf16.msra.mxu3 %v6185_v54  ;;  %v9399_v54 = vld [vmem:[%s7427_s7 + $0x3c8] sm:$0xf] }
 0x32d   : > { %v4274_v27 = vpop.f32.mrf.mxu0 }
 0x32e   : > { %v4291_v40 = vadd.f32 %v4274_v27, %v9155_v23  ;;  %v4454_v41 = vpop.f32.mrf.mxu1  ;;  %v5513_v27 = vshll.u32 %v9325_v4, 16  ;;  %v5512_v43 = vrot.slane %v5510_v29, 4 }
 0x330   : > { %v4469_v5 = vadd.f32 %v4452_v6, %v4291_v40  ;;  %7185 = vmatmul.msk.bf16.gmra.mxu0 %vm325_vm1, %v5050_v20  ;;  %7200 = vmatmul.msk.bf16.gmra.mxu3 %vm325_vm1, %v5361_v52  ;;  %v5211_v6 = vrot.slane %v5210_v32, 4  ;;  %v5362_v20 = vpack.c.b16 %v9318_v61, %v5224_v11  ;;  %v5515_v47 = vrot.slane %v5513_v27, 5 }
 0x332   : > { %v4514_v57 = vpop.f32.mrf.mxu2  ;;  %v4529_v23 = vadd.f32 %v4512_v60, %v4469_v5  ;;  %v5527_v60 = vshll.u32 %v9322_v21, 16  ;;  %v5216_v0 = vsel %vm7446_vm4, %v5211_v6, %v5215_v33  ;;  %v5526_v5 = vrot.slane %v5524_v9, 4 }
 0x333   : > { %v4585_v25 = vpop.f32.mrf.mxu3  ;;  %v9344_v11 = vunpack.c.l.b16 %v5216_v0  ;;  %v9380_v0 = vld [vmem:[%s7427_s7 + $0x3c0] sm:$0xf] }
 0x334   : > { %v9312_v13 = vadd.f32 %v4585_v25, %v4529_v23  ;;  %v5529_v12 = vrot.slane %v5527_v60, 5  ;;  %v5555_v58 = vshll.u32 %v9380_v0, 16 }
 0x335   : > { %v4276_v36 = vpop.f32.mrf.mxu0  ;;  %v5230_v32 = vpack.c.b16 %v9344_v11, %v9318_v61 }
 0x336   : > { %v4292_v22 = vadd.f32 %v4276_v36, %v9174_v50  ;;  %v4457_v18 = vpop.f32.mrf.mxu1  ;;  %v5350_v50 = vor.u32 %v5349_v49, %v5346_v35  ;;  %v7206_v36 = vld [vmem:[%s7427_s7 + $0x3b4] sm:$0x1]  ;;  %v5541_v35 = vshll.u32 %v9359_v1, 16  ;;  %v5516_v49 = vor.u32 %v5515_v47, %v5512_v43 }
 0x337   : > { %7196 = vmatmul.msk.bf16.gmra.mxu2 %vm325_vm1, %v5289_v31  ;;  %v5290_v31 = vpack.c.b16 %v5286_v15, %v5048_v42  ;;  %v5530_v33 = vor.u32 %v5529_v12, %v5526_v5 }
 0x338   : > { %v4470_v39 = vadd.f32 %v4454_v41, %v4292_v22  ;;  %v5351_v40 = vrot.slane %v5350_v50, 4  ;;  %v5355_v41 = vrot.slane %v5353_v37, 5  ;;  %v5517_v37 = vrot.slane %v5516_v49, 4 }
 0x339   : > { %7191 = vmatmul.msk.bf16.gmra.mxu1 %vm325_vm1, %v5229_v24  ;;  %v6052_v24 = vsel %vm338_vm0, %v7264_v55, 0  ;;  %v7210_v55 = vld [vmem:[%s7427_s7 + $0x3c4] sm:$0x1] }
 0x33a   : > { %v4517_v45 = vpop.f32.mrf.mxu2  ;;  %v4530_v38 = vadd.f32 %v4514_v57, %v4470_v39  ;;  %v5356_v26 = vsel %vm7446_vm4, %v5351_v40, %v5355_v41  ;;  %6061 = vmatpush.bf16.msra.mxu1 %v6052_v24  ;;  %v5519_v39 = vshll.u32 %v7204_v7, 16  ;;  %v5561_v49 = vshll.u32 %v7210_v55, 16 }
 0x33b   : > { %v4587_v8 = vpop.f32.mrf.mxu3 }
 0x33c   : > { %v9331_v19 = vadd.f32 %v4587_v8, %v4530_v38  ;;  %v5359_v38 = vunpack.c.l.b16 %v5356_v26  ;;  %v5543_v8 = vrot.slane %v5541_v35, 5  ;;  %v5521_v9 = vrot.slane %v5519_v39, 5 }
 0x33d   : > { %v4279_v52 = vpop.f32.mrf.mxu0  ;;  %v5569_v26 = vshll.u32 %v9399_v54, 16  ;;  %v5445_v39 = vunpack.c.l.b16 %v9325_v4 }
 0x33e   : > { %v4293_v34 = vadd.f32 %v4279_v52, %v9210_v30  ;;  %v4459_v51 = vpop.f32.mrf.mxu1  ;;  %v7269_v30 = vld [vmem:[%s9855_s1 + $0x74] sm:$0x3]  ;;  %v5522_v40 = vsel %vm7446_vm4, %v5517_v37, %v5521_v9  ;;  %v7212_v37 = vld [vmem:[%s7427_s7 + $0x3cc] sm:$0x1] }
 0x33f   : > { %v6112_v3 = vsel %vm338_vm0, %v7269_v30, 0  ;;  %v5552_v30 = vshrl.u32 %v9380_v0, 16 }
 0x340   : > { %v4471_v59 = vadd.f32 %v4457_v18, %v4293_v34  ;;  %7186 = vmatmul.msk.bf16.gmra.mxu0 %vm325_vm1, %v5051_v53  ;;  %7201 = vmatmul.msk.bf16.gmra.mxu3 %vm325_vm1, %v5362_v20  ;;  %v5538_v18 = vshrl.u32 %v9359_v1, 16  ;;  %v5531_v53 = vrot.slane %v5530_v33, 4  ;;  %v5052_v34 = vpack.c.b16 %v5048_v42, %v5047_v16 }
 0x341   : > { %6121 = vmatpush.bf16.msra.mxu2 %v6112_v3  ;;  %v5446_v16 = vunpack.c.l.b16 %v9322_v21  ;;  %v5447_v42 = vunpack.c.l.b16 %v9359_v1 }
 0x342   : > { %v4519_v57 = vpop.f32.mrf.mxu2  ;;  %v4531_v23 = vadd.f32 %v4517_v45, %v4471_v59  ;;  %v5533_v45 = vshll.u32 %v7206_v36, 16  ;;  %v5540_v50 = vrot.slane %v5538_v18, 4 }
 0x343   : > { %v4590_v25 = vpop.f32.mrf.mxu3  ;;  %v5691_v21 = vpack.c.b16 %v5447_v42, %v5446_v16 }
 0x344   : > { %v9367_v2 = vadd.f32 %v4590_v25, %v4531_v23  ;;  %v5535_v20 = vrot.slane %v5533_v45, 5  ;;  %v5544_v41 = vor.u32 %v5543_v8, %v5540_v50  ;;  %v5557_v23 = vrot.slane %v5555_v58, 5 }
 0x345   : > { %v4281_v22 = vpop.f32.mrf.mxu0  ;;  %v5571_v45 = vrot.slane %v5569_v26, 5 }
 0x346   : > { %v4294_v63 = vadd.f32 %v4281_v22, %v9225_v17  ;;  %v4462_v6 = vpop.f32.mrf.mxu1  ;;  %v7208_v17 = vld [vmem:[%s7427_s7 + $0x3bc] sm:$0x1]  ;;  %v5536_v59 = vsel %vm7446_vm4, %v5531_v53, %v5535_v20  ;;  %v5545_v14 = vrot.slane %v5544_v41, 4  ;;  %v5448_v41 = vunpack.c.l.b16 %v9380_v0 }
 0x347   : > { %7197 = vmatmul.msk.bf16.gmra.mxu2 %vm325_vm1, %v5290_v31  ;;  %v5547_v5 = vshll.u32 %v7208_v17, 16  ;;  %v5624_v48 = vunpack.c.l.b16 %v5536_v59 }
 0x348   : > { %v4472_v61 = vadd.f32 %v4459_v51, %v4294_v63  ;;  %v5363_v51 = vpack.c.b16 %v5359_v38, %v9344_v11 }
 0x349   : > { %7192 = vmatmul.msk.bf16.gmra.mxu1 %vm325_vm1, %v5230_v32  ;;  %v5549_v47 = vrot.slane %v5547_v5, 5  ;;  %v5566_v32 = vshrl.u32 %v9399_v54, 16  ;;  %v5449_v5 = vunpack.c.l.b16 %v9399_v54 }
 0x34a   : > { %v4522_v60 = vpop.f32.mrf.mxu2  ;;  %v4532_v29 = vadd.f32 %v4519_v57, %v4472_v61  ;;  %v5554_v57 = vrot.slane %v5552_v30, 4  ;;  %v9415_v61 = vld [vmem:[%s7427_s7 + $0x3d0] sm:$0xf] }
 0x34b   : > { %v4592_v52 = vpop.f32.mrf.mxu3  ;;  %v5550_v24 = vsel %vm7446_vm4, %v5545_v14, %v5549_v47  ;;  %v5568_v33 = vrot.slane %v5566_v32, 4  ;;  %v5580_v4 = vshrl.u32 %v9415_v61, 16  ;;  %v5583_v20 = vshll.u32 %v9415_v61, 16 }
 0x34c   : > { %v9382_v27 = vadd.f32 %v4592_v52, %v4532_v29  ;;  %v5558_v35 = vor.u32 %v5557_v23, %v5554_v57  ;;  %v5692_v0 = vpack.c.b16 %v5449_v5, %v5448_v41 }
 0x34d   : > { %v4284_v15 = vpop.f32.mrf.mxu0  ;;  %v5572_v52 = vor.u32 %v5571_v45, %v5568_v33  ;;  %v5585_v59 = vrot.slane %v5583_v20, 5  ;;  %v5450_v20 = vunpack.c.l.b16 %v9415_v61 }
 0x34e   : > { %v4295_v12 = vadd.f32 %v4284_v15, %v9247_v10  ;;  %v4464_v43 = vpop.f32.mrf.mxu1  ;;  %v5623_v10 = vunpack.c.l.b16 %v5522_v40  ;;  %v5559_v8 = vrot.slane %v5558_v35, 4 }
 0x34f   : > { %v5573_v58 = vrot.slane %v5572_v52, 4 }
 0x350   : > { %v4473_v11 = vadd.f32 %v4462_v6, %v4295_v12  ;;  %7187 = vmatmul.msk.bf16.gmra.mxu0 %vm325_vm1, %v5052_v34  ;;  %7202 = vmatmul.msk.bf16.gmra.mxu3 %vm325_vm1, %v5363_v51  ;;  %v5631_v36 = vpack.c.b16 %v5624_v48, %v5623_v10  ;;  %v5625_v6 = vunpack.c.l.b16 %v5550_v24  ;;  %v5575_v34 = vshll.u32 %v7212_v37, 16 }
 0x352   : > { %v4524_v3 = vpop.f32.mrf.mxu2  ;;  %v4533_v28 = vadd.f32 %v4522_v60, %v4473_v11  ;;  %v5453_v60 = vpack.c.b16 %v5446_v16, %v5445_v39  ;;  %v5764_v53 = vpack.c.b16 %v5625_v6, %v5624_v48  ;;  %v5577_v16 = vrot.slane %v5575_v34, 5  ;;  %v9431_v48 = vld [vmem:[%s7427_s7 + $0x3d8] sm:$0xf] }
 0x353   : > { %v4595_v7 = vpop.f32.mrf.mxu3  ;;  %v5597_v55 = vshll.u32 %v9431_v48, 16  ;;  %v5451_v1 = vunpack.c.l.b16 %v9431_v48 }
 0x354   : > { %v9404_v25 = vadd.f32 %v4595_v7, %v4533_v28  ;;  %v5578_v7 = vsel %vm7446_vm4, %v5573_v58, %v5577_v16 }
 0x355   : > { %v4286_v31 = vpop.f32.mrf.mxu0  ;;  %v5627_v32 = vunpack.c.l.b16 %v5578_v7  ;;  %v5599_v35 = vrot.slane %v5597_v55, 5  ;;  %v9479_v55 = vld [vmem:[%s7427_s7 + $0x3f8] sm:$0xf] }
 0x356   : > { %v4296_v22 = vadd.f32 %v4286_v31, %v9261_v46  ;;  %v4851_v18 = vpop.f32.mrf.mxu1  ;;  %v5563_v46 = vrot.slane %v5561_v49, 5 }
 0x357   : > { %7232 = vmatmul.msk.bf16.vlgmr.msrb.gmra.mxu2 %vm325_vm1, %v5691_v21  ;;  %v5594_v21 = vshrl.u32 %v9431_v48, 16 }
 0x358   : > { %v4474_v63 = vadd.f32 %v4464_v43, %v4296_v22  ;;  %v5564_v40 = vsel %vm7446_vm4, %v5559_v8, %v5563_v46  ;;  %v5582_v43 = vrot.slane %v5580_v4, 4 }
 0x359   : > { %7227 = vmatmul.msk.bf16.vlgmr.msrb.gmra.mxu1 %vm325_vm1, %v5631_v36  ;;  %v5626_v30 = vunpack.c.l.b16 %v5564_v40 }
 0x35a   : > { %v4911_v38 = vpop.f32.mrf.mxu2  ;;  %v4534_v50 = vadd.f32 %v4524_v3, %v4474_v63  ;;  %v5586_v3 = vor.u32 %v5585_v59, %v5582_v43  ;;  %v7216_v63 = vld [vmem:[%s7427_s7 + $0x3dc] sm:$0x1]  ;;  %v7218_v43 = vld [vmem:[%s7427_s7 + $0x3e4] sm:$0x1] }
 0x35b   : > { %v4597_v9 = vpop.f32.mrf.mxu3  ;;  %v5632_v23 = vpack.c.b16 %v5626_v30, %v5625_v6  ;;  %v9446_v6 = vld [vmem:[%s7427_s7 + $0x3e0] sm:$0xf]  ;;  %v5603_v37 = vshll.u32 %v7216_v63, 16 }
 0x35c   : > { %v9418_v29 = vadd.f32 %v4597_v9, %v4534_v50  ;;  %v5587_v26 = vrot.slane %v5586_v3, 4  ;;  %v5608_v9 = vshrl.u32 %v9446_v6, 16 }
 0x35d   : > { %v4673_v17 = vpop.f32.mrf.mxu0 }
 0x35e   : > { %v4693_v51 = vadd.f32 %v4673_v17, %v9278_v56  ;;  %v4853_v15 = vpop.f32.mrf.mxu1  ;;  %v7214_v56 = vld [vmem:[%s7427_s7 + $0x3d4] sm:$0x1] }
 0x35f   : > { %v5589_v28 = vshll.u32 %v7214_v56, 16 }
 0x360   : > { %v4871_v12 = vadd.f32 %v4851_v18, %v4693_v51  ;;  %7222 = vmatmul.msk.bf16.vlgmr.msrb.gmra.mxu0 %vm325_vm1, %v5453_v60  ;;  %7237 = vmatmul.msk.bf16.vlgmr.msrb.gmra.mxu3 %vm325_vm1, %v5764_v53  ;;  %v5596_v18 = vrot.slane %v5594_v21, 4  ;;  %v5611_v60 = vshll.u32 %v9446_v6, 16  ;;  %v5605_v51 = vrot.slane %v5603_v37, 5  ;;  %v7220_v21 = vld [vmem:[%s7427_s7 + $0x3ec] sm:$0x1] }
 0x361   : > { %v5591_v22 = vrot.slane %v5589_v28, 5 }
 0x362   : > { %v4913_v11 = vpop.f32.mrf.mxu2  ;;  %v4931_v10 = vadd.f32 %v4911_v38, %v4871_v12  ;;  %v5765_v38 = vpack.c.b16 %v5627_v32, %v5626_v30  ;;  %v5600_v46 = vor.u32 %v5599_v35, %v5596_v18  ;;  %v5613_v40 = vrot.slane %v5611_v60, 5 }
 0x363   : > { %v4984_v14 = vpop.f32.mrf.mxu3  ;;  %v5592_v50 = vsel %vm7446_vm4, %v5587_v26, %v5591_v22  ;;  %v5693_v30 = vpack.c.b16 %v5451_v1, %v5450_v20  ;;  %v5757_v18 = vshll.u32 %v7220_v21, 16  ;;  %v5928_v35 = vshrl.u32 %v9479_v55, 16 }
 0x364   : > { %v9435_v47 = vadd.f32 %v4984_v14, %v4931_v10  ;;  %v5628_v52 = vunpack.c.l.b16 %v5592_v50  ;;  %v5601_v34 = vrot.slane %v5600_v46, 4  ;;  %v5617_v14 = vshll.u32 %v7218_v43, 16  ;;  %v7302_v43 = vld [vmem:[%s9855_s1 + $0x3e] sm:$0x3] }
 0x365   : > { %v4675_v57 = vpop.f32.mrf.mxu0 }
 0x366   : > { %v4694_v31 = vadd.f32 %v4675_v57, %v9291_v62  ;;  %v4856_v36 = vpop.f32.mrf.mxu1  ;;  %v5454_v62 = vpack.c.b16 %v5448_v41, %v5447_v42  ;;  %v9460_v42 = vld [vmem:[%s7427_s7 + $0x3e8] sm:$0xf]  ;;  %v5633_v56 = vpack.c.b16 %v5628_v52, %v5627_v32 }
 0x367   : > { %7233 = vmatmul.msk.bf16.gmra.mxu2 %vm325_vm1, %v5692_v0  ;;  %v5748_v12 = vshrl.u32 %v9460_v42, 16  ;;  %v5751_v61 = vshll.u32 %v9460_v42, 16  ;;  %v5690_v60 = vunpack.c.l.b16 %v9460_v42  ;;  %v7312_v42 = vld [vmem:[%s9855_s1 + $0x7e] sm:$0x3] }
 0x368   : > { %v4872_v24 = vadd.f32 %v4853_v15, %v4694_v31  ;;  %v5610_v15 = vrot.slane %v5608_v9, 4  ;;  %v9482_v31 = vld [vmem:[%s7427_s7 + $0x3f0] sm:$0xf]  ;;  %v5452_v9 = vunpack.c.l.b16 %v9446_v6  ;;  %v7297_v6 = vld [vmem:[%s9855_s1 + $0x36] sm:$0x3] }
 0x369   : > { %7228 = vmatmul.msk.bf16.gmra.mxu1 %vm325_vm1, %v5632_v23  ;;  %v5750_v28 = vrot.slane %v5748_v12, 4  ;;  %v5753_v57 = vrot.slane %v5751_v61, 5  ;;  %v9516_v12 = vld [vmem:[%s7427_s7 + $0x400] sm:$0xf]  ;;  %v7242_v61 = vld [vmem:[%s7427_s7 + $0x3f4] sm:$0x1] }
 0x36a   : > { %v4916_v49 = vpop.f32.mrf.mxu2  ;;  %v4932_v39 = vadd.f32 %v4913_v11, %v4872_v24  ;;  %v5606_v11 = vsel %vm7446_vm4, %v5601_v34, %v5605_v51  ;;  %v5614_v10 = vor.u32 %v5613_v40, %v5610_v15  ;;  %v5619_v24 = vrot.slane %v5617_v14, 5 }
 0x36b   : > { %v4986_v33 = vpop.f32.mrf.mxu3  ;;  %v9475_v7 = vunpack.c.l.b16 %v5606_v11  ;;  %v6278_v15 = vsel %vm338_vm0, %v7297_v6, 0  ;;  %v6589_v40 = vsel %vm338_vm0, %v7312_v42, 0 }
 0x36c   : > { %v9448_v45 = vadd.f32 %v4986_v33, %v4932_v39  ;;  %v5914_v39 = vshrl.u32 %v9482_v31, 16  ;;  %v5455_v33 = vpack.c.b16 %v5450_v20, %v5449_v5  ;;  %6287 = vmatpush.bf16.msrb.mxu0 %v6278_v15  ;;  %6598 = vmatpush.bf16.msrb.mxu3 %v6589_v40  ;;  %v9556_v40 = vld [vmem:[%s7427_s7 + $0x410] sm:$0xf] }
 0x36d   : > { %v4678_v8 = vpop.f32.mrf.mxu0 }
 0x36e   : > { %v4695_v53 = vadd.f32 %v4678_v8, %v9312_v13  ;;  %v4858_v4 = vpop.f32.mrf.mxu1  ;;  %v5917_v8 = vshll.u32 %v9482_v31, 16  ;;  %v5916_v5 = vrot.slane %v5914_v39, 4 }
 0x370   : > { %v4873_v17 = vadd.f32 %v4856_v36, %v4695_v53  ;;  %7223 = vmatmul.msk.bf16.gmra.mxu0 %vm325_vm1, %v5454_v62  ;;  %7238 = vmatmul.msk.bf16.gmra.mxu3 %vm325_vm1, %v5765_v38  ;;  %v5615_v36 = vrot.slane %v5614_v10, 4  ;;  %v5766_v62 = vpack.c.b16 %v9475_v7, %v5628_v52  ;;  %v5919_v34 = vrot.slane %v5917_v8, 5 }
 0x372   : > { %v4918_v41 = vpop.f32.mrf.mxu2  ;;  %v4933_v13 = vadd.f32 %v4916_v49, %v4873_v17  ;;  %v5931_v49 = vshll.u32 %v9479_v55, 16  ;;  %v5620_v50 = vsel %vm7446_vm4, %v5615_v36, %v5619_v24  ;;  %v5930_v17 = vrot.slane %v5928_v35, 4 }
 0x373   : > { %v4989_v59 = vpop.f32.mrf.mxu3  ;;  %v9501_v52 = vunpack.c.l.b16 %v5620_v50  ;;  %v9537_v50 = vld [vmem:[%s7427_s7 + $0x408] sm:$0xf] }
 0x374   : > { %v9469_v58 = vadd.f32 %v4989_v59, %v4933_v13  ;;  %v5933_v54 = vrot.slane %v5931_v49, 5  ;;  %v5959_v48 = vshll.u32 %v9537_v50, 16 }
 0x375   : > { %v4680_v16 = vpop.f32.mrf.mxu0  ;;  %v5634_v10 = vpack.c.b16 %v9501_v52, %v9475_v7 }
 0x376   : > { %v4696_v0 = vadd.f32 %v4680_v16, %v9331_v19  ;;  %v4861_v3 = vpop.f32.mrf.mxu1  ;;  %v5754_v19 = vor.u32 %v5753_v57, %v5750_v28  ;;  %v7244_v16 = vld [vmem:[%s7427_s7 + $0x3fc] sm:$0x1]  ;;  %v5945_v28 = vshll.u32 %v9516_v12, 16  ;;  %v5920_v57 = vor.u32 %v5919_v34, %v5916_v5 }
 0x377   : > { %7234 = vmatmul.msk.bf16.gmra.mxu2 %vm325_vm1, %v5693_v30  ;;  %v5694_v30 = vpack.c.b16 %v5690_v60, %v5452_v9  ;;  %v5934_v24 = vor.u32 %v5933_v54, %v5930_v17 }
 0x378   : > { %v4874_v23 = vadd.f32 %v4858_v4, %v4696_v0  ;;  %v5755_v53 = vrot.slane %v5754_v19, 4  ;;  %v5759_v4 = vrot.slane %v5757_v18, 5  ;;  %v5921_v18 = vrot.slane %v5920_v57, 4 }
 0x379   : > { %7229 = vmatmul.msk.bf16.gmra.mxu1 %vm325_vm1, %v5633_v56  ;;  %v6456_v56 = vsel %vm338_vm0, %v7302_v43, 0  ;;  %v7248_v43 = vld [vmem:[%s7427_s7 + $0x40c] sm:$0x1] }
 0x37a   : > { %v4921_v32 = vpop.f32.mrf.mxu2  ;;  %v4934_v26 = vadd.f32 %v4918_v41, %v4874_v23  ;;  %v5760_v14 = vsel %vm7446_vm4, %v5755_v53, %v5759_v4  ;;  %6465 = vmatpush.bf16.msrb.mxu1 %v6456_v56  ;;  %v5923_v23 = vshll.u32 %v7242_v61, 16  ;;  %v5965_v57 = vshll.u32 %v7248_v43, 16 }
 0x37b   : > { %v4991_v22 = vpop.f32.mrf.mxu3 }
 0x37c   : > { %v9488_v63 = vadd.f32 %v4991_v22, %v4934_v26  ;;  %v5763_v26 = vunpack.c.l.b16 %v5760_v14  ;;  %v5947_v22 = vrot.slane %v5945_v28, 5  ;;  %v5925_v35 = vrot.slane %v5923_v23, 5 }
 0x37d   : > { %v4683_v38 = vpop.f32.mrf.mxu0  ;;  %v5973_v14 = vshll.u32 %v9556_v40, 16  ;;  %v5849_v23 = vunpack.c.l.b16 %v9482_v31 }
 0x37e   : > { %v4697_v46 = vadd.f32 %v4683_v38, %v9367_v2  ;;  %v4863_v37 = vpop.f32.mrf.mxu1  ;;  %v7307_v2 = vld [vmem:[%s9855_s1 + $0x76] sm:$0x3]  ;;  %v5926_v53 = vsel %vm7446_vm4, %v5921_v18, %v5925_v35  ;;  %v7250_v18 = vld [vmem:[%s7427_s7 + $0x414] sm:$0x1] }
 0x37f   : > { %v6516_v51 = vsel %vm338_vm0, %v7307_v2, 0  ;;  %v5956_v2 = vshrl.u32 %v9537_v50, 16 }
 0x380   : > { %v4875_v20 = vadd.f32 %v4861_v3, %v4697_v46  ;;  %7224 = vmatmul.msk.bf16.gmra.mxu0 %vm325_vm1, %v5455_v33  ;;  %7239 = vmatmul.msk.bf16.gmra.mxu3 %vm325_vm1, %v5766_v62  ;;  %v5942_v3 = vshrl.u32 %v9516_v12, 16  ;;  %v5935_v33 = vrot.slane %v5934_v24, 4  ;;  %v5456_v46 = vpack.c.b16 %v5452_v9, %v5451_v1 }
 0x381   : > { %6525 = vmatpush.bf16.msrb.mxu2 %v6516_v51  ;;  %v5850_v1 = vunpack.c.l.b16 %v9479_v55  ;;  %v5851_v9 = vunpack.c.l.b16 %v9516_v12 }
 0x382   : > { %v4923_v41 = vpop.f32.mrf.mxu2  ;;  %v4935_v13 = vadd.f32 %v4921_v32, %v4875_v20  ;;  %v5937_v32 = vshll.u32 %v7244_v16, 16  ;;  %v5944_v19 = vrot.slane %v5942_v3, 4 }
 0x383   : > { %v4994_v59 = vpop.f32.mrf.mxu3  ;;  %v6095_v55 = vpack.c.b16 %v5851_v9, %v5850_v1 }
 0x384   : > { %v9524_v11 = vadd.f32 %v4994_v59, %v4935_v13  ;;  %v5939_v62 = vrot.slane %v5937_v32, 5  ;;  %v5948_v4 = vor.u32 %v5947_v22, %v5944_v19  ;;  %v5961_v13 = vrot.slane %v5959_v48, 5 }
 0x385   : > { %v4685_v0 = vpop.f32.mrf.mxu0  ;;  %v5975_v32 = vrot.slane %v5973_v14, 5 }
 0x386   : > { %v4698_v21 = vadd.f32 %v4685_v0, %v9382_v27  ;;  %v4866_v36 = vpop.f32.mrf.mxu1  ;;  %v7246_v27 = vld [vmem:[%s7427_s7 + $0x404] sm:$0x1]  ;;  %v5940_v20 = vsel %vm7446_vm4, %v5935_v33, %v5939_v62  ;;  %v5949_v42 = vrot.slane %v5948_v4, 4  ;;  %v5852_v4 = vunpack.c.l.b16 %v9537_v50 }
 0x387   : > { %7235 = vmatmul.msk.bf16.gmra.mxu2 %vm325_vm1, %v5694_v30  ;;  %v5951_v17 = vshll.u32 %v7246_v27, 16  ;;  %v6028_v6 = vunpack.c.l.b16 %v5940_v20 }
 0x388   : > { %v4876_v7 = vadd.f32 %v4863_v37, %v4698_v21  ;;  %v5767_v37 = vpack.c.b16 %v5763_v26, %v9501_v52 }
 0x389   : > { %7230 = vmatmul.msk.bf16.gmra.mxu1 %vm325_vm1, %v5634_v10  ;;  %v5953_v34 = vrot.slane %v5951_v17, 5  ;;  %v5970_v10 = vshrl.u32 %v9556_v40, 16  ;;  %v5853_v17 = vunpack.c.l.b16 %v9556_v40 }
 0x38a   : > { %v4926_v49 = vpop.f32.mrf.mxu2  ;;  %v4936_v39 = vadd.f32 %v4923_v41, %v4876_v7  ;;  %v5958_v41 = vrot.slane %v5956_v2, 4  ;;  %v9572_v7 = vld [vmem:[%s7427_s7 + $0x418] sm:$0xf] }
 0x38b   : > { %v4996_v38 = vpop.f32.mrf.mxu3  ;;  %v5954_v56 = vsel %vm7446_vm4, %v5949_v42, %v5953_v34  ;;  %v5972_v24 = vrot.slane %v5970_v10, 4  ;;  %v5984_v31 = vshrl.u32 %v9572_v7, 16  ;;  %v5987_v62 = vshll.u32 %v9572_v7, 16 }
 0x38c   : > { %v9539_v8 = vadd.f32 %v4996_v38, %v4936_v39  ;;  %v5962_v28 = vor.u32 %v5961_v13, %v5958_v41  ;;  %v6096_v50 = vpack.c.b16 %v5853_v17, %v5852_v4 }
 0x38d   : > { %v4688_v60 = vpop.f32.mrf.mxu0  ;;  %v5976_v38 = vor.u32 %v5975_v32, %v5972_v24  ;;  %v5989_v20 = vrot.slane %v5987_v62, 5  ;;  %v5854_v62 = vunpack.c.l.b16 %v9572_v7 }
 0x38e   : > { %v4699_v54 = vadd.f32 %v4688_v60, %v9404_v25  ;;  %v4868_v5 = vpop.f32.mrf.mxu1  ;;  %v6027_v25 = vunpack.c.l.b16 %v5926_v53  ;;  %v5963_v22 = vrot.slane %v5962_v28, 4 }
 0x38f   : > { %v5977_v48 = vrot.slane %v5976_v38, 4 }
 0x390   : > { %v4877_v52 = vadd.f32 %v4866_v36, %v4699_v54  ;;  %7225 = vmatmul.msk.bf16.gmra.mxu0 %vm325_vm1, %v5456_v46  ;;  %7240 = vmatmul.msk.bf16.gmra.mxu3 %vm325_vm1, %v5767_v37  ;;  %v6035_v16 = vpack.c.b16 %v6028_v6, %v6027_v25  ;;  %v6029_v36 = vunpack.c.l.b16 %v5954_v56  ;;  %v5979_v46 = vshll.u32 %v7250_v18, 16 }
 0x392   : > { %v4928_v51 = vpop.f32.mrf.mxu2  ;;  %v4937_v15 = vadd.f32 %v4926_v49, %v4877_v52  ;;  %v5857_v49 = vpack.c.b16 %v5850_v1, %v5849_v23  ;;  %v6168_v33 = vpack.c.b16 %v6029_v36, %v6028_v6  ;;  %v5981_v1 = vrot.slane %v5979_v46, 5  ;;  %v9588_v6 = vld [vmem:[%s7427_s7 + $0x420] sm:$0xf] }
 0x393   : > { %v4999_v61 = vpop.f32.mrf.mxu3  ;;  %v6001_v43 = vshll.u32 %v9588_v6, 16  ;;  %v5855_v12 = vunpack.c.l.b16 %v9588_v6 }
 0x394   : > { %v9561_v59 = vadd.f32 %v4999_v61, %v4937_v15  ;;  %v5982_v61 = vsel %vm7446_vm4, %v5977_v48, %v5981_v1 }
 0x395   : > { %v4690_v30 = vpop.f32.mrf.mxu0  ;;  %v6031_v10 = vunpack.c.l.b16 %v5982_v61  ;;  %v6003_v28 = vrot.slane %v6001_v43, 5  ;;  %v6097_v7 = vpack.c.b16 %v5855_v12, %v5854_v62 }
 0x396   : > { %v4700_v0 = vadd.f32 %v4690_v30, %v9418_v29  ;;  %v5255_v3 = vpop.f32.mrf.mxu1  ;;  %v5967_v29 = vrot.slane %v5965_v57, 5 }
 0x397   : > { %7270 = vmatmul.msk.bf16.vlgmr.msra.gmra.mxu2 %vm325_vm1, %v6095_v55  ;;  %v5998_v55 = vshrl.u32 %v9588_v6, 16 }
 0x398   : > { %v4878_v21 = vadd.f32 %v4868_v5, %v4700_v0  ;;  %v5968_v53 = vsel %vm7446_vm4, %v5963_v22, %v5967_v29  ;;  %v5986_v5 = vrot.slane %v5984_v31, 4 }
 0x399   : > { %7265 = vmatmul.msk.bf16.vlgmr.msra.gmra.mxu1 %vm325_vm1, %v6035_v16  ;;  %v6030_v2 = vunpack.c.l.b16 %v5968_v53 }
 0x39a   : > { %v5315_v26 = vpop.f32.mrf.mxu2  ;;  %v4938_v19 = vadd.f32 %v4928_v51, %v4878_v21  ;;  %v5990_v51 = vor.u32 %v5989_v20, %v5986_v5  ;;  %v7254_v21 = vld [vmem:[%s7427_s7 + $0x424] sm:$0x1] }
 0x39b   : > { %v5001_v35 = vpop.f32.mrf.mxu3  ;;  %v6036_v13 = vpack.c.b16 %v6030_v2, %v6029_v36  ;;  %v9603_v36 = vld [vmem:[%s7427_s7 + $0x428] sm:$0xf]  ;;  %v6007_v18 = vshll.u32 %v7254_v21, 16 }
 0x39c   : > { %v9575_v39 = vadd.f32 %v5001_v35, %v4938_v19  ;;  %v5991_v14 = vrot.slane %v5990_v51, 4  ;;  %v6012_v35 = vshrl.u32 %v9603_v36, 16 }
 0x39d   : > { %v5077_v27 = vpop.f32.mrf.mxu0  ;;  %v6009_v46 = vrot.slane %v6007_v18, 5 }
 0x39e   : > { %v5097_v37 = vadd.f32 %v5077_v27, %v9435_v47  ;;  %v5257_v60 = vpop.f32.mrf.mxu1  ;;  %v7252_v47 = vld [vmem:[%s7427_s7 + $0x41c] sm:$0x1] }
 0x39f   : > { %v5993_v15 = vshll.u32 %v7252_v47, 16 }
 0x3a0   : > { %v5275_v54 = vadd.f32 %v5255_v3, %v5097_v37  ;;  %7260 = vmatmul.msk.bf16.vlgmr.msra.gmra.mxu0 %vm325_vm1, %v5857_v49  ;;  %7275 = vmatmul.msk.bf16.vlgmr.msra.gmra.mxu3 %vm325_vm1, %v6168_v33  ;;  %v6000_v3 = vrot.slane %v5998_v55, 4  ;;  %v6015_v49 = vshll.u32 %v9603_v36, 16  ;;  %v9619_v37 = vld [vmem:[%s7427_s7 + $0x430] sm:$0xf] }
 0x3a1   : > { %v5995_v0 = vrot.slane %v5993_v15, 5  ;;  %v6155_v48 = vshll.u32 %v9619_v37, 16  ;;  %v6094_v18 = vunpack.c.l.b16 %v9619_v37 }
 0x3a2   : > { %v5317_v52 = vpop.f32.mrf.mxu2  ;;  %v5335_v25 = vadd.f32 %v5315_v26, %v5275_v54  ;;  %v6169_v26 = vpack.c.b16 %v6031_v10, %v6030_v2  ;;  %v6004_v29 = vor.u32 %v6003_v28, %v6000_v3  ;;  %v6017_v53 = vrot.slane %v6015_v49, 5 }
 0x3a3   : > { %v5388_v42 = vpop.f32.mrf.mxu3  ;;  %v5996_v19 = vsel %vm7446_vm4, %v5991_v14, %v5995_v0  ;;  %v6152_v2 = vshrl.u32 %v9619_v37, 16  ;;  %v6157_v61 = vrot.slane %v6155_v48, 5  ;;  %v9640_v0 = vld [vmem:[%s7427_s7 + $0x440] sm:$0xf] }
 0x3a4   : > { %v9592_v34 = vadd.f32 %v5388_v42, %v5335_v25  ;;  %v6032_v27 = vunpack.c.l.b16 %v5996_v19  ;;  %v6005_v38 = vrot.slane %v6004_v29, 4  ;;  %v5856_v29 = vunpack.c.l.b16 %v9603_v36  ;;  %v7280_v36 = vld [vmem:[%s7427_s7 + $0x43c] sm:$0x1] }
 0x3a5   : > { %v5079_v41 = vpop.f32.mrf.mxu0  ;;  %v6254_v6 = vunpack.c.l.b16 %v9640_v0 }
 0x3a6   : > { %v5098_v30 = vadd.f32 %v5079_v41, %v9448_v45  ;;  %v5260_v16 = vpop.f32.mrf.mxu1  ;;  %v5858_v45 = vpack.c.b16 %v5852_v4, %v5851_v9  ;;  %v6037_v47 = vpack.c.b16 %v6032_v27, %v6031_v10  ;;  %v9635_v10 = vld [vmem:[%s7427_s7 + $0x438] sm:$0xf]  ;;  %v6098_v37 = vpack.c.b16 %v6094_v18, %v5856_v29 }
 0x3a7   : > { %7271 = vmatmul.msk.bf16.gmra.mxu2 %vm325_vm1, %v6096_v50 }
 0x3a8   : > { %v5276_v56 = vadd.f32 %v5257_v60, %v5098_v30  ;;  %v6014_v60 = vrot.slane %v6012_v35, 4  ;;  %v7258_v30 = vld [vmem:[%s7427_s7 + $0x434] sm:$0x1] }
 0x3a9   : > { %7266 = vmatmul.msk.bf16.gmra.mxu1 %vm325_vm1, %v6036_v13  ;;  %v6154_v13 = vrot.slane %v6152_v2, 4 }
 0x3aa   : > { %v5320_v57 = vpop.f32.mrf.mxu2  ;;  %v5336_v23 = vadd.f32 %v5317_v52, %v5276_v56  ;;  %v6010_v52 = vsel %vm7446_vm4, %v6005_v38, %v6009_v46  ;;  %v6018_v25 = vor.u32 %v6017_v53, %v6014_v60  ;;  %v9656_v38 = vld [vmem:[%s7427_s7 + $0x448] sm:$0xf] }
 0x3ab   : > { %v5390_v24 = vpop.f32.mrf.mxu3  ;;  %v6033_v41 = vunpack.c.l.b16 %v6010_v52  ;;  %v6346_v2 = vshrl.u32 %v9656_v38, 16  ;;  %v6349_v48 = vshll.u32 %v9656_v38, 16 }
 0x3ac   : > { %v9605_v32 = vadd.f32 %v5390_v24, %v5336_v23  ;;  %v6019_v55 = vrot.slane %v6018_v25, 4  ;;  %v6161_v23 = vshll.u32 %v7258_v30, 16 }
 0x3ad   : > { %v5082_v22 = vpop.f32.mrf.mxu0  ;;  %v6170_v28 = vpack.c.b16 %v6033_v41, %v6032_v27 }
 0x3ae   : > { %v5099_v33 = vadd.f32 %v5082_v22, %v9469_v58  ;;  %v5262_v31 = vpop.f32.mrf.mxu1  ;;  %v7256_v58 = vld [vmem:[%s7427_s7 + $0x42c] sm:$0x1]  ;;  %v6335_v22 = vshll.u32 %v9640_v0, 16 }
 0x3af   : > { %v6021_v42 = vshll.u32 %v7256_v58, 16 }
 0x3b0   : > { %v5277_v9 = vadd.f32 %v5260_v16, %v5099_v33  ;;  %7261 = vmatmul.msk.bf16.gmra.mxu0 %vm325_vm1, %v5858_v45  ;;  %7276 = vmatmul.msk.bf16.gmra.mxu3 %vm325_vm1, %v6169_v26  ;;  %v6318_v45 = vshrl.u32 %v9635_v10, 16  ;;  %v6321_v26 = vshll.u32 %v9635_v10, 16  ;;  %v6337_v60 = vrot.slane %v6335_v22, 5 }
 0x3b1   : > { %v6023_v43 = vrot.slane %v6021_v42, 5 }
 0x3b2   : > { %v5322_v4 = vpop.f32.mrf.mxu2  ;;  %v5337_v54 = vadd.f32 %v5320_v57, %v5277_v9  ;;  %v6158_v57 = vor.u32 %v6157_v61, %v6154_v13  ;;  %v6351_v13 = vrot.slane %v6349_v48, 5 }
 0x3b3   : > { %v5393_v5 = vpop.f32.mrf.mxu3  ;;  %v6024_v24 = vsel %vm7446_vm4, %v6019_v55, %v6023_v43 }
 0x3b4   : > { %v9624_v20 = vadd.f32 %v5393_v5, %v5337_v54  ;;  %v6034_v49 = vunpack.c.l.b16 %v6024_v24  ;;  %v6159_v33 = vrot.slane %v6158_v57, 4  ;;  %v5860_v57 = vpack.c.b16 %v5856_v29, %v5855_v12 }
 0x3b5   : > { %v5084_v1 = vpop.f32.mrf.mxu0  ;;  %v6255_v12 = vunpack.c.l.b16 %v9656_v38 }
 0x3b6   : > { %v5100_v50 = vadd.f32 %v5084_v1, %v9488_v63  ;;  %v5265_v51 = vpop.f32.mrf.mxu1  ;;  %v5859_v63 = vpack.c.b16 %v5854_v62, %v5853_v17  ;;  %v6332_v17 = vshrl.u32 %v9640_v0, 16  ;;  %v6323_v62 = vrot.slane %v6321_v26, 5 }
 0x3b7   : > { %7272 = vmatmul.msk.bf16.gmra.mxu2 %vm325_vm1, %v6097_v7  ;;  %v6038_v58 = vpack.c.b16 %v6034_v49, %v6033_v41  ;;  %v6348_v41 = vrot.slane %v6346_v2, 4  ;;  %v6499_v0 = vpack.c.b16 %v6255_v12, %v6254_v6 }
 0x3b8   : > { %v5278_v15 = vadd.f32 %v5262_v31, %v5100_v50  ;;  %v6320_v31 = vrot.slane %v6318_v45, 4  ;;  %v6334_v46 = vrot.slane %v6332_v17, 4 }
 0x3b9   : > { %7267 = vmatmul.msk.bf16.gmra.mxu1 %vm325_vm1, %v6037_v47  ;;  %v6327_v47 = vshll.u32 %v7280_v36, 16  ;;  %v6352_v45 = vor.u32 %v6351_v13, %v6348_v41 }
 0x3ba   : > { %v5325_v16 = vpop.f32.mrf.mxu2  ;;  %v5338_v56 = vadd.f32 %v5322_v4, %v5278_v15  ;;  %v7282_v4 = vld [vmem:[%s7427_s7 + $0x444] sm:$0x1]  ;;  %v6324_v1 = vor.u32 %v6323_v62, %v6320_v31  ;;  %v6338_v42 = vor.u32 %v6337_v60, %v6334_v46  ;;  %v9689_v62 = vld [vmem:[%s7427_s7 + $0x458] sm:$0xf]  ;;  %v7286_v60 = vld [vmem:[%s7427_s7 + $0x454] sm:$0x1] }
 0x3bb   : > { %v5395_v14 = vpop.f32.mrf.mxu3  ;;  %v6341_v50 = vshll.u32 %v7282_v4, 16  ;;  %v6329_v55 = vrot.slane %v6327_v47, 5 }
 0x3bc   : > { %v9642_v3 = vadd.f32 %v5395_v14, %v5338_v56  ;;  %v6325_v61 = vrot.slane %v6324_v1, 4  ;;  %v6369_v1 = vshll.u32 %v7286_v60, 16 }
 0x3bd   : > { %v5087_v21 = vpop.f32.mrf.mxu0  ;;  %v6343_v56 = vrot.slane %v6341_v50, 5 }
 0x3be   : > { %v5101_v19 = vadd.f32 %v5087_v21, %v9524_v11  ;;  %v5267_v40 = vpop.f32.mrf.mxu1  ;;  %v6163_v11 = vrot.slane %v6161_v23, 5  ;;  %v6330_v24 = vsel %vm7446_vm4, %v6325_v61, %v6329_v55  ;;  %v6371_v13 = vrot.slane %v6369_v1, 5  ;;  %v7288_v61 = vld [vmem:[%s7427_s7 + $0x45c] sm:$0x1]  ;;  %v9706_v55 = vld [vmem:[%s7427_s7 + $0x460] sm:$0xf] }
 0x3c0   : > { %v5279_v35 = vadd.f32 %v5265_v51, %v5101_v19  ;;  %7262 = vmatmul.msk.bf16.gmra.mxu0 %vm325_vm1, %v5859_v63  ;;  %7277 = vmatmul.msk.bf16.gmra.mxu3 %vm325_vm1, %v6170_v28  ;;  %v6164_v5 = vsel %vm7446_vm4, %v6159_v33, %v6163_v11  ;;  %v9671_v63 = vld [vmem:[%s7427_s7 + $0x450] sm:$0xf] }
 0x3c1   : > { %v6167_v15 = vunpack.c.l.b16 %v6164_v5  ;;  %v6360_v22 = vshrl.u32 %v9671_v63, 16  ;;  %v6363_v18 = vshll.u32 %v9671_v63, 16  ;;  %v6377_v5 = vshll.u32 %v9689_v62, 16 }
 0x3c2   : > { %v5327_v9 = vpop.f32.mrf.mxu2  ;;  %v5339_v27 = vadd.f32 %v5325_v16, %v5279_v35  ;;  %v6339_v16 = vrot.slane %v6338_v42, 4 }
 0x3c3   : > { %v5398_v53 = vpop.f32.mrf.mxu3  ;;  %v6171_v23 = vpack.c.b16 %v6167_v15, %v6034_v49  ;;  %v6353_v49 = vrot.slane %v6352_v45, 4  ;;  %v6379_v50 = vrot.slane %v6377_v5, 5  ;;  %v6256_v45 = vunpack.c.l.b16 %v9671_v63 }
 0x3c4   : > { %v9660_v54 = vadd.f32 %v5398_v53, %v5339_v27  ;;  %v6344_v17 = vsel %vm7446_vm4, %v6339_v16, %v6343_v56  ;;  %v6365_v27 = vrot.slane %v6363_v18, 5 }
 0x3c5   : > { %v5089_v7 = vpop.f32.mrf.mxu0  ;;  %v6432_v35 = vunpack.c.l.b16 %v6344_v17 }
 0x3c6   : > { %v5102_v52 = vadd.f32 %v5089_v7, %v9539_v8  ;;  %v5270_v25 = vpop.f32.mrf.mxu1  ;;  %v7284_v8 = vld [vmem:[%s7427_s7 + $0x44c] sm:$0x1] }
 0x3c7   : > { %7273 = vmatmul.msk.bf16.gmra.mxu2 %vm325_vm1, %v6098_v37  ;;  %v6355_v26 = vshll.u32 %v7284_v8, 16 }
 0x3c8   : > { %v5280_v51 = vadd.f32 %v5267_v40, %v5102_v52  ;;  %v6253_v52 = vunpack.c.l.b16 %v9635_v10  ;;  %v6383_v10 = vshll.u32 %v7288_v61, 16 }
 0x3c9   : > { %7268 = vmatmul.msk.bf16.gmra.mxu1 %vm325_vm1, %v6038_v58  ;;  %v6357_v33 = vrot.slane %v6355_v26, 5  ;;  %v6374_v58 = vshrl.u32 %v9689_v62, 16  ;;  %v6257_v26 = vunpack.c.l.b16 %v9689_v62 }
 0x3ca   : > { %v5330_v43 = vpop.f32.mrf.mxu2  ;;  %v5340_v30 = vadd.f32 %v5327_v9, %v5280_v51  ;;  %v6362_v9 = vrot.slane %v6360_v22, 4  ;;  %v6385_v17 = vrot.slane %v6383_v10, 5 }
 0x3cb   : > { %v5400_v14 = vpop.f32.mrf.mxu3  ;;  %v6358_v4 = vsel %vm7446_vm4, %v6353_v49, %v6357_v33  ;;  %v6376_v42 = vrot.slane %v6374_v58, 4  ;;  %v6500_v63 = vpack.c.b16 %v6257_v26, %v6256_v45  ;;  %v7290_v49 = vld [vmem:[%s7427_s7 + $0x464] sm:$0x1] }
 0x3cc   : > { %v9673_v28 = vadd.f32 %v5400_v14, %v5340_v30  ;;  %v6366_v48 = vor.u32 %v6365_v27, %v6362_v9  ;;  %v6261_v30 = vpack.c.b16 %v6254_v6, %v6253_v52  ;;  %v9720_v6 = vld [vmem:[%s7427_s7 + $0x468] sm:$0xf]  ;;  %v7292_v52 = vld [vmem:[%s7427_s7 + $0x46c] sm:$0x1] }
 0x3cd   : > { %v5092_v21 = vpop.f32.mrf.mxu0  ;;  %v6380_v8 = vor.u32 %v6379_v50, %v6376_v42  ;;  %v6402_v27 = vshrl.u32 %v9720_v6, 16  ;;  %v9736_v42 = vld [vmem:[%s7427_s7 + $0x470] sm:$0xf]  ;;  %v6262_v50 = vpack.c.b16 %v6256_v45, %v6255_v12  ;;  %v6259_v38 = vunpack.c.l.b16 %v9720_v6 }
 0x3ce   : > { %v5103_v19 = vadd.f32 %v5092_v21, %v9561_v59  ;;  %v5272_v40 = vpop.f32.mrf.mxu1  ;;  %v6431_v59 = vunpack.c.l.b16 %v6330_v24  ;;  %v6367_v41 = vrot.slane %v6366_v48, 4  ;;  %v6388_v21 = vshrl.u32 %v9706_v55, 16 }
 0x3cf   : > { %v6391_v24 = vshll.u32 %v9706_v55, 16  ;;  %v6404_v5 = vrot.slane %v6402_v27, 4 }
 0x3d0   : > { %v5281_v29 = vadd.f32 %v5270_v25, %v5103_v19  ;;  %7263 = vmatmul.msk.bf16.gmra.mxu0 %vm325_vm1, %v5860_v57  ;;  %7278 = vmatmul.msk.bf16.gmra.mxu3 %vm325_vm1, %v6171_v23  ;;  %v6439_v37 = vpack.c.b16 %v6432_v35, %v6431_v59  ;;  %v6433_v25 = vunpack.c.l.b16 %v6358_v4  ;;  %v6372_v23 = vsel %vm7446_vm4, %v6367_v41, %v6371_v13 }
 0x3d1   : > { %v6393_v59 = vrot.slane %v6391_v24, 5  ;;  %v6411_v13 = vshll.u32 %v7292_v52, 16 }
 0x3d2   : > { %v5332_v11 = vpop.f32.mrf.mxu2  ;;  %v5341_v31 = vadd.f32 %v5330_v43, %v5281_v29  ;;  %v6572_v16 = vpack.c.b16 %v6433_v25, %v6432_v35  ;;  %v6390_v29 = vrot.slane %v6388_v21, 4  ;;  %v7295_v21 = vld [vmem:[%s7427_s7 + $0x478] sm:$0xf] }
 0x3d3   : > { %v5403_v46 = vpop.f32.mrf.mxu3 }
 0x3d4   : > { %v9694_v36 = vadd.f32 %v5403_v46, %v5341_v31  ;;  %v6405_v46 = vshll.u32 %v9720_v6, 16 }
 0x3d5   : > { %v5094_v53 = vpop.f32.mrf.mxu0 }
 0x3d6   : > { %v5104_v7 = vadd.f32 %v5094_v53, %v9575_v39  ;;  %v5659_v2 = vpop.f32.mrf.mxu1  ;;  %v6394_v53 = vor.u32 %v6393_v59, %v6390_v29  ;;  %v6556_v29 = vshrl.u32 %v7295_v21, 16  ;;  %v6559_v59 = vshll.u32 %v7295_v21, 16 }
 0x3d7   : > { %7308 = vmatmul.msk.bf16.vlgmr.msrb.gmra.mxu2 %vm325_vm1, %v6499_v0 }
 0x3d8   : > { %v5282_v47 = vadd.f32 %v5272_v40, %v5104_v7  ;;  %v6434_v40 = vunpack.c.l.b16 %v6372_v23  ;;  %v6407_v7 = vrot.slane %v6405_v46, 5  ;;  %v6395_v1 = vrot.slane %v6394_v53, 4 }
 0x3d9   : > { %7303 = vmatmul.msk.bf16.vlgmr.msrb.gmra.mxu1 %vm325_vm1, %v6439_v37  ;;  %v6397_v37 = vshll.u32 %v7290_v49, 16  ;;  %v6558_v27 = vrot.slane %v6556_v29, 4  ;;  %v6561_v46 = vrot.slane %v6559_v59, 5 }
 0x3da   : > { %v5719_v51 = vpop.f32.mrf.mxu2  ;;  %v5342_v15 = vadd.f32 %v5332_v11, %v5282_v47  ;;  %v6440_v31 = vpack.c.b16 %v6434_v40, %v6433_v25  ;;  %v6408_v41 = vor.u32 %v6407_v7, %v6404_v5 }
 0x3db   : > { %v5405_v39 = vpop.f32.mrf.mxu3  ;;  %v6399_v47 = vrot.slane %v6397_v37, 5 }
 0x3dc   : > { %v9708_v43 = vadd.f32 %v5405_v39, %v5342_v15 }
 0x3dd   : > { %v5481_v56 = vpop.f32.mrf.mxu0 }
 0x3de   : > { %v5501_v14 = vadd.f32 %v5481_v56, %v9592_v34  ;;  %v5661_v57 = vpop.f32.mrf.mxu1  ;;  %v6381_v34 = vrot.slane %v6380_v8, 4  ;;  %v6419_v56 = vshll.u32 %v9736_v42, 16  ;;  %v6258_v8 = vunpack.c.l.b16 %v9706_v55  ;;  %v7294_v55 = vld [vmem:[%s7427_s7 + $0x474] sm:$0x1] }
 0x3e0   : > { %v5679_v19 = vadd.f32 %v5659_v2, %v5501_v14  ;;  %7298 = vmatmul.msk.bf16.vlgmr.msrb.gmra.mxu0 %vm325_vm1, %v6261_v30  ;;  %7313 = vmatmul.msk.bf16.vlgmr.msrb.gmra.mxu3 %vm325_vm1, %v6572_v16  ;;  %v6386_v9 = vsel %vm7446_vm4, %v6381_v34, %v6385_v17  ;;  %v6400_v30 = vsel %vm7446_vm4, %v6395_v1, %v6399_v47  ;;  %v6416_v16 = vshrl.u32 %v9736_v42, 16 }
 0x3e1   : > { %v6435_v58 = vunpack.c.l.b16 %v6386_v9  ;;  %v6436_v10 = vunpack.c.l.b16 %v6400_v30  ;;  %v6413_v14 = vrot.slane %v6411_v13, 5  ;;  %v6421_v45 = vrot.slane %v6419_v56, 5 }
 0x3e2   : > { %v5721_v22 = vpop.f32.mrf.mxu2  ;;  %v5739_v18 = vadd.f32 %v5719_v51, %v5679_v19  ;;  %v6418_v24 = vrot.slane %v6416_v16, 4 }
 0x3e3   : > { %v5792_v35 = vpop.f32.mrf.mxu3  ;;  %v6573_v51 = vpack.c.b16 %v6435_v58, %v6434_v40  ;;  %v6501_v40 = vpack.c.b16 %v6259_v38, %v6258_v8 }
 0x3e4   : > { %v9725_v33 = vadd.f32 %v5792_v35, %v5739_v18  ;;  %v6422_v49 = vor.u32 %v6421_v45, %v6418_v24 }
 0x3e5   : > { %v5483_v11 = vpop.f32.mrf.mxu0 }
 0x3e6   : > { %v5502_v0 = vadd.f32 %v5483_v11, %v9605_v32  ;;  %v5664_v60 = vpop.f32.mrf.mxu1  ;;  %v6425_v11 = vshll.u32 %v7294_v55, 16  ;;  %v6423_v53 = vrot.slane %v6422_v49, 4 }
 0x3e7   : > { %7309 = vmatmul.msk.bf16.gmra.mxu2 %vm325_vm1, %v6500_v63 }
 0x3e8   : > { %v5680_v4 = vadd.f32 %v5661_v57, %v5502_v0  ;;  %v6427_v37 = vrot.slane %v6425_v11, 5 }
 0x3e9   : > { %7304 = vmatmul.msk.bf16.gmra.mxu1 %vm325_vm1, %v6440_v31 }
 0x3ea   : > { %v5724_v2 = vpop.f32.mrf.mxu2  ;;  %v5740_v48 = vadd.f32 %v5721_v22, %v5680_v4  ;;  %v6441_v22 = vpack.c.b16 %v6436_v10, %v6435_v58  ;;  %v7296_v4 = vld [vmem:[%s7427_s7 + $0x47c] sm:$0x1] }
 0x3eb   : > { %v5794_v25 = vpop.f32.mrf.mxu3  ;;  %v6565_v1 = vshll.u32 %v7296_v4, 16 }
 0x3ec   : > { %v9738_v32 = vadd.f32 %v5794_v25, %v5740_v48  ;;  %v6562_v48 = vor.u32 %v6561_v46, %v6558_v27  ;;  %v6428_v25 = vsel %vm7446_vm4, %v6423_v53, %v6427_v37 }
 0x3ed   : > { %v5486_v15 = vpop.f32.mrf.mxu0  ;;  %v6438_v62 = vunpack.c.l.b16 %v6428_v25 }
 0x3ee   : > { %v5503_v61 = vadd.f32 %v5486_v15, %v9624_v20  ;;  %v5666_v39 = vpop.f32.mrf.mxu1  ;;  %v6409_v20 = vrot.slane %v6408_v41, 4  ;;  %v6567_v41 = vrot.slane %v6565_v1, 5 }
 0x3f0   : > { %v5681_v12 = vadd.f32 %v5664_v60, %v5503_v61  ;;  %7299 = vmatmul.msk.bf16.gmra.mxu0 %vm325_vm1, %v6262_v50  ;;  %7314 = vmatmul.msk.bf16.gmra.mxu3 %vm325_vm1, %v6573_v51  ;;  %v6414_v18 = vsel %vm7446_vm4, %v6409_v20, %v6413_v14  ;;  %v6260_v50 = vunpack.c.l.b16 %v9736_v42  ;;  %v6498_v51 = vunpack.c.l.b16 %v7295_v21 }
 0x3f1   : > { %v6437_v9 = vunpack.c.l.b16 %v6414_v18 }
 0x3f2   : > { %v5726_v57 = vpop.f32.mrf.mxu2  ;;  %v5741_v23 = vadd.f32 %v5724_v2, %v5681_v12  ;;  %v6502_v30 = vpack.c.b16 %v6498_v51, %v6260_v50  ;;  %v6264_v24 = vpack.c.b16 %v6260_v50, %v6259_v38 }
 0x3f3   : > { %v5797_v19 = vpop.f32.mrf.mxu3  ;;  %v6574_v7 = vpack.c.b16 %v6437_v9, %v6436_v10  ;;  %v6442_v56 = vpack.c.b16 %v6438_v62, %v6437_v9 }
 0x3f4   : > { %v9755_v34 = vadd.f32 %v5797_v19, %v5741_v23 }
 0x3f5   : > { %v5488_v17 = vpop.f32.mrf.mxu0 }
 0x3f6   : > { %v5504_v35 = vadd.f32 %v5488_v17, %v9642_v3  ;;  %v5669_v63 = vpop.f32.mrf.mxu1  ;;  %v6263_v3 = vpack.c.b16 %v6258_v8, %v6257_v26  ;;  %v6563_v26 = vrot.slane %v6562_v48, 4 }
 0x3f7   : > { %7310 = vmatmul.msk.bf16.gmra.mxu2 %vm325_vm1, %v6501_v40 }
 0x3f8   : > { %v5682_v31 = vadd.f32 %v5666_v39, %v5504_v35  ;;  %v6568_v8 = vsel %vm7446_vm4, %v6563_v26, %v6567_v41 }
 0x3f9   : > { %7305 = vmatmul.msk.bf16.gmra.mxu1 %vm325_vm1, %v6441_v22  ;;  %v6571_v20 = vunpack.c.l.b16 %v6568_v8 }
 0x3fa   : > { %v5729_v0 = vpop.f32.mrf.mxu2  ;;  %v5742_v60 = vadd.f32 %v5726_v57, %v5682_v31 }
 0x3fb   : > { %v5799_v58 = vpop.f32.mrf.mxu3  ;;  %v6575_v45 = vpack.c.b16 %v6571_v20, %v6438_v62 }
 0x3fc   : > { %v9763_v5 = vadd.f32 %v5799_v58, %v5742_v60 }
 0x3fd   : > { %v5491_v2 = vpop.f32.mrf.mxu0 }
 0x3fe   : > { %v5505_v47 = vadd.f32 %v5491_v2, %v9660_v54  ;;  %v5671_v52 = vpop.f32.mrf.mxu1 }
 0x400   : > { %v5683_v15 = vadd.f32 %v5669_v63, %v5505_v47  ;;  %7300 = vmatmul.msk.bf16.gmra.mxu0 %vm325_vm1, %v6263_v3  ;;  %7315 = vmatmul.msk.bf16.gmra.mxu3 %vm325_vm1, %v6574_v7 }
 0x402   : > { %v5731_v13 = vpop.f32.mrf.mxu2  ;;  %v5743_v61 = vadd.f32 %v5729_v0, %v5683_v15 }
 0x403   : > { %v5802_v39 = vpop.f32.mrf.mxu3 }
 0x404   : > { %v5816_v54 = vadd.f32 %v5802_v39, %v5743_v61 }
 0x405   : > { %v5493_v16 = vpop.f32.mrf.mxu0 }
 0x406   : > { %v5506_v42 = vadd.f32 %v5493_v16, %v9673_v28  ;;  %v5674_v12 = vpop.f32.mrf.mxu1 }
 0x407   : > { %7311 = vmatmul.msk.bf16.gmra.mxu2 %vm325_vm1, %v6502_v30 }
 0x408   : > { %v5684_v10 = vadd.f32 %v5671_v52, %v5506_v42 }
 0x409   : > { %7306 = vmatmul.msk.bf16.gmra.mxu1 %vm325_vm1, %v6442_v56 }
 0x40a   : > { %v5734_v14 = vpop.f32.mrf.mxu2  ;;  %v5744_v57 = vadd.f32 %v5731_v13, %v5684_v10 }
 0x40b   : > { %v5804_v23 = vpop.f32.mrf.mxu3 }
 0x40c   : > { %v9778_v21 = vadd.f32 %v5804_v23, %v5744_v57 }
 0x40d   : > { %v5496_v44 = vpop.f32.mrf.mxu0 }
 0x40e   : > { %v5507_v19 = vadd.f32 %v5496_v44, %v9694_v36  ;;  %v5676_v28 = vpop.f32.mrf.mxu1 }
 0x410   : > { %v5685_v40 = vadd.f32 %v5674_v12, %v5507_v19  ;;  %7301 = vmatmul.msk.bf16.gmra.mxu0 %vm325_vm1, %v6264_v24  ;;  %7316 = vmatmul.msk.bf16.gmra.mxu3 %vm325_vm1, %v6575_v45 }
 0x412   : > { %v5736_v55 = vpop.f32.mrf.mxu2  ;;  %v5745_v17 = vadd.f32 %v5734_v14, %v5685_v40 }
 0x413   : > { %v5807_v22 = vpop.f32.mrf.mxu3 }
 0x414   : > { %v5818_v18 = vadd.f32 %v5807_v22, %v5745_v17 }
 0x415   : > { %v5498_v29 = vpop.f32.mrf.mxu0 }
 0x416   : > { %v5508_v59 = vadd.f32 %v5498_v29, %v9708_v43  ;;  %v6063_v35 = vpop.f32.mrf.mxu1 }
 0x418   : > { %v5686_v6 = vadd.f32 %v5676_v28, %v5508_v59 }
 0x41a   : > { %v6123_v38 = vpop.f32.mrf.mxu2  ;;  %v5746_v63 = vadd.f32 %v5736_v55, %v5686_v6 }
 0x41b   : > { %v5809_v49 = vpop.f32.mrf.mxu3 }
 0x41c   : > { %v9786_v11 = vadd.f32 %v5809_v49, %v5746_v63 }
 0x41d   : > { %v5885_v36 = vpop.f32.mrf.mxu0 }
 0x41e   : > { %v5905_v31 = vadd.f32 %v5885_v36, %v9725_v33  ;;  %v6065_v9 = vpop.f32.mrf.mxu1 }
 0x420   : > { %v6083_v27 = vadd.f32 %v6063_v35, %v5905_v31 }
 0x422   : > { %v6125_v46 = vpop.f32.mrf.mxu2  ;;  %v6143_v0 = vadd.f32 %v6123_v38, %v6083_v27 }
 0x423   : > { %v6196_v60 = vpop.f32.mrf.mxu3 }
 0x424   : > { %v6216_v53 = vadd.f32 %v6196_v60, %v6143_v0 }
 0x425   : > { %v5887_v37 = vpop.f32.mrf.mxu0 }
 0x426   : > { %v6068_v4 = vpop.f32.mrf.mxu1  ;;  %v5906_v19 = vadd.f32 %v5887_v37, %v9738_v32 }
 0x428   : > { %v6084_v55 = vadd.f32 %v6065_v9, %v5906_v19  ;;  %v9818_v9 = vld [vmem:[%s9856_s2] ss:$0 sm:$0xff] }
 0x42a   : > { %v6128_v58 = vpop.f32.mrf.mxu2  ;;  %v6144_v29 = vadd.f32 %v6125_v46, %v6084_v55 }
 0x42b   : > { %v6198_v43 = vpop.f32.mrf.mxu3 }
 0x42c   : > { %v6217_v38 = vadd.f32 %v6198_v43, %v6144_v29 }
 0x42d   : > { %v5890_v3 = vpop.f32.mrf.mxu0 }
 0x42e   : > { %v5907_v7 = vadd.f32 %v5890_v3, %v9755_v34  ;;  %v6070_v2 = vpop.f32.mrf.mxu1 }
 0x430   : > { %v6085_v48 = vadd.f32 %v6068_v4, %v5907_v7 }
 0x432   : > { %v9790_v1 = vpop.f32.mrf.mxu2  ;;  %v6145_v47 = vadd.f32 %v6128_v58, %v6085_v48 }
 0x433   : > { %v6201_v52 = vpop.f32.mrf.mxu3 }
 0x434   : > { %v6218_v33 = vadd.f32 %v6201_v52, %v6145_v47 }
 0x435   : > { %v5892_v25 = vpop.f32.mrf.mxu0 }
 0x436   : > { %v6073_v50 = vpop.f32.mrf.mxu1  ;;  %v5908_v32 = vadd.f32 %v5892_v25, %v9763_v5 }
 0x438   : > { %v6086_v37 = vadd.f32 %v6070_v2, %v5908_v32 }
 0x43a   : > { %v6133_v51 = vpop.f32.mrf.mxu2  ;;  %v6146_v48 = vadd.f32 %v9790_v1, %v6086_v37 }
 0x43b   : > { %v9792_v15 = vpop.f32.mrf.mxu3 }
 0x43d   : > { %v5895_v62 = vpop.f32.mrf.mxu0 }
 0x43e   : > { %v5909_v26 = vadd.f32 %v5895_v62, %v5816_v54  ;;  %v9794_v41 = vpop.f32.mrf.mxu1  ;;  %v6219_v62 = vadd.f32 %v9792_v15, %v6146_v48 }
 0x440   : > { %v6087_v13 = vadd.f32 %v6073_v50, %v5909_v26 }
 0x442   : > { %v9796_v61 = vpop.f32.mrf.mxu2  ;;  %v6147_v34 = vadd.f32 %v6133_v51, %v6087_v13 }
 0x443   : > { %v6206_v39 = vpop.f32.mrf.mxu3 }
 0x444   : > { %v9798_v30 = vadd.f32 %v6206_v39, %v6147_v34 }
 0x445   : > { %v5897_v16 = vpop.f32.mrf.mxu0 }
 0x446   : > { %v6078_v56 = vpop.f32.mrf.mxu1  ;;  %v5910_v1 = vadd.f32 %v5897_v16, %v9778_v21 }
 0x44a   : > { %v6138_v8 = vpop.f32.mrf.mxu2 }
 0x44b   : > { %v9800_v42 = vpop.f32.mrf.mxu3 }
 0x44d   : > { %v5900_v12 = vpop.f32.mrf.mxu0 }
 0x44e   : > { %v5911_v10 = vadd.f32 %v5900_v12, %v5818_v18  ;;  %v9802_v20 = vpop.f32.mrf.mxu1 }
 0x450   : > { %v6089_v14 = vadd.f32 %v6078_v56, %v5911_v10 }
 0x452   : > { %v9804_v54 = vpop.f32.mrf.mxu2  ;;  %v6149_v57 = vadd.f32 %v6138_v8, %v6089_v14  ;;  %v6088_v14 = vadd.f32 %v9794_v41, %v5910_v1 }
 0x453   : > { %v6211_v23 = vpop.f32.mrf.mxu3 }
 0x454   : > { %v9806_v24 = vadd.f32 %v6211_v23, %v6149_v57 }
 0x455   : > { %v9808_v45 = vpop.f32.mrf.mxu0 }
 0x456   : > { %v6467_v44 = vpop.f32.mrf.mxu1 }
 0x45a   : > { %v6527_v28 = vpop.f32.mrf.mxu2 }
 0x45b   : > { %v9811_v40 = vpop.f32.mrf.mxu3 }
 0x45d   : > { %v6289_v17 = vpop.f32.mrf.mxu0 }
 0x45e   : > { %v6309_v22 = vadd.f32 %v6289_v17, %v6216_v53  ;;  %v6469_v18 = vpop.f32.mrf.mxu1 }
 0x460   : > { %v6487_v59 = vadd.f32 %v6467_v44, %v6309_v22 }
 0x462   : > { %v6529_v35 = vpop.f32.mrf.mxu2  ;;  %v6547_v63 = vadd.f32 %v6527_v28, %v6487_v59  ;;  %v6148_v28 = vadd.f32 %v9796_v61, %v6088_v14 }
 0x463   : > { %v6600_v6 = vpop.f32.mrf.mxu3 }
 0x464   : > { %v6620_v27 = vadd.f32 %v6600_v6, %v6547_v63  ;;  %v6221_v29 = vadd.f32 %v9800_v42, %v6148_v28 }
 0x465   : > { %v6291_v49 = vpop.f32.mrf.mxu0 }
 0x466   : > { %v6310_v36 = vadd.f32 %v6291_v49, %v6217_v38  ;;  %v6472_v31 = vpop.f32.mrf.mxu1  ;;  %v6632_v4 = vadd.f32 %v9818_v9, %v6620_v27  ;;  %v5912_v38 = vadd.f32 %v9808_v45, %v9786_v11 }
 0x468   : > { %v6488_v0 = vadd.f32 %v6469_v18, %v6310_v36  ;;  %v6640_v47 = vmax.f32 %v6632_v4, 0.0  ;;  %v6090_v36 = vadd.f32 %v9802_v20, %v5912_v38 }
 0x46a   : > { %v6532_v60 = vpop.f32.mrf.mxu2  ;;  %v6548_v46 = vadd.f32 %v6529_v35, %v6488_v0 }
 0x46b   : > { %v6602_v53 = vpop.f32.mrf.mxu3 }
 0x46c   : > { %v6621_v58 = vadd.f32 %v6602_v53, %v6548_v46  ;;  %v6150_v53 = vadd.f32 %v9804_v54, %v6090_v36 }
 0x46d   : > { %v6294_v43 = vpop.f32.mrf.mxu0 }
 0x46e   : > { %v6633_v3 = vadd.f32 %v9818_v9, %v6621_v58  ;;  %v6311_v5 = vadd.f32 %v6294_v43, %v6218_v33  ;;  %v6474_v7 = vpop.f32.mrf.mxu1  ;;  %v6223_v43 = vadd.f32 %v9811_v40, %v6150_v53 }
 0x470   : > { %v6641_v52 = vmax.f32 %v6633_v3, 0.0  ;;  %v6489_v25 = vadd.f32 %v6472_v31, %v6311_v5 }
 0x472   : > { %v7323_v2 = vpack.c.bf16 %v6641_v52, %v6640_v47  ;;  %v6534_v50 = vpop.f32.mrf.mxu2  ;;  %v6549_v26 = vadd.f32 %v6532_v60, %v6489_v25 }
 0x473   : > { %v6605_v51 = vpop.f32.mrf.mxu3 }
 0x474   : > { %7324 = vst [vmem:[%s9827_s30] sm:$0xff] %v7323_v2   ;;  %v6622_v34 = vadd.f32 %v6605_v51, %v6549_v26 }
 0x475   : > { %v6296_v33 = vpop.f32.mrf.mxu0 }
 0x476   : > { %v6312_v13 = vadd.f32 %v6296_v33, %v6219_v62  ;;  %v6477_v56 = vpop.f32.mrf.mxu1  ;;  %v6634_v57 = vadd.f32 %v9818_v9, %v6622_v34 }
 0x478   : > { %v6490_v39 = vadd.f32 %v6474_v7, %v6312_v13  ;;  %v6642_v21 = vmax.f32 %v6634_v57, 0.0 }
 0x47a   : > { %v6550_v8 = vadd.f32 %v6534_v50, %v6490_v39  ;;  %v6537_v12 = vpop.f32.mrf.mxu2 }
 0x47b   : > { %v6607_v10 = vpop.f32.mrf.mxu3 }
 0x47c   : > { %v6623_v23 = vadd.f32 %v6607_v10, %v6550_v8 }
 0x47d   : > { %v6299_v44 = vpop.f32.mrf.mxu0 }
 0x47e   : > { %v6635_v15 = vadd.f32 %v9818_v9, %v6623_v23  ;;  %v6313_v19 = vadd.f32 %v6299_v44, %v9798_v30  ;;  %v6479_v22 = vpop.f32.mrf.mxu1 }
 0x480   : > { %v6643_v16 = vmax.f32 %v6635_v15, 0.0  ;;  %v6491_v55 = vadd.f32 %v6477_v56, %v6313_v19 }
 0x482   : > { %v7328_v17 = vpack.c.bf16 %v6643_v16, %v6642_v21  ;;  %v6551_v41 = vadd.f32 %v6537_v12, %v6491_v55  ;;  %v6539_v59 = vpop.f32.mrf.mxu2 }
 0x483   : > { %v6610_v18 = vpop.f32.mrf.mxu3 }
 0x484   : > { %7340 = vst [vmem:[%s9827_s30 + $0x8] sm:$0xff] %v7328_v17   ;;  %v6624_v63 = vadd.f32 %v6610_v18, %v6551_v41 }
 0x485   : > { %v6301_v35 = vpop.f32.mrf.mxu0 }
 0x486   : > { %v6314_v6 = vadd.f32 %v6301_v35, %v6221_v29  ;;  %v6636_v31 = vadd.f32 %v9818_v9, %v6624_v63  ;;  %v6482_v27 = vpop.f32.mrf.mxu1 }
 0x488   : > { %v6492_v30 = vadd.f32 %v6479_v22, %v6314_v6  ;;  %v6644_v11 = vmax.f32 %v6636_v31, 0.0 }
 0x48a   : > { %v6552_v49 = vadd.f32 %v6539_v59, %v6492_v30  ;;  %v6542_v46 = vpop.f32.mrf.mxu2 }
 0x48b   : > { %v6612_v61 = vpop.f32.mrf.mxu3 }
 0x48c   : > { %v6625_v32 = vadd.f32 %v6612_v61, %v6552_v49 }
 0x48d   : > { %v6304_v42 = vpop.f32.mrf.mxu0 }
 0x48e   : > { %v6637_v0 = vadd.f32 %v9818_v9, %v6625_v32  ;;  %v6315_v60 = vadd.f32 %v6304_v42, %v9806_v24  ;;  %v6484_v7 = vpop.f32.mrf.mxu1 }
 0x490   : > { %v6645_v45 = vmax.f32 %v6637_v0, 0.0  ;;  %v6493_v37 = vadd.f32 %v6482_v27, %v6315_v60 }
 0x492   : > { %v7333_v4 = vpack.c.bf16 %v6645_v45, %v6644_v11  ;;  %v6553_v20 = vadd.f32 %v6542_v46, %v6493_v37  ;;  %v6544_v52 = vpop.f32.mrf.mxu2 }
 0x493   : > { %v6615_v58 = vpop.f32.mrf.mxu3 }
 0x494   : > { %7341 = vst [vmem:[%s9827_s30 + $0x10] sm:$0xff] %v7333_v4   ;;  %v6626_v48 = vadd.f32 %v6615_v58, %v6553_v20 }
 0x495   : > { %v6306_v3 = vpop.f32.mrf.mxu0 }
 0x496   : > { %v6316_v5 = vadd.f32 %v6306_v3, %v6223_v43  ;;  %v6638_v54 = vadd.f32 %v9818_v9, %v6626_v48 }
 0x498   : > { %v6494_v47 = vadd.f32 %v6484_v7, %v6316_v5  ;;  %v6646_v51 = vmax.f32 %v6638_v54, 0.0 }
 0x49a   : > { %v6554_v24 = vadd.f32 %v6544_v52, %v6494_v47 }
 0x49b   : > { %v6617_v25 = vpop.f32.mrf.mxu3 }
 0x49c   : > { %v6627_v2 = vadd.f32 %v6617_v25, %v6554_v24 }
 0x49e   : > { %v6639_v50 = vadd.f32 %v9818_v9, %v6627_v2 }
 0x4a0   : > { %v6647_v62 = vmax.f32 %v6639_v50, 0.0 }
 0x4a2   : > { %v7338_v26 = vpack.c.bf16 %v6647_v62, %v6646_v51 }
 0x4a4   : > { %7342 = vst [vmem:[%s9827_s30 + $0x18] sm:$0xff] %v7338_v26  }
 0x4a5 PF: > { %s13_s12 = sadd.s32 1, %s7359_s12  }
 0x4a6   : > { %p10_p5 = scmp.ge.s32.totalorder %s13_s12, 4  }
 0x4a8   :  { %12 = sbr.rel (!%p10_p5) target bundleno = 1 (0x1), region = 140 }

</bundles_post_ra>
